<compile_context>
chip_gen: v6e
topology: v6e:2x2x1
jax: 0.10.0
libtpu: 0.0.40
codegen_flags: <defaults>
</compile_context>

<pallas_src>
import functools

import jax
import jax.numpy as jnp
from jax import lax
from jax.experimental import pallas as pl
from jax.experimental.pallas import tpu as pltpu

_EPS = 1e-8  # matches torch.nn.CosineSimilarity(eps=1e-8)


def _mp2v_kernel(x_ref, out_ref, *, C):
    """x_ref : VMEM [K, tb, D]  gathered rows (k=0 target, 1..C ctx, rest neg)
       out_ref: VMEM [1, tb]    per-row loss tile."""
    x = x_ref[...].astype(jnp.float32)                  # [K, tb, D]
    xt = x[0:1]                                         # [1, tb, D] target rows

    sq = jnp.sum(x * x, axis=-1)                        # [K, tb]  squared norms
    dots = jnp.sum(x * xt, axis=-1)                     # [K, tb]  <row_k, target>

    # 1 / max(||v||, eps) == rsqrt(max(||v||^2, eps^2)) (per-norm clamp, as torch)
    inv_n = lax.rsqrt(jnp.maximum(sq, _EPS * _EPS))     # [K, tb]
    cos = dots * inv_n * inv_n[0:1]                     # [K, tb]

    # k == 0        -> target itself (masked out of the sum)
    # 1 <= k < 1+C  -> positive contexts:  logsigmoid(+cos)
    # k >= 1+C      -> negative contexts:  logsigmoid(cos(-t, n)) = logsigmoid(-cos)
    k_ids = lax.broadcasted_iota(jnp.int32, cos.shape, 0)
    p = jnp.where(k_ids < 1 + C, cos, -cos)
    # numerically-stable logsigmoid: min(p, 0) - log1p(exp(-|p|))
    q = jnp.minimum(p, 0.0) - jnp.log1p(jnp.exp(-jnp.abs(p)))
    q = jnp.where(k_ids >= 1, q, 0.0)

    out_ref[...] = -jnp.sum(q, axis=0, keepdims=True)   # [1, tb] lane-dense store


def net_forward(emb_weight, x_target, x_context=None, x_neg_context=None,
                *, batch_tile=128):
    """Mirrors Net.forward. Eval mode (context is None) returns Emb(x_target)."""
    x_target = x_target.astype(jnp.int32)
    if x_context is None:
        # Eval path: plain embedding lookup (pure gather glue, no kernel needed).
        return jnp.take(emb_weight, x_target, axis=0)

    B = x_target.shape[0]
    C = x_context.shape[1]
    N = x_neg_context.shape[1]
    E, D = emb_weight.shape
    NC = N * C
    K = 1 + C + NC

    # [K, B] index matrix: row 0 = target, rows 1..C = contexts, rest = negatives.
    idx_kb = jnp.concatenate(
        [x_target[None, :],
         x_context.astype(jnp.int32).T,
         x_neg_context.reshape(B, NC).astype(jnp.int32).T],
        axis=0)

    # Batch tile = lane axis of the compute layout; multiple of 128 keeps every
    # vector stage and the output store lane-dense / unmasked.
    tb = max(128, (int(batch_tile) // 128) * 128)
    B_pad = pl.cdiv(B, tb) * tb
    if B_pad != B:
        idx_kb = jnp.pad(idx_kb, ((0, 0), (0, B_pad - B)))   # pad with row 0 (valid)

    # XLA-side gather: [K, B_pad, D].  The kernel then streams rectangular
    # tiles that Pallas double-buffers automatically.
    gathered = jnp.take(emb_weight, idx_kb, axis=0)

    block_bytes = K * tb * D * jnp.dtype(gathered.dtype).itemsize
    # input double-buffer + output + headroom; clamp so it also fits v7x (64 MiB/TC).
    vmem_limit = int(min(100 * 2**20, max(32 * 2**20, 4 * block_bytes)))

    kernel = functools.partial(_mp2v_kernel, C=C)
    out = pl.pallas_call(
        kernel,
        out_shape=jax.ShapeDtypeStruct((1, B_pad), jnp.float32),
        grid_spec=pltpu.PrefetchScalarGridSpec(
            num_scalar_prefetch=0,
            grid=(B_pad // tb,),
            in_specs=[pl.BlockSpec((K, tb, D), lambda i: (0, i, 0))],
            out_specs=pl.BlockSpec((1, tb), lambda i: (0, i)),
        ),
        compiler_params=pltpu.CompilerParams(
            dimension_semantics=("parallel",),     # batch tiles are independent
            vmem_limit_bytes=vmem_limit,
        ),
    )(gathered)
    return out[0, :B]


def ref_forward(emb_weight, x_target, x_context, x_neg_context):
    """Pure-JAX reference mirroring the PyTorch module (per-norm eps clamp)."""
    x_t = emb_weight[x_target]                                   # [B, D]
    x_c = emb_weight[x_context]                                  # [B, C, D]
    x_n = emb_weight[x_neg_context]                              # [B, N, C, D]

    def cos(a, b):
        na = jnp.maximum(jnp.linalg.norm(a, axis=-1), _EPS)
        nb = jnp.maximum(jnp.linalg.norm(b, axis=-1), _EPS)
        return jnp.sum(a * b, axis=-1) / (na * nb)

    pos_1 = jax.nn.log_sigmoid(cos(x_t[:, None, :], x_c))               # [B, C]
    neg_1 = jax.nn.log_sigmoid(cos(-x_t[:, None, None, :], x_n))        # [B, N, C]
    return -(jnp.sum(pos_1, axis=1) + jnp.sum(neg_1, axis=(1, 2)))      # [B]


if __name__ == "__main__":
    # Small but grid-exercising sizes (2 batch tiles of 128, lane-dense D).
    num_entities = 1024
    emb_dim = 128         # D
    context_size = 4      # C
    num_neg_samples = 3   # N
    batch = 256           # B

    key = jax.random.PRNGKey(0)
    k_emb, k_tgt, k_ctx, k_neg = jax.random.split(key, 4)

    # nn.init.uniform_(Emb.weight, -2.0, 2.0), deterministic
    emb_weight = jax.random.uniform(
        k_emb, (num_entities, emb_dim), dtype=jnp.float32, minval=-2.0, maxval=2.0)

    x_target = jax.random.randint(k_tgt, (batch,), 0, num_entities, dtype=jnp.int32)
    x_context = jax.random.randint(
        k_ctx, (batch, context_size), 0, num_entities, dtype=jnp.int32)
    x_neg_context = jax.random.randint(
        k_neg, (batch, num_neg_samples, context_size), 0, num_entities, dtype=jnp.int32)

    out = jax.block_until_ready(
        net_forward(emb_weight, x_target, x_context, x_neg_context, batch_tile=128))

    ref = ref_forward(emb_weight, x_target, x_context, x_neg_context)
    assert out.shape == (batch,)
    assert jnp.allclose(out, ref, atol=1e-4, rtol=1e-5), (out[:8], ref[:8])

    # eval-mode path (single input): just the embedding lookup
    eval_out = jax.block_until_ready(net_forward(emb_weight, x_target))
    assert eval_out.shape == (batch, emb_dim)

    print("KERNEL_OK")
</pallas_src>

<mosaic_0001>
module attributes {stable_mosaic.version = 11 : i64} {
  func.func @_mp2v_kernel(%arg0: i32, %arg1: memref<17x128x128xf32, #tpu.memory_space<vmem>>, %arg2: memref<1x128xf32, #tpu.memory_space<vmem>>) attributes {dimension_semantics = [#tpu.dimension_semantics<parallel>], iteration_bounds = array<i64: 2>, scalar_prefetch = 0 : i64, scratch_operands = 0 : i64, tpu.core_type = #tpu.core_type<tc>, window_params = [{transform_indices = @transform_0, window_bounds = array<i64: 17, 128, 128>}, {transform_indices = @transform_1, window_bounds = array<i64: 1, 128>}]} {
    %c0 = arith.constant 0 : index
    %c0_0 = arith.constant 0 : index
    %c0_1 = arith.constant 0 : index
    %0 = vector.load %arg1[%c0, %c0_0, %c0_1] : memref<17x128x128xf32, #tpu.memory_space<vmem>>, vector<17x128x128xf32>
    %1 = vector.extract_strided_slice %0 {offsets = [0, 0, 0], sizes = [1, 128, 128], strides = [1, 1, 1]} : vector<17x128x128xf32> to vector<1x128x128xf32>
    %2 = arith.mulf %0, %0 : vector<17x128x128xf32>
    %cst = arith.constant dense<0.000000e+00> : vector<17x128xf32>
    %3 = vector.multi_reduction <add>, %2, %cst [2] : vector<17x128x128xf32> to vector<17x128xf32>
    %4 = vector.broadcast %1 : vector<1x128x128xf32> to vector<17x128x128xf32>
    %5 = arith.mulf %0, %4 : vector<17x128x128xf32>
    %cst_2 = arith.constant dense<0.000000e+00> : vector<17x128xf32>
    %6 = vector.multi_reduction <add>, %5, %cst_2 [2] : vector<17x128x128xf32> to vector<17x128xf32>
    %cst_3 = arith.constant 1.000000e-16 : f32
    %7 = vector.broadcast %cst_3 : f32 to vector<17x128xf32>
    %8 = arith.maximumf %3, %7 : vector<17x128xf32>
    %9 = math.rsqrt %8 : vector<17x128xf32>
    %10 = arith.mulf %6, %9 : vector<17x128xf32>
    %11 = vector.extract_strided_slice %9 {offsets = [0, 0], sizes = [1, 128], strides = [1, 1]} : vector<17x128xf32> to vector<1x128xf32>
    %12 = vector.broadcast %11 : vector<1x128xf32> to vector<17x128xf32>
    %13 = arith.mulf %10, %12 : vector<17x128xf32>
    %14 = tpu.iota {dimensions = array<i32: 0>} : vector<17x128xi32>
    %c5_i32 = arith.constant 5 : i32
    %15 = vector.broadcast %c5_i32 : i32 to vector<17x128xi32>
    %16 = arith.cmpi slt, %14, %15 : vector<17x128xi32>
    %cst_4 = arith.constant 0.000000e+00 : f32
    %17 = vector.broadcast %cst_4 : f32 to vector<17x128xf32>
    %18 = arith.subf %17, %13 : vector<17x128xf32>
    %19 = arith.select %16, %13, %18 : vector<17x128xi1>, vector<17x128xf32>
    %cst_5 = arith.constant 0.000000e+00 : f32
    %20 = vector.broadcast %cst_5 : f32 to vector<17x128xf32>
    %21 = arith.minimumf %19, %20 : vector<17x128xf32>
    %22 = math.absf %19 : vector<17x128xf32>
    %cst_6 = arith.constant 0.000000e+00 : f32
    %23 = vector.broadcast %cst_6 : f32 to vector<17x128xf32>
    %24 = arith.subf %23, %22 : vector<17x128xf32>
    %25 = math.exp %24 : vector<17x128xf32>
    %26 = math.log1p %25 : vector<17x128xf32>
    %27 = arith.subf %21, %26 : vector<17x128xf32>
    %c1_i32 = arith.constant 1 : i32
    %28 = vector.broadcast %c1_i32 : i32 to vector<17x128xi32>
    %29 = arith.cmpi sge, %14, %28 : vector<17x128xi32>
    %cst_7 = arith.constant 0.000000e+00 : f32
    %30 = vector.broadcast %cst_7 : f32 to vector<17x128xf32>
    %31 = arith.select %29, %27, %30 : vector<17x128xi1>, vector<17x128xf32>
    %cst_8 = arith.constant dense<0.000000e+00> : vector<128xf32>
    %32 = vector.multi_reduction <add>, %31, %cst_8 [0] : vector<17x128xf32> to vector<128xf32>
    %33 = vector.shape_cast %32 : vector<128xf32> to vector<1x128xf32>
    %cst_9 = arith.constant 0.000000e+00 : f32
    %34 = vector.broadcast %cst_9 : f32 to vector<1x128xf32>
    %35 = arith.subf %34, %33 : vector<1x128xf32>
    %c0_10 = arith.constant 0 : index
    %c0_11 = arith.constant 0 : index
    %36 = vector.load %arg2[%c0_10, %c0_11] : memref<1x128xf32, #tpu.memory_space<vmem>>, vector<1x128xf32>
    tpu.vector_store %arg2[%c0_10, %c0_11], %35 {strides = array<i32>} : memref<1x128xf32, #tpu.memory_space<vmem>>, vector<1x128xf32>,
    return
  }
  func.func @transform_0(%arg0: i32) -> (i32, i32, i32) {
    %c0_i32 = arith.constant 0 : i32
    %c0_i32_0 = arith.constant 0 : i32
    %c0_i32_1 = arith.constant 0 : i32
    return %c0_i32, %arg0, %c0_i32_0 : i32, i32, i32
  }
  func.func @transform_1(%arg0: i32) -> (i32, i32) {
    %c0_i32 = arith.constant 0 : i32
    %c0_i32_0 = arith.constant 0 : i32
    return %c0_i32, %arg0 : i32, i32
  }
}

</mosaic_0001>

<bundles_post_ra>
// kernel: tpu_custom_call.1
= control target key start
LH: loop header
LB: loop body
LE: loop exit
PB: predicated region body
PF: predicated region fallthrough
CT: control target
= control target key end

     0   :  { %6 = vsyncpa [#allocation3], 0  ;;  %s11492_s0 = inlined_call_operand.hbm [shape: f32[17,256,128], index: 0, kind: input, shape index: {}]   ;;  %s11493_s1 = inlined_call_operand.hbm [shape: f32[1,256], index: 1, kind: output, shape index: {}]  }
   0x1   :  { %8 = vsyncpa [#allocation3 + $0x1], 0 }
   0x2   :  { %9 = vsyncpa [#allocation4], 0 }
   0x3   :  { %11 = vsyncpa [#allocation4 + $0x1], 0  ;;  %s7858_s6 = smov 0   ;;  %s7860_s7 = smov 0  }
   0x4   :  { %s7862_s8 = smov 0   ;;  %s7864_s9 = smov 0  }
   0x5 LB: > { %s7879_s10 = sadd.s32 4294967295, %s7839_s9   ;;  %s6831_s11 = sadd.s32 4294967294, %s7839_s9   ;;  %s7839_s9 = sphi %s7864_s9, %s12471_s9   ;;  %s7835_s8 = sphi %s7862_s8, %s12470_s8   ;;  %s7831_s7 = sphi %s7860_s7, %s12469_s7   ;;  %s7827_s6 = sphi %s7858_s6, %s12468_s6  }
   0x6   : > { %s7883_s12 = sadd.s32 1, %s7839_s9   ;;  %s24_s13 = sadd.s32 1, %s7835_s8 }
   0x7   : > { %s21_s14 = ssub.s32 %s7839_s9, %s7883_s12  ;;  %p31_p0 = scmp.ne.s32.totalorder %s7835_s8, %s7831_s7 }
   0x8   : > { %p22_p1 = scmp.eq.s32.totalorder %s21_s14, 0  ;;  %p32_p2 = scmp.eq.s32.totalorder %s7839_s9, 0 }
   0x9   : > { %p37_p3 = scmp.ne.s32.totalorder %s7831_s7, %s7827_s6  ;;  %p38_p4 = scmp.eq.s32.totalorder %s7879_s10, 0 }
   0xa   : > { %s7895_s15 = scalar_select %p22_p1, %s7835_s8, %s24_s13  }
   0xb   : > { %p7897_p5 = por %p32_p2, %p31_p0  ;;  %p7901_p6 = por %p38_p4, %p37_p3 }
   0xc   : > { %p61_p7 = scmp.eq.s32.totalorder %s7879_s10, 1  ;;  %p67_p8 = scmp.eq.s32.totalorder %s6831_s11, 1 }
   0xd   : > { %p11624_p11 = scmp.ge.s32.totalorder %s7839_s9, 2 }
   0xe   : > { %p7906_p9 = por %p61_p7, %p31_p0  ;;  %p7910_p10 = por %p67_p8, %p37_p3 }
   0xf   : > { %83 = sbr.rel (%p11624_p11) target bundleno = 34 (0x22), region = 16 }
  0x14   : > { %s87_s20 = sand.u32 1, %s7835_s8   ;;  %s6842_s22 = sshll.u32 %s7839_s9, 11 }
  0x15   : > { %s6843_s21 = smul.u32 2176, %s87_s20  ;;  %s7841_s23 = smov 4096  }
  0x16   : > { %6846 = sst [smem:[#allocation7]] (%p7897_p5), %s7841_s23  ;;  %s97_s27 = scalar_lea.hbm %s11492_s0, %s6842_s22 }
  0x17   : > { %s6845_s24 = scalar_select %p7897_p5, [#allocation0], [#allocation8] }
  0x18   : > { %s91_s29 = scalar_lea.vmem [#allocation2], %s6843_s21  ;;  %s7842_s2 = smov 2048  }
  0x19   : > { %s102_s28 = sld [smem:[%s6845_s24]]   ;;  %s110_s30 = sshll.u32 %s91_s29, 4  ;;  %s111_s30 = int_to_ptr.vmem [resolvable:$true] %s110_s30 }
  0x1a   : > { %6847 = sst [smem:[#allocation7 + $0x1]] (%p7897_p5), %s7842_s2  ;;  %s7843_s3 = smov 16  }
  0x1b   : > { %6848 = sst [smem:[#allocation7 + $0x2]] (%p7897_p5), %s7843_s3  ;;  %s7844_s4 = smov 128  }
  0x1c   : > { %6849 = sst [smem:[#allocation7 + $0x3]] (%p7897_p5), %s7844_s4  ;;  %s7845_s5 = smov 8  }
  0x1d   : > { %6850 = sst [smem:[#allocation7 + $0x4]] (%p7897_p5), %s7844_s4  ;;  %s88_s14 = scalar_lea.sflag [#allocation3], %s87_s20 }
  0x1e   : > { %6851 = sst [smem:[#allocation7 + $0x5]] (%p7897_p5), %s7845_s5  ;;  %s7846_s21 = smov 131072  }
  0x1f   : > { %s6836_s11 = sshll.u32 %s102_s28, 26 }
  0x20   : > { %s6837_s13 = sadd.s32 134217728, %s6836_s11 }
  0x21   : > { %6852 = dma.general (%p7897_p5), %s97_s27, 34816, %s111_s30, %s88_s14, %s7846_s21, [#allocation7], %s6837_s13, 0  }
  0x22 PF: > { %p6838_p12 = scmp.ge.s32.totalorder %s7839_s9, 1  ;;  %p131_p13 = scmp.lt.s32.totalorder %s7839_s9, 3 }
  0x24   : > { %p132_p0 = pnand %p6838_p12, %p131_p13 }
  0x26   : > { %135 = sbr.rel (%p132_p0) target bundleno = 1326 (0x52e), region = 24 }
  0x2b   : > { %s7941_s22 = sand.u32 1, %s7831_s7  }
  0x2c   : > { %s6844_s23 = smul.u32 2176, %s7941_s22  ;;  %s138_s24 = scalar_lea.sflag [#allocation3], %s7941_s22 }
  0x2e   : > { %s7945_s25 = scalar_lea.vmem [#allocation2], %s6844_s23 }
  0x2f   : > { %7818 = dma.done.wait (%p7901_p6), %s138_s24, 34816  }
  0x30   : > { %7820 = vsyncadd (%p7901_p6), %s138_s24, 4294932480  ;;  %v162_v0 = vld [vmem:[%s7945_s25 + $0x10] sm:$0xff]  ;;  %v160_v1 = vld [vmem:[%s7945_s25] sm:$0xff]  ;;  %vm3666_vm0 = vcmask 130112   ;;  %vm3673_vm1 = vcmask 195712   ;;  %vm3680_vm2 = vcmask 261312  }
  0x31   : > { %v163_v2 = vld [vmem:[%s7945_s25 + $0x18] sm:$0xff]  ;;  %v434_v3 = vmul.f32 %v162_v0, %v162_v0  ;;  %v432_v4 = vmul.f32 %v160_v1, %v160_v1  ;;  %v161_v5 = vld [vmem:[%s7945_s25 + $0x8] sm:$0xff]  ;;  %v164_v9 = vld [vmem:[%s7945_s25 + $0x20] sm:$0xff]  ;;  %vm3687_vm3 = vcmask 326912   ;;  %vm3694_vm4 = vcmask 392512   ;;  %s6839_s16 = sshll.u32 %s7879_s10, 4 }
  0x32   : > { %v435_v6 = vmul.f32 %v163_v2, %v163_v2  ;;  %v433_v7 = vmul.f32 %v161_v5, %v161_v5  ;;  %v165_v8 = vld [vmem:[%s7945_s25 + $0x28] sm:$0xff]  ;;  %v436_v11 = vmul.f32 %v164_v9, %v164_v9  ;;  %v167_v12 = vld [vmem:[%s7945_s25 + $0x38] sm:$0xff]  ;;  %v166_v13 = vld [vmem:[%s7945_s25 + $0x30] sm:$0xff]  ;;  %vm3701_vm5 = vcmask 458112   ;;  %s158_s17 = scalar_lea.vmem [#allocation5], %s7941_s22  ;;  %s6763_s28 = scalar_lea.hbm %s11493_s1, %s6839_s16 }
  0x33   : > { %708 = vadd.xlane.f32.xlu1 %v434_v3  ;;  %704 = vadd.xlane.f32.xlu0 %v432_v4  ;;  %v437_v10 = vmul.f32 %v165_v8, %v165_v8  ;;  %v439_v14 = vmul.f32 %v167_v12, %v167_v12  ;;  %v438_v15 = vmul.f32 %v166_v13, %v166_v13  ;;  %v169_v16 = vld [vmem:[%s7945_s25 + $0x48] sm:$0xff]  ;;  %v168_v17 = vld [vmem:[%s7945_s25 + $0x40] sm:$0xff]  ;;  %v171_v20 = vld [vmem:[%s7945_s25 + $0x58] sm:$0xff]  ;;  %vm3708_vm6 = vcmask 523712   ;;  %s6765_s20 = sshll.u32 %s158_s17, 4  ;;  %s6753_s29 = scalar_lea.sflag [#allocation4], %s7941_s22  ;;  %s6766_s20 = int_to_ptr.vmem [resolvable:$true] %s6765_s20 }
  0x34   : > { %v441_v18 = vmul.f32 %v169_v16, %v169_v16  ;;  %v440_v19 = vmul.f32 %v168_v17, %v168_v17  ;;  %v170_v21 = vld [vmem:[%s7945_s25 + $0x50] sm:$0xff]  ;;  %v443_v22 = vmul.f32 %v171_v20, %v171_v20  ;;  %v173_v24 = vld [vmem:[%s7945_s25 + $0x68] sm:$0xff]  ;;  %v172_v25 = vld [vmem:[%s7945_s25 + $0x60] sm:$0xff]  ;;  %vm3715_vm7 = vcmask 589312   ;;  %s7775_s30 = scalar_lea.vmem %s6766_s20, 16  ;;  %s7847_s2 = smov [#allocation5]  }
  0x35   : > { %v442_v23 = vmul.f32 %v170_v21, %v170_v21  ;;  %v445_v26 = vmul.f32 %v173_v24, %v173_v24  ;;  %v444_v27 = vmul.f32 %v172_v25, %v172_v25  ;;  %v175_v28 = vld [vmem:[%s7945_s25 + $0x78] sm:$0xff]  ;;  %v174_v29 = vld [vmem:[%s7945_s25 + $0x70] sm:$0xff]  ;;  %v177_v32 = vld [vmem:[%s7945_s25 + $0x88] sm:$0xff]  ;;  %vm3722_vm8 = vcmask 654912   ;;  %p7776_p1 = scmp.ne.s32.totalorder %s6766_s20, %s7775_s30  ;;  %s7779_s3 = sshll.u32 %s7847_s2, 4  ;;  %s7780_s3 = int_to_ptr.vmem [resolvable:$false] %s7779_s3 }
  0x36   : > { %v447_v30 = vmul.f32 %v175_v28, %v175_v28  ;;  %v446_v31 = vmul.f32 %v174_v29, %v174_v29  ;;  %v176_v33 = vld [vmem:[%s7945_s25 + $0x80] sm:$0xff]  ;;  %v449_v34 = vmul.f32 %v177_v32, %v177_v32  ;;  %v179_v36 = vld [vmem:[%s7945_s25 + $0x98] sm:$0xff]  ;;  %v178_v37 = vld [vmem:[%s7945_s25 + $0x90] sm:$0xff]  ;;  %vm3729_vm9 = vcmask 720512   ;;  %s7781_s10 = scalar_lea.vmem %s7780_s3, 32  ;;  %p7782_p4 = scmp.lt.s32.totalorder %s6766_s20, %s7780_s3 }
  0x37   : > { %710 = vadd.xlane.f32.xlu1 %v435_v6  ;;  %706 = vadd.xlane.f32.xlu0 %v433_v7  ;;  %v448_v35 = vmul.f32 %v176_v33, %v176_v33  ;;  %v451_v38 = vmul.f32 %v179_v36, %v179_v36  ;;  %v450_v39 = vmul.f32 %v178_v37, %v178_v37  ;;  %v181_v40 = vld [vmem:[%s7945_s25 + $0xa8] sm:$0xff]  ;;  %v180_v41 = vld [vmem:[%s7945_s25 + $0xa0] sm:$0xff]  ;;  %v183_v44 = vld [vmem:[%s7945_s25 + $0xb8] sm:$0xff]  ;;  %vm3736_vm10 = vcmask 786112   ;;  %p7777_p2 = pnand %p7776_p1, %p7906_p9  ;;  %p7783_p5 = scmp.lt.s32.totalorder %s7781_s10, %s7775_s30 }
  0x38   : > { %v453_v42 = vmul.f32 %v181_v40, %v181_v40  ;;  %v452_v43 = vmul.f32 %v180_v41, %v180_v41  ;;  %v182_v45 = vld [vmem:[%s7945_s25 + $0xb0] sm:$0xff]  ;;  %v455_v46 = vmul.f32 %v183_v44, %v183_v44  ;;  %v185_v48 = vld [vmem:[%s7945_s25 + $0xc8] sm:$0xff]  ;;  %v184_v49 = vld [vmem:[%s7945_s25 + $0xc0] sm:$0xff]  ;;  %vm3743_vm11 = vcmask 851712  }
  0x39   : > { %v454_v47 = vmul.f32 %v182_v45, %v182_v45  ;;  %v457_v50 = vmul.f32 %v185_v48, %v185_v48  ;;  %v456_v51 = vmul.f32 %v184_v49, %v184_v49  ;;  %v187_v52 = vld [vmem:[%s7945_s25 + $0xd8] sm:$0xff]  ;;  %v186_v53 = vld [vmem:[%s7945_s25 + $0xd0] sm:$0xff]  ;;  %v189_v56 = vld [vmem:[%s7945_s25 + $0xe8] sm:$0xff]  ;;  %vm3750_vm12 = vcmask 917312   ;;  %p7778_p3 = pneg %p7777_p2  ;;  %p7784_p6 = por %p7783_p5, %p7782_p4 }
  0x3a   : > { %v459_v54 = vmul.f32 %v187_v52, %v187_v52  ;;  %v458_v55 = vmul.f32 %v186_v53, %v186_v53  ;;  %v188_v57 = vld [vmem:[%s7945_s25 + $0xe0] sm:$0xff]  ;;  %v461_v58 = vmul.f32 %v189_v56, %v189_v56  ;;  %v191_v60 = vld [vmem:[%s7945_s25 + $0xf8] sm:$0xff]  ;;  %v190_v61 = vld [vmem:[%s7945_s25 + $0xf0] sm:$0xff]  ;;  %vm11612_vm13 = vcmask 982912  }
  0x3b   : > { %714 = vadd.xlane.f32.xlu1 %v437_v10  ;;  %712 = vadd.xlane.f32.xlu0 %v436_v11  ;;  %v460_v59 = vmul.f32 %v188_v57, %v188_v57  ;;  %v463_v62 = vmul.f32 %v191_v60, %v191_v60  ;;  %v462_v63 = vmul.f32 %v190_v61, %v190_v61  ;;  %v193_v0 = vld [vmem:[%s7945_s25 + $0x108] sm:$0xff]  ;;  %v192_v1 = vld [vmem:[%s7945_s25 + $0x100] sm:$0xff]  ;;  %v195_v4 = vld [vmem:[%s7945_s25 + $0x118] sm:$0xff]  ;;  %vm11611_vm14 = vcmask 1048512   ;;  %p7785_p7 = pnand %p7784_p6, %p7778_p3 }
  0x3c   : > { %v465_v2 = vmul.f32 %v193_v0, %v193_v0  ;;  %v464_v3 = vmul.f32 %v192_v1, %v192_v1  ;;  %v194_v5 = vld [vmem:[%s7945_s25 + $0x110] sm:$0xff]  ;;  %v467_v6 = vmul.f32 %v195_v4, %v195_v4  ;;  %v197_v8 = vld [vmem:[%s7945_s25 + $0x128] sm:$0xff]  ;;  %v196_v9 = vld [vmem:[%s7945_s25 + $0x120] sm:$0xff]  ;;  %vm11583_vm15 = vcmask 1041409  }
  0x3d   : > { %v466_v7 = vmul.f32 %v194_v5, %v194_v5  ;;  %v469_v10 = vmul.f32 %v197_v8, %v197_v8  ;;  %v468_v11 = vmul.f32 %v196_v9, %v196_v9  ;;  %v199_v12 = vld [vmem:[%s7945_s25 + $0x138] sm:$0xff]  ;;  %v198_v13 = vld [vmem:[%s7945_s25 + $0x130] sm:$0xff]  ;;  %v201_v16 = vld [vmem:[%s7945_s25 + $0x148] sm:$0xff] }
  0x3e   : > { %v200_v17 = vld [vmem:[%s7945_s25 + $0x140] sm:$0xff]  ;;  %v203_v20 = vld [vmem:[%s7945_s25 + $0x158] sm:$0xff]  ;;  %v202_v21 = vld [vmem:[%s7945_s25 + $0x150] sm:$0xff] }
  0x3f   : > { %718 = vadd.xlane.f32.xlu1 %v439_v14  ;;  %716 = vadd.xlane.f32.xlu0 %v438_v15  ;;  %v471_v14 = vmul.f32 %v199_v12, %v199_v12  ;;  %v470_v15 = vmul.f32 %v198_v13, %v198_v13  ;;  %v205_v24 = vld [vmem:[%s7945_s25 + $0x168] sm:$0xff]  ;;  %v204_v25 = vld [vmem:[%s7945_s25 + $0x160] sm:$0xff]  ;;  %v207_v28 = vld [vmem:[%s7945_s25 + $0x178] sm:$0xff]  ;;  %v3104_v12 = vlaneseq }
  0x40   : > { %v206_v29 = vld [vmem:[%s7945_s25 + $0x170] sm:$0xff]  ;;  %v209_v32 = vld [vmem:[%s7945_s25 + $0x188] sm:$0xff]  ;;  %v208_v33 = vld [vmem:[%s7945_s25 + $0x180] sm:$0xff] }
  0x41   : > { %v211_v36 = vld [vmem:[%s7945_s25 + $0x198] sm:$0xff]  ;;  %v210_v37 = vld [vmem:[%s7945_s25 + $0x190] sm:$0xff]  ;;  %v213_v40 = vld [vmem:[%s7945_s25 + $0x1a8] sm:$0xff] }
  0x42   : > { %v212_v41 = vld [vmem:[%s7945_s25 + $0x1a0] sm:$0xff]  ;;  %v215_v44 = vld [vmem:[%s7945_s25 + $0x1b8] sm:$0xff]  ;;  %v214_v45 = vld [vmem:[%s7945_s25 + $0x1b0] sm:$0xff] }
  0x43   : > { %722 = vadd.xlane.f32.xlu1 %v441_v18  ;;  %720 = vadd.xlane.f32.xlu0 %v440_v19  ;;  %v473_v18 = vmul.f32 %v201_v16, %v201_v16  ;;  %v472_v19 = vmul.f32 %v200_v17, %v200_v17  ;;  %v217_v48 = vld [vmem:[%s7945_s25 + $0x1c8] sm:$0xff]  ;;  %v216_v49 = vld [vmem:[%s7945_s25 + $0x1c0] sm:$0xff]  ;;  %v219_v52 = vld [vmem:[%s7945_s25 + $0x1d8] sm:$0xff]  ;;  %v8023_v17 = vand.u32 127, %v3104_v12 }
  0x44   : > { %v218_v53 = vld [vmem:[%s7945_s25 + $0x1d0] sm:$0xff]  ;;  %v221_v56 = vld [vmem:[%s7945_s25 + $0x1e8] sm:$0xff]  ;;  %v220_v57 = vld [vmem:[%s7945_s25 + $0x1e0] sm:$0xff] }
  0x45   : > { %v223_v60 = vld [vmem:[%s7945_s25 + $0x1f8] sm:$0xff]  ;;  %v222_v61 = vld [vmem:[%s7945_s25 + $0x1f0] sm:$0xff]  ;;  %v225_v0 = vld [vmem:[%s7945_s25 + $0x208] sm:$0xff] }
  0x46   : > { %v224_v1 = vld [vmem:[%s7945_s25 + $0x200] sm:$0xff]  ;;  %v227_v4 = vld [vmem:[%s7945_s25 + $0x218] sm:$0xff]  ;;  %v226_v5 = vld [vmem:[%s7945_s25 + $0x210] sm:$0xff] }
  0x47   : > { %726 = vadd.xlane.f32.xlu1 %v443_v22  ;;  %724 = vadd.xlane.f32.xlu0 %v442_v23  ;;  %v475_v22 = vmul.f32 %v203_v20, %v203_v20  ;;  %v474_v23 = vmul.f32 %v202_v21, %v202_v21  ;;  %v229_v8 = vld [vmem:[%s7945_s25 + $0x228] sm:$0xff]  ;;  %v228_v9 = vld [vmem:[%s7945_s25 + $0x220] sm:$0xff]  ;;  %v231_v13 = vld [vmem:[%s7945_s25 + $0x238] sm:$0xff] }
  0x48   : > { %v233_v20 = vld [vmem:[%s7945_s25 + $0x248] sm:$0xff]  ;;  %v232_v21 = vld [vmem:[%s7945_s25 + $0x240] sm:$0xff] }
  0x4b   : > { %730 = vadd.xlane.f32.xlu1 %v445_v26  ;;  %728 = vadd.xlane.f32.xlu0 %v444_v27  ;;  %v477_v26 = vmul.f32 %v205_v24, %v205_v24  ;;  %v476_v27 = vmul.f32 %v204_v25, %v204_v25  ;;  %v505_v24 = vmul.f32 %v233_v20, %v233_v20 }
  0x4c   : > { %v504_v25 = vmul.f32 %v232_v21, %v232_v21 }
  0x4f   : > { %734 = vadd.xlane.f32.xlu1 %v447_v30  ;;  %732 = vadd.xlane.f32.xlu0 %v446_v31  ;;  %v479_v30 = vmul.f32 %v207_v28, %v207_v28  ;;  %v478_v31 = vmul.f32 %v206_v29, %v206_v29 }
  0x53   : > { %738 = vadd.xlane.f32.xlu1 %v449_v34  ;;  %736 = vadd.xlane.f32.xlu0 %v448_v35  ;;  %v481_v34 = vmul.f32 %v209_v32, %v209_v32  ;;  %v480_v35 = vmul.f32 %v208_v33, %v208_v33  ;;  %v3675_v32 = vadd.s32 4294967272, %v8023_v17 }
  0x57   : > { %742 = vadd.xlane.f32.xlu1 %v451_v38  ;;  %740 = vadd.xlane.f32.xlu0 %v450_v39  ;;  %v483_v38 = vmul.f32 %v211_v36, %v211_v36  ;;  %v482_v39 = vmul.f32 %v210_v37, %v210_v37  ;;  %v3689_v36 = vadd.s32 4294967256, %v8023_v17  ;;  %v3682_v37 = vadd.s32 4294967264, %v8023_v17 }
  0x5b   : > { %746 = vadd.xlane.f32.xlu1 %v453_v42  ;;  %744 = vadd.xlane.f32.xlu0 %v452_v43  ;;  %v485_v42 = vmul.f32 %v213_v40, %v213_v40  ;;  %v484_v43 = vmul.f32 %v212_v41, %v212_v41  ;;  %v237_v40 = vld [vmem:[%s7945_s25 + $0x268] sm:$0xff]  ;;  %v236_v41 = vld [vmem:[%s7945_s25 + $0x260] sm:$0xff] }
  0x5f   : > { %750 = vadd.xlane.f32.xlu1 %v455_v46  ;;  %748 = vadd.xlane.f32.xlu0 %v454_v47  ;;  %v487_v46 = vmul.f32 %v215_v44, %v215_v44  ;;  %v486_v47 = vmul.f32 %v214_v45, %v214_v45 }
  0x63   : > { %754 = vadd.xlane.f32.xlu1 %v457_v50  ;;  %752 = vadd.xlane.f32.xlu0 %v456_v51  ;;  %v489_v50 = vmul.f32 %v217_v48, %v217_v48  ;;  %v488_v51 = vmul.f32 %v216_v49, %v216_v49  ;;  %v239_v49 = vld [vmem:[%s7945_s25 + $0x278] sm:$0xff] }
  0x67   : > { %758 = vadd.xlane.f32.xlu1 %v459_v54  ;;  %756 = vadd.xlane.f32.xlu0 %v458_v55  ;;  %v491_v54 = vmul.f32 %v219_v52, %v219_v52  ;;  %v490_v55 = vmul.f32 %v218_v53, %v218_v53  ;;  %v509_v52 = vmul.f32 %v237_v40, %v237_v40  ;;  %v249_v40 = vld [vmem:[%s7945_s25 + $0x2c8] sm:$0xff] }
  0x68   : > { %v508_v53 = vmul.f32 %v236_v41, %v236_v41 }
  0x6b   : > { %762 = vadd.xlane.f32.xlu1 %v461_v58  ;;  %760 = vadd.xlane.f32.xlu0 %v460_v59  ;;  %v493_v58 = vmul.f32 %v221_v56, %v221_v56  ;;  %v492_v59 = vmul.f32 %v220_v57, %v220_v57  ;;  %v3703_v57 = vadd.s32 4294967240, %v8023_v17 }
  0x6f   : > { %766 = vadd.xlane.f32.xlu1 %v463_v62  ;;  %764 = vadd.xlane.f32.xlu0 %v462_v63  ;;  %v495_v62 = vmul.f32 %v223_v60, %v223_v60  ;;  %v494_v63 = vmul.f32 %v222_v61, %v222_v61  ;;  %v243_v60 = vld [vmem:[%s7945_s25 + $0x298] sm:$0xff]  ;;  %v242_v61 = vld [vmem:[%s7945_s25 + $0x290] sm:$0xff] }
  0x73   : > { %770 = vadd.xlane.f32.xlu1 %v465_v2  ;;  %768 = vadd.xlane.f32.xlu0 %v464_v3  ;;  %v497_v2 = vmul.f32 %v225_v0, %v225_v0  ;;  %v496_v3 = vmul.f32 %v224_v1, %v224_v1  ;;  %v3717_v0 = vadd.s32 4294967224, %v8023_v17  ;;  %v3710_v1 = vadd.s32 4294967232, %v8023_v17 }
  0x77   : > { %774 = vadd.xlane.f32.xlu1 %v467_v6  ;;  %772 = vadd.xlane.f32.xlu0 %v466_v7  ;;  %v499_v6 = vmul.f32 %v227_v4, %v227_v4  ;;  %v498_v7 = vmul.f32 %v226_v5, %v226_v5 }
  0x7b   : > { %778 = vadd.xlane.f32.xlu1 %v469_v10  ;;  %776 = vadd.xlane.f32.xlu0 %v468_v11  ;;  %v501_v10 = vmul.f32 %v229_v8, %v229_v8  ;;  %v500_v11 = vmul.f32 %v228_v9, %v228_v9  ;;  %v8092_v9 = vmul.f32 %v243_v60, %v243_v60 }
  0x7f   : > { %782 = vadd.xlane.f32.xlu1 %v471_v14  ;;  %780 = vadd.xlane.f32.xlu0 %v470_v15  ;;  %v230_v14 = vld [vmem:[%s7945_s25 + $0x230] sm:$0xff]  ;;  %v503_v15 = vmul.f32 %v231_v13, %v231_v13  ;;  %v3724_v13 = vadd.s32 4294967216, %v8023_v17 }
  0x80   : > { %v502_v16 = vmul.f32 %v230_v14, %v230_v14  ;;  %v245_v14 = vld [vmem:[%s7945_s25 + $0x2a8] sm:$0xff] }
  0x83   : > { %786 = vadd.xlane.f32.xlu1 %v473_v18  ;;  %784 = vadd.xlane.f32.xlu0 %v472_v19 }
  0x87   : > { %790 = vadd.xlane.f32.xlu1 %v475_v22  ;;  %788 = vadd.xlane.f32.xlu0 %v474_v23 }
  0x8b   : > { %794 = vadd.xlane.f32.xlu1 %v477_v26  ;;  %792 = vadd.xlane.f32.xlu0 %v476_v27  ;;  %v8033_v26 = vshrl.u32 %v3104_v12, 7  ;;  %v3668_v27 = vadd.s32 4294967280, %v8023_v17 }
  0x8d   : > { %11629 = vst [vmem:[#allocation11_spill] sm:$0xff] %v8033_v26  ;;  %v8059_v45 = vsub.s32 %v8023_v17, %v8033_v26  ;;  %v8076_v56 = vsub.s32 %v3682_v37, %v8033_v26  ;;  %v8108_v20 = vsub.s32 %v3717_v0, %v8033_v26  ;;  %v8132_v37 = vmul.f32 %v245_v14, %v245_v14 }
  0x8f   : > { %798 = vadd.xlane.f32.xlu1 %v479_v30  ;;  %796 = vadd.xlane.f32.xlu0 %v478_v31  ;;  %v235_v30 = vld [vmem:[%s7945_s25 + $0x258] sm:$0xff]  ;;  %v234_v31 = vld [vmem:[%s7945_s25 + $0x250] sm:$0xff]  ;;  %11631 = vst [vmem:[#allocation13_spill] sm:$0xff] %v8059_v45  ;;  %11635 = vst [vmem:[#allocation17_spill] sm:$0xff] %v8076_v56 }
  0x90   : > { %11639 = vst [vmem:[#allocation21_spill] sm:$0xff] %v8108_v20 }
  0x93   : > { %802 = vadd.xlane.f32.xlu1 %v481_v34  ;;  %800 = vadd.xlane.f32.xlu0 %v480_v35  ;;  %v3661_v35 = vadd.s32 4294967288, %v8023_v17 }
  0x97   : > { %806 = vadd.xlane.f32.xlu1 %v483_v38  ;;  %804 = vadd.xlane.f32.xlu0 %v482_v39  ;;  %v507_v38 = vmul.f32 %v235_v30, %v235_v30  ;;  %v506_v39 = vmul.f32 %v234_v31, %v234_v31 }
  0x9b   : > { %810 = vadd.xlane.f32.xlu1 %v485_v42  ;;  %808 = vadd.xlane.f32.xlu0 %v484_v43  ;;  %v8051_v42 = vsub.s32 %v3668_v27, %v8033_v26 }
  0x9d   : > { %11630 = vst [vmem:[#allocation12_spill] sm:$0xff] %v8051_v42 }
  0x9f   : > { %814 = vadd.xlane.f32.xlu1 %v487_v46  ;;  %812 = vadd.xlane.f32.xlu0 %v486_v47  ;;  %v8062_v46 = vsub.s32 %v3675_v32, %v8033_v26 }
  0xa1   : > { %11632 = vst [vmem:[#allocation14_spill] sm:$0xff] %v8062_v46 }
  0xa3   : > { %818 = vadd.xlane.f32.xlu1 %v489_v50  ;;  %816 = vadd.xlane.f32.xlu0 %v488_v51  ;;  %v8068_v50 = vsub.s32 %v3661_v35, %v8033_v26  ;;  %v8071_v51 = vsub.s32 %v3689_v36, %v8033_v26 }
  0xa5   : > { %11633 = vst [vmem:[#allocation15_spill] sm:$0xff] %v8068_v50  ;;  %11634 = vst [vmem:[#allocation16_spill] sm:$0xff] %v8071_v51 }
  0xa7   : > { %822 = vadd.xlane.f32.xlu1 %v491_v54  ;;  %820 = vadd.xlane.f32.xlu0 %v490_v55  ;;  %v238_v54 = vld [vmem:[%s7945_s25 + $0x270] sm:$0xff]  ;;  %v241_v55 = vld [vmem:[%s7945_s25 + $0x288] sm:$0xff] }
  0xa8   : > { %v510_v5 = vmul.f32 %v238_v54, %v238_v54  ;;  %v248_v54 = vld [vmem:[%s7945_s25 + $0x2c0] sm:$0xff] }
  0xab   : > { %826 = vadd.xlane.f32.xlu1 %v493_v58  ;;  %824 = vadd.xlane.f32.xlu0 %v492_v59  ;;  %v3696_v58 = vadd.s32 4294967248, %v8023_v17  ;;  %v240_v59 = vld [vmem:[%s7945_s25 + $0x280] sm:$0xff] }
  0xac   : > { %v512_v8 = vmul.f32 %v240_v59, %v240_v59 }
  0xad   : > { %v8100_v12 = vsub.s32 %v3696_v58, %v8033_v26 }
  0xaf   : > { %830 = vadd.xlane.f32.xlu1 %v495_v62  ;;  %828 = vadd.xlane.f32.xlu0 %v494_v63  ;;  %11637 = vst [vmem:[#allocation19_spill] sm:$0xff] %v8100_v12 }
  0xb3   : > { %834 = vadd.xlane.f32.xlu1 %v497_v2  ;;  %832 = vadd.xlane.f32.xlu0 %v496_v3  ;;  %v511_v2 = vmul.f32 %v239_v49, %v239_v49 }
  0xb7   : > { %838 = vadd.xlane.f32.xlu1 %v499_v6  ;;  %836 = vadd.xlane.f32.xlu0 %v498_v7  ;;  %v513_v6 = vmul.f32 %v241_v55, %v241_v55  ;;  %v3731_v7 = vadd.s32 4294967208, %v8023_v17 }
  0xb9   : > { %v8130_v36 = vsub.s32 %v3731_v7, %v8033_v26 }
  0xbb   : > { %842 = vadd.xlane.f32.xlu1 %v501_v10  ;;  %840 = vadd.xlane.f32.xlu0 %v500_v11  ;;  %v8094_v10 = vmul.f32 %v242_v61, %v242_v61  ;;  %v8097_v11 = vsub.s32 %v3703_v57, %v8033_v26  ;;  %11642 = vst [vmem:[#allocation24_spill] sm:$0xff] %v8130_v36 }
  0xbc   : > { %v8025_v18 = vpop.xlane.xlu1 %708  ;;  %v8027_v19 = vpop.xlane.xlu0 %704 }
  0xbd   : > { %v2018_v22 = vmax.f32 %v8025_v18, 1e-16  ;;  %v2016_v23 = vmax.f32 %v8027_v19, 1e-16  ;;  %11636 = vst [vmem:[#allocation18_spill] sm:$0xff] %v8097_v11 }
  0xbf   : > { %6899 = vrsqrt.f32 %v2018_v22  ;;  %846 = vadd.xlane.f32.xlu1 %v503_v15  ;;  %844 = vadd.xlane.f32.xlu0 %v502_v16  ;;  %v244_v15 = vld [vmem:[%s7945_s25 + $0x2a0] sm:$0xff]  ;;  %v8113_v22 = vsub.s32 %v3710_v1, %v8033_v26 }
  0xc0   : > { %6901 = vrsqrt.f32 %v2016_v23  ;;  %v8036_v28 = vpop.xlane.xlu1 %710  ;;  %v8038_v29 = vpop.xlane.xlu0 %706 }
  0xc1   : > { %v2019_v33 = vmax.f32 %v8036_v28, 1e-16  ;;  %v2017_v34 = vmax.f32 %v8038_v29, 1e-16  ;;  %11640 = vst [vmem:[#allocation22_spill] sm:$0xff] %v8113_v22 }
  0xc3   : > { %6903 = vrsqrt.f32 %v2019_v33  ;;  %850 = vadd.xlane.f32.xlu1 %v505_v24  ;;  %848 = vadd.xlane.f32.xlu0 %v504_v25  ;;  %v3745_v24 = vadd.s32 4294967192, %v8023_v17  ;;  %v247_v25 = vld [vmem:[%s7945_s25 + $0x2b8] sm:$0xff]  ;;  %v3738_v33 = vadd.s32 4294967200, %v8023_v17 }
  0xc4   : > { %6905 = vrsqrt.f32 %v2017_v34  ;;  %v8053_v43 = vpop.xlane.xlu1 %714  ;;  %v8055_v44 = vpop.xlane.xlu0 %712  ;;  %v246_v34 = vld [vmem:[%s7945_s25 + $0x2b0] sm:$0xff] }
  0xc5   : > { %v2021_v47 = vmax.f32 %v8053_v43, 1e-16  ;;  %v2020_v48 = vmax.f32 %v8055_v44, 1e-16  ;;  %v8165_v60 = vsub.s32 %v3738_v33, %v8033_v26 }
  0xc7   : > { %6907 = vrsqrt.f32 %v2021_v47  ;;  %854 = vadd.xlane.f32.xlu1 %v507_v38  ;;  %852 = vadd.xlane.f32.xlu0 %v506_v39  ;;  %v8134_v38 = vmul.f32 %v244_v15, %v244_v15  ;;  %v8140_v39 = vsub.s32 %v3724_v13, %v8033_v26  ;;  %11647 = vst [vmem:[#allocation29_spill] sm:$0xff] %v8165_v60 }
  0xc8   : > { %6909 = vrsqrt.f32 %v2020_v48  ;;  %v8083_v62 = vpop.xlane.xlu1 %718  ;;  %v8085_v63 = vpop.xlane.xlu0 %716 }
  0xc9   : > { %v2023_v3 = vmax.f32 %v8083_v62, 1e-16  ;;  %v2022_v4 = vmax.f32 %v8085_v63, 1e-16  ;;  %11643 = vst [vmem:[#allocation25_spill] sm:$0xff] %v8140_v39 }
  0xcb   : > { %6911 = vrsqrt.f32 %v2023_v3  ;;  %858 = vadd.xlane.f32.xlu1 %v509_v52  ;;  %856 = vadd.xlane.f32.xlu0 %v508_v53  ;;  %v8153_v52 = vsub.s32 %v3745_v24, %v8033_v26  ;;  %v8155_v53 = vmul.f32 %v246_v34, %v246_v34 }
  0xcc   : > { %v8105_v16 = vpop.eup %6899  ;;  %6913 = vrsqrt.f32 %v2022_v4  ;;  %v8110_v21 = vpop.xlane.xlu1 %722  ;;  %v8175_v4 = vmul.f32 %v248_v54, %v248_v54 }
  0xcd   : > { %11638 = vst [vmem:[#allocation20_spill] sm:$0xff] %v8105_v16  ;;  %v8115_v23 = vpop.xlane.xlu0 %720  ;;  %v8119_v27 = vpop.eup %6901  ;;  %v2562_v30 = vmul.f32 %v8105_v16, %v8025_v18  ;;  %v2025_v31 = vmax.f32 %v8110_v21, 1e-16  ;;  %11645 = vst [vmem:[#allocation27_spill] sm:$0xff] %v8153_v52 }
  0xce   : > { %11641 = vst [vmem:[#allocation23_spill] sm:$0xff] %v8119_v27  ;;  %v2024_v32 = vmax.f32 %v8115_v23, 1e-16  ;;  %v2560_v35 = vmul.f32 %v8119_v27, %v8027_v19  ;;  %v8142_v19 = vmul.f32 %v247_v25, %v247_v25 }
  0xcf   : > { %v8137_v18 = vmul.f32 %v8105_v16, %v2562_v30  ;;  %6915 = vrsqrt.f32 %v2025_v31  ;;  %862 = vadd.xlane.f32.xlu1 %v511_v2  ;;  %860 = vadd.xlane.f32.xlu0 %v510_v5  ;;  %v8170_v2 = vmul.f32 %v249_v40, %v249_v40 }
  0xd0   : > { %v8145_v41 = vpop.eup %6903  ;;  %v2832_v47 = vmul.f32 %v8119_v27, %v2560_v35  ;;  %6917 = vrsqrt.f32 %v2024_v32  ;;  %v8148_v48 = vpop.xlane.xlu1 %726 }
  0xd1   : > { %11644 = vst [vmem:[#allocation26_spill] sm:$0xff] %v8145_v41  ;;  %v8150_v49 = vpop.xlane.xlu0 %724  ;;  %v8158_v55 = vpop.eup %6905  ;;  %v3113_v57 = vsub.f32 0.0, %v8137_v18  ;;  %v2563_v58 = vmul.f32 %v8145_v41, %v8036_v28  ;;  %v2027_v59 = vmax.f32 %v8148_v48, 1e-16  ;;  %v3672_v3 = vrot.slane %v8137_v18, %v8051_v42 }
  0xd2   : > { %11646 = vst [vmem:[#allocation28_spill] sm:$0xff] %v8158_v55  ;;  %v3111_v61 = vsub.f32 0.0, %v2832_v47  ;;  %v2561_v0 = vmul.f32 %v8158_v55, %v8038_v29  ;;  %v2026_v1 = vmax.f32 %v8150_v49, 1e-16  ;;  %v3660_v29 = vrot.slane %v2832_v47, %v8059_v45 }
  0xd3   : > { %v2835_v28 = vmul.f32 %v8145_v41, %v2563_v58  ;;  %6919 = vrsqrt.f32 %v2027_v59  ;;  %866 = vadd.xlane.f32.xlu1 %v513_v6  ;;  %864 = vadd.xlane.f32.xlu0 %v512_v8  ;;  %v5338_v7 = vrot.slane %v3113_v57, %v8051_v42 }
  0xd4   : > { %v8177_v5 = vpop.eup %6907  ;;  %v2833_v13 = vmul.f32 %v8158_v55, %v2561_v0  ;;  %6921 = vrsqrt.f32 %v2026_v1  ;;  %v8182_v14 = vpop.xlane.xlu1 %730  ;;  %v5329_v6 = vrot.slane %v3111_v61, %v8059_v45 }
  0xd5   : > { %11648 = vst [vmem:[#allocation30_spill] sm:$0xff] %v8177_v5  ;;  %v8184_v15 = vpop.xlane.xlu0 %728  ;;  %v8186_v24 = vpop.eup %6909  ;;  %v3114_v8 = vsub.f32 0.0, %v2835_v28  ;;  %v2565_v25 = vmul.f32 %v8177_v5, %v8053_v43  ;;  %v2029_v30 = vmax.f32 %v8182_v14, 1e-16  ;;  %v3679_v35 = vrot.slane %v2835_v28, %v8062_v46 }
  0xd6   : > { %11649 = vst [vmem:[#allocation31_spill] sm:$0xff] %v8186_v24  ;;  %v3112_v31 = vsub.f32 0.0, %v2833_v13  ;;  %v3665_v32 = vrot.slane %v2833_v13, %v8068_v50  ;;  %v2564_v33 = vmul.f32 %v8186_v24, %v8055_v44  ;;  %v2028_v34 = vmax.f32 %v8184_v15, 1e-16 }
  0xd7   : > { %v5343_v18 = vrot.slane %v3114_v8, %v8062_v46  ;;  %v2837_v40 = vmul.f32 %v8177_v5, %v2565_v25  ;;  %6923 = vrsqrt.f32 %v2029_v30  ;;  %870 = vadd.xlane.f32.xlu1 %v8092_v9  ;;  %868 = vadd.xlane.f32.xlu0 %v8094_v10 }
  0xd8   : > { %v8201_v43 = vpop.eup %6911  ;;  %v3667_v47 = vsel %vm3666_vm0, %v3665_v32, %v3660_v29  ;;  %v5333_v44 = vrot.slane %v3112_v31, %v8068_v50  ;;  %v2836_v54 = vmul.f32 %v8186_v24, %v2564_v33  ;;  %6925 = vrsqrt.f32 %v2028_v34  ;;  %v8206_v57 = vpop.xlane.xlu1 %734 }
  0xd9   : > { %11650 = vst [vmem:[#allocation32_spill] sm:$0xff] %v8201_v43  ;;  %v8208_v58 = vpop.xlane.xlu0 %732  ;;  %v8210_v59 = vpop.eup %6913  ;;  %v3674_v61 = vsel %vm3673_vm1, %v3672_v3, %v3667_v47  ;;  %v3116_v9 = vsub.f32 0.0, %v2837_v40  ;;  %v3693_v10 = vrot.slane %v2837_v40, %v8071_v51  ;;  %v2567_v0 = vmul.f32 %v8201_v43, %v8083_v62 }
  0xda   : > { %11651 = vst [vmem:[#allocation33_spill] sm:$0xff] %v8210_v59  ;;  %v5334_v1 = vsel %vm3666_vm0, %v5333_v44, %v5329_v6  ;;  %v3681_v28 = vsel %vm3680_vm2, %v3679_v35, %v3674_v61  ;;  %v3115_v29 = vsub.f32 0.0, %v2836_v54  ;;  %v3686_v13 = vrot.slane %v2836_v54, %v8076_v56  ;;  %v250_v61 = vld [vmem:[%s7945_s25 + $0x2d0] sm:$0xff] }
  0xdb   : > { %v5339_v8 = vsel %vm3673_vm1, %v5338_v7, %v5334_v1  ;;  %v5353_v25 = vrot.slane %v3116_v9, %v8071_v51  ;;  %v2839_v3 = vmul.f32 %v8201_v43, %v2567_v0  ;;  %v2566_v30 = vmul.f32 %v8210_v59, %v8085_v63  ;;  %874 = vadd.xlane.f32.xlu1 %v8132_v37  ;;  %v251_v63 = vld [vmem:[%s7945_s25 + $0x2d8] sm:$0xff] }
  0xdc   : > { %v8225_v62 = vpop.eup %6915  ;;  %v5344_v6 = vsel %vm3680_vm2, %v5343_v18, %v5339_v8  ;;  %v3688_v31 = vsel %vm3687_vm3, %v3686_v13, %v3681_v28  ;;  %v5348_v32 = vrot.slane %v3115_v29, %v8076_v56  ;;  %v2031_v7 = vmax.f32 %v8206_v57, 1e-16  ;;  %872 = vadd.xlane.f32.xlu0 %v8134_v38  ;;  %v8232_v33 = vpop.xlane.xlu1 %738 }
  0xdd   : > { %11652 = vst [vmem:[#allocation34_spill] sm:$0xff] %v8225_v62  ;;  %v8234_v34 = vpop.xlane.xlu0 %736  ;;  %v8237_v35 = vpop.eup %6917  ;;  %v3118_v37 = vsub.f32 0.0, %v2839_v3  ;;  %v3707_v40 = vrot.slane %v2839_v3, %v8097_v11  ;;  %v3695_v18 = vsel %vm3694_vm4, %v3693_v10, %v3688_v31  ;;  %v2838_v47 = vmul.f32 %v8210_v59, %v2566_v30 }
  0xde   : > { %11653 = vst [vmem:[#allocation35_spill] sm:$0xff] %v8237_v35  ;;  %v5349_v44 = vsel %vm3687_vm3, %v5348_v32, %v5344_v6  ;;  %v2569_v54 = vmul.f32 %v8225_v62, %v8110_v21  ;;  %v2568_v38 = vmul.f32 %v8237_v35, %v8115_v23  ;;  %6927 = vrsqrt.f32 %v2031_v7 }
  0xdf   : > { %v5354_v9 = vsel %vm3694_vm4, %v5353_v25, %v5349_v44  ;;  %v3117_v0 = vsub.f32 0.0, %v2838_v47  ;;  %v3700_v1 = vrot.slane %v2838_v47, %v8100_v12  ;;  %878 = vadd.xlane.f32.xlu1 %v8142_v19  ;;  %v523_v10 = vmul.f32 %v251_v63, %v251_v63 }
  0xe0   : > { %v8251_v28 = vpop.eup %6919  ;;  %v5363_v29 = vrot.slane %v3118_v37, %v8097_v11  ;;  %v2841_v21 = vmul.f32 %v8225_v62, %v2569_v54  ;;  %v2840_v23 = vmul.f32 %v8237_v35, %v2568_v38  ;;  %v2030_v13 = vmax.f32 %v8208_v58, 1e-16  ;;  %876 = vadd.xlane.f32.xlu0 %v8155_v53  ;;  %v8258_v8 = vpop.xlane.xlu1 %742 }
  0xe1   : > { %11654 = vst [vmem:[#allocation36_spill] sm:$0xff] %v8251_v28  ;;  %v8260_v25 = vpop.xlane.xlu0 %740  ;;  %v8262_v3 = vpop.eup %6921  ;;  %v3702_v19 = vsel %vm3701_vm5, %v3700_v1, %v3695_v18  ;;  %v5358_v30 = vrot.slane %v3117_v0, %v8100_v12  ;;  %v2571_v6 = vmul.f32 %v8251_v28, %v8148_v48  ;;  %v522_v31 = vmul.f32 %v250_v61, %v250_v61  ;;  %v253_v0 = vld [vmem:[%s7945_s25 + $0x2e8] sm:$0xff] }
  0xe2   : > { %11655 = vst [vmem:[#allocation37_spill] sm:$0xff] %v8262_v3  ;;  %v3120_v32 = vsub.f32 0.0, %v2841_v21  ;;  %v3721_v7 = vrot.slane %v2841_v21, %v8108_v20  ;;  %v3709_v53 = vsel %vm3708_vm6, %v3707_v40, %v3702_v19  ;;  %v3119_v63 = vsub.f32 0.0, %v2840_v23 }
  0xe3   : > { %v5359_v37 = vsel %vm3701_vm5, %v5358_v30, %v5354_v9  ;;  %v3714_v47 = vrot.slane %v2840_v23, %v8113_v22  ;;  %v2843_v44 = vmul.f32 %v8251_v28, %v2571_v6  ;;  %v2570_v18 = vmul.f32 %v8262_v3, %v8150_v49  ;;  %882 = vadd.xlane.f32.xlu1 %v8170_v2 }
  0xe4   : > { %v8276_v48 = vpop.eup %6923  ;;  %v5373_v54 = vrot.slane %v3120_v32, %v8108_v20  ;;  %v5364_v38 = vsel %vm3708_vm6, %v5363_v29, %v5359_v37  ;;  %v5368_v40 = vrot.slane %v3119_v63, %v8113_v22  ;;  %6929 = vrsqrt.f32 %v2030_v13  ;;  %880 = vadd.xlane.f32.xlu0 %v8175_v4  ;;  %v8282_v61 = vpop.xlane.xlu1 %746  ;;  %v252_v29 = vld [vmem:[%s7945_s25 + $0x2e0] sm:$0xff] }
  0xe5   : > { %11656 = vst [vmem:[#allocation38_spill] sm:$0xff] %v8276_v48  ;;  %v8284_v9 = vpop.xlane.xlu0 %744  ;;  %v8287_v49 = vpop.eup %6925  ;;  %v3716_v2 = vsel %vm3715_vm7, %v3714_v47, %v3709_v53  ;;  %v3122_v1 = vsub.f32 0.0, %v2843_v44  ;;  %v3735_v21 = vrot.slane %v2843_v44, %v8130_v36  ;;  %v2842_v23 = vmul.f32 %v8262_v3, %v2570_v18 }
  0xe6   : > { %11657 = vst [vmem:[#allocation39_spill] sm:$0xff] %v8287_v49  ;;  %v5369_v19 = vsel %vm3715_vm7, %v5368_v40, %v5364_v38  ;;  %v3723_v4 = vsel %vm3722_vm8, %v3721_v7, %v3716_v2  ;;  %v2573_v13 = vmul.f32 %v8276_v48, %v8182_v14  ;;  %v2572_v30 = vmul.f32 %v8287_v49, %v8184_v15  ;;  %v255_v15 = vld [vmem:[%s7945_s25 + $0x2f8] sm:$0xff]  ;;  %v254_v38 = vld [vmem:[%s7945_s25 + $0x2f0] sm:$0xff] }
  0xe7   : > { %v5374_v6 = vsel %vm3722_vm8, %v5373_v54, %v5369_v19  ;;  %v3121_v32 = vsub.f32 0.0, %v2842_v23  ;;  %v3728_v53 = vrot.slane %v2842_v23, %v8140_v39  ;;  %886 = vadd.xlane.f32.xlu1 %v523_v10  ;;  %v525_v63 = vmul.f32 %v253_v0, %v253_v0 }
  0xe8   : > { %v5383_v37 = vrot.slane %v3122_v1, %v8130_v36  ;;  %v2845_v47 = vmul.f32 %v8276_v48, %v2573_v13  ;;  %v2844_v7 = vmul.f32 %v8287_v49, %v2572_v30  ;;  %884 = vadd.xlane.f32.xlu0 %v522_v31  ;;  %v8304_v44 = vpop.xlane.xlu1 %750  ;;  %v524_v18 = vmul.f32 %v252_v29, %v252_v29 }
  0xe9   : > { %v8306_v14 = vpop.xlane.xlu0 %748  ;;  %v3730_v54 = vsel %vm3729_vm9, %v3728_v53, %v3723_v4  ;;  %v5378_v40 = vrot.slane %v3121_v32, %v8140_v39  ;;  %v527_v19 = vmul.f32 %v255_v15, %v255_v15  ;;  %v526_v4 = vmul.f32 %v254_v38, %v254_v38  ;;  %v256_v15 = vld [vmem:[%s7945_s25 + $0x300] sm:$0xff] }
  0xea   : > { %v3124_v10 = vsub.f32 0.0, %v2845_v47  ;;  %v3749_v0 = vrot.slane %v2845_v47, %v8153_v52  ;;  %v3737_v2 = vsel %vm3736_vm10, %v3735_v21, %v3730_v54  ;;  %v3123_v31 = vsub.f32 0.0, %v2844_v7 }
  0xeb   : > { %v8314_v1 = vpop.eup %6927  ;;  %v5379_v23 = vsel %vm3729_vm9, %v5378_v40, %v5374_v6  ;;  %v3742_v29 = vrot.slane %v2844_v7, %v8165_v60  ;;  %890 = vadd.xlane.f32.xlu1 %v525_v63  ;;  %v257_v6 = vld [vmem:[%s7945_s25 + $0x308] sm:$0xff]  ;;  %v3759_v7 = vadd.s32 4294967176, %v8023_v17  ;;  %v3752_v54 = vadd.s32 4294967184, %v8023_v17  ;;  %v258_v17 = vld [vmem:[%s7945_s25 + $0x310] sm:$0xff] }
  0xec   : > { %11658 = vst [vmem:[#allocation40_spill] sm:$0xff] %v8314_v1  ;;  %v5393_v13 = vrot.slane %v3124_v10, %v8153_v52  ;;  %v5384_v30 = vsel %vm3736_vm10, %v5383_v37, %v5379_v23  ;;  %v5388_v32 = vrot.slane %v3123_v31, %v8165_v60  ;;  %v2575_v21 = vmul.f32 %v8314_v1, %v8206_v57  ;;  %v8323_v53 = vpop.xlane.xlu1 %754  ;;  %v259_v23 = vld [vmem:[%s7945_s25 + $0x318] sm:$0xff] }
  0xed   : > { %888 = vadd.xlane.f32.xlu0 %v524_v18  ;;  %v8325_v47 = vpop.xlane.xlu0 %752  ;;  %v3744_v63 = vsel %vm3743_vm11, %v3742_v29, %v3737_v2  ;;  %v529_v40 = vmul.f32 %v257_v6, %v257_v6  ;;  %v528_v31 = vmul.f32 %v256_v15, %v256_v15 }
  0xee   : > { %v5389_v37 = vsel %vm3743_vm11, %v5388_v32, %v5384_v30  ;;  %v3751_v38 = vsel %vm3750_vm12, %v3749_v0, %v3744_v63  ;;  %v2847_v57 = vmul.f32 %v8314_v1, %v2575_v21  ;;  %v8344_v0 = vsub.s32 %v3759_v7, %v8033_v26  ;;  %v261_v7 = vld [vmem:[%s7945_s25 + $0x328] sm:$0xff] }
  0xef   : > { %v5394_v18 = vsel %vm3750_vm12, %v5393_v13, %v5389_v37  ;;  %894 = vadd.xlane.f32.xlu1 %v527_v19  ;;  %v8348_v30 = vsub.s32 %v3752_v54, %v8033_v26  ;;  %v531_v13 = vmul.f32 %v259_v23, %v259_v23  ;;  %v530_v63 = vmul.f32 %v258_v17, %v258_v17  ;;  %v260_v37 = vld [vmem:[%s7945_s25 + $0x320] sm:$0xff] }
  0xf0   : > { %v8336_v10 = vpop.xlane.xlu1 %758  ;;  %11660 = vst [vmem:[#allocation42_spill] sm:$0xff] %v8344_v0  ;;  %v3763_v15 = vrot.slane %v2847_v57, %v8344_v0  ;;  %v532_v26 = vmul.f32 %v260_v37, %v260_v37 }
  0xf1   : > { %892 = vadd.xlane.f32.xlu0 %v526_v4  ;;  %v8338_v2 = vpop.xlane.xlu0 %756  ;;  %v8341_v29 = vpop.eup %6929  ;;  %11661 = vst [vmem:[#allocation43_spill] sm:$0xff] %v8348_v30  ;;  %v3126_v4 = vsub.f32 0.0, %v2847_v57 }
  0xf2   : > { %11659 = vst [vmem:[#allocation41_spill] sm:$0xff] %v8341_v29  ;;  %v2574_v19 = vmul.f32 %v8341_v29, %v8208_v58 }
  0xf3   : > { %898 = vadd.xlane.f32.xlu1 %v529_v40  ;;  %v5403_v40 = vrot.slane %v3126_v4, %v8344_v0 }
  0xf4   : > { %v2846_v32 = vmul.f32 %v8341_v29, %v2574_v19  ;;  %v8353_v21 = vpop.xlane.xlu1 %762  ;;  %v263_v29 = vld [vmem:[%s7945_s25 + $0x338] sm:$0xff] }
  0xf5   : > { %896 = vadd.xlane.f32.xlu0 %v528_v31  ;;  %v8355_v6 = vpop.xlane.xlu0 %760  ;;  %v533_v31 = vmul.f32 %v261_v7, %v261_v7 }
  0xf6   : > { %v3125_v58 = vsub.f32 0.0, %v2846_v32  ;;  %v3756_v54 = vrot.slane %v2846_v32, %v8348_v30  ;;  %v262_v32 = vld [vmem:[%s7945_s25 + $0x330] sm:$0xff] }
  0xf7   : > { %902 = vadd.xlane.f32.xlu1 %v531_v13  ;;  %v535_v13 = vmul.f32 %v263_v29, %v263_v29  ;;  %v534_v37 = vmul.f32 %v262_v32, %v262_v32 }
  0xf8   : > { %v3758_v23 = vsel %vm11612_vm13, %v3756_v54, %v3751_v38  ;;  %v5398_v19 = vrot.slane %v3125_v58, %v8348_v30  ;;  %v8364_v17 = vpop.xlane.xlu1 %766  ;;  %v265_v58 = vld [vmem:[%s7945_s25 + $0x348] sm:$0xff] }
  0xf9   : > { %900 = vadd.xlane.f32.xlu0 %v530_v63  ;;  %v8366_v57 = vpop.xlane.xlu0 %764  ;;  %v8370_v1 = vsel %vm11611_vm14, %v3763_v15, %v3758_v23  ;;  %v264_v15 = vld [vmem:[%s7945_s25 + $0x340] sm:$0xff]  ;;  %v537_v54 = vmul.f32 %v265_v58, %v265_v58 }
  0xfa   : > { %11662 = vst [vmem:[#allocation44_spill] sm:$0xff] %v8370_v1  ;;  %v5399_v4 = vsel %vm11612_vm13, %v5398_v19, %v5394_v18  ;;  %v536_v23 = vmul.f32 %v264_v15, %v264_v15 }
  0xfb   : > { %v8375_v38 = vsel %vm11611_vm14, %v5403_v40, %v5399_v4  ;;  %906 = vadd.xlane.f32.xlu1 %v533_v31  ;;  %v267_v31 = vld [vmem:[%s7945_s25 + $0x358] sm:$0xff] }
  0xfc   : > { %11663 = vst [vmem:[#allocation45_spill] sm:$0xff] %v8375_v38  ;;  %v8377_v63 = vpop.xlane.xlu1 %770  ;;  %v539_v29 = vmul.f32 %v267_v31, %v267_v31 }
  0xfd   : > { %904 = vadd.xlane.f32.xlu0 %v532_v26  ;;  %v8379_v7 = vpop.xlane.xlu0 %768  ;;  %v266_v26 = vld [vmem:[%s7945_s25 + $0x350] sm:$0xff] }
  0xfe   : > { %v538_v4 = vmul.f32 %v266_v26, %v266_v26 }
  0xff   : > { %910 = vadd.xlane.f32.xlu1 %v535_v13  ;;  %v269_v13 = vld [vmem:[%s7945_s25 + $0x368] sm:$0xff] }
 0x100   : > { %v8383_v18 = vpop.xlane.xlu1 %774  ;;  %v541_v58 = vmul.f32 %v269_v13, %v269_v13 }
 0x101   : > { %908 = vadd.xlane.f32.xlu0 %v534_v37  ;;  %v8385_v40 = vpop.xlane.xlu0 %772  ;;  %v268_v37 = vld [vmem:[%s7945_s25 + $0x360] sm:$0xff] }
 0x102   : > { %v540_v1 = vmul.f32 %v268_v37, %v268_v37 }
 0x103   : > { %914 = vadd.xlane.f32.xlu1 %v537_v54  ;;  %v271_v54 = vld [vmem:[%s7945_s25 + $0x378] sm:$0xff] }
 0x104   : > { %v8389_v19 = vpop.xlane.xlu1 %778  ;;  %v543_v31 = vmul.f32 %v271_v54, %v271_v54 }
 0x105   : > { %912 = vadd.xlane.f32.xlu0 %v536_v23  ;;  %v8391_v32 = vpop.xlane.xlu0 %776  ;;  %v270_v23 = vld [vmem:[%s7945_s25 + $0x370] sm:$0xff] }
 0x106   : > { %v542_v0 = vmul.f32 %v270_v23, %v270_v23 }
 0x107   : > { %918 = vadd.xlane.f32.xlu1 %v539_v29  ;;  %v273_v29 = vld [vmem:[%s7945_s25 + $0x388] sm:$0xff] }
 0x108   : > { %v8395_v15 = vpop.xlane.xlu1 %782  ;;  %v545_v13 = vmul.f32 %v273_v29, %v273_v29 }
 0x109   : > { %916 = vadd.xlane.f32.xlu0 %v538_v4  ;;  %v8397_v38 = vpop.xlane.xlu0 %780  ;;  %v272_v4 = vld [vmem:[%s7945_s25 + $0x380] sm:$0xff] }
 0x10a   : > { %v544_v52 = vmul.f32 %v272_v4, %v272_v4 }
 0x10b   : > { %922 = vadd.xlane.f32.xlu1 %v541_v58  ;;  %v275_v58 = vld [vmem:[%s7945_s25 + $0x398] sm:$0xff] }
 0x10c   : > { %v8401_v26 = vpop.xlane.xlu1 %786  ;;  %v547_v54 = vmul.f32 %v275_v58, %v275_v58 }
 0x10d   : > { %920 = vadd.xlane.f32.xlu0 %v540_v1  ;;  %v8403_v30 = vpop.xlane.xlu0 %784  ;;  %v274_v1 = vld [vmem:[%s7945_s25 + $0x390] sm:$0xff] }
 0x10e   : > { %v546_v48 = vmul.f32 %v274_v1, %v274_v1 }
 0x10f   : > { %926 = vadd.xlane.f32.xlu1 %v543_v31  ;;  %v277_v31 = vld [vmem:[%s7945_s25 + $0x3a8] sm:$0xff] }
 0x110   : > { %v8407_v37 = vpop.xlane.xlu1 %790  ;;  %v549_v29 = vmul.f32 %v277_v31, %v277_v31 }
 0x111   : > { %924 = vadd.xlane.f32.xlu0 %v542_v0  ;;  %v8409_v60 = vpop.xlane.xlu0 %788  ;;  %v276_v0 = vld [vmem:[%s7945_s25 + $0x3a0] sm:$0xff] }
 0x112   : > { %v548_v36 = vmul.f32 %v276_v0, %v276_v0 }
 0x113   : > { %930 = vadd.xlane.f32.xlu1 %v545_v13  ;;  %v279_v13 = vld [vmem:[%s7945_s25 + $0x3b8] sm:$0xff] }
 0x114   : > { %v8413_v23 = vpop.xlane.xlu1 %794  ;;  %v551_v58 = vmul.f32 %v279_v13, %v279_v13 }
 0x115   : > { %928 = vadd.xlane.f32.xlu0 %v544_v52  ;;  %v8415_v49 = vpop.xlane.xlu0 %792  ;;  %v278_v52 = vld [vmem:[%s7945_s25 + $0x3b0] sm:$0xff] }
 0x116   : > { %v550_v28 = vmul.f32 %v278_v52, %v278_v52 }
 0x117   : > { %934 = vadd.xlane.f32.xlu1 %v547_v54  ;;  %v281_v54 = vld [vmem:[%s7945_s25 + $0x3c8] sm:$0xff] }
 0x118   : > { %v8419_v4 = vpop.xlane.xlu1 %798  ;;  %v553_v31 = vmul.f32 %v281_v54, %v281_v54 }
 0x119   : > { %932 = vadd.xlane.f32.xlu0 %v546_v48  ;;  %v8421_v39 = vpop.xlane.xlu0 %796  ;;  %v280_v48 = vld [vmem:[%s7945_s25 + $0x3c0] sm:$0xff] }
 0x11a   : > { %v552_v20 = vmul.f32 %v280_v48, %v280_v48 }
 0x11b   : > { %938 = vadd.xlane.f32.xlu1 %v549_v29  ;;  %v283_v29 = vld [vmem:[%s7945_s25 + $0x3d8] sm:$0xff] }
 0x11c   : > { %v8425_v1 = vpop.xlane.xlu1 %802  ;;  %v555_v13 = vmul.f32 %v283_v29, %v283_v29 }
 0x11d   : > { %936 = vadd.xlane.f32.xlu0 %v548_v36  ;;  %v8427_v3 = vpop.xlane.xlu0 %800  ;;  %v282_v36 = vld [vmem:[%s7945_s25 + $0x3d0] sm:$0xff] }
 0x11e   : > { %v554_v62 = vmul.f32 %v282_v36, %v282_v36 }
 0x11f   : > { %942 = vadd.xlane.f32.xlu1 %v551_v58  ;;  %v285_v58 = vld [vmem:[%s7945_s25 + $0x3e8] sm:$0xff] }
 0x120   : > { %v8431_v0 = vpop.xlane.xlu1 %806  ;;  %v557_v54 = vmul.f32 %v285_v58, %v285_v58 }
 0x121   : > { %940 = vadd.xlane.f32.xlu0 %v550_v28  ;;  %v8433_v22 = vpop.xlane.xlu0 %804  ;;  %v284_v28 = vld [vmem:[%s7945_s25 + $0x3e0] sm:$0xff] }
 0x122   : > { %v556_v11 = vmul.f32 %v284_v28, %v284_v28 }
 0x123   : > { %946 = vadd.xlane.f32.xlu1 %v553_v31  ;;  %v287_v31 = vld [vmem:[%s7945_s25 + $0x3f8] sm:$0xff] }
 0x124   : > { %v8437_v52 = vpop.xlane.xlu1 %810  ;;  %v559_v29 = vmul.f32 %v287_v31, %v287_v31 }
 0x125   : > { %944 = vadd.xlane.f32.xlu0 %v552_v20  ;;  %v8439_v35 = vpop.xlane.xlu0 %808  ;;  %v286_v20 = vld [vmem:[%s7945_s25 + $0x3f0] sm:$0xff] }
 0x126   : > { %v558_v43 = vmul.f32 %v286_v20, %v286_v20 }
 0x127   : > { %950 = vadd.xlane.f32.xlu1 %v555_v13  ;;  %v289_v13 = vld [vmem:[%s7945_s25 + $0x408] sm:$0xff] }
 0x128   : > { %v8443_v48 = vpop.xlane.xlu1 %814  ;;  %v561_v58 = vmul.f32 %v289_v13, %v289_v13 }
 0x129   : > { %948 = vadd.xlane.f32.xlu0 %v554_v62  ;;  %v8445_v12 = vpop.xlane.xlu0 %812  ;;  %v288_v62 = vld [vmem:[%s7945_s25 + $0x400] sm:$0xff] }
 0x12a   : > { %11664 = vst [vmem:[#allocation46_spill] sm:$0xff] %v8445_v12  ;;  %v560_v51 = vmul.f32 %v288_v62, %v288_v62  ;;  %v7484_v12 = vld [vmem:[%s7945_s25 + $0xf8] sm:$0xff] }
 0x12b   : > { %954 = vadd.xlane.f32.xlu1 %v557_v54  ;;  %v291_v54 = vld [vmem:[%s7945_s25 + $0x418] sm:$0xff] }
 0x12c   : > { %v8449_v36 = vpop.xlane.xlu1 %818  ;;  %v563_v31 = vmul.f32 %v291_v54, %v291_v54 }
 0x12d   : > { %952 = vadd.xlane.f32.xlu0 %v556_v11  ;;  %11665 = vst [vmem:[#allocation47_spill] sm:$0xff] %v8449_v36  ;;  %v8451_v59 = vpop.xlane.xlu0 %816  ;;  %v290_v11 = vld [vmem:[%s7945_s25 + $0x410] sm:$0xff] }
 0x12e   : > { %11666 = vst [vmem:[#allocation48_spill] sm:$0xff] %v8451_v59  ;;  %v562_v5 = vmul.f32 %v290_v11, %v290_v11  ;;  %v2035_v59 = vmax.f32 %v8258_v8, 1e-16 }
 0x12f   : > { %958 = vadd.xlane.f32.xlu1 %v559_v29  ;;  %v293_v29 = vld [vmem:[%s7945_s25 + $0x428] sm:$0xff] }
 0x130   : > { %v8455_v28 = vpop.xlane.xlu1 %822  ;;  %v565_v13 = vmul.f32 %v293_v29, %v293_v29 }
 0x131   : > { %956 = vadd.xlane.f32.xlu0 %v558_v43  ;;  %11667 = vst [vmem:[#allocation49_spill] sm:$0xff] %v8455_v28  ;;  %v8457_v56 = vpop.xlane.xlu0 %820  ;;  %v292_v43 = vld [vmem:[%s7945_s25 + $0x420] sm:$0xff] }
 0x132   : > { %11668 = vst [vmem:[#allocation50_spill] sm:$0xff] %v8457_v56  ;;  %v564_v46 = vmul.f32 %v292_v43, %v292_v43 }
 0x133   : > { %962 = vadd.xlane.f32.xlu1 %v561_v58  ;;  %v295_v58 = vld [vmem:[%s7945_s25 + $0x438] sm:$0xff] }
 0x134   : > { %v8461_v20 = vpop.xlane.xlu1 %826  ;;  %v567_v54 = vmul.f32 %v295_v58, %v295_v58 }
 0x135   : > { %960 = vadd.xlane.f32.xlu0 %v560_v51  ;;  %11669 = vst [vmem:[#allocation51_spill] sm:$0xff] %v8461_v20  ;;  %v8463_v24 = vpop.xlane.xlu0 %824  ;;  %v294_v51 = vld [vmem:[%s7945_s25 + $0x430] sm:$0xff] }
 0x136   : > { %11670 = vst [vmem:[#allocation52_spill] sm:$0xff] %v8463_v24  ;;  %v566_v41 = vmul.f32 %v294_v51, %v294_v51  ;;  %v7474_v24 = vld [vmem:[%s7945_s25 + $0xc0] sm:$0xff] }
 0x137   : > { %966 = vadd.xlane.f32.xlu1 %v563_v31  ;;  %v297_v31 = vld [vmem:[%s7945_s25 + $0x448] sm:$0xff] }
 0x138   : > { %v8467_v62 = vpop.xlane.xlu1 %830  ;;  %v569_v29 = vmul.f32 %v297_v31, %v297_v31 }
 0x139   : > { %964 = vadd.xlane.f32.xlu0 %v562_v5  ;;  %11671 = vst [vmem:[#allocation53_spill] sm:$0xff] %v8467_v62  ;;  %v8469_v42 = vpop.xlane.xlu0 %828  ;;  %v296_v5 = vld [vmem:[%s7945_s25 + $0x440] sm:$0xff]  ;;  %v7472_v62 = vld [vmem:[%s7945_s25 + $0xc8] sm:$0xff] }
 0x13a   : > { %11672 = vst [vmem:[#allocation54_spill] sm:$0xff] %v8469_v42  ;;  %v568_v50 = vmul.f32 %v296_v5, %v296_v5  ;;  %v7470_v42 = vld [vmem:[%s7945_s25 + $0xb0] sm:$0xff] }
 0x13b   : > { %970 = vadd.xlane.f32.xlu1 %v565_v13  ;;  %v299_v13 = vld [vmem:[%s7945_s25 + $0x458] sm:$0xff] }
 0x13c   : > { %v8473_v11 = vpop.xlane.xlu1 %834  ;;  %v571_v58 = vmul.f32 %v299_v13, %v299_v13 }
 0x13d   : > { %968 = vadd.xlane.f32.xlu0 %v564_v46  ;;  %11673 = vst [vmem:[#allocation55_spill] sm:$0xff] %v8473_v11  ;;  %v8475_v16 = vpop.xlane.xlu0 %832  ;;  %v298_v46 = vld [vmem:[%s7945_s25 + $0x450] sm:$0xff]  ;;  %v7468_v11 = vld [vmem:[%s7945_s25 + $0xb8] sm:$0xff] }
 0x13e   : > { %11674 = vst [vmem:[#allocation56_spill] sm:$0xff] %v8475_v16  ;;  %v570_v55 = vmul.f32 %v298_v46, %v298_v46 }
 0x13f   : > { %974 = vadd.xlane.f32.xlu1 %v567_v54  ;;  %v301_v54 = vld [vmem:[%s7945_s25 + $0x468] sm:$0xff] }
 0x140   : > { %v8479_v43 = vpop.xlane.xlu1 %838  ;;  %v573_v31 = vmul.f32 %v301_v54, %v301_v54 }
 0x141   : > { %972 = vadd.xlane.f32.xlu0 %v566_v41  ;;  %11675 = vst [vmem:[#allocation57_spill] sm:$0xff] %v8479_v43  ;;  %v8481_v45 = vpop.xlane.xlu0 %836  ;;  %v300_v41 = vld [vmem:[%s7945_s25 + $0x460] sm:$0xff] }
 0x142   : > { %11676 = vst [vmem:[#allocation58_spill] sm:$0xff] %v8481_v45  ;;  %v572_v43 = vmul.f32 %v300_v41, %v300_v41 }
 0x143   : > { %978 = vadd.xlane.f32.xlu1 %v569_v29  ;;  %v303_v29 = vld [vmem:[%s7945_s25 + $0x478] sm:$0xff] }
 0x144   : > { %v8485_v51 = vpop.xlane.xlu1 %842  ;;  %v575_v13 = vmul.f32 %v303_v29, %v303_v29 }
 0x145   : > { %976 = vadd.xlane.f32.xlu0 %v568_v50  ;;  %11677 = vst [vmem:[#allocation59_spill] sm:$0xff] %v8485_v51  ;;  %v8487_v27 = vpop.xlane.xlu0 %840  ;;  %v302_v50 = vld [vmem:[%s7945_s25 + $0x470] sm:$0xff] }
 0x146   : > { %11678 = vst [vmem:[#allocation60_spill] sm:$0xff] %v8487_v27  ;;  %v574_v51 = vmul.f32 %v302_v50, %v302_v50 }
 0x147   : > { %982 = vadd.xlane.f32.xlu1 %v571_v58  ;;  %v305_v58 = vld [vmem:[%s7945_s25 + $0x488] sm:$0xff] }
 0x148   : > { %v8491_v5 = vpop.xlane.xlu1 %846  ;;  %v577_v54 = vmul.f32 %v305_v58, %v305_v58 }
 0x149   : > { %980 = vadd.xlane.f32.xlu0 %v570_v55  ;;  %11679 = vst [vmem:[#allocation61_spill] sm:$0xff] %v8491_v5  ;;  %v8493_v45 = vpop.xlane.xlu0 %844  ;;  %v304_v55 = vld [vmem:[%s7945_s25 + $0x480] sm:$0xff] }
 0x14a   : > { %11680 = vst [vmem:[#allocation62_spill] sm:$0xff] %v8493_v45  ;;  %v576_v5 = vmul.f32 %v304_v55, %v304_v55 }
 0x14b   : > { %986 = vadd.xlane.f32.xlu1 %v573_v31  ;;  %v307_v31 = vld [vmem:[%s7945_s25 + $0x498] sm:$0xff] }
 0x14c   : > { %v8497_v46 = vpop.xlane.xlu1 %850  ;;  %v579_v29 = vmul.f32 %v307_v31, %v307_v31 }
 0x14d   : > { %984 = vadd.xlane.f32.xlu0 %v572_v43  ;;  %11681 = vst [vmem:[#allocation63_spill] sm:$0xff] %v8497_v46  ;;  %v8499_v27 = vpop.xlane.xlu0 %848  ;;  %v306_v43 = vld [vmem:[%s7945_s25 + $0x490] sm:$0xff] }
 0x14e   : > { %11682 = vst [vmem:[#allocation64_spill] sm:$0xff] %v8499_v27  ;;  %v578_v46 = vmul.f32 %v306_v43, %v306_v43 }
 0x14f   : > { %990 = vadd.xlane.f32.xlu1 %v575_v13  ;;  %v309_v13 = vld [vmem:[%s7945_s25 + $0x4a8] sm:$0xff] }
 0x150   : > { %v8503_v41 = vpop.xlane.xlu1 %854  ;;  %v581_v58 = vmul.f32 %v309_v13, %v309_v13 }
 0x151   : > { %988 = vadd.xlane.f32.xlu0 %v574_v51  ;;  %11683 = vst [vmem:[#allocation65_spill] sm:$0xff] %v8503_v41  ;;  %v8505_v45 = vpop.xlane.xlu0 %852  ;;  %v308_v51 = vld [vmem:[%s7945_s25 + $0x4a0] sm:$0xff] }
 0x152   : > { %11684 = vst [vmem:[#allocation66_spill] sm:$0xff] %v8505_v45  ;;  %v580_v41 = vmul.f32 %v308_v51, %v308_v51 }
 0x153   : > { %994 = vadd.xlane.f32.xlu1 %v577_v54  ;;  %v311_v54 = vld [vmem:[%s7945_s25 + $0x4b8] sm:$0xff] }
 0x154   : > { %v8509_v50 = vpop.xlane.xlu1 %858  ;;  %v583_v31 = vmul.f32 %v311_v54, %v311_v54 }
 0x155   : > { %992 = vadd.xlane.f32.xlu0 %v576_v5  ;;  %11685 = vst [vmem:[#allocation67_spill] sm:$0xff] %v8509_v50  ;;  %v8511_v27 = vpop.xlane.xlu0 %856  ;;  %v310_v5 = vld [vmem:[%s7945_s25 + $0x4b0] sm:$0xff] }
 0x156   : > { %11686 = vst [vmem:[#allocation68_spill] sm:$0xff] %v8511_v27  ;;  %v582_v50 = vmul.f32 %v310_v5, %v310_v5 }
 0x157   : > { %998 = vadd.xlane.f32.xlu1 %v579_v29  ;;  %v313_v29 = vld [vmem:[%s7945_s25 + $0x4c8] sm:$0xff] }
 0x158   : > { %v8515_v55 = vpop.xlane.xlu1 %862  ;;  %v585_v13 = vmul.f32 %v313_v29, %v313_v29 }
 0x159   : > { %996 = vadd.xlane.f32.xlu0 %v578_v46  ;;  %11687 = vst [vmem:[#allocation69_spill] sm:$0xff] %v8515_v55  ;;  %v8517_v45 = vpop.xlane.xlu0 %860  ;;  %v312_v46 = vld [vmem:[%s7945_s25 + $0x4c0] sm:$0xff] }
 0x15a   : > { %11688 = vst [vmem:[#allocation70_spill] sm:$0xff] %v8517_v45  ;;  %v584_v55 = vmul.f32 %v312_v46, %v312_v46 }
 0x15b   : > { %1002 = vadd.xlane.f32.xlu1 %v581_v58  ;;  %v315_v58 = vld [vmem:[%s7945_s25 + $0x4d8] sm:$0xff] }
 0x15c   : > { %v8521_v43 = vpop.xlane.xlu1 %866  ;;  %v587_v54 = vmul.f32 %v315_v58, %v315_v58 }
 0x15d   : > { %1000 = vadd.xlane.f32.xlu0 %v580_v41  ;;  %11689 = vst [vmem:[#allocation71_spill] sm:$0xff] %v8521_v43  ;;  %v8523_v27 = vpop.xlane.xlu0 %864  ;;  %v314_v41 = vld [vmem:[%s7945_s25 + $0x4d0] sm:$0xff]  ;;  %v317_v43 = vld [vmem:[%s7945_s25 + $0x4e8] sm:$0xff] }
 0x15e   : > { %11690 = vst [vmem:[#allocation72_spill] sm:$0xff] %v8523_v27  ;;  %v586_v27 = vmul.f32 %v314_v41, %v314_v41  ;;  %v589_v29 = vmul.f32 %v317_v43, %v317_v43 }
 0x15f   : > { %1006 = vadd.xlane.f32.xlu1 %v583_v31 }
 0x160   : > { %v8527_v51 = vpop.xlane.xlu1 %870 }
 0x161   : > { %1004 = vadd.xlane.f32.xlu0 %v582_v50  ;;  %11691 = vst [vmem:[#allocation73_spill] sm:$0xff] %v8527_v51  ;;  %v8529_v45 = vpop.xlane.xlu0 %868  ;;  %v316_v50 = vld [vmem:[%s7945_s25 + $0x4e0] sm:$0xff]  ;;  %v319_v51 = vld [vmem:[%s7945_s25 + $0x4f8] sm:$0xff] }
 0x162   : > { %11692 = vst [vmem:[#allocation74_spill] sm:$0xff] %v8529_v45  ;;  %v588_v45 = vmul.f32 %v316_v50, %v316_v50  ;;  %v591_v58 = vmul.f32 %v319_v51, %v319_v51 }
 0x163   : > { %1010 = vadd.xlane.f32.xlu1 %v585_v13 }
 0x164   : > { %v8533_v5 = vpop.xlane.xlu1 %874 }
 0x165   : > { %1008 = vadd.xlane.f32.xlu0 %v584_v55  ;;  %11693 = vst [vmem:[#allocation75_spill] sm:$0xff] %v8533_v5  ;;  %v8536_v31 = vpop.xlane.xlu0 %872  ;;  %v318_v55 = vld [vmem:[%s7945_s25 + $0x4f0] sm:$0xff]  ;;  %v321_v5 = vld [vmem:[%s7945_s25 + $0x508] sm:$0xff] }
 0x166   : > { %11694 = vst [vmem:[#allocation76_spill] sm:$0xff] %v8536_v31  ;;  %v590_v31 = vmul.f32 %v318_v55, %v318_v55  ;;  %v593_v43 = vmul.f32 %v321_v5, %v321_v5  ;;  %v324_v5 = vld [vmem:[%s7945_s25 + $0x520] sm:$0xff] }
 0x167   : > { %1014 = vadd.xlane.f32.xlu1 %v587_v54 }
 0x168   : > { %v8539_v46 = vpop.xlane.xlu1 %878 }
 0x169   : > { %1012 = vadd.xlane.f32.xlu0 %v586_v27  ;;  %11695 = vst [vmem:[#allocation77_spill] sm:$0xff] %v8539_v46  ;;  %v8542_v13 = vpop.xlane.xlu0 %876  ;;  %v320_v27 = vld [vmem:[%s7945_s25 + $0x500] sm:$0xff]  ;;  %v323_v46 = vld [vmem:[%s7945_s25 + $0x518] sm:$0xff] }
 0x16a   : > { %11696 = vst [vmem:[#allocation78_spill] sm:$0xff] %v8542_v13  ;;  %v592_v13 = vmul.f32 %v320_v27, %v320_v27  ;;  %v595_v51 = vmul.f32 %v323_v46, %v323_v46  ;;  %v326_v46 = vld [vmem:[%s7945_s25 + $0x530] sm:$0xff] }
 0x16b   : > { %1018 = vadd.xlane.f32.xlu1 %v589_v29 }
 0x16c   : > { %v8545_v41 = vpop.xlane.xlu1 %882 }
 0x16d   : > { %1016 = vadd.xlane.f32.xlu0 %v588_v45  ;;  %11697 = vst [vmem:[#allocation79_spill] sm:$0xff] %v8545_v41  ;;  %v8548_v54 = vpop.xlane.xlu0 %880  ;;  %v322_v45 = vld [vmem:[%s7945_s25 + $0x510] sm:$0xff]  ;;  %v325_v41 = vld [vmem:[%s7945_s25 + $0x528] sm:$0xff] }
 0x16e   : > { %11698 = vst [vmem:[#allocation80_spill] sm:$0xff] %v8548_v54  ;;  %v594_v54 = vmul.f32 %v322_v45, %v322_v45 }
 0x16f   : > { %1022 = vadd.xlane.f32.xlu1 %v591_v58 }
 0x170   : > { %v8551_v50 = vpop.xlane.xlu1 %886 }
 0x171   : > { %1020 = vadd.xlane.f32.xlu0 %v590_v31  ;;  %11699 = vst [vmem:[#allocation81_spill] sm:$0xff] %v8551_v50  ;;  %v8554_v29 = vpop.xlane.xlu0 %884  ;;  %v597_v31 = vmul.f32 %v325_v41, %v325_v41  ;;  %v327_v50 = vld [vmem:[%s7945_s25 + $0x538] sm:$0xff]  ;;  %v328_v41 = vld [vmem:[%s7945_s25 + $0x540] sm:$0xff] }
 0x172   : > { %11700 = vst [vmem:[#allocation82_spill] sm:$0xff] %v8554_v29  ;;  %v596_v29 = vmul.f32 %v324_v5, %v324_v5 }
 0x173   : > { %1026 = vadd.xlane.f32.xlu1 %v593_v43 }
 0x174   : > { %v8557_v55 = vpop.xlane.xlu1 %890 }
 0x175   : > { %1024 = vadd.xlane.f32.xlu0 %v592_v13  ;;  %11701 = vst [vmem:[#allocation83_spill] sm:$0xff] %v8557_v55  ;;  %v599_v13 = vmul.f32 %v327_v50, %v327_v50  ;;  %v329_v55 = vld [vmem:[%s7945_s25 + $0x548] sm:$0xff]  ;;  %v330_v50 = vld [vmem:[%s7945_s25 + $0x550] sm:$0xff] }
 0x176   : > { %v8560_v58 = vpop.xlane.xlu0 %888 }
 0x177   : > { %11702 = vst [vmem:[#allocation84_spill] sm:$0xff] %v8560_v58  ;;  %1030 = vadd.xlane.f32.xlu1 %v595_v51  ;;  %v598_v58 = vmul.f32 %v326_v46, %v326_v46 }
 0x178   : > { %v8563_v27 = vpop.xlane.xlu1 %894 }
 0x179   : > { %1028 = vadd.xlane.f32.xlu0 %v594_v54  ;;  %11703 = vst [vmem:[#allocation85_spill] sm:$0xff] %v8563_v27  ;;  %v601_v54 = vmul.f32 %v329_v55, %v329_v55  ;;  %v331_v27 = vld [vmem:[%s7945_s25 + $0x558] sm:$0xff]  ;;  %v332_v55 = vld [vmem:[%s7945_s25 + $0x560] sm:$0xff] }
 0x17a   : > { %v8566_v43 = vpop.xlane.xlu0 %892 }
 0x17b   : > { %11704 = vst [vmem:[#allocation86_spill] sm:$0xff] %v8566_v43  ;;  %1034 = vadd.xlane.f32.xlu1 %v597_v31  ;;  %v600_v43 = vmul.f32 %v328_v41, %v328_v41 }
 0x17c   : > { %v8569_v45 = vpop.xlane.xlu1 %898 }
 0x17d   : > { %1032 = vadd.xlane.f32.xlu0 %v596_v29  ;;  %11705 = vst [vmem:[#allocation87_spill] sm:$0xff] %v8569_v45  ;;  %v603_v29 = vmul.f32 %v331_v27, %v331_v27  ;;  %v333_v45 = vld [vmem:[%s7945_s25 + $0x568] sm:$0xff]  ;;  %v334_v27 = vld [vmem:[%s7945_s25 + $0x570] sm:$0xff] }
 0x17e   : > { %v8572_v51 = vpop.xlane.xlu0 %896 }
 0x17f   : > { %11706 = vst [vmem:[#allocation88_spill] sm:$0xff] %v8572_v51  ;;  %1038 = vadd.xlane.f32.xlu1 %v599_v13  ;;  %v602_v51 = vmul.f32 %v330_v50, %v330_v50 }
 0x180   : > { %v8575_v5 = vpop.xlane.xlu1 %902 }
 0x181   : > { %1036 = vadd.xlane.f32.xlu0 %v598_v58  ;;  %11707 = vst [vmem:[#allocation89_spill] sm:$0xff] %v8575_v5  ;;  %v605_v58 = vmul.f32 %v333_v45, %v333_v45  ;;  %v335_v5 = vld [vmem:[%s7945_s25 + $0x578] sm:$0xff]  ;;  %v336_v45 = vld [vmem:[%s7945_s25 + $0x580] sm:$0xff] }
 0x182   : > { %v8578_v31 = vpop.xlane.xlu0 %900 }
 0x183   : > { %11708 = vst [vmem:[#allocation90_spill] sm:$0xff] %v8578_v31  ;;  %1042 = vadd.xlane.f32.xlu1 %v601_v54  ;;  %v604_v31 = vmul.f32 %v332_v55, %v332_v55 }
 0x184   : > { %v8581_v46 = vpop.xlane.xlu1 %906 }
 0x185   : > { %1040 = vadd.xlane.f32.xlu0 %v600_v43  ;;  %11709 = vst [vmem:[#allocation91_spill] sm:$0xff] %v8581_v46  ;;  %v607_v43 = vmul.f32 %v335_v5, %v335_v5  ;;  %v337_v46 = vld [vmem:[%s7945_s25 + $0x588] sm:$0xff]  ;;  %v338_v5 = vld [vmem:[%s7945_s25 + $0x590] sm:$0xff] }
 0x186   : > { %v8584_v13 = vpop.xlane.xlu0 %904 }
 0x187   : > { %11710 = vst [vmem:[#allocation92_spill] sm:$0xff] %v8584_v13  ;;  %1046 = vadd.xlane.f32.xlu1 %v603_v29  ;;  %v606_v13 = vmul.f32 %v334_v27, %v334_v27 }
 0x188   : > { %v8587_v41 = vpop.xlane.xlu1 %910 }
 0x189   : > { %1044 = vadd.xlane.f32.xlu0 %v602_v51  ;;  %11711 = vst [vmem:[#allocation93_spill] sm:$0xff] %v8587_v41  ;;  %v609_v51 = vmul.f32 %v337_v46, %v337_v46  ;;  %v339_v41 = vld [vmem:[%s7945_s25 + $0x598] sm:$0xff]  ;;  %v340_v46 = vld [vmem:[%s7945_s25 + $0x5a0] sm:$0xff] }
 0x18a   : > { %v8590_v54 = vpop.xlane.xlu0 %908 }
 0x18b   : > { %11712 = vst [vmem:[#allocation94_spill] sm:$0xff] %v8590_v54  ;;  %1050 = vadd.xlane.f32.xlu1 %v605_v58  ;;  %v608_v54 = vmul.f32 %v336_v45, %v336_v45 }
 0x18c   : > { %v8593_v50 = vpop.xlane.xlu1 %914 }
 0x18d   : > { %1048 = vadd.xlane.f32.xlu0 %v604_v31  ;;  %11713 = vst [vmem:[#allocation95_spill] sm:$0xff] %v8593_v50  ;;  %v611_v31 = vmul.f32 %v339_v41, %v339_v41  ;;  %v341_v50 = vld [vmem:[%s7945_s25 + $0x5a8] sm:$0xff]  ;;  %v342_v41 = vld [vmem:[%s7945_s25 + $0x5b0] sm:$0xff] }
 0x18e   : > { %v8596_v29 = vpop.xlane.xlu0 %912 }
 0x18f   : > { %11714 = vst [vmem:[#allocation96_spill] sm:$0xff] %v8596_v29  ;;  %1054 = vadd.xlane.f32.xlu1 %v607_v43  ;;  %v610_v29 = vmul.f32 %v338_v5, %v338_v5 }
 0x190   : > { %v8599_v55 = vpop.xlane.xlu1 %918 }
 0x191   : > { %1052 = vadd.xlane.f32.xlu0 %v606_v13  ;;  %11715 = vst [vmem:[#allocation97_spill] sm:$0xff] %v8599_v55  ;;  %v613_v13 = vmul.f32 %v341_v50, %v341_v50  ;;  %v343_v55 = vld [vmem:[%s7945_s25 + $0x5b8] sm:$0xff]  ;;  %v344_v50 = vld [vmem:[%s7945_s25 + $0x5c0] sm:$0xff] }
 0x192   : > { %v8602_v58 = vpop.xlane.xlu0 %916 }
 0x193   : > { %11716 = vst [vmem:[#allocation98_spill] sm:$0xff] %v8602_v58  ;;  %1058 = vadd.xlane.f32.xlu1 %v609_v51  ;;  %v612_v58 = vmul.f32 %v340_v46, %v340_v46 }
 0x194   : > { %v8605_v27 = vpop.xlane.xlu1 %922 }
 0x195   : > { %1056 = vadd.xlane.f32.xlu0 %v608_v54  ;;  %11717 = vst [vmem:[#allocation99_spill] sm:$0xff] %v8605_v27  ;;  %v615_v54 = vmul.f32 %v343_v55, %v343_v55  ;;  %v345_v27 = vld [vmem:[%s7945_s25 + $0x5c8] sm:$0xff]  ;;  %v346_v55 = vld [vmem:[%s7945_s25 + $0x5d0] sm:$0xff] }
 0x196   : > { %v8608_v43 = vpop.xlane.xlu0 %920 }
 0x197   : > { %11718 = vst [vmem:[#allocation100_spill] sm:$0xff] %v8608_v43  ;;  %1062 = vadd.xlane.f32.xlu1 %v611_v31  ;;  %v614_v43 = vmul.f32 %v342_v41, %v342_v41 }
 0x198   : > { %v8611_v45 = vpop.xlane.xlu1 %926 }
 0x199   : > { %1060 = vadd.xlane.f32.xlu0 %v610_v29  ;;  %11719 = vst [vmem:[#allocation101_spill] sm:$0xff] %v8611_v45  ;;  %v617_v29 = vmul.f32 %v345_v27, %v345_v27  ;;  %v347_v45 = vld [vmem:[%s7945_s25 + $0x5d8] sm:$0xff]  ;;  %v348_v27 = vld [vmem:[%s7945_s25 + $0x5e0] sm:$0xff] }
 0x19a   : > { %v8614_v51 = vpop.xlane.xlu0 %924 }
 0x19b   : > { %11720 = vst [vmem:[#allocation102_spill] sm:$0xff] %v8614_v51  ;;  %1066 = vadd.xlane.f32.xlu1 %v613_v13  ;;  %v616_v51 = vmul.f32 %v344_v50, %v344_v50 }
 0x19c   : > { %v8617_v5 = vpop.xlane.xlu1 %930 }
 0x19d   : > { %1064 = vadd.xlane.f32.xlu0 %v612_v58  ;;  %11721 = vst [vmem:[#allocation103_spill] sm:$0xff] %v8617_v5  ;;  %v619_v58 = vmul.f32 %v347_v45, %v347_v45  ;;  %v349_v5 = vld [vmem:[%s7945_s25 + $0x5e8] sm:$0xff]  ;;  %v350_v45 = vld [vmem:[%s7945_s25 + $0x5f0] sm:$0xff] }
 0x19e   : > { %v8620_v31 = vpop.xlane.xlu0 %928 }
 0x19f   : > { %11722 = vst [vmem:[#allocation104_spill] sm:$0xff] %v8620_v31  ;;  %1070 = vadd.xlane.f32.xlu1 %v615_v54  ;;  %v618_v31 = vmul.f32 %v346_v55, %v346_v55 }
 0x1a0   : > { %v8623_v46 = vpop.xlane.xlu1 %934 }
 0x1a1   : > { %1068 = vadd.xlane.f32.xlu0 %v614_v43  ;;  %11723 = vst [vmem:[#allocation105_spill] sm:$0xff] %v8623_v46  ;;  %v621_v43 = vmul.f32 %v349_v5, %v349_v5  ;;  %v351_v46 = vld [vmem:[%s7945_s25 + $0x5f8] sm:$0xff]  ;;  %v352_v5 = vld [vmem:[%s7945_s25 + $0x600] sm:$0xff] }
 0x1a2   : > { %v8626_v13 = vpop.xlane.xlu0 %932 }
 0x1a3   : > { %11724 = vst [vmem:[#allocation106_spill] sm:$0xff] %v8626_v13  ;;  %1074 = vadd.xlane.f32.xlu1 %v617_v29  ;;  %v620_v13 = vmul.f32 %v348_v27, %v348_v27 }
 0x1a4   : > { %v8629_v41 = vpop.xlane.xlu1 %938 }
 0x1a5   : > { %1072 = vadd.xlane.f32.xlu0 %v616_v51  ;;  %11725 = vst [vmem:[#allocation107_spill] sm:$0xff] %v8629_v41  ;;  %v623_v51 = vmul.f32 %v351_v46, %v351_v46  ;;  %v353_v41 = vld [vmem:[%s7945_s25 + $0x608] sm:$0xff]  ;;  %v354_v46 = vld [vmem:[%s7945_s25 + $0x610] sm:$0xff] }
 0x1a6   : > { %v8632_v54 = vpop.xlane.xlu0 %936 }
 0x1a7   : > { %11726 = vst [vmem:[#allocation108_spill] sm:$0xff] %v8632_v54  ;;  %1078 = vadd.xlane.f32.xlu1 %v619_v58  ;;  %v622_v54 = vmul.f32 %v350_v45, %v350_v45 }
 0x1a8   : > { %v8635_v50 = vpop.xlane.xlu1 %942 }
 0x1a9   : > { %1076 = vadd.xlane.f32.xlu0 %v618_v31  ;;  %11727 = vst [vmem:[#allocation109_spill] sm:$0xff] %v8635_v50  ;;  %v625_v31 = vmul.f32 %v353_v41, %v353_v41  ;;  %v355_v50 = vld [vmem:[%s7945_s25 + $0x618] sm:$0xff]  ;;  %v356_v41 = vld [vmem:[%s7945_s25 + $0x620] sm:$0xff] }
 0x1aa   : > { %v8638_v29 = vpop.xlane.xlu0 %940 }
 0x1ab   : > { %11728 = vst [vmem:[#allocation110_spill] sm:$0xff] %v8638_v29  ;;  %1082 = vadd.xlane.f32.xlu1 %v621_v43  ;;  %v624_v29 = vmul.f32 %v352_v5, %v352_v5 }
 0x1ac   : > { %v8641_v55 = vpop.xlane.xlu1 %946 }
 0x1ad   : > { %1080 = vadd.xlane.f32.xlu0 %v620_v13  ;;  %11729 = vst [vmem:[#allocation111_spill] sm:$0xff] %v8641_v55  ;;  %v627_v13 = vmul.f32 %v355_v50, %v355_v50  ;;  %v357_v55 = vld [vmem:[%s7945_s25 + $0x628] sm:$0xff]  ;;  %v358_v50 = vld [vmem:[%s7945_s25 + $0x630] sm:$0xff] }
 0x1ae   : > { %v8644_v58 = vpop.xlane.xlu0 %944 }
 0x1af   : > { %11730 = vst [vmem:[#allocation112_spill] sm:$0xff] %v8644_v58  ;;  %1086 = vadd.xlane.f32.xlu1 %v623_v51  ;;  %v626_v58 = vmul.f32 %v354_v46, %v354_v46 }
 0x1b0   : > { %v8647_v27 = vpop.xlane.xlu1 %950 }
 0x1b1   : > { %1084 = vadd.xlane.f32.xlu0 %v622_v54  ;;  %11731 = vst [vmem:[#allocation113_spill] sm:$0xff] %v8647_v27  ;;  %v629_v54 = vmul.f32 %v357_v55, %v357_v55  ;;  %v359_v27 = vld [vmem:[%s7945_s25 + $0x638] sm:$0xff]  ;;  %v360_v55 = vld [vmem:[%s7945_s25 + $0x640] sm:$0xff] }
 0x1b2   : > { %v8650_v43 = vpop.xlane.xlu0 %948 }
 0x1b3   : > { %11732 = vst [vmem:[#allocation114_spill] sm:$0xff] %v8650_v43  ;;  %1090 = vadd.xlane.f32.xlu1 %v625_v31  ;;  %v628_v43 = vmul.f32 %v356_v41, %v356_v41 }
 0x1b4   : > { %v8653_v45 = vpop.xlane.xlu1 %954 }
 0x1b5   : > { %1088 = vadd.xlane.f32.xlu0 %v624_v29  ;;  %11733 = vst [vmem:[#allocation115_spill] sm:$0xff] %v8653_v45  ;;  %v631_v29 = vmul.f32 %v359_v27, %v359_v27  ;;  %v361_v45 = vld [vmem:[%s7945_s25 + $0x648] sm:$0xff]  ;;  %v362_v27 = vld [vmem:[%s7945_s25 + $0x650] sm:$0xff] }
 0x1b6   : > { %v8656_v51 = vpop.xlane.xlu0 %952 }
 0x1b7   : > { %11734 = vst [vmem:[#allocation116_spill] sm:$0xff] %v8656_v51  ;;  %1094 = vadd.xlane.f32.xlu1 %v627_v13  ;;  %v630_v51 = vmul.f32 %v358_v50, %v358_v50 }
 0x1b8   : > { %v8659_v5 = vpop.xlane.xlu1 %958 }
 0x1b9   : > { %1092 = vadd.xlane.f32.xlu0 %v626_v58  ;;  %11735 = vst [vmem:[#allocation117_spill] sm:$0xff] %v8659_v5  ;;  %v633_v58 = vmul.f32 %v361_v45, %v361_v45  ;;  %v363_v5 = vld [vmem:[%s7945_s25 + $0x658] sm:$0xff]  ;;  %v364_v45 = vld [vmem:[%s7945_s25 + $0x660] sm:$0xff] }
 0x1ba   : > { %v8662_v31 = vpop.xlane.xlu0 %956 }
 0x1bb   : > { %11736 = vst [vmem:[#allocation118_spill] sm:$0xff] %v8662_v31  ;;  %1098 = vadd.xlane.f32.xlu1 %v629_v54  ;;  %v632_v31 = vmul.f32 %v360_v55, %v360_v55 }
 0x1bc   : > { %v8665_v46 = vpop.xlane.xlu1 %962 }
 0x1bd   : > { %1096 = vadd.xlane.f32.xlu0 %v628_v43  ;;  %11737 = vst [vmem:[#allocation119_spill] sm:$0xff] %v8665_v46  ;;  %v635_v43 = vmul.f32 %v363_v5, %v363_v5  ;;  %v365_v46 = vld [vmem:[%s7945_s25 + $0x668] sm:$0xff]  ;;  %v366_v5 = vld [vmem:[%s7945_s25 + $0x670] sm:$0xff] }
 0x1be   : > { %v8668_v13 = vpop.xlane.xlu0 %960 }
 0x1bf   : > { %11738 = vst [vmem:[#allocation120_spill] sm:$0xff] %v8668_v13  ;;  %1102 = vadd.xlane.f32.xlu1 %v631_v29  ;;  %v634_v13 = vmul.f32 %v362_v27, %v362_v27 }
 0x1c0   : > { %v8671_v41 = vpop.xlane.xlu1 %966 }
 0x1c1   : > { %1100 = vadd.xlane.f32.xlu0 %v630_v51  ;;  %11739 = vst [vmem:[#allocation121_spill] sm:$0xff] %v8671_v41  ;;  %v637_v51 = vmul.f32 %v365_v46, %v365_v46  ;;  %v367_v41 = vld [vmem:[%s7945_s25 + $0x678] sm:$0xff]  ;;  %v368_v46 = vld [vmem:[%s7945_s25 + $0x680] sm:$0xff] }
 0x1c2   : > { %v8674_v54 = vpop.xlane.xlu0 %964 }
 0x1c3   : > { %11740 = vst [vmem:[#allocation122_spill] sm:$0xff] %v8674_v54  ;;  %1106 = vadd.xlane.f32.xlu1 %v633_v58  ;;  %v636_v54 = vmul.f32 %v364_v45, %v364_v45 }
 0x1c4   : > { %v8677_v50 = vpop.xlane.xlu1 %970 }
 0x1c5   : > { %1104 = vadd.xlane.f32.xlu0 %v632_v31  ;;  %11741 = vst [vmem:[#allocation123_spill] sm:$0xff] %v8677_v50  ;;  %v639_v31 = vmul.f32 %v367_v41, %v367_v41  ;;  %v369_v50 = vld [vmem:[%s7945_s25 + $0x688] sm:$0xff]  ;;  %v370_v41 = vld [vmem:[%s7945_s25 + $0x690] sm:$0xff] }
 0x1c6   : > { %v8680_v29 = vpop.xlane.xlu0 %968 }
 0x1c7   : > { %11742 = vst [vmem:[#allocation124_spill] sm:$0xff] %v8680_v29  ;;  %1110 = vadd.xlane.f32.xlu1 %v635_v43  ;;  %v638_v29 = vmul.f32 %v366_v5, %v366_v5 }
 0x1c8   : > { %v8683_v55 = vpop.xlane.xlu1 %974 }
 0x1c9   : > { %1108 = vadd.xlane.f32.xlu0 %v634_v13  ;;  %11743 = vst [vmem:[#allocation125_spill] sm:$0xff] %v8683_v55  ;;  %v641_v13 = vmul.f32 %v369_v50, %v369_v50  ;;  %v371_v55 = vld [vmem:[%s7945_s25 + $0x698] sm:$0xff]  ;;  %v372_v50 = vld [vmem:[%s7945_s25 + $0x6a0] sm:$0xff] }
 0x1ca   : > { %v8686_v58 = vpop.xlane.xlu0 %972 }
 0x1cb   : > { %11744 = vst [vmem:[#allocation126_spill] sm:$0xff] %v8686_v58  ;;  %1114 = vadd.xlane.f32.xlu1 %v637_v51  ;;  %v640_v58 = vmul.f32 %v368_v46, %v368_v46 }
 0x1cc   : > { %v8689_v27 = vpop.xlane.xlu1 %978 }
 0x1cd   : > { %1112 = vadd.xlane.f32.xlu0 %v636_v54  ;;  %11745 = vst [vmem:[#allocation127_spill] sm:$0xff] %v8689_v27  ;;  %v643_v54 = vmul.f32 %v371_v55, %v371_v55  ;;  %v373_v27 = vld [vmem:[%s7945_s25 + $0x6a8] sm:$0xff]  ;;  %v374_v55 = vld [vmem:[%s7945_s25 + $0x6b0] sm:$0xff] }
 0x1ce   : > { %v8692_v43 = vpop.xlane.xlu0 %976 }
 0x1cf   : > { %11746 = vst [vmem:[#allocation128_spill] sm:$0xff] %v8692_v43  ;;  %1118 = vadd.xlane.f32.xlu1 %v639_v31  ;;  %v642_v43 = vmul.f32 %v370_v41, %v370_v41 }
 0x1d0   : > { %v8695_v45 = vpop.xlane.xlu1 %982 }
 0x1d1   : > { %1116 = vadd.xlane.f32.xlu0 %v638_v29  ;;  %11747 = vst [vmem:[#allocation129_spill] sm:$0xff] %v8695_v45  ;;  %v645_v29 = vmul.f32 %v373_v27, %v373_v27  ;;  %v375_v45 = vld [vmem:[%s7945_s25 + $0x6b8] sm:$0xff]  ;;  %v376_v27 = vld [vmem:[%s7945_s25 + $0x6c0] sm:$0xff] }
 0x1d2   : > { %v8698_v51 = vpop.xlane.xlu0 %980 }
 0x1d3   : > { %11748 = vst [vmem:[#allocation130_spill] sm:$0xff] %v8698_v51  ;;  %1122 = vadd.xlane.f32.xlu1 %v641_v13  ;;  %v644_v51 = vmul.f32 %v372_v50, %v372_v50 }
 0x1d4   : > { %v8701_v5 = vpop.xlane.xlu1 %986 }
 0x1d5   : > { %1120 = vadd.xlane.f32.xlu0 %v640_v58  ;;  %11749 = vst [vmem:[#allocation131_spill] sm:$0xff] %v8701_v5  ;;  %v647_v58 = vmul.f32 %v375_v45, %v375_v45  ;;  %v377_v5 = vld [vmem:[%s7945_s25 + $0x6c8] sm:$0xff]  ;;  %v378_v45 = vld [vmem:[%s7945_s25 + $0x6d0] sm:$0xff] }
 0x1d6   : > { %v8704_v31 = vpop.xlane.xlu0 %984 }
 0x1d7   : > { %11750 = vst [vmem:[#allocation132_spill] sm:$0xff] %v8704_v31  ;;  %1126 = vadd.xlane.f32.xlu1 %v643_v54  ;;  %v646_v31 = vmul.f32 %v374_v55, %v374_v55 }
 0x1d8   : > { %v8707_v46 = vpop.xlane.xlu1 %990 }
 0x1d9   : > { %1124 = vadd.xlane.f32.xlu0 %v642_v43  ;;  %11751 = vst [vmem:[#allocation133_spill] sm:$0xff] %v8707_v46  ;;  %v649_v43 = vmul.f32 %v377_v5, %v377_v5  ;;  %v379_v46 = vld [vmem:[%s7945_s25 + $0x6d8] sm:$0xff]  ;;  %v380_v5 = vld [vmem:[%s7945_s25 + $0x6e0] sm:$0xff] }
 0x1da   : > { %v8710_v13 = vpop.xlane.xlu0 %988 }
 0x1db   : > { %11752 = vst [vmem:[#allocation134_spill] sm:$0xff] %v8710_v13  ;;  %1130 = vadd.xlane.f32.xlu1 %v645_v29  ;;  %v648_v13 = vmul.f32 %v376_v27, %v376_v27 }
 0x1dc   : > { %v8713_v41 = vpop.xlane.xlu1 %994 }
 0x1dd   : > { %1128 = vadd.xlane.f32.xlu0 %v644_v51  ;;  %11753 = vst [vmem:[#allocation135_spill] sm:$0xff] %v8713_v41  ;;  %v651_v51 = vmul.f32 %v379_v46, %v379_v46  ;;  %v381_v41 = vld [vmem:[%s7945_s25 + $0x6e8] sm:$0xff]  ;;  %v382_v46 = vld [vmem:[%s7945_s25 + $0x6f0] sm:$0xff] }
 0x1de   : > { %v8716_v54 = vpop.xlane.xlu0 %992 }
 0x1df   : > { %11754 = vst [vmem:[#allocation136_spill] sm:$0xff] %v8716_v54  ;;  %1134 = vadd.xlane.f32.xlu1 %v647_v58  ;;  %v650_v54 = vmul.f32 %v378_v45, %v378_v45 }
 0x1e0   : > { %v8719_v50 = vpop.xlane.xlu1 %998 }
 0x1e1   : > { %1132 = vadd.xlane.f32.xlu0 %v646_v31  ;;  %11755 = vst [vmem:[#allocation137_spill] sm:$0xff] %v8719_v50  ;;  %v653_v31 = vmul.f32 %v381_v41, %v381_v41  ;;  %v383_v50 = vld [vmem:[%s7945_s25 + $0x6f8] sm:$0xff]  ;;  %v384_v41 = vld [vmem:[%s7945_s25 + $0x700] sm:$0xff] }
 0x1e2   : > { %v8722_v29 = vpop.xlane.xlu0 %996 }
 0x1e3   : > { %11756 = vst [vmem:[#allocation138_spill] sm:$0xff] %v8722_v29  ;;  %1138 = vadd.xlane.f32.xlu1 %v649_v43  ;;  %v652_v29 = vmul.f32 %v380_v5, %v380_v5 }
 0x1e4   : > { %v8725_v55 = vpop.xlane.xlu1 %1002 }
 0x1e5   : > { %1136 = vadd.xlane.f32.xlu0 %v648_v13  ;;  %11757 = vst [vmem:[#allocation139_spill] sm:$0xff] %v8725_v55  ;;  %v655_v13 = vmul.f32 %v383_v50, %v383_v50  ;;  %v385_v55 = vld [vmem:[%s7945_s25 + $0x708] sm:$0xff]  ;;  %v386_v50 = vld [vmem:[%s7945_s25 + $0x710] sm:$0xff] }
 0x1e6   : > { %v8728_v58 = vpop.xlane.xlu0 %1000 }
 0x1e7   : > { %11758 = vst [vmem:[#allocation140_spill] sm:$0xff] %v8728_v58  ;;  %1142 = vadd.xlane.f32.xlu1 %v651_v51  ;;  %v654_v58 = vmul.f32 %v382_v46, %v382_v46 }
 0x1e8   : > { %v8731_v27 = vpop.xlane.xlu1 %1006 }
 0x1e9   : > { %1140 = vadd.xlane.f32.xlu0 %v650_v54  ;;  %11759 = vst [vmem:[#allocation141_spill] sm:$0xff] %v8731_v27  ;;  %v657_v54 = vmul.f32 %v385_v55, %v385_v55  ;;  %v387_v27 = vld [vmem:[%s7945_s25 + $0x718] sm:$0xff]  ;;  %v388_v55 = vld [vmem:[%s7945_s25 + $0x720] sm:$0xff] }
 0x1ea   : > { %v8734_v43 = vpop.xlane.xlu0 %1004 }
 0x1eb   : > { %11760 = vst [vmem:[#allocation142_spill] sm:$0xff] %v8734_v43  ;;  %1146 = vadd.xlane.f32.xlu1 %v653_v31  ;;  %v656_v43 = vmul.f32 %v384_v41, %v384_v41 }
 0x1ec   : > { %v8737_v45 = vpop.xlane.xlu1 %1010 }
 0x1ed   : > { %1144 = vadd.xlane.f32.xlu0 %v652_v29  ;;  %11761 = vst [vmem:[#allocation143_spill] sm:$0xff] %v8737_v45  ;;  %v659_v29 = vmul.f32 %v387_v27, %v387_v27  ;;  %v389_v45 = vld [vmem:[%s7945_s25 + $0x728] sm:$0xff]  ;;  %v390_v27 = vld [vmem:[%s7945_s25 + $0x730] sm:$0xff] }
 0x1ee   : > { %v8740_v51 = vpop.xlane.xlu0 %1008 }
 0x1ef   : > { %11762 = vst [vmem:[#allocation144_spill] sm:$0xff] %v8740_v51  ;;  %1150 = vadd.xlane.f32.xlu1 %v655_v13  ;;  %v658_v51 = vmul.f32 %v386_v50, %v386_v50 }
 0x1f0   : > { %v8743_v5 = vpop.xlane.xlu1 %1014 }
 0x1f1   : > { %1148 = vadd.xlane.f32.xlu0 %v654_v58  ;;  %11763 = vst [vmem:[#allocation145_spill] sm:$0xff] %v8743_v5  ;;  %v661_v58 = vmul.f32 %v389_v45, %v389_v45  ;;  %v391_v5 = vld [vmem:[%s7945_s25 + $0x738] sm:$0xff]  ;;  %v392_v45 = vld [vmem:[%s7945_s25 + $0x740] sm:$0xff] }
 0x1f2   : > { %v8746_v31 = vpop.xlane.xlu0 %1012 }
 0x1f3   : > { %11764 = vst [vmem:[#allocation146_spill] sm:$0xff] %v8746_v31  ;;  %1154 = vadd.xlane.f32.xlu1 %v657_v54  ;;  %v660_v31 = vmul.f32 %v388_v55, %v388_v55 }
 0x1f4   : > { %v8749_v46 = vpop.xlane.xlu1 %1018 }
 0x1f5   : > { %1152 = vadd.xlane.f32.xlu0 %v656_v43  ;;  %11765 = vst [vmem:[#allocation147_spill] sm:$0xff] %v8749_v46  ;;  %v663_v43 = vmul.f32 %v391_v5, %v391_v5  ;;  %v393_v46 = vld [vmem:[%s7945_s25 + $0x748] sm:$0xff]  ;;  %v394_v5 = vld [vmem:[%s7945_s25 + $0x750] sm:$0xff] }
 0x1f6   : > { %v8752_v13 = vpop.xlane.xlu0 %1016 }
 0x1f7   : > { %11766 = vst [vmem:[#allocation148_spill] sm:$0xff] %v8752_v13  ;;  %1158 = vadd.xlane.f32.xlu1 %v659_v29  ;;  %v662_v13 = vmul.f32 %v390_v27, %v390_v27 }
 0x1f8   : > { %v8755_v41 = vpop.xlane.xlu1 %1022 }
 0x1f9   : > { %1156 = vadd.xlane.f32.xlu0 %v658_v51  ;;  %11767 = vst [vmem:[#allocation149_spill] sm:$0xff] %v8755_v41  ;;  %v665_v51 = vmul.f32 %v393_v46, %v393_v46  ;;  %v395_v41 = vld [vmem:[%s7945_s25 + $0x758] sm:$0xff]  ;;  %v396_v46 = vld [vmem:[%s7945_s25 + $0x760] sm:$0xff] }
 0x1fa   : > { %v8758_v54 = vpop.xlane.xlu0 %1020 }
 0x1fb   : > { %11768 = vst [vmem:[#allocation150_spill] sm:$0xff] %v8758_v54  ;;  %1162 = vadd.xlane.f32.xlu1 %v661_v58  ;;  %v664_v54 = vmul.f32 %v392_v45, %v392_v45 }
 0x1fc   : > { %v8761_v50 = vpop.xlane.xlu1 %1026 }
 0x1fd   : > { %1160 = vadd.xlane.f32.xlu0 %v660_v31  ;;  %11769 = vst [vmem:[#allocation151_spill] sm:$0xff] %v8761_v50  ;;  %v667_v31 = vmul.f32 %v395_v41, %v395_v41  ;;  %v397_v50 = vld [vmem:[%s7945_s25 + $0x768] sm:$0xff]  ;;  %v398_v41 = vld [vmem:[%s7945_s25 + $0x770] sm:$0xff] }
 0x1fe   : > { %v8764_v29 = vpop.xlane.xlu0 %1024 }
 0x1ff   : > { %11770 = vst [vmem:[#allocation152_spill] sm:$0xff] %v8764_v29  ;;  %1166 = vadd.xlane.f32.xlu1 %v663_v43  ;;  %v666_v29 = vmul.f32 %v394_v5, %v394_v5 }
 0x200   : > { %v8767_v55 = vpop.xlane.xlu1 %1030 }
 0x201   : > { %1164 = vadd.xlane.f32.xlu0 %v662_v13  ;;  %11771 = vst [vmem:[#allocation153_spill] sm:$0xff] %v8767_v55  ;;  %v669_v13 = vmul.f32 %v397_v50, %v397_v50  ;;  %v399_v55 = vld [vmem:[%s7945_s25 + $0x778] sm:$0xff]  ;;  %v400_v50 = vld [vmem:[%s7945_s25 + $0x780] sm:$0xff] }
 0x202   : > { %v8770_v58 = vpop.xlane.xlu0 %1028 }
 0x203   : > { %11772 = vst [vmem:[#allocation154_spill] sm:$0xff] %v8770_v58  ;;  %1170 = vadd.xlane.f32.xlu1 %v665_v51  ;;  %v668_v58 = vmul.f32 %v396_v46, %v396_v46 }
 0x204   : > { %v8773_v27 = vpop.xlane.xlu1 %1034 }
 0x205   : > { %1168 = vadd.xlane.f32.xlu0 %v664_v54  ;;  %11773 = vst [vmem:[#allocation155_spill] sm:$0xff] %v8773_v27  ;;  %v671_v54 = vmul.f32 %v399_v55, %v399_v55  ;;  %v401_v27 = vld [vmem:[%s7945_s25 + $0x788] sm:$0xff]  ;;  %v402_v55 = vld [vmem:[%s7945_s25 + $0x790] sm:$0xff] }
 0x206   : > { %v8776_v43 = vpop.xlane.xlu0 %1032 }
 0x207   : > { %11774 = vst [vmem:[#allocation156_spill] sm:$0xff] %v8776_v43  ;;  %1174 = vadd.xlane.f32.xlu1 %v667_v31  ;;  %v670_v43 = vmul.f32 %v398_v41, %v398_v41 }
 0x208   : > { %v8779_v45 = vpop.xlane.xlu1 %1038 }
 0x209   : > { %1172 = vadd.xlane.f32.xlu0 %v666_v29  ;;  %11775 = vst [vmem:[#allocation157_spill] sm:$0xff] %v8779_v45  ;;  %v673_v29 = vmul.f32 %v401_v27, %v401_v27  ;;  %v403_v45 = vld [vmem:[%s7945_s25 + $0x798] sm:$0xff]  ;;  %v404_v27 = vld [vmem:[%s7945_s25 + $0x7a0] sm:$0xff] }
 0x20a   : > { %v8782_v51 = vpop.xlane.xlu0 %1036 }
 0x20b   : > { %11776 = vst [vmem:[#allocation158_spill] sm:$0xff] %v8782_v51  ;;  %1178 = vadd.xlane.f32.xlu1 %v669_v13  ;;  %v672_v51 = vmul.f32 %v400_v50, %v400_v50 }
 0x20c   : > { %v8785_v5 = vpop.xlane.xlu1 %1042 }
 0x20d   : > { %1176 = vadd.xlane.f32.xlu0 %v668_v58  ;;  %11777 = vst [vmem:[#allocation159_spill] sm:$0xff] %v8785_v5  ;;  %v675_v58 = vmul.f32 %v403_v45, %v403_v45  ;;  %v405_v5 = vld [vmem:[%s7945_s25 + $0x7a8] sm:$0xff]  ;;  %v406_v45 = vld [vmem:[%s7945_s25 + $0x7b0] sm:$0xff] }
 0x20e   : > { %v8788_v31 = vpop.xlane.xlu0 %1040 }
 0x20f   : > { %11778 = vst [vmem:[#allocation160_spill] sm:$0xff] %v8788_v31  ;;  %1182 = vadd.xlane.f32.xlu1 %v671_v54  ;;  %v674_v31 = vmul.f32 %v402_v55, %v402_v55 }
 0x210   : > { %v8791_v46 = vpop.xlane.xlu1 %1046 }
 0x211   : > { %1180 = vadd.xlane.f32.xlu0 %v670_v43  ;;  %11779 = vst [vmem:[#allocation161_spill] sm:$0xff] %v8791_v46  ;;  %v677_v43 = vmul.f32 %v405_v5, %v405_v5  ;;  %v407_v46 = vld [vmem:[%s7945_s25 + $0x7b8] sm:$0xff]  ;;  %v408_v5 = vld [vmem:[%s7945_s25 + $0x7c0] sm:$0xff] }
 0x212   : > { %v8794_v13 = vpop.xlane.xlu0 %1044 }
 0x213   : > { %11780 = vst [vmem:[#allocation162_spill] sm:$0xff] %v8794_v13  ;;  %1186 = vadd.xlane.f32.xlu1 %v673_v29  ;;  %v676_v13 = vmul.f32 %v404_v27, %v404_v27 }
 0x214   : > { %v8797_v41 = vpop.xlane.xlu1 %1050 }
 0x215   : > { %1184 = vadd.xlane.f32.xlu0 %v672_v51  ;;  %11781 = vst [vmem:[#allocation163_spill] sm:$0xff] %v8797_v41  ;;  %v679_v51 = vmul.f32 %v407_v46, %v407_v46  ;;  %v409_v41 = vld [vmem:[%s7945_s25 + $0x7c8] sm:$0xff]  ;;  %v410_v46 = vld [vmem:[%s7945_s25 + $0x7d0] sm:$0xff] }
 0x216   : > { %v8800_v54 = vpop.xlane.xlu0 %1048 }
 0x217   : > { %11782 = vst [vmem:[#allocation164_spill] sm:$0xff] %v8800_v54  ;;  %1190 = vadd.xlane.f32.xlu1 %v675_v58  ;;  %v678_v54 = vmul.f32 %v406_v45, %v406_v45 }
 0x218   : > { %v8803_v50 = vpop.xlane.xlu1 %1054 }
 0x219   : > { %1188 = vadd.xlane.f32.xlu0 %v674_v31  ;;  %11783 = vst [vmem:[#allocation165_spill] sm:$0xff] %v8803_v50  ;;  %v681_v31 = vmul.f32 %v409_v41, %v409_v41  ;;  %v411_v50 = vld [vmem:[%s7945_s25 + $0x7d8] sm:$0xff]  ;;  %v412_v41 = vld [vmem:[%s7945_s25 + $0x7e0] sm:$0xff] }
 0x21a   : > { %v8806_v29 = vpop.xlane.xlu0 %1052 }
 0x21b   : > { %11784 = vst [vmem:[#allocation166_spill] sm:$0xff] %v8806_v29  ;;  %1194 = vadd.xlane.f32.xlu1 %v677_v43  ;;  %v680_v29 = vmul.f32 %v408_v5, %v408_v5 }
 0x21c   : > { %v8809_v55 = vpop.xlane.xlu1 %1058 }
 0x21d   : > { %1192 = vadd.xlane.f32.xlu0 %v676_v13  ;;  %11785 = vst [vmem:[#allocation167_spill] sm:$0xff] %v8809_v55  ;;  %v683_v13 = vmul.f32 %v411_v50, %v411_v50  ;;  %v413_v55 = vld [vmem:[%s7945_s25 + $0x7e8] sm:$0xff]  ;;  %v414_v50 = vld [vmem:[%s7945_s25 + $0x7f0] sm:$0xff] }
 0x21e   : > { %v8812_v58 = vpop.xlane.xlu0 %1056 }
 0x21f   : > { %11786 = vst [vmem:[#allocation168_spill] sm:$0xff] %v8812_v58  ;;  %1198 = vadd.xlane.f32.xlu1 %v679_v51  ;;  %v682_v58 = vmul.f32 %v410_v46, %v410_v46 }
 0x220   : > { %v8815_v27 = vpop.xlane.xlu1 %1062 }
 0x221   : > { %1196 = vadd.xlane.f32.xlu0 %v678_v54  ;;  %11787 = vst [vmem:[#allocation169_spill] sm:$0xff] %v8815_v27  ;;  %v685_v54 = vmul.f32 %v413_v55, %v413_v55  ;;  %v415_v27 = vld [vmem:[%s7945_s25 + $0x7f8] sm:$0xff]  ;;  %v416_v55 = vld [vmem:[%s7945_s25 + $0x800] sm:$0xff] }
 0x222   : > { %v8818_v43 = vpop.xlane.xlu0 %1060 }
 0x223   : > { %11788 = vst [vmem:[#allocation170_spill] sm:$0xff] %v8818_v43  ;;  %1202 = vadd.xlane.f32.xlu1 %v681_v31  ;;  %v684_v43 = vmul.f32 %v412_v41, %v412_v41 }
 0x224   : > { %v8821_v45 = vpop.xlane.xlu1 %1066 }
 0x225   : > { %1200 = vadd.xlane.f32.xlu0 %v680_v29  ;;  %11789 = vst [vmem:[#allocation171_spill] sm:$0xff] %v8821_v45  ;;  %v687_v29 = vmul.f32 %v415_v27, %v415_v27  ;;  %v417_v45 = vld [vmem:[%s7945_s25 + $0x808] sm:$0xff]  ;;  %v418_v27 = vld [vmem:[%s7945_s25 + $0x810] sm:$0xff] }
 0x226   : > { %v8824_v51 = vpop.xlane.xlu0 %1064 }
 0x227   : > { %11790 = vst [vmem:[#allocation172_spill] sm:$0xff] %v8824_v51  ;;  %1206 = vadd.xlane.f32.xlu1 %v683_v13  ;;  %v686_v51 = vmul.f32 %v414_v50, %v414_v50 }
 0x228   : > { %v8827_v5 = vpop.xlane.xlu1 %1070 }
 0x229   : > { %1204 = vadd.xlane.f32.xlu0 %v682_v58  ;;  %11791 = vst [vmem:[#allocation173_spill] sm:$0xff] %v8827_v5  ;;  %v689_v58 = vmul.f32 %v417_v45, %v417_v45  ;;  %v419_v5 = vld [vmem:[%s7945_s25 + $0x818] sm:$0xff]  ;;  %v420_v45 = vld [vmem:[%s7945_s25 + $0x820] sm:$0xff] }
 0x22a   : > { %v8830_v31 = vpop.xlane.xlu0 %1068 }
 0x22b   : > { %11792 = vst [vmem:[#allocation174_spill] sm:$0xff] %v8830_v31  ;;  %1210 = vadd.xlane.f32.xlu1 %v685_v54  ;;  %v688_v31 = vmul.f32 %v416_v55, %v416_v55 }
 0x22c   : > { %v8833_v46 = vpop.xlane.xlu1 %1074 }
 0x22d   : > { %1208 = vadd.xlane.f32.xlu0 %v684_v43  ;;  %11793 = vst [vmem:[#allocation175_spill] sm:$0xff] %v8833_v46  ;;  %v691_v43 = vmul.f32 %v419_v5, %v419_v5  ;;  %v421_v46 = vld [vmem:[%s7945_s25 + $0x828] sm:$0xff]  ;;  %v422_v5 = vld [vmem:[%s7945_s25 + $0x830] sm:$0xff] }
 0x22e   : > { %v8836_v13 = vpop.xlane.xlu0 %1072 }
 0x22f   : > { %11794 = vst [vmem:[#allocation176_spill] sm:$0xff] %v8836_v13  ;;  %1214 = vadd.xlane.f32.xlu1 %v687_v29  ;;  %v690_v13 = vmul.f32 %v418_v27, %v418_v27 }
 0x230   : > { %v8839_v41 = vpop.xlane.xlu1 %1078 }
 0x231   : > { %1212 = vadd.xlane.f32.xlu0 %v686_v51  ;;  %11795 = vst [vmem:[#allocation177_spill] sm:$0xff] %v8839_v41  ;;  %v693_v51 = vmul.f32 %v421_v46, %v421_v46  ;;  %v423_v41 = vld [vmem:[%s7945_s25 + $0x838] sm:$0xff]  ;;  %v424_v46 = vld [vmem:[%s7945_s25 + $0x840] sm:$0xff] }
 0x232   : > { %v8842_v54 = vpop.xlane.xlu0 %1076 }
 0x233   : > { %11796 = vst [vmem:[#allocation178_spill] sm:$0xff] %v8842_v54  ;;  %1218 = vadd.xlane.f32.xlu1 %v689_v58  ;;  %v692_v54 = vmul.f32 %v420_v45, %v420_v45 }
 0x234   : > { %v8845_v50 = vpop.xlane.xlu1 %1082 }
 0x235   : > { %1216 = vadd.xlane.f32.xlu0 %v688_v31  ;;  %11797 = vst [vmem:[#allocation179_spill] sm:$0xff] %v8845_v50  ;;  %v695_v31 = vmul.f32 %v423_v41, %v423_v41  ;;  %v425_v50 = vld [vmem:[%s7945_s25 + $0x848] sm:$0xff]  ;;  %v426_v41 = vld [vmem:[%s7945_s25 + $0x850] sm:$0xff] }
 0x236   : > { %v8848_v29 = vpop.xlane.xlu0 %1080 }
 0x237   : > { %11798 = vst [vmem:[#allocation180_spill] sm:$0xff] %v8848_v29  ;;  %1222 = vadd.xlane.f32.xlu1 %v691_v43  ;;  %v694_v29 = vmul.f32 %v422_v5, %v422_v5 }
 0x238   : > { %v8851_v55 = vpop.xlane.xlu1 %1086 }
 0x239   : > { %1220 = vadd.xlane.f32.xlu0 %v690_v13  ;;  %11799 = vst [vmem:[#allocation181_spill] sm:$0xff] %v8851_v55  ;;  %v697_v13 = vmul.f32 %v425_v50, %v425_v50  ;;  %v427_v55 = vld [vmem:[%s7945_s25 + $0x858] sm:$0xff]  ;;  %v428_v50 = vld [vmem:[%s7945_s25 + $0x860] sm:$0xff] }
 0x23a   : > { %v8854_v58 = vpop.xlane.xlu0 %1084 }
 0x23b   : > { %11800 = vst [vmem:[#allocation182_spill] sm:$0xff] %v8854_v58  ;;  %1226 = vadd.xlane.f32.xlu1 %v693_v51  ;;  %v696_v58 = vmul.f32 %v424_v46, %v424_v46  ;;  %v700_v46 = vmul.f32 %v428_v50, %v428_v50 }
 0x23c   : > { %v8857_v27 = vpop.xlane.xlu1 %1090 }
 0x23d   : > { %1224 = vadd.xlane.f32.xlu0 %v692_v54  ;;  %11801 = vst [vmem:[#allocation183_spill] sm:$0xff] %v8857_v27  ;;  %v699_v54 = vmul.f32 %v427_v55, %v427_v55  ;;  %v429_v27 = vld [vmem:[%s7945_s25 + $0x868] sm:$0xff] }
 0x23e   : > { %v8860_v43 = vpop.xlane.xlu0 %1088 }
 0x23f   : > { %11802 = vst [vmem:[#allocation184_spill] sm:$0xff] %v8860_v43  ;;  %1230 = vadd.xlane.f32.xlu1 %v695_v31  ;;  %v698_v43 = vmul.f32 %v426_v41, %v426_v41 }
 0x240   : > { %v8863_v45 = vpop.xlane.xlu1 %1094 }
 0x241   : > { %1228 = vadd.xlane.f32.xlu0 %v694_v29  ;;  %11803 = vst [vmem:[#allocation185_spill] sm:$0xff] %v8863_v45  ;;  %v701_v29 = vmul.f32 %v429_v27, %v429_v27  ;;  %v7466_v45 = vld [vmem:[%s7945_s25 + $0xa0] sm:$0xff] }
 0x242   : > { %v8866_v51 = vpop.xlane.xlu0 %1092 }
 0x243   : > { %11804 = vst [vmem:[#allocation186_spill] sm:$0xff] %v8866_v51  ;;  %1234 = vadd.xlane.f32.xlu1 %v697_v13  ;;  %v431_v13 = vld [vmem:[%s7945_s25 + $0x878] sm:$0xff]  ;;  %v7464_v51 = vld [vmem:[%s7945_s25 + $0xa8] sm:$0xff] }
 0x244   : > { %v8869_v5 = vpop.xlane.xlu1 %1098  ;;  %v703_v41 = vmul.f32 %v431_v13, %v431_v13 }
 0x245   : > { %1232 = vadd.xlane.f32.xlu0 %v696_v58  ;;  %11805 = vst [vmem:[#allocation187_spill] sm:$0xff] %v8869_v5  ;;  %v430_v58 = vld [vmem:[%s7945_s25 + $0x870] sm:$0xff] }
 0x246   : > { %v8872_v16 = vpop.xlane.xlu0 %1096  ;;  %v702_v5 = vmul.f32 %v430_v58, %v430_v58 }
 0x247   : > { %11806 = vst [vmem:[#allocation188_spill] sm:$0xff] %v8872_v16  ;;  %1238 = vadd.xlane.f32.xlu1 %v699_v54  ;;  %v7456_v54 = vld [vmem:[%s7945_s25 + $0x88] sm:$0xff] }
 0x248   : > { %v8875_v31 = vpop.xlane.xlu1 %1102 }
 0x249   : > { %1236 = vadd.xlane.f32.xlu0 %v698_v43  ;;  %11807 = vst [vmem:[#allocation189_spill] sm:$0xff] %v8875_v31  ;;  %v8886_v43 = vld [vmem:[%s7945_s25 + $0x8] sm:$0xff]  ;;  %v8891_v31 = vld [vmem:[%s7945_s25] sm:$0xff] }
 0x24a   : > { %v8878_v55 = vpop.xlane.xlu0 %1100  ;;  %v1249_v50 = vmul.f32 %v7456_v54, %v8886_v43 }
 0x24b   : > { %11808 = vst [vmem:[#allocation190_spill] sm:$0xff] %v8878_v55  ;;  %1242 = vadd.xlane.f32.xlu1 %v701_v29  ;;  %v7458_v29 = vld [vmem:[%s7945_s25 + $0x80] sm:$0xff]  ;;  %v7462_v55 = vld [vmem:[%s7945_s25 + $0x90] sm:$0xff] }
 0x24c   : > { %v8881_v16 = vpop.xlane.xlu1 %1106 }
 0x24d   : > { %1240 = vadd.xlane.f32.xlu0 %v700_v46  ;;  %11809 = vst [vmem:[#allocation191_spill] sm:$0xff] %v8881_v16  ;;  %v1248_v46 = vmul.f32 %v7458_v29, %v8891_v31  ;;  %v8900_v16 = vld [vmem:[%s7945_s25 + $0x18] sm:$0xff] }
 0x24e   : > { %v8883_v27 = vpop.xlane.xlu0 %1104 }
 0x24f   : > { %11810 = vst [vmem:[#allocation192_spill] sm:$0xff] %v8883_v27  ;;  %1246 = vadd.xlane.f32.xlu1 %v703_v41  ;;  %v7460_v27 = vld [vmem:[%s7945_s25 + $0x98] sm:$0xff]  ;;  %v8905_v41 = vld [vmem:[%s7945_s25 + $0x10] sm:$0xff] }
 0x250   : > { %v8895_v13 = vpop.xlane.xlu1 %1110  ;;  %v1251_v54 = vmul.f32 %v7460_v27, %v8900_v16  ;;  %v1250_v29 = vmul.f32 %v7462_v55, %v8905_v41 }
 0x251   : > { %1244 = vadd.xlane.f32.xlu0 %v702_v5  ;;  %11811 = vst [vmem:[#allocation193_spill] sm:$0xff] %v8895_v13 }
 0x252   : > { %v8897_v58 = vpop.xlane.xlu0 %1108 }
 0x253   : > { %11812 = vst [vmem:[#allocation194_spill] sm:$0xff] %v8897_v58  ;;  %1506 = vadd.xlane.f32.xlu1 %v1249_v50  ;;  %v8914_v58 = vld [vmem:[%s7945_s25 + $0x28] sm:$0xff]  ;;  %v8919_v50 = vld [vmem:[%s7945_s25 + $0x20] sm:$0xff] }
 0x254   : > { %v8909_v5 = vpop.xlane.xlu1 %1114  ;;  %v1253_v27 = vmul.f32 %v7464_v51, %v8914_v58  ;;  %v1252_v55 = vmul.f32 %v7466_v45, %v8919_v50 }
 0x255   : > { %1504 = vadd.xlane.f32.xlu0 %v1248_v46  ;;  %11813 = vst [vmem:[#allocation195_spill] sm:$0xff] %v8909_v5 }
 0x256   : > { %v8911_v13 = vpop.xlane.xlu0 %1112 }
 0x257   : > { %11814 = vst [vmem:[#allocation196_spill] sm:$0xff] %v8911_v13  ;;  %1510 = vadd.xlane.f32.xlu1 %v1251_v54  ;;  %v8928_v13 = vld [vmem:[%s7945_s25 + $0x38] sm:$0xff]  ;;  %v8933_v54 = vld [vmem:[%s7945_s25 + $0x30] sm:$0xff] }
 0x258   : > { %v8923_v46 = vpop.xlane.xlu1 %1118  ;;  %v1255_v51 = vmul.f32 %v7468_v11, %v8928_v13  ;;  %v1254_v45 = vmul.f32 %v7470_v42, %v8933_v54 }
 0x259   : > { %1508 = vadd.xlane.f32.xlu0 %v1250_v29  ;;  %11815 = vst [vmem:[#allocation197_spill] sm:$0xff] %v8923_v46 }
 0x25a   : > { %v8925_v5 = vpop.xlane.xlu0 %1116 }
 0x25b   : > { %11816 = vst [vmem:[#allocation198_spill] sm:$0xff] %v8925_v5  ;;  %1514 = vadd.xlane.f32.xlu1 %v1253_v27  ;;  %v8942_v5 = vld [vmem:[%s7945_s25 + $0x48] sm:$0xff]  ;;  %v8947_v27 = vld [vmem:[%s7945_s25 + $0x40] sm:$0xff] }
 0x25c   : > { %v8937_v29 = vpop.xlane.xlu1 %1122  ;;  %v1257_v11 = vmul.f32 %v7472_v62, %v8942_v5  ;;  %v1256_v20 = vmul.f32 %v7474_v24, %v8947_v27  ;;  %v8961_v62 = vld [vmem:[%s7945_s25 + $0x50] sm:$0xff] }
 0x25d   : > { %1512 = vadd.xlane.f32.xlu0 %v1252_v55  ;;  %11817 = vst [vmem:[#allocation199_spill] sm:$0xff] %v8937_v29  ;;  %v8956_v29 = vld [vmem:[%s7945_s25 + $0x58] sm:$0xff] }
 0x25e   : > { %v8939_v46 = vpop.xlane.xlu0 %1120 }
 0x25f   : > { %11818 = vst [vmem:[#allocation200_spill] sm:$0xff] %v8939_v46  ;;  %1518 = vadd.xlane.f32.xlu1 %v1255_v51  ;;  %v7476_v46 = vld [vmem:[%s7945_s25 + $0xd8] sm:$0xff]  ;;  %v7478_v51 = vld [vmem:[%s7945_s25 + $0xd0] sm:$0xff] }
 0x260   : > { %v8951_v42 = vpop.xlane.xlu1 %1126  ;;  %v1259_v56 = vmul.f32 %v7476_v46, %v8956_v29  ;;  %v1258_v24 = vmul.f32 %v7478_v51, %v8961_v62  ;;  %v8973_v46 = vld [vmem:[%s7945_s25 + $0x68] sm:$0xff]  ;;  %v2034_v51 = vmax.f32 %v8260_v25, 1e-16  ;;  %v8991_v25 = vld [vmem:[%s7945_s25 + $0x78] sm:$0xff] }
 0x261   : > { %1516 = vadd.xlane.f32.xlu0 %v1254_v45  ;;  %11819 = vst [vmem:[#allocation201_spill] sm:$0xff] %v8951_v42  ;;  %v2033_v45 = vmax.f32 %v8232_v33, 1e-16  ;;  %v8979_v33 = vld [vmem:[%s7945_s25 + $0x60] sm:$0xff] }
 0x262   : > { %v8953_v55 = vpop.xlane.xlu0 %1124 }
 0x263   : > { %11820 = vst [vmem:[#allocation202_spill] sm:$0xff] %v8953_v55  ;;  %1522 = vadd.xlane.f32.xlu1 %v1257_v11  ;;  %v2032_v55 = vmax.f32 %v8234_v34, 1e-16  ;;  %v7480_v11 = vld [vmem:[%s7945_s25 + $0xe8] sm:$0xff]  ;;  %6931 = vrsqrt.f32 %v2033_v45  ;;  %v2037_v34 = vmax.f32 %v8282_v61, 1e-16 }
 0x264   : > { %v8966_v42 = vpop.xlane.xlu1 %1130  ;;  %v1261_v36 = vmul.f32 %v7480_v11, %v8973_v46  ;;  %v2036_v11 = vmax.f32 %v8284_v9, 1e-16  ;;  %v2038_v61 = vmax.f32 %v8306_v14, 1e-16  ;;  %v2043_v14 = vmax.f32 %v8336_v10, 1e-16 }
 0x265   : > { %1520 = vadd.xlane.f32.xlu0 %v1256_v20  ;;  %11821 = vst [vmem:[#allocation203_spill] sm:$0xff] %v8966_v42  ;;  %v7482_v20 = vld [vmem:[%s7945_s25 + $0xe0] sm:$0xff]  ;;  %6933 = vrsqrt.f32 %v2032_v55  ;;  %v7486_v55 = vld [vmem:[%s7945_s25 + $0xf0] sm:$0xff]  ;;  %v2044_v10 = vmax.f32 %v8355_v6, 1e-16 }
 0x266   : > { %v8969_v28 = vpop.xlane.xlu0 %1128  ;;  %v1260_v42 = vmul.f32 %v7482_v20, %v8979_v33  ;;  %6935 = vrsqrt.f32 %v2035_v59  ;;  %v1263_v20 = vmul.f32 %v7484_v12, %v8991_v25  ;;  %v2041_v59 = vmax.f32 %v8323_v53, 1e-16  ;;  %v7488_v53 = vld [vmem:[%s7945_s25 + $0x100] sm:$0xff] }
 0x267   : > { %11822 = vst [vmem:[#allocation204_spill] sm:$0xff] %v8969_v28  ;;  %1526 = vadd.xlane.f32.xlu1 %v1259_v56  ;;  %v2039_v56 = vmax.f32 %v8304_v44, 1e-16  ;;  %6937 = vrsqrt.f32 %v2034_v51  ;;  %v2040_v12 = vmax.f32 %v8325_v47, 1e-16 }
 0x268   : > { %v8984_v8 = vpop.xlane.xlu1 %1134  ;;  %6939 = vrsqrt.f32 %v2037_v34  ;;  %v2042_v34 = vmax.f32 %v8338_v2, 1e-16  ;;  %v2045_v47 = vmax.f32 %v8353_v21, 1e-16  ;;  %v7489_v2 = vld [vmem:[%s7945_s25 + $0x118] sm:$0xff]  ;;  %v7490_v21 = vld [vmem:[%s7945_s25 + $0x110] sm:$0xff] }
 0x269   : > { %1524 = vadd.xlane.f32.xlu0 %v1258_v24  ;;  %11823 = vst [vmem:[#allocation205_spill] sm:$0xff] %v8984_v8  ;;  %v8997_v24 = vld [vmem:[%s7945_s25 + $0x70] sm:$0xff]  ;;  %6941 = vrsqrt.f32 %v2036_v11 }
 0x26a   : > { %v8987_v28 = vpop.xlane.xlu0 %1132  ;;  %v1262_v9 = vmul.f32 %v7486_v55, %v8997_v24  ;;  %6943 = vrsqrt.f32 %v2039_v56  ;;  %v2046_v55 = vmax.f32 %v8366_v57, 1e-16 }
 0x26b   : > { %11824 = vst [vmem:[#allocation206_spill] sm:$0xff] %v8987_v28  ;;  %1530 = vadd.xlane.f32.xlu1 %v1261_v36  ;;  %v7487_v36 = vld [vmem:[%s7945_s25 + $0x108] sm:$0xff]  ;;  %6945 = vrsqrt.f32 %v2038_v61  ;;  %v2047_v61 = vmax.f32 %v8364_v17, 1e-16  ;;  %v2048_v17 = vmax.f32 %v8379_v7, 1e-16 }
 0x26c   : > { %v9002_v44 = vpop.xlane.xlu1 %1138  ;;  %v1265_v51 = vmul.f32 %v7487_v36, %v8886_v43  ;;  %6947 = vrsqrt.f32 %v2041_v59  ;;  %v2049_v59 = vmax.f32 %v8377_v63, 1e-16  ;;  %v2051_v36 = vmax.f32 %v8383_v18, 1e-16  ;;  %v7492_v7 = vld [vmem:[%s7945_s25 + $0x120] sm:$0xff] }
 0x26d   : > { %1528 = vadd.xlane.f32.xlu0 %v1260_v42  ;;  %11825 = vst [vmem:[#allocation207_spill] sm:$0xff] %v9002_v44  ;;  %v1264_v42 = vmul.f32 %v7488_v53, %v8891_v31  ;;  %6949 = vrsqrt.f32 %v2040_v12  ;;  %v2050_v53 = vmax.f32 %v8385_v40, 1e-16  ;;  %v11854_v28 = vld [vmem:[#allocation51_spill] sm:$0xff] }
 0x26e   : > { %v9005_v45 = vpop.xlane.xlu0 %1136  ;;  %6951 = vrsqrt.f32 %v2043_v14 }
 0x26f   : > { %11826 = vst [vmem:[#allocation208_spill] sm:$0xff] %v9005_v45  ;;  %1534 = vadd.xlane.f32.xlu1 %v1263_v20  ;;  %v1267_v20 = vmul.f32 %v7489_v2, %v8900_v16  ;;  %6953 = vrsqrt.f32 %v2042_v34  ;;  %v7491_v34 = vld [vmem:[%s7945_s25 + $0x128] sm:$0xff]  ;;  %v2052_v2 = vmax.f32 %v8391_v32, 1e-16  ;;  %v7494_v32 = vld [vmem:[%s7945_s25 + $0x130] sm:$0xff] }
 0x270   : > { %v9014_v11 = vpop.xlane.xlu1 %1142  ;;  %6955 = vrsqrt.f32 %v2045_v47  ;;  %v9028_v12 = vpop.eup %6931  ;;  %v1269_v63 = vmul.f32 %v7491_v34, %v8914_v58  ;;  %v1268_v47 = vmul.f32 %v7492_v7, %v8919_v50  ;;  %v1270_v34 = vmul.f32 %v7494_v32, %v8933_v54  ;;  %v11844_v45 = vld [vmem:[#allocation47_spill] sm:$0xff] }
 0x271   : > { %1532 = vadd.xlane.f32.xlu0 %v1262_v9  ;;  %11827 = vst [vmem:[#allocation209_spill] sm:$0xff] %v9014_v11  ;;  %v1266_v9 = vmul.f32 %v7490_v21, %v8905_v41  ;;  %6957 = vrsqrt.f32 %v2044_v10  ;;  %v2053_v10 = vmax.f32 %v8389_v19, 1e-16 }
 0x272   : > { %v9017_v56 = vpop.xlane.xlu0 %1140  ;;  %v9033_v57 = vpop.eup %6933  ;;  %6959 = vrsqrt.f32 %v2047_v61 }
 0x273   : > { %11828 = vst [vmem:[#allocation210_spill] sm:$0xff] %v9017_v56  ;;  %1538 = vadd.xlane.f32.xlu1 %v1265_v51  ;;  %v9036_v51 = vpop.eup %6935  ;;  %6961 = vrsqrt.f32 %v2046_v55  ;;  %v2055_v55 = vmax.f32 %v8395_v15, 1e-16 }
 0x274   : > { %v9026_v6 = vpop.xlane.xlu1 %1146  ;;  %6963 = vrsqrt.f32 %v2049_v59  ;;  %v7493_v59 = vld [vmem:[%s7945_s25 + $0x138] sm:$0xff] }
 0x275   : > { %1536 = vadd.xlane.f32.xlu0 %v1264_v42  ;;  %11829 = vst [vmem:[#allocation211_spill] sm:$0xff] %v9026_v6  ;;  %v9041_v42 = vpop.eup %6937  ;;  %6965 = vrsqrt.f32 %v2048_v17  ;;  %v1271_v19 = vmul.f32 %v7493_v59, %v8928_v13  ;;  %v2059_v59 = vmax.f32 %v8407_v37, 1e-16 }
 0x276   : > { %v9031_v14 = vpop.xlane.xlu0 %1144  ;;  %v9048_v61 = vpop.eup %6939  ;;  %6967 = vrsqrt.f32 %v2051_v36  ;;  %v2057_v36 = vmax.f32 %v8401_v26, 1e-16 }
 0x277   : > { %11830 = vst [vmem:[#allocation212_spill] sm:$0xff] %v9031_v14  ;;  %1542 = vadd.xlane.f32.xlu1 %v1267_v20  ;;  %v9053_v20 = vpop.eup %6941  ;;  %6969 = vrsqrt.f32 %v2050_v53  ;;  %v2056_v53 = vmax.f32 %v8403_v30, 1e-16  ;;  %v7496_v30 = vld [vmem:[%s7945_s25 + $0x140] sm:$0xff] }
 0x278   : > { %v9046_v18 = vpop.xlane.xlu1 %1150  ;;  %v9056_v21 = vpop.eup %6943  ;;  %6971 = vrsqrt.f32 %v2053_v10  ;;  %v7495_v10 = vld [vmem:[%s7945_s25 + $0x148] sm:$0xff] }
 0x279   : > { %1540 = vadd.xlane.f32.xlu0 %v1266_v9  ;;  %11831 = vst [vmem:[#allocation213_spill] sm:$0xff] %v9046_v18  ;;  %v2054_v9 = vmax.f32 %v8397_v38, 1e-16  ;;  %v9061_v17 = vpop.eup %6945  ;;  %6973 = vrsqrt.f32 %v2052_v2  ;;  %v1273_v26 = vmul.f32 %v7495_v10, %v8942_v5  ;;  %v1272_v18 = vmul.f32 %v7496_v30, %v8947_v27 }
 0x27a   : > { %v9051_v40 = vpop.xlane.xlu0 %1148  ;;  %v9068_v7 = vpop.eup %6947  ;;  %6975 = vrsqrt.f32 %v2055_v55  ;;  %v2061_v55 = vmax.f32 %v8413_v23, 1e-16  ;;  %v2063_v10 = vmax.f32 %v8419_v4, 1e-16 }
 0x27b   : > { %11832 = vst [vmem:[#allocation214_spill] sm:$0xff] %v9051_v40  ;;  %1546 = vadd.xlane.f32.xlu1 %v1269_v63  ;;  %v9073_v63 = vpop.eup %6949  ;;  %6977 = vrsqrt.f32 %v2054_v9  ;;  %v2060_v9 = vmax.f32 %v8415_v49, 1e-16  ;;  %v7498_v49 = vld [vmem:[%s7945_s25 + $0x150] sm:$0xff] }
 0x27c   : > { %v9066_v15 = vpop.xlane.xlu1 %1154  ;;  %v9076_v32 = vpop.eup %6951  ;;  %6979 = vrsqrt.f32 %v2057_v36  ;;  %v7497_v36 = vld [vmem:[%s7945_s25 + $0x158] sm:$0xff]  ;;  %v1274_v6 = vmul.f32 %v7498_v49, %v8961_v62 }
 0x27d   : > { %1544 = vadd.xlane.f32.xlu0 %v1268_v47  ;;  %11833 = vst [vmem:[#allocation215_spill] sm:$0xff] %v9066_v15  ;;  %v2058_v47 = vmax.f32 %v8409_v60, 1e-16  ;;  %v9081_v2 = vpop.eup %6953  ;;  %6981 = vrsqrt.f32 %v2056_v53  ;;  %v1275_v23 = vmul.f32 %v7497_v36, %v8956_v29  ;;  %v2067_v36 = vmax.f32 %v8431_v0, 1e-16  ;;  %v11864_v15 = vld [vmem:[#allocation55_spill] sm:$0xff] }
 0x27e   : > { %v9071_v38 = vpop.xlane.xlu0 %1152  ;;  %v9088_v40 = vpop.eup %6955  ;;  %6983 = vrsqrt.f32 %v2059_v59  ;;  %v2065_v59 = vmax.f32 %v8425_v1, 1e-16 }
 0x27f   : > { %11834 = vst [vmem:[#allocation216_spill] sm:$0xff] %v9071_v38  ;;  %1550 = vadd.xlane.f32.xlu1 %v1271_v19  ;;  %v9093_v19 = vpop.eup %6957  ;;  %6985 = vrsqrt.f32 %v2058_v47  ;;  %v2064_v47 = vmax.f32 %v8427_v3, 1e-16  ;;  %v7500_v3 = vld [vmem:[%s7945_s25 + $0x160] sm:$0xff] }
 0x280   : > { %v9086_v37 = vpop.xlane.xlu1 %1158  ;;  %v9096_v30 = vpop.eup %6959  ;;  %6987 = vrsqrt.f32 %v2061_v55  ;;  %v7499_v55 = vld [vmem:[%s7945_s25 + $0x168] sm:$0xff]  ;;  %v1276_v11 = vmul.f32 %v7500_v3, %v8979_v33 }
 0x281   : > { %1548 = vadd.xlane.f32.xlu0 %v1270_v34  ;;  %11835 = vst [vmem:[#allocation217_spill] sm:$0xff] %v9086_v37  ;;  %v2062_v34 = vmax.f32 %v8421_v39, 1e-16  ;;  %v9101_v53 = vpop.eup %6961  ;;  %6989 = vrsqrt.f32 %v2060_v9  ;;  %v1277_v1 = vmul.f32 %v7499_v55, %v8973_v46  ;;  %v2071_v55 = vmax.f32 %v8443_v48, 1e-16  ;;  %v11860_v37 = vld [vmem:[#allocation53_spill] sm:$0xff] }
 0x282   : > { %v9091_v60 = vpop.xlane.xlu0 %1156  ;;  %v9108_v14 = vpop.eup %6963  ;;  %6991 = vrsqrt.f32 %v2063_v10  ;;  %v2069_v10 = vmax.f32 %v8437_v52, 1e-16 }
 0x283   : > { %11836 = vst [vmem:[#allocation218_spill] sm:$0xff] %v9091_v60  ;;  %1554 = vadd.xlane.f32.xlu1 %v1273_v26  ;;  %v9113_v26 = vpop.eup %6965  ;;  %6993 = vrsqrt.f32 %v2062_v34  ;;  %v2068_v34 = vmax.f32 %v8439_v35, 1e-16  ;;  %v7502_v35 = vld [vmem:[%s7945_s25 + $0x170] sm:$0xff]  ;;  %v2079_v60 = vmax.f32 %v11860_v37, 1e-16 }
 0x284   : > { %v9106_v4 = vpop.xlane.xlu1 %1162  ;;  %v9116_v49 = vpop.eup %6967  ;;  %6995 = vrsqrt.f32 %v2065_v59  ;;  %v7501_v59 = vld [vmem:[%s7945_s25 + $0x178] sm:$0xff] }
 0x285   : > { %1552 = vadd.xlane.f32.xlu0 %v1272_v18  ;;  %11837 = vst [vmem:[#allocation219_spill] sm:$0xff] %v9106_v4  ;;  %v2066_v18 = vmax.f32 %v8433_v22, 1e-16  ;;  %v9121_v9 = vpop.eup %6969  ;;  %6997 = vrsqrt.f32 %v2064_v47  ;;  %v1279_v52 = vmul.f32 %v7501_v59, %v8991_v25 }
 0x286   : > { %v9111_v39 = vpop.xlane.xlu0 %1160  ;;  %v9128_v56 = vpop.eup %6971  ;;  %6999 = vrsqrt.f32 %v2067_v36  ;;  %v2073_v36 = vmax.f32 %v11844_v45, 1e-16 }
 0x287   : > { %11838 = vst [vmem:[#allocation220_spill] sm:$0xff] %v9111_v39  ;;  %1558 = vadd.xlane.f32.xlu1 %v1275_v23  ;;  %v9133_v23 = vpop.eup %6973  ;;  %7001 = vrsqrt.f32 %v2066_v18  ;;  %v11847_v18 = vld [vmem:[#allocation48_spill] sm:$0xff] }
 0x288   : > { %v9126_v0 = vpop.xlane.xlu1 %1166  ;;  %v9136_v3 = vpop.eup %6975  ;;  %7003 = vrsqrt.f32 %v2069_v10  ;;  %v2072_v59 = vmax.f32 %v11847_v18, 1e-16  ;;  %v7503_v10 = vld [vmem:[%s7945_s25 + $0x188] sm:$0xff]  ;;  %v7504_v18 = vld [vmem:[%s7945_s25 + $0x180] sm:$0xff] }
 0x289   : > { %1556 = vadd.xlane.f32.xlu0 %v1274_v6  ;;  %11839 = vst [vmem:[#allocation221_spill] sm:$0xff] %v9126_v0  ;;  %11841 = vst [vmem:[#allocation223_spill] sm:$0xff] %v9136_v3  ;;  %v11842_v6 = vld [vmem:[#allocation46_spill] sm:$0xff]  ;;  %v9141_v47 = vpop.eup %6977  ;;  %v1278_v0 = vmul.f32 %v7502_v35, %v8997_v24  ;;  %7005 = vrsqrt.f32 %v2068_v34  ;;  %v1281_v45 = vmul.f32 %v7503_v10, %v8886_v43 }
 0x28a   : > { %v9131_v22 = vpop.xlane.xlu0 %1164  ;;  %v2070_v44 = vmax.f32 %v11842_v6, 1e-16  ;;  %11843 = vst [vmem:[#allocation46_spill] sm:$0xff] %v9141_v47  ;;  %v9148_v8 = vpop.eup %6979  ;;  %7007 = vrsqrt.f32 %v2071_v55  ;;  %v2077_v55 = vmax.f32 %v11854_v28, 1e-16 }
 0x28b   : > { %11840 = vst [vmem:[#allocation222_spill] sm:$0xff] %v9131_v22  ;;  %1562 = vadd.xlane.f32.xlu1 %v1277_v1  ;;  %11846 = vst [vmem:[#allocation224_spill] sm:$0xff] %v9148_v8  ;;  %v9153_v1 = vpop.eup %6981  ;;  %v11850_v22 = vld [vmem:[#allocation49_spill] sm:$0xff] }
 0x28c   : > { %v9146_v48 = vpop.xlane.xlu1 %1170  ;;  %11849 = vst [vmem:[#allocation225_spill] sm:$0xff] %v9153_v1  ;;  %v2075_v4 = vmax.f32 %v11850_v22, 1e-16  ;;  %v9156_v35 = vpop.eup %6983  ;;  %7009 = vrsqrt.f32 %v2070_v44  ;;  %v11857_v44 = vld [vmem:[#allocation52_spill] sm:$0xff]  ;;  %v12061_v1 = vld [vmem:[#allocation23_spill] sm:$0xff] }
 0x28d   : > { %1560 = vadd.xlane.f32.xlu0 %v1276_v11  ;;  %11845 = vst [vmem:[#allocation47_spill] sm:$0xff] %v9146_v48  ;;  %11851 = vst [vmem:[#allocation49_spill] sm:$0xff] %v9156_v35  ;;  %v11852_v11 = vld [vmem:[#allocation50_spill] sm:$0xff]  ;;  %v9161_v34 = vpop.eup %6985  ;;  %7011 = vrsqrt.f32 %v2073_v36  ;;  %v2076_v10 = vmax.f32 %v11857_v44, 1e-16  ;;  %v7506_v44 = vld [vmem:[%s7945_s25 + $0x190] sm:$0xff] }
 0x28e   : > { %v9151_v6 = vpop.xlane.xlu0 %1168  ;;  %v2074_v48 = vmax.f32 %v11852_v11, 1e-16  ;;  %11853 = vst [vmem:[#allocation50_spill] sm:$0xff] %v9161_v34  ;;  %v9168_v39 = vpop.eup %6987  ;;  %7013 = vrsqrt.f32 %v2072_v59  ;;  %v7505_v36 = vld [vmem:[%s7945_s25 + $0x198] sm:$0xff]  ;;  %v12057_v34 = vld [vmem:[#allocation28_spill] sm:$0xff] }
 0x28f   : > { %11848 = vst [vmem:[#allocation48_spill] sm:$0xff] %v9151_v6  ;;  %1566 = vadd.xlane.f32.xlu1 %v1279_v52  ;;  %v1280_v6 = vmul.f32 %v7504_v18, %v8891_v31  ;;  %11856 = vst [vmem:[#allocation226_spill] sm:$0xff] %v9168_v39  ;;  %v9173_v52 = vpop.eup %6989  ;;  %7015 = vrsqrt.f32 %v2075_v4  ;;  %v1283_v28 = vmul.f32 %v7505_v36, %v8900_v16  ;;  %v2081_v4 = vmax.f32 %v11864_v15, 1e-16 }
 0x290   : > { %v9166_v22 = vpop.xlane.xlu1 %1174  ;;  %11859 = vst [vmem:[#allocation227_spill] sm:$0xff] %v9173_v52  ;;  %v9176_v18 = vpop.eup %6991  ;;  %7017 = vrsqrt.f32 %v2074_v48  ;;  %v11867_v48 = vld [vmem:[#allocation56_spill] sm:$0xff] }
 0x291   : > { %1564 = vadd.xlane.f32.xlu0 %v1278_v0  ;;  %11855 = vst [vmem:[#allocation51_spill] sm:$0xff] %v9166_v22  ;;  %11861 = vst [vmem:[#allocation53_spill] sm:$0xff] %v9176_v18  ;;  %v11862_v0 = vld [vmem:[#allocation54_spill] sm:$0xff]  ;;  %v9181_v59 = vpop.eup %6993  ;;  %7019 = vrsqrt.f32 %v2077_v55  ;;  %v2080_v36 = vmax.f32 %v11867_v48, 1e-16  ;;  %v7507_v55 = vld [vmem:[%s7945_s25 + $0x1a8] sm:$0xff] }
 0x292   : > { %v9171_v11 = vpop.xlane.xlu0 %1172  ;;  %v2078_v22 = vmax.f32 %v11862_v0, 1e-16  ;;  %11863 = vst [vmem:[#allocation54_spill] sm:$0xff] %v9181_v59  ;;  %v9188_v38 = vpop.eup %6995  ;;  %7021 = vrsqrt.f32 %v2076_v10  ;;  %v11870_v59 = vld [vmem:[#allocation57_spill] sm:$0xff]  ;;  %v1285_v15 = vmul.f32 %v7507_v55, %v8914_v58  ;;  %v7508_v48 = vld [vmem:[%s7945_s25 + $0x1a0] sm:$0xff] }
 0x293   : > { %11858 = vst [vmem:[#allocation52_spill] sm:$0xff] %v9171_v11  ;;  %1570 = vadd.xlane.f32.xlu1 %v1281_v45  ;;  %v1282_v11 = vmul.f32 %v7506_v44, %v8905_v41  ;;  %11866 = vst [vmem:[#allocation228_spill] sm:$0xff] %v9188_v38  ;;  %v9193_v45 = vpop.eup %6997  ;;  %7023 = vrsqrt.f32 %v2079_v60  ;;  %v2083_v18 = vmax.f32 %v11870_v59, 1e-16 }
 0x294   : > { %v9186_v37 = vpop.xlane.xlu1 %1178  ;;  %11869 = vst [vmem:[#allocation229_spill] sm:$0xff] %v9193_v45  ;;  %v9196_v44 = vpop.eup %6999  ;;  %7025 = vrsqrt.f32 %v2078_v22  ;;  %v11874_v45 = vld [vmem:[#allocation59_spill] sm:$0xff]  ;;  %v11877_v22 = vld [vmem:[#allocation60_spill] sm:$0xff] }
 0x295   : > { %1568 = vadd.xlane.f32.xlu0 %v1280_v6  ;;  %11865 = vst [vmem:[#allocation55_spill] sm:$0xff] %v9186_v37  ;;  %11871 = vst [vmem:[#allocation57_spill] sm:$0xff] %v9196_v44  ;;  %v11872_v6 = vld [vmem:[#allocation58_spill] sm:$0xff]  ;;  %v9201_v10 = vpop.eup %7001  ;;  %7027 = vrsqrt.f32 %v2081_v4  ;;  %v2085_v60 = vmax.f32 %v11874_v45, 1e-16 }
 0x296   : > { %v9191_v0 = vpop.xlane.xlu0 %1176  ;;  %v2082_v37 = vmax.f32 %v11872_v6, 1e-16  ;;  %11873 = vst [vmem:[#allocation58_spill] sm:$0xff] %v9201_v10  ;;  %v9208_v44 = vpop.eup %7003  ;;  %7029 = vrsqrt.f32 %v2080_v36  ;;  %v2084_v55 = vmax.f32 %v11877_v22, 1e-16  ;;  %v11880_v10 = vld [vmem:[#allocation61_spill] sm:$0xff] }
 0x297   : > { %11868 = vst [vmem:[#allocation56_spill] sm:$0xff] %v9191_v0  ;;  %1574 = vadd.xlane.f32.xlu1 %v1283_v28  ;;  %v1284_v0 = vmul.f32 %v7508_v48, %v8919_v50  ;;  %11876 = vst [vmem:[#allocation230_spill] sm:$0xff] %v9208_v44  ;;  %v9213_v28 = vpop.eup %7005  ;;  %7031 = vrsqrt.f32 %v2083_v18  ;;  %v2087_v38 = vmax.f32 %v11880_v10, 1e-16  ;;  %v7509_v4 = vld [vmem:[%s7945_s25 + $0x1b8] sm:$0xff]  ;;  %v7510_v22 = vld [vmem:[%s7945_s25 + $0x1b0] sm:$0xff] }
 0x298   : > { %v9206_v59 = vpop.xlane.xlu1 %1182  ;;  %11879 = vst [vmem:[#allocation231_spill] sm:$0xff] %v9213_v28  ;;  %v9216_v48 = vpop.eup %7007  ;;  %7033 = vrsqrt.f32 %v2082_v37  ;;  %v11882_v45 = vld [vmem:[#allocation62_spill] sm:$0xff]  ;;  %v11884_v28 = vld [vmem:[#allocation63_spill] sm:$0xff]  ;;  %v11887_v37 = vld [vmem:[#allocation64_spill] sm:$0xff] }
 0x299   : > { %1572 = vadd.xlane.f32.xlu0 %v1282_v11  ;;  %11875 = vst [vmem:[#allocation59_spill] sm:$0xff] %v9206_v59  ;;  %11881 = vst [vmem:[#allocation61_spill] sm:$0xff] %v9216_v48  ;;  %v1287_v11 = vmul.f32 %v7509_v4, %v8928_v13  ;;  %v2086_v59 = vmax.f32 %v11882_v45, 1e-16  ;;  %v9221_v36 = vpop.eup %7009  ;;  %7035 = vrsqrt.f32 %v2085_v60  ;;  %v2089_v18 = vmax.f32 %v11884_v28, 1e-16 }
 0x29a   : > { %v9211_v6 = vpop.xlane.xlu0 %1180  ;;  %11883 = vst [vmem:[#allocation62_spill] sm:$0xff] %v9221_v36  ;;  %v9228_v48 = vpop.eup %7011  ;;  %7037 = vrsqrt.f32 %v2084_v55  ;;  %v2088_v4 = vmax.f32 %v11887_v37, 1e-16  ;;  %v11890_v36 = vld [vmem:[#allocation65_spill] sm:$0xff]  ;;  %v7511_v60 = vld [vmem:[%s7945_s25 + $0x1c8] sm:$0xff]  ;;  %v11892_v28 = vld [vmem:[#allocation66_spill] sm:$0xff] }
 0x29b   : > { %11878 = vst [vmem:[#allocation60_spill] sm:$0xff] %v9211_v6  ;;  %1578 = vadd.xlane.f32.xlu1 %v1285_v15  ;;  %v1286_v6 = vmul.f32 %v7510_v22, %v8933_v54  ;;  %11886 = vst [vmem:[#allocation232_spill] sm:$0xff] %v9228_v48  ;;  %v9233_v15 = vpop.eup %7013  ;;  %7039 = vrsqrt.f32 %v2087_v38  ;;  %v2091_v44 = vmax.f32 %v11890_v36, 1e-16  ;;  %v7512_v37 = vld [vmem:[%s7945_s25 + $0x1c0] sm:$0xff] }
 0x29c   : > { %v9226_v10 = vpop.xlane.xlu1 %1186  ;;  %11889 = vst [vmem:[#allocation233_spill] sm:$0xff] %v9233_v15  ;;  %v9236_v22 = vpop.eup %7015  ;;  %7041 = vrsqrt.f32 %v2086_v59  ;;  %v11894_v15 = vld [vmem:[#allocation67_spill] sm:$0xff]  ;;  %v11897_v59 = vld [vmem:[#allocation68_spill] sm:$0xff] }
 0x29d   : > { %1576 = vadd.xlane.f32.xlu0 %v1284_v0  ;;  %11885 = vst [vmem:[#allocation63_spill] sm:$0xff] %v9226_v10  ;;  %11891 = vst [vmem:[#allocation65_spill] sm:$0xff] %v9236_v22  ;;  %v1289_v0 = vmul.f32 %v7511_v60, %v8942_v5  ;;  %v2090_v10 = vmax.f32 %v11892_v28, 1e-16  ;;  %v9241_v55 = vpop.eup %7017  ;;  %7043 = vrsqrt.f32 %v2089_v18  ;;  %v2093_v38 = vmax.f32 %v11894_v15, 1e-16 }
 0x29e   : > { %v9231_v45 = vpop.xlane.xlu0 %1184  ;;  %11893 = vst [vmem:[#allocation66_spill] sm:$0xff] %v9241_v55  ;;  %v9248_v22 = vpop.eup %7019  ;;  %7045 = vrsqrt.f32 %v2088_v4  ;;  %v2092_v60 = vmax.f32 %v11897_v59, 1e-16  ;;  %v11900_v55 = vld [vmem:[#allocation69_spill] sm:$0xff]  ;;  %v11902_v15 = vld [vmem:[#allocation70_spill] sm:$0xff] }
 0x29f   : > { %11888 = vst [vmem:[#allocation64_spill] sm:$0xff] %v9231_v45  ;;  %1582 = vadd.xlane.f32.xlu1 %v1287_v11  ;;  %v1288_v45 = vmul.f32 %v7512_v37, %v8947_v27  ;;  %11896 = vst [vmem:[#allocation234_spill] sm:$0xff] %v9248_v22  ;;  %v9253_v11 = vpop.eup %7021  ;;  %7047 = vrsqrt.f32 %v2091_v44  ;;  %v2095_v48 = vmax.f32 %v11900_v55, 1e-16  ;;  %v7513_v18 = vld [vmem:[%s7945_s25 + $0x1d8] sm:$0xff]  ;;  %v7514_v59 = vld [vmem:[%s7945_s25 + $0x1d0] sm:$0xff] }
 0x2a0   : > { %v9246_v36 = vpop.xlane.xlu1 %1190  ;;  %11899 = vst [vmem:[#allocation235_spill] sm:$0xff] %v9253_v11  ;;  %v9256_v37 = vpop.eup %7023  ;;  %7049 = vrsqrt.f32 %v2090_v10  ;;  %v11904_v11 = vld [vmem:[#allocation71_spill] sm:$0xff]  ;;  %v11907_v10 = vld [vmem:[#allocation72_spill] sm:$0xff] }
 0x2a1   : > { %1580 = vadd.xlane.f32.xlu0 %v1286_v6  ;;  %11895 = vst [vmem:[#allocation67_spill] sm:$0xff] %v9246_v36  ;;  %11901 = vst [vmem:[#allocation69_spill] sm:$0xff] %v9256_v37  ;;  %v1291_v6 = vmul.f32 %v7513_v18, %v8956_v29  ;;  %v2094_v36 = vmax.f32 %v11902_v15, 1e-16  ;;  %v9261_v4 = vpop.eup %7025  ;;  %7051 = vrsqrt.f32 %v2093_v38  ;;  %v2097_v44 = vmax.f32 %v11904_v11, 1e-16 }
 0x2a2   : > { %v9251_v28 = vpop.xlane.xlu0 %1188  ;;  %11903 = vst [vmem:[#allocation70_spill] sm:$0xff] %v9261_v4  ;;  %v9268_v37 = vpop.eup %7027  ;;  %7053 = vrsqrt.f32 %v2092_v60  ;;  %v2096_v18 = vmax.f32 %v11907_v10, 1e-16  ;;  %v11910_v4 = vld [vmem:[#allocation73_spill] sm:$0xff]  ;;  %v7515_v38 = vld [vmem:[%s7945_s25 + $0x1e8] sm:$0xff]  ;;  %v11912_v11 = vld [vmem:[#allocation74_spill] sm:$0xff] }
 0x2a3   : > { %11898 = vst [vmem:[#allocation68_spill] sm:$0xff] %v9251_v28  ;;  %1586 = vadd.xlane.f32.xlu1 %v1289_v0  ;;  %v1290_v28 = vmul.f32 %v7514_v59, %v8961_v62  ;;  %11906 = vst [vmem:[#allocation236_spill] sm:$0xff] %v9268_v37  ;;  %v9273_v0 = vpop.eup %7029  ;;  %7055 = vrsqrt.f32 %v2095_v48  ;;  %v2099_v22 = vmax.f32 %v11910_v4, 1e-16  ;;  %v7516_v10 = vld [vmem:[%s7945_s25 + $0x1e0] sm:$0xff] }
 0x2a4   : > { %v9266_v55 = vpop.xlane.xlu1 %1194  ;;  %11909 = vst [vmem:[#allocation237_spill] sm:$0xff] %v9273_v0  ;;  %v9276_v59 = vpop.eup %7031  ;;  %7057 = vrsqrt.f32 %v2094_v36  ;;  %v11914_v0 = vld [vmem:[#allocation75_spill] sm:$0xff]  ;;  %v11917_v36 = vld [vmem:[#allocation76_spill] sm:$0xff] }
 0x2a5   : > { %1584 = vadd.xlane.f32.xlu0 %v1288_v45  ;;  %11905 = vst [vmem:[#allocation71_spill] sm:$0xff] %v9266_v55  ;;  %11911 = vst [vmem:[#allocation73_spill] sm:$0xff] %v9276_v59  ;;  %v1293_v45 = vmul.f32 %v7515_v38, %v8973_v46  ;;  %v2098_v55 = vmax.f32 %v11912_v11, 1e-16  ;;  %v9281_v60 = vpop.eup %7033  ;;  %7059 = vrsqrt.f32 %v2097_v44  ;;  %v2101_v48 = vmax.f32 %v11914_v0, 1e-16 }
 0x2a6   : > { %v9271_v15 = vpop.xlane.xlu0 %1192  ;;  %11913 = vst [vmem:[#allocation74_spill] sm:$0xff] %v9281_v60  ;;  %v9288_v59 = vpop.eup %7035  ;;  %7061 = vrsqrt.f32 %v2096_v18  ;;  %v2100_v38 = vmax.f32 %v11917_v36, 1e-16  ;;  %v11920_v60 = vld [vmem:[#allocation77_spill] sm:$0xff]  ;;  %v11922_v0 = vld [vmem:[#allocation78_spill] sm:$0xff] }
 0x2a7   : > { %11908 = vst [vmem:[#allocation72_spill] sm:$0xff] %v9271_v15  ;;  %1590 = vadd.xlane.f32.xlu1 %v1291_v6  ;;  %v1292_v15 = vmul.f32 %v7516_v10, %v8979_v33  ;;  %11916 = vst [vmem:[#allocation238_spill] sm:$0xff] %v9288_v59  ;;  %v9293_v6 = vpop.eup %7037  ;;  %7063 = vrsqrt.f32 %v2099_v22  ;;  %v2103_v37 = vmax.f32 %v11920_v60, 1e-16  ;;  %v7517_v44 = vld [vmem:[%s7945_s25 + $0x1f8] sm:$0xff]  ;;  %v7518_v36 = vld [vmem:[%s7945_s25 + $0x1f0] sm:$0xff] }
 0x2a8   : > { %v9286_v4 = vpop.xlane.xlu1 %1198  ;;  %11919 = vst [vmem:[#allocation239_spill] sm:$0xff] %v9293_v6  ;;  %v9296_v10 = vpop.eup %7039  ;;  %7065 = vrsqrt.f32 %v2098_v55  ;;  %v11924_v6 = vld [vmem:[#allocation79_spill] sm:$0xff]  ;;  %v11927_v55 = vld [vmem:[#allocation80_spill] sm:$0xff] }
 0x2a9   : > { %1588 = vadd.xlane.f32.xlu0 %v1290_v28  ;;  %11915 = vst [vmem:[#allocation75_spill] sm:$0xff] %v9286_v4  ;;  %11921 = vst [vmem:[#allocation77_spill] sm:$0xff] %v9296_v10  ;;  %v1295_v28 = vmul.f32 %v7517_v44, %v8991_v25  ;;  %v2102_v4 = vmax.f32 %v11922_v0, 1e-16  ;;  %v9301_v18 = vpop.eup %7041  ;;  %7067 = vrsqrt.f32 %v2101_v48  ;;  %v2105_v22 = vmax.f32 %v11924_v6, 1e-16 }
 0x2aa   : > { %v9291_v11 = vpop.xlane.xlu0 %1196  ;;  %11923 = vst [vmem:[#allocation78_spill] sm:$0xff] %v9301_v18  ;;  %v9308_v10 = vpop.eup %7043  ;;  %7069 = vrsqrt.f32 %v2100_v38  ;;  %v2104_v44 = vmax.f32 %v11927_v55, 1e-16  ;;  %v11930_v18 = vld [vmem:[#allocation81_spill] sm:$0xff]  ;;  %v7519_v48 = vld [vmem:[%s7945_s25 + $0x208] sm:$0xff]  ;;  %v11932_v6 = vld [vmem:[#allocation82_spill] sm:$0xff] }
 0x2ab   : > { %11918 = vst [vmem:[#allocation76_spill] sm:$0xff] %v9291_v11  ;;  %1594 = vadd.xlane.f32.xlu1 %v1293_v45  ;;  %v1294_v11 = vmul.f32 %v7518_v36, %v8997_v24  ;;  %11926 = vst [vmem:[#allocation240_spill] sm:$0xff] %v9308_v10  ;;  %v9313_v45 = vpop.eup %7045  ;;  %7071 = vrsqrt.f32 %v2103_v37  ;;  %v2107_v59 = vmax.f32 %v11930_v18, 1e-16  ;;  %v7520_v55 = vld [vmem:[%s7945_s25 + $0x200] sm:$0xff] }
 0x2ac   : > { %v9306_v60 = vpop.xlane.xlu1 %1202  ;;  %11929 = vst [vmem:[#allocation241_spill] sm:$0xff] %v9313_v45  ;;  %v9316_v36 = vpop.eup %7047  ;;  %7073 = vrsqrt.f32 %v2102_v4  ;;  %v11934_v45 = vld [vmem:[#allocation83_spill] sm:$0xff]  ;;  %v11937_v4 = vld [vmem:[#allocation84_spill] sm:$0xff] }
 0x2ad   : > { %1592 = vadd.xlane.f32.xlu0 %v1292_v15  ;;  %11925 = vst [vmem:[#allocation79_spill] sm:$0xff] %v9306_v60  ;;  %11931 = vst [vmem:[#allocation81_spill] sm:$0xff] %v9316_v36  ;;  %v1297_v15 = vmul.f32 %v7519_v48, %v8886_v43  ;;  %v2106_v60 = vmax.f32 %v11932_v6, 1e-16  ;;  %v9321_v38 = vpop.eup %7049  ;;  %7075 = vrsqrt.f32 %v2105_v22  ;;  %v2109_v37 = vmax.f32 %v11934_v45, 1e-16 }
 0x2ae   : > { %v9311_v0 = vpop.xlane.xlu0 %1200  ;;  %11933 = vst [vmem:[#allocation82_spill] sm:$0xff] %v9321_v38  ;;  %v9328_v36 = vpop.eup %7051  ;;  %7077 = vrsqrt.f32 %v2104_v44  ;;  %v2108_v48 = vmax.f32 %v11937_v4, 1e-16  ;;  %v11940_v38 = vld [vmem:[#allocation85_spill] sm:$0xff]  ;;  %v11942_v45 = vld [vmem:[#allocation86_spill] sm:$0xff] }
 0x2af   : > { %11928 = vst [vmem:[#allocation80_spill] sm:$0xff] %v9311_v0  ;;  %1598 = vadd.xlane.f32.xlu1 %v1295_v28  ;;  %v1296_v0 = vmul.f32 %v7520_v55, %v8891_v31  ;;  %11936 = vst [vmem:[#allocation242_spill] sm:$0xff] %v9328_v36  ;;  %v9333_v28 = vpop.eup %7053  ;;  %7079 = vrsqrt.f32 %v2107_v59  ;;  %v2111_v10 = vmax.f32 %v11940_v38, 1e-16  ;;  %v7521_v22 = vld [vmem:[%s7945_s25 + $0x218] sm:$0xff]  ;;  %v7522_v4 = vld [vmem:[%s7945_s25 + $0x210] sm:$0xff] }
 0x2b0   : > { %v9326_v18 = vpop.xlane.xlu1 %1206  ;;  %11939 = vst [vmem:[#allocation243_spill] sm:$0xff] %v9333_v28  ;;  %v9336_v55 = vpop.eup %7055  ;;  %7081 = vrsqrt.f32 %v2106_v60  ;;  %v11944_v28 = vld [vmem:[#allocation87_spill] sm:$0xff]  ;;  %v11947_v60 = vld [vmem:[#allocation88_spill] sm:$0xff] }
 0x2b1   : > { %1596 = vadd.xlane.f32.xlu0 %v1294_v11  ;;  %11935 = vst [vmem:[#allocation83_spill] sm:$0xff] %v9326_v18  ;;  %11941 = vst [vmem:[#allocation85_spill] sm:$0xff] %v9336_v55  ;;  %v1299_v11 = vmul.f32 %v7521_v22, %v8900_v16  ;;  %v2110_v18 = vmax.f32 %v11942_v45, 1e-16  ;;  %v9341_v44 = vpop.eup %7057  ;;  %7083 = vrsqrt.f32 %v2109_v37  ;;  %v2113_v59 = vmax.f32 %v11944_v28, 1e-16 }
 0x2b2   : > { %v9331_v6 = vpop.xlane.xlu0 %1204  ;;  %11943 = vst [vmem:[#allocation86_spill] sm:$0xff] %v9341_v44  ;;  %v9348_v55 = vpop.eup %7059  ;;  %7085 = vrsqrt.f32 %v2108_v48  ;;  %v2112_v22 = vmax.f32 %v11947_v60, 1e-16  ;;  %v11950_v44 = vld [vmem:[#allocation89_spill] sm:$0xff]  ;;  %v7523_v37 = vld [vmem:[%s7945_s25 + $0x228] sm:$0xff]  ;;  %v11952_v28 = vld [vmem:[#allocation90_spill] sm:$0xff] }
 0x2b3   : > { %11938 = vst [vmem:[#allocation84_spill] sm:$0xff] %v9331_v6  ;;  %1602 = vadd.xlane.f32.xlu1 %v1297_v15  ;;  %v1298_v6 = vmul.f32 %v7522_v4, %v8905_v41  ;;  %11946 = vst [vmem:[#allocation244_spill] sm:$0xff] %v9348_v55  ;;  %v9353_v15 = vpop.eup %7061  ;;  %7087 = vrsqrt.f32 %v2111_v10  ;;  %v2115_v36 = vmax.f32 %v11950_v44, 1e-16  ;;  %v7524_v60 = vld [vmem:[%s7945_s25 + $0x220] sm:$0xff] }
 0x2b4   : > { %v9346_v38 = vpop.xlane.xlu1 %1210  ;;  %11949 = vst [vmem:[#allocation245_spill] sm:$0xff] %v9353_v15  ;;  %v9356_v4 = vpop.eup %7063  ;;  %7089 = vrsqrt.f32 %v2110_v18  ;;  %v11954_v15 = vld [vmem:[#allocation91_spill] sm:$0xff] }
 0x2b5   : > { %1600 = vadd.xlane.f32.xlu0 %v1296_v0  ;;  %11945 = vst [vmem:[#allocation87_spill] sm:$0xff] %v9346_v38  ;;  %11951 = vst [vmem:[#allocation89_spill] sm:$0xff] %v9356_v4  ;;  %v1301_v0 = vmul.f32 %v7523_v37, %v8914_v58  ;;  %v2114_v38 = vmax.f32 %v11952_v28, 1e-16  ;;  %v9361_v48 = vpop.eup %7065  ;;  %7091 = vrsqrt.f32 %v2113_v59  ;;  %v2117_v10 = vmax.f32 %v11954_v15, 1e-16 }
 0x2b6   : > { %v9351_v45 = vpop.xlane.xlu0 %1208  ;;  %11953 = vst [vmem:[#allocation90_spill] sm:$0xff] %v9361_v48  ;;  %v9368_v4 = vpop.eup %7067  ;;  %7093 = vrsqrt.f32 %v2112_v22  ;;  %v11957_v58 = vld [vmem:[#allocation92_spill] sm:$0xff]  ;;  %v11960_v28 = vld [vmem:[#allocation93_spill] sm:$0xff]  ;;  %v11962_v15 = vld [vmem:[#allocation94_spill] sm:$0xff] }
 0x2b7   : > { %11948 = vst [vmem:[#allocation88_spill] sm:$0xff] %v9351_v45  ;;  %1606 = vadd.xlane.f32.xlu1 %v1299_v11  ;;  %v1300_v45 = vmul.f32 %v7524_v60, %v8919_v50  ;;  %11956 = vst [vmem:[#allocation246_spill] sm:$0xff] %v9368_v4  ;;  %v2116_v18 = vmax.f32 %v11957_v58, 1e-16  ;;  %v9373_v11 = vpop.eup %7069  ;;  %7095 = vrsqrt.f32 %v2115_v36  ;;  %v2119_v48 = vmax.f32 %v11960_v28, 1e-16 }
 0x2b8   : > { %v9366_v44 = vpop.xlane.xlu1 %1214  ;;  %11959 = vst [vmem:[#allocation247_spill] sm:$0xff] %v9373_v11  ;;  %v9376_v50 = vpop.eup %7071  ;;  %v7525_v59 = vld [vmem:[%s7945_s25 + $0x238] sm:$0xff]  ;;  %7097 = vrsqrt.f32 %v2114_v38  ;;  %v2118_v60 = vmax.f32 %v11962_v15, 1e-16  ;;  %v7526_v58 = vld [vmem:[%s7945_s25 + $0x230] sm:$0xff] }
 0x2b9   : > { %1604 = vadd.xlane.f32.xlu0 %v1298_v6  ;;  %11955 = vst [vmem:[#allocation91_spill] sm:$0xff] %v9366_v44  ;;  %11961 = vst [vmem:[#allocation93_spill] sm:$0xff] %v9376_v50  ;;  %v1303_v6 = vmul.f32 %v7525_v59, %v8928_v13  ;;  %v9381_v22 = vpop.eup %7073  ;;  %v1302_v44 = vmul.f32 %v7526_v58, %v8933_v54  ;;  %7099 = vrsqrt.f32 %v2117_v10  ;;  %v11967_v13 = vld [vmem:[#allocation96_spill] sm:$0xff]  ;;  %v11970_v15 = vld [vmem:[#allocation97_spill] sm:$0xff] }
 0x2ba   : > { %v9371_v37 = vpop.xlane.xlu0 %1212  ;;  %11963 = vst [vmem:[#allocation94_spill] sm:$0xff] %v9381_v22  ;;  %v9388_v50 = vpop.eup %7075  ;;  %7101 = vrsqrt.f32 %v2116_v18  ;;  %v2120_v38 = vmax.f32 %v11967_v13, 1e-16  ;;  %v2123_v22 = vmax.f32 %v11970_v15, 1e-16  ;;  %v7527_v10 = vld [vmem:[%s7945_s25 + $0x248] sm:$0xff] }
 0x2bb   : > { %11958 = vst [vmem:[#allocation92_spill] sm:$0xff] %v9371_v37  ;;  %1610 = vadd.xlane.f32.xlu1 %v1301_v0  ;;  %v11964_v37 = vld [vmem:[#allocation95_spill] sm:$0xff]  ;;  %11966 = vst [vmem:[#allocation248_spill] sm:$0xff] %v9388_v50  ;;  %v9393_v0 = vpop.eup %7077  ;;  %7103 = vrsqrt.f32 %v2119_v48  ;;  %v7562_v11 = vld [vmem:[%s7945_s25 + $0x2f0] sm:$0xff] }
 0x2bc   : > { %v2121_v36 = vmax.f32 %v11964_v37, 1e-16  ;;  %v9386_v28 = vpop.xlane.xlu1 %1218  ;;  %11969 = vst [vmem:[#allocation249_spill] sm:$0xff] %v9393_v0  ;;  %v9396_v54 = vpop.eup %7079  ;;  %7105 = vrsqrt.f32 %v2118_v60  ;;  %v11972_v37 = vld [vmem:[#allocation98_spill] sm:$0xff]  ;;  %v12053_v4 = vld [vmem:[#allocation128_spill] sm:$0xff] }
 0x2bd   : > { %1608 = vadd.xlane.f32.xlu0 %v1300_v45  ;;  %11965 = vst [vmem:[#allocation95_spill] sm:$0xff] %v9386_v28  ;;  %11971 = vst [vmem:[#allocation97_spill] sm:$0xff] %v9396_v54  ;;  %v1305_v45 = vmul.f32 %v7527_v10, %v8942_v5  ;;  %v2122_v58 = vmax.f32 %v11972_v37, 1e-16  ;;  %v9401_v18 = vpop.eup %7081  ;;  %v7528_v13 = vld [vmem:[%s7945_s25 + $0x240] sm:$0xff]  ;;  %v11977_v5 = vld [vmem:[#allocation100_spill] sm:$0xff] }
 0x2be   : > { %v9391_v59 = vpop.xlane.xlu0 %1216  ;;  %11973 = vst [vmem:[#allocation98_spill] sm:$0xff] %v9401_v18  ;;  %7107 = vrsqrt.f32 %v2121_v36  ;;  %v11974_v28 = vld [vmem:[#allocation99_spill] sm:$0xff]  ;;  %v9408_v54 = vpop.eup %7083  ;;  %v2124_v60 = vmax.f32 %v11977_v5, 1e-16  ;;  %v11980_v37 = vld [vmem:[#allocation101_spill] sm:$0xff] }
 0x2bf   : > { %11968 = vst [vmem:[#allocation96_spill] sm:$0xff] %v9391_v59  ;;  %1614 = vadd.xlane.f32.xlu1 %v1303_v6  ;;  %v1304_v59 = vmul.f32 %v7528_v13, %v8947_v27  ;;  %v2125_v48 = vmax.f32 %v11974_v28, 1e-16  ;;  %11976 = vst [vmem:[#allocation250_spill] sm:$0xff] %v9408_v54  ;;  %7109 = vrsqrt.f32 %v2120_v38  ;;  %v9413_v6 = vpop.eup %7085  ;;  %v2127_v18 = vmax.f32 %v11980_v37, 1e-16 }
 0x2c0   : > { %v9406_v15 = vpop.xlane.xlu1 %1222  ;;  %11979 = vst [vmem:[#allocation251_spill] sm:$0xff] %v9413_v6  ;;  %7111 = vrsqrt.f32 %v2123_v22  ;;  %v9416_v27 = vpop.eup %7087  ;;  %v7529_v36 = vld [vmem:[%s7945_s25 + $0x258] sm:$0xff]  ;;  %v7530_v5 = vld [vmem:[%s7945_s25 + $0x250] sm:$0xff]  ;;  %v9596_v6 = vld [vmem:[%s7945_s25 + $0x60] sm:$0xff]  ;;  %v2152_v55 = vmax.f32 %v12053_v4, 1e-16 }
 0x2c1   : > { %1612 = vadd.xlane.f32.xlu0 %v1302_v44  ;;  %11975 = vst [vmem:[#allocation99_spill] sm:$0xff] %v9406_v15  ;;  %11981 = vst [vmem:[#allocation101_spill] sm:$0xff] %v9416_v27  ;;  %v1307_v44 = vmul.f32 %v7529_v36, %v8956_v29  ;;  %7113 = vrsqrt.f32 %v2122_v58  ;;  %v11982_v28 = vld [vmem:[#allocation102_spill] sm:$0xff]  ;;  %v9421_v38 = vpop.eup %7089  ;;  %v1306_v15 = vmul.f32 %v7530_v5, %v8961_v62  ;;  %v11987_v29 = vld [vmem:[#allocation104_spill] sm:$0xff] }
 0x2c2   : > { %v9411_v10 = vpop.xlane.xlu0 %1220  ;;  %v2126_v13 = vmax.f32 %v11982_v28, 1e-16  ;;  %11983 = vst [vmem:[#allocation102_spill] sm:$0xff] %v9421_v38  ;;  %7115 = vrsqrt.f32 %v2125_v48  ;;  %v9428_v27 = vpop.eup %7091  ;;  %v2128_v58 = vmax.f32 %v11987_v29, 1e-16  ;;  %v11990_v28 = vld [vmem:[#allocation105_spill] sm:$0xff] }
 0x2c3   : > { %11978 = vst [vmem:[#allocation100_spill] sm:$0xff] %v9411_v10  ;;  %1618 = vadd.xlane.f32.xlu1 %v1305_v45  ;;  %v11984_v10 = vld [vmem:[#allocation103_spill] sm:$0xff]  ;;  %11986 = vst [vmem:[#allocation252_spill] sm:$0xff] %v9428_v27  ;;  %7117 = vrsqrt.f32 %v2124_v60  ;;  %v9433_v45 = vpop.eup %7093  ;;  %v2131_v38 = vmax.f32 %v11990_v28, 1e-16  ;;  %v9603_v0 = vld [vmem:[%s7945_s25 + $0x78] sm:$0xff] }
 0x2c4   : > { %v2129_v22 = vmax.f32 %v11984_v10, 1e-16  ;;  %v9426_v37 = vpop.xlane.xlu1 %1226  ;;  %11989 = vst [vmem:[#allocation253_spill] sm:$0xff] %v9433_v45  ;;  %7119 = vrsqrt.f32 %v2127_v18  ;;  %v9436_v62 = vpop.eup %7095  ;;  %v7531_v48 = vld [vmem:[%s7945_s25 + $0x268] sm:$0xff]  ;;  %v11992_v10 = vld [vmem:[#allocation106_spill] sm:$0xff]  ;;  %12049 = vst [vmem:[#allocation267_spill] sm:$0xff] %v9596_v6 }
 0x2c5   : > { %1616 = vadd.xlane.f32.xlu0 %v1304_v59  ;;  %11985 = vst [vmem:[#allocation103_spill] sm:$0xff] %v9426_v37  ;;  %11991 = vst [vmem:[#allocation105_spill] sm:$0xff] %v9436_v62  ;;  %v1309_v59 = vmul.f32 %v7531_v48, %v8973_v46  ;;  %7121 = vrsqrt.f32 %v2126_v13  ;;  %v2130_v5 = vmax.f32 %v11992_v10, 1e-16  ;;  %v9441_v60 = vpop.eup %7097  ;;  %v7532_v29 = vld [vmem:[%s7945_s25 + $0x260] sm:$0xff]  ;;  %v11997_v46 = vld [vmem:[#allocation108_spill] sm:$0xff] }
 0x2c6   : > { %v9431_v36 = vpop.xlane.xlu0 %1224  ;;  %11993 = vst [vmem:[#allocation106_spill] sm:$0xff] %v9441_v60  ;;  %v1308_v37 = vmul.f32 %v7532_v29, %v8979_v33  ;;  %7123 = vrsqrt.f32 %v2129_v22  ;;  %v9448_v62 = vpop.eup %7099  ;;  %v2132_v13 = vmax.f32 %v11997_v46, 1e-16  ;;  %v12000_v10 = vld [vmem:[#allocation109_spill] sm:$0xff]  ;;  %v9586_v45 = vld [vmem:[%s7945_s25 + $0x68] sm:$0xff]  ;;  %v7558_v54 = vld [vmem:[%s7945_s25 + $0x2e0] sm:$0xff] }
 0x2c7   : > { %11988 = vst [vmem:[#allocation104_spill] sm:$0xff] %v9431_v36  ;;  %1622 = vadd.xlane.f32.xlu1 %v1307_v44  ;;  %v11994_v36 = vld [vmem:[#allocation107_spill] sm:$0xff]  ;;  %11996 = vst [vmem:[#allocation254_spill] sm:$0xff] %v9448_v62  ;;  %7125 = vrsqrt.f32 %v2128_v58  ;;  %v9453_v44 = vpop.eup %7101  ;;  %v2135_v60 = vmax.f32 %v12000_v10, 1e-16  ;;  %v7533_v22 = vld [vmem:[%s7945_s25 + $0x278] sm:$0xff] }
 0x2c8   : > { %v2133_v18 = vmax.f32 %v11994_v36, 1e-16  ;;  %v9446_v28 = vpop.xlane.xlu1 %1230  ;;  %11999 = vst [vmem:[#allocation255_spill] sm:$0xff] %v9453_v44  ;;  %7127 = vrsqrt.f32 %v2131_v38  ;;  %v9456_v33 = vpop.eup %7103  ;;  %v12002_v36 = vld [vmem:[#allocation110_spill] sm:$0xff]  ;;  %v7534_v46 = vld [vmem:[%s7945_s25 + $0x270] sm:$0xff]  ;;  %12050 = vst [vmem:[#allocation268_spill] sm:$0xff] %v9603_v0 }
 0x2c9   : > { %1620 = vadd.xlane.f32.xlu0 %v1306_v15  ;;  %11995 = vst [vmem:[#allocation107_spill] sm:$0xff] %v9446_v28  ;;  %12001 = vst [vmem:[#allocation109_spill] sm:$0xff] %v9456_v33  ;;  %v1311_v15 = vmul.f32 %v7533_v22, %v8991_v25  ;;  %7129 = vrsqrt.f32 %v2130_v5  ;;  %v2134_v29 = vmax.f32 %v12002_v36, 1e-16  ;;  %v9461_v58 = vpop.eup %7105  ;;  %v1310_v28 = vmul.f32 %v7534_v46, %v8997_v24  ;;  %v12007_v25 = vld [vmem:[#allocation112_spill] sm:$0xff]  ;;  %v12010_v36 = vld [vmem:[#allocation113_spill] sm:$0xff] }
 0x2ca   : > { %v9451_v48 = vpop.xlane.xlu0 %1228  ;;  %12003 = vst [vmem:[#allocation110_spill] sm:$0xff] %v9461_v58  ;;  %7131 = vrsqrt.f32 %v2133_v18  ;;  %v2136_v5 = vmax.f32 %v12007_v25, 1e-16  ;;  %v2139_v58 = vmax.f32 %v12010_v36, 1e-16  ;;  %v7535_v18 = vld [vmem:[%s7945_s25 + $0x288] sm:$0xff] }
 0x2cb   : > { %11998 = vst [vmem:[#allocation108_spill] sm:$0xff] %v9451_v48  ;;  %1626 = vadd.xlane.f32.xlu1 %v1309_v59  ;;  %v12004_v48 = vld [vmem:[#allocation111_spill] sm:$0xff]  ;;  %v9468_v33 = vpop.eup %7107  ;;  %7133 = vrsqrt.f32 %v2132_v13 }
 0x2cc   : > { %v2137_v38 = vmax.f32 %v12004_v48, 1e-16  ;;  %v9466_v10 = vpop.xlane.xlu1 %1234  ;;  %12006 = vst [vmem:[#allocation256_spill] sm:$0xff] %v9468_v33  ;;  %v9473_v59 = vpop.eup %7109  ;;  %7135 = vrsqrt.f32 %v2135_v60  ;;  %v12012_v48 = vld [vmem:[#allocation114_spill] sm:$0xff] }
 0x2cd   : > { %1624 = vadd.xlane.f32.xlu0 %v1308_v37  ;;  %12005 = vst [vmem:[#allocation111_spill] sm:$0xff] %v9466_v10  ;;  %12009 = vst [vmem:[#allocation257_spill] sm:$0xff] %v9473_v59  ;;  %v9476_v24 = vpop.eup %7111  ;;  %v1313_v37 = vmul.f32 %v7535_v18, %v8886_v43  ;;  %7137 = vrsqrt.f32 %v2134_v29  ;;  %v2138_v46 = vmax.f32 %v12012_v48, 1e-16  ;;  %v7536_v25 = vld [vmem:[%s7945_s25 + $0x280] sm:$0xff]  ;;  %v12017_v43 = vld [vmem:[#allocation116_spill] sm:$0xff] }
 0x2ce   : > { %v9471_v22 = vpop.xlane.xlu0 %1232  ;;  %12011 = vst [vmem:[#allocation113_spill] sm:$0xff] %v9476_v24  ;;  %v9481_v13 = vpop.eup %7113  ;;  %v1312_v10 = vmul.f32 %v7536_v25, %v8891_v31  ;;  %7139 = vrsqrt.f32 %v2137_v38  ;;  %v2140_v29 = vmax.f32 %v12017_v43, 1e-16  ;;  %v12020_v48 = vld [vmem:[#allocation117_spill] sm:$0xff]  ;;  %v7566_v4 = vld [vmem:[%s7945_s25 + $0x300] sm:$0xff] }
 0x2cf   : > { %12008 = vst [vmem:[#allocation112_spill] sm:$0xff] %v9471_v22  ;;  %1630 = vadd.xlane.f32.xlu1 %v1311_v15  ;;  %12013 = vst [vmem:[#allocation114_spill] sm:$0xff] %v9481_v13  ;;  %v12014_v22 = vld [vmem:[#allocation115_spill] sm:$0xff]  ;;  %v9488_v24 = vpop.eup %7115  ;;  %7141 = vrsqrt.f32 %v2136_v5  ;;  %v2143_v13 = vmax.f32 %v12020_v48, 1e-16  ;;  %v7537_v38 = vld [vmem:[%s7945_s25 + $0x298] sm:$0xff] }
 0x2d0   : > { %v2141_v60 = vmax.f32 %v12014_v22, 1e-16  ;;  %v9486_v36 = vpop.xlane.xlu1 %1238  ;;  %12016 = vst [vmem:[#allocation258_spill] sm:$0xff] %v9488_v24  ;;  %v9493_v15 = vpop.eup %7117  ;;  %7143 = vrsqrt.f32 %v2139_v58  ;;  %v12022_v22 = vld [vmem:[#allocation118_spill] sm:$0xff]  ;;  %v7538_v43 = vld [vmem:[%s7945_s25 + $0x290] sm:$0xff]  ;;  %v12024_v58 = vld [vmem:[#allocation119_spill] sm:$0xff] }
 0x2d1   : > { %1628 = vadd.xlane.f32.xlu0 %v1310_v28  ;;  %12015 = vst [vmem:[#allocation115_spill] sm:$0xff] %v9486_v36  ;;  %12019 = vst [vmem:[#allocation259_spill] sm:$0xff] %v9493_v15  ;;  %v9496_v31 = vpop.eup %7119  ;;  %v1315_v28 = vmul.f32 %v7537_v38, %v8900_v16  ;;  %7145 = vrsqrt.f32 %v2138_v46  ;;  %v2142_v25 = vmax.f32 %v12022_v22, 1e-16  ;;  %v1314_v36 = vmul.f32 %v7538_v43, %v8905_v41  ;;  %v12027_v16 = vld [vmem:[#allocation120_spill] sm:$0xff]  ;;  %v12030_v22 = vld [vmem:[#allocation121_spill] sm:$0xff] }
 0x2d2   : > { %v9491_v18 = vpop.xlane.xlu0 %1236  ;;  %12021 = vst [vmem:[#allocation117_spill] sm:$0xff] %v9496_v31  ;;  %v9501_v5 = vpop.eup %7121  ;;  %7147 = vrsqrt.f32 %v2141_v60  ;;  %v2147_v41 = vmax.f32 %v12030_v22, 1e-16  ;;  %v7540_v43 = vld [vmem:[%s7945_s25 + $0x2a8] sm:$0xff]  ;;  %v7550_v24 = vld [vmem:[%s7945_s25 + $0x2c0] sm:$0xff]  ;;  %v9569_v59 = vld [vmem:[%s7945_s25 + $0x58] sm:$0xff] }
 0x2d3   : > { %12018 = vst [vmem:[#allocation116_spill] sm:$0xff] %v9491_v18  ;;  %1634 = vadd.xlane.f32.xlu1 %v1313_v37  ;;  %12023 = vst [vmem:[#allocation118_spill] sm:$0xff] %v9501_v5  ;;  %v2145_v18 = vmax.f32 %v12024_v58, 1e-16  ;;  %v9508_v31 = vpop.eup %7123  ;;  %7149 = vrsqrt.f32 %v2140_v29  ;;  %v2144_v37 = vmax.f32 %v12027_v16, 1e-16 }
 0x2d4   : > { %v9506_v48 = vpop.xlane.xlu1 %1242  ;;  %12026 = vst [vmem:[#allocation260_spill] sm:$0xff] %v9508_v31  ;;  %v9513_v38 = vpop.eup %7125  ;;  %7151 = vrsqrt.f32 %v2143_v13  ;;  %v12033_v29 = vld [vmem:[#allocation122_spill] sm:$0xff]  ;;  %v12039_v31 = vld [vmem:[#allocation124_spill] sm:$0xff] }
 0x2d5   : > { %1632 = vadd.xlane.f32.xlu0 %v1312_v10  ;;  %12025 = vst [vmem:[#allocation119_spill] sm:$0xff] %v9506_v48  ;;  %12029 = vst [vmem:[#allocation261_spill] sm:$0xff] %v9513_v38  ;;  %v9516_v60 = vpop.eup %7127  ;;  %v9519_v10 = vld [vmem:[%s7945_s25 + $0x28] sm:$0xff]  ;;  %7153 = vrsqrt.f32 %v2142_v25  ;;  %v2146_v48 = vmax.f32 %v12033_v29, 1e-16  ;;  %v7542_v13 = vld [vmem:[%s7945_s25 + $0x2a0] sm:$0xff] }
 0x2d6   : > { %v9511_v46 = vpop.xlane.xlu0 %1240  ;;  %12031 = vst [vmem:[#allocation121_spill] sm:$0xff] %v9516_v60  ;;  %12032 = vst [vmem:[#allocation262_spill] sm:$0xff] %v9519_v10  ;;  %v1317_v58 = vmul.f32 %v7540_v43, %v9519_v10  ;;  %v9524_v16 = vpop.eup %7129  ;;  %7155 = vrsqrt.f32 %v2145_v18  ;;  %v12035_v60 = vld [vmem:[#allocation123_spill] sm:$0xff]  ;;  %v7544_v29 = vld [vmem:[%s7945_s25 + $0x2b8] sm:$0xff] }
 0x2d7   : > { %12028 = vst [vmem:[#allocation120_spill] sm:$0xff] %v9511_v46  ;;  %1638 = vadd.xlane.f32.xlu1 %v1315_v28  ;;  %12034 = vst [vmem:[#allocation122_spill] sm:$0xff] %v9524_v16  ;;  %v9527_v46 = vld [vmem:[%s7945_s25 + $0x20] sm:$0xff]  ;;  %v2149_v38 = vmax.f32 %v12035_v60, 1e-16  ;;  %v9534_v25 = vpop.eup %7131  ;;  %v9537_v28 = vld [vmem:[%s7945_s25 + $0x38] sm:$0xff]  ;;  %7157 = vrsqrt.f32 %v2144_v37 }
 0x2d8   : > { %v1316_v22 = vmul.f32 %v7542_v13, %v9527_v46  ;;  %v9532_v43 = vpop.xlane.xlu1 %1246  ;;  %12037 = vst [vmem:[#allocation263_spill] sm:$0xff] %v9534_v25  ;;  %12038 = vst [vmem:[#allocation264_spill] sm:$0xff] %v9537_v28  ;;  %v1319_v16 = vmul.f32 %v7544_v29, %v9537_v28  ;;  %v2148_v13 = vmax.f32 %v12039_v31, 1e-16  ;;  %v9544_v60 = vpop.eup %7133  ;;  %v9552_v5 = vld [vmem:[%s7945_s25 + $0x48] sm:$0xff]  ;;  %7159 = vrsqrt.f32 %v2147_v41  ;;  %v12043_v31 = vld [vmem:[#allocation125_spill] sm:$0xff] }
 0x2d9   : > { %1636 = vadd.xlane.f32.xlu0 %v1314_v36  ;;  %12036 = vst [vmem:[#allocation123_spill] sm:$0xff] %v9532_v43  ;;  %12041 = vst [vmem:[#allocation265_spill] sm:$0xff] %v9544_v60  ;;  %v9547_v36 = vld [vmem:[%s7945_s25 + $0x30] sm:$0xff]  ;;  %v7548_v15 = vld [vmem:[%s7945_s25 + $0x2c8] sm:$0xff]  ;;  %v2151_v29 = vmax.f32 %v12043_v31, 1e-16  ;;  %7161 = vrsqrt.f32 %v2146_v48 }
 0x2da   : > { %v9542_v18 = vpop.xlane.xlu0 %1244  ;;  %12042 = vst [vmem:[#allocation266_spill] sm:$0xff] %v9547_v36  ;;  %v7546_v43 = vld [vmem:[%s7945_s25 + $0x2b0] sm:$0xff]  ;;  %v9556_v37 = vmul.f32 %v7548_v15, %v9552_v5  ;;  %v9562_v60 = vld [vmem:[%s7945_s25 + $0x40] sm:$0xff]  ;;  %v7552_v33 = vld [vmem:[%s7945_s25 + $0x2d8] sm:$0xff]  ;;  %7163 = vrsqrt.f32 %v2149_v38 }
 0x2db   : > { %12040 = vst [vmem:[#allocation124_spill] sm:$0xff] %v9542_v18  ;;  %v1318_v25 = vmul.f32 %v7546_v43, %v9547_v36  ;;  %v9559_v18 = vpop.eup %7135  ;;  %v9566_v43 = vmul.f32 %v7550_v24, %v9562_v60  ;;  %v9573_v44 = vmul.f32 %v7552_v33, %v9569_v59  ;;  %v12045_v15 = vld [vmem:[#allocation126_spill] sm:$0xff]  ;;  %1642 = vadd.xlane.f32.xlu1 %v1317_v58  ;;  %v7554_v24 = vld [vmem:[%s7945_s25 + $0x2d0] sm:$0xff]  ;;  %v7556_v33 = vld [vmem:[%s7945_s25 + $0x2e8] sm:$0xff]  ;;  %7165 = vrsqrt.f32 %v2148_v13 }
 0x2dc   : > { %12044 = vst [vmem:[#allocation125_spill] sm:$0xff] %v9559_v18  ;;  %v2150_v41 = vmax.f32 %v12045_v15, 1e-16  ;;  %v9576_v31 = vpop.eup %7137  ;;  %v9579_v18 = vld [vmem:[%s7945_s25 + $0x50] sm:$0xff]  ;;  %v9590_v27 = vmul.f32 %v7556_v33, %v9586_v45  ;;  %v12047_v48 = vld [vmem:[#allocation127_spill] sm:$0xff]  ;;  %v1507_v15 = vpop.xlane.xlu1 %1506  ;;  %v7560_v33 = vld [vmem:[%s7945_s25 + $0x2f8] sm:$0xff]  ;;  %7167 = vrsqrt.f32 %v2151_v29 }
 0x2dd   : > { %12046 = vst [vmem:[#allocation126_spill] sm:$0xff] %v9576_v31  ;;  %v9583_v62 = vmul.f32 %v7554_v24, %v9579_v18  ;;  %v2153_v58 = vmax.f32 %v12047_v48, 1e-16  ;;  %1640 = vadd.xlane.f32.xlu0 %v1316_v22  ;;  %v9593_v31 = vpop.eup %7139  ;;  %v9600_v24 = vmul.f32 %v7558_v54, %v9596_v6  ;;  %v9607_v38 = vmul.f32 %v7560_v33, %v9603_v0  ;;  %v9624_v13 = vld [vmem:[%s7945_s25 + $0x8] sm:$0xff]  ;;  %v9635_v29 = vld [vmem:[%s7945_s25] sm:$0xff] }
 0x2de   : > { %12048 = vst [vmem:[#allocation127_spill] sm:$0xff] %v9593_v31  ;;  %v2577_v22 = vmul.f32 %v9028_v12, %v1507_v15  ;;  %v1505_v48 = vpop.xlane.xlu0 %1504  ;;  %v9610_v50 = vpop.eup %7141  ;;  %v9613_v31 = vld [vmem:[%s7945_s25 + $0x70] sm:$0xff]  ;;  %12055 = vst [vmem:[#allocation271_spill] sm:$0xff] %v9624_v13  ;;  %v7564_v12 = vld [vmem:[%s7945_s25 + $0x308] sm:$0xff]  ;;  %7169 = vrsqrt.f32 %v2150_v41 }
 0x2df   : > { %12051 = vst [vmem:[#allocation269_spill] sm:$0xff] %v9610_v50  ;;  %12052 = vst [vmem:[#allocation270_spill] sm:$0xff] %v9613_v31  ;;  %v9617_v54 = vmul.f32 %v7562_v11, %v9613_v31  ;;  %v2576_v33 = vmul.f32 %v9033_v57, %v1505_v48  ;;  %v9621_v52 = vpop.eup %7143  ;;  %v9628_v15 = vmul.f32 %v7564_v12, %v9624_v13  ;;  %v12056_v50 = vld [vmem:[#allocation129_spill] sm:$0xff]  ;;  %1646 = vadd.xlane.f32.xlu1 %v1319_v16  ;;  %v12060_v48 = vld [vmem:[#allocation130_spill] sm:$0xff] }
 0x2e0   : > { %12054 = vst [vmem:[#allocation128_spill] sm:$0xff] %v9621_v52  ;;  %v2155_v39 = vmax.f32 %v12056_v50, 1e-16  ;;  %v2849_v35 = vmul.f32 %v12057_v34, %v2577_v22  ;;  %v9632_v11 = vpop.eup %7145  ;;  %12059 = vst [vmem:[#allocation28_spill] sm:$0xff] %v9635_v29  ;;  %v9639_v57 = vmul.f32 %v7566_v4, %v9635_v29  ;;  %7171 = vrsqrt.f32 %v2153_v58  ;;  %v1511_v41 = vpop.xlane.xlu1 %1510  ;;  %v12063_v50 = vld [vmem:[#allocation131_spill] sm:$0xff]  ;;  %v12066_v4 = vld [vmem:[#allocation13_spill] sm:$0xff] }
 0x2e1   : > { %12058 = vst [vmem:[#allocation129_spill] sm:$0xff] %v9632_v11  ;;  %v2154_v52 = vmax.f32 %v12060_v48, 1e-16  ;;  %v2848_v12 = vmul.f32 %v12061_v1, %v2576_v33  ;;  %1644 = vadd.xlane.f32.xlu0 %v1318_v25  ;;  %v9643_v8 = vpop.eup %7147  ;;  %v2157_v22 = vmax.f32 %v12063_v50, 1e-16  ;;  %v12064_v13 = vld [vmem:[#allocation15_spill] sm:$0xff]  ;;  %v2579_v47 = vmul.f32 %v9036_v51, %v1511_v41 }
 0x2e2   : > { %12062 = vst [vmem:[#allocation130_spill] sm:$0xff] %v9643_v8  ;;  %v3128_v16 = vsub.f32 0.0, %v2849_v35  ;;  %v3773_v11 = vrot.slane %v2849_v35, %v12064_v13  ;;  %v1509_v3 = vpop.xlane.xlu0 %1508  ;;  %v9648_v31 = vpop.eup %7149  ;;  %7173 = vrsqrt.f32 %v2152_v55  ;;  %v12068_v8 = vld [vmem:[#allocation132_spill] sm:$0xff]  ;;  %v12069_v0 = vld [vmem:[#allocation26_spill] sm:$0xff] }
 0x2e3   : > { %12065 = vst [vmem:[#allocation131_spill] sm:$0xff] %v9648_v31  ;;  %v3127_v58 = vsub.f32 0.0, %v2848_v12  ;;  %v3769_v48 = vrot.slane %v2848_v12, %v12066_v4  ;;  %v2578_v33 = vmul.f32 %v9041_v42, %v1509_v3  ;;  %v9652_v25 = vpop.eup %7151  ;;  %7175 = vrsqrt.f32 %v2155_v39  ;;  %1650 = vadd.xlane.f32.xlu1 %v9556_v37  ;;  %v12071_v41 = vld [vmem:[#allocation20_spill] sm:$0xff] }
 0x2e4   : > { %12067 = vst [vmem:[#allocation15_spill] sm:$0xff] %v9652_v25  ;;  %v2156_v29 = vmax.f32 %v12068_v8, 1e-16  ;;  %v5412_v50 = vrot.slane %v3128_v16, %v12064_v13  ;;  %v2851_v35 = vmul.f32 %v12069_v0, %v2579_v47  ;;  %v9658_v51 = vpop.eup %7153  ;;  %7177 = vrsqrt.f32 %v2154_v52  ;;  %v1515_v39 = vpop.xlane.xlu1 %1514  ;;  %v12073_v16 = vld [vmem:[#allocation14_spill] sm:$0xff] }
 0x2e5   : > { %12070 = vst [vmem:[#allocation13_spill] sm:$0xff] %v9658_v51  ;;  %v3774_v55 = vsel %vm3666_vm0, %v3773_v11, %v3769_v48  ;;  %v5408_v12 = vrot.slane %v3127_v58, %v12066_v4  ;;  %v2850_v42 = vmul.f32 %v12071_v41, %v2578_v33  ;;  %1648 = vadd.xlane.f32.xlu0 %v9566_v43  ;;  %v9664_v3 = vpop.eup %7155  ;;  %7179 = vrsqrt.f32 %v2157_v22  ;;  %v12075_v58 = vld [vmem:[#allocation12_spill] sm:$0xff] }
 0x2e6   : > { %12072 = vst [vmem:[#allocation132_spill] sm:$0xff] %v9664_v3  ;;  %v3130_v8 = vsub.f32 0.0, %v2851_v35  ;;  %v3783_v47 = vrot.slane %v2851_v35, %v12073_v16  ;;  %v2581_v37 = vmul.f32 %v9048_v61, %v1515_v39  ;;  %v1513_v25 = vpop.xlane.xlu0 %1512  ;;  %v9668_v51 = vpop.eup %7157  ;;  %7181 = vrsqrt.f32 %v2156_v29  ;;  %v12077_v3 = vld [vmem:[#allocation133_spill] sm:$0xff]  ;;  %v12078_v35 = vld [vmem:[#allocation30_spill] sm:$0xff] }
 0x2e7   : > { %12074 = vst [vmem:[#allocation14_spill] sm:$0xff] %v9668_v51  ;;  %v5413_v52 = vsel %vm3666_vm0, %v5412_v50, %v5408_v12  ;;  %v3129_v11 = vsub.f32 0.0, %v2850_v42  ;;  %v3778_v48 = vrot.slane %v2850_v42, %v12075_v58  ;;  %v2580_v33 = vmul.f32 %v9053_v20, %v1513_v25  ;;  %v9673_v43 = vpop.eup %7159  ;;  %1654 = vadd.xlane.f32.xlu1 %v9573_v44  ;;  %v12080_v39 = vld [vmem:[#allocation134_spill] sm:$0xff]  ;;  %v12081_v20 = vld [vmem:[#allocation31_spill] sm:$0xff] }
 0x2e8   : > { %12076 = vst [vmem:[#allocation272_spill] sm:$0xff] %v9673_v43  ;;  %v2159_v22 = vmax.f32 %v12077_v3, 1e-16  ;;  %v5422_v31 = vrot.slane %v3130_v8, %v12073_v16  ;;  %v2853_v6 = vmul.f32 %v12078_v35, %v2581_v37  ;;  %v9679_v61 = vpop.eup %7161  ;;  %v2158_v50 = vmax.f32 %v12080_v39, 1e-16  ;;  %v1519_v29 = vpop.xlane.xlu1 %1518  ;;  %v12083_v43 = vld [vmem:[#allocation16_spill] sm:$0xff] }
 0x2e9   : > { %12079 = vst [vmem:[#allocation133_spill] sm:$0xff] %v9679_v61  ;;  %v3779_v12 = vsel %vm3673_vm1, %v3778_v48, %v3774_v55  ;;  %v5417_v42 = vrot.slane %v3129_v11, %v12075_v58  ;;  %v2852_v25 = vmul.f32 %v12081_v20, %v2580_v33  ;;  %1652 = vadd.xlane.f32.xlu0 %v9583_v62  ;;  %v9686_v3 = vpop.eup %7163  ;;  %v12085_v48 = vld [vmem:[#allocation17_spill] sm:$0xff] }
 0x2ea   : > { %12082 = vst [vmem:[#allocation134_spill] sm:$0xff] %v9686_v3  ;;  %v3132_v8 = vsub.f32 0.0, %v2853_v6  ;;  %v3793_v37 = vrot.slane %v2853_v6, %v12083_v43  ;;  %v3784_v44 = vsel %vm3680_vm2, %v3783_v47, %v3779_v12  ;;  %v2583_v61 = vmul.f32 %v9056_v21, %v1519_v29  ;;  %v1517_v51 = vpop.xlane.xlu0 %1516  ;;  %v9691_v39 = vpop.eup %7165  ;;  %v12087_v47 = vld [vmem:[#allocation32_spill] sm:$0xff] }
 0x2eb   : > { %12084 = vst [vmem:[#allocation16_spill] sm:$0xff] %v9691_v39  ;;  %v5418_v55 = vsel %vm3673_vm1, %v5417_v42, %v5413_v52  ;;  %v3131_v11 = vsub.f32 0.0, %v2852_v25  ;;  %v3788_v33 = vrot.slane %v2852_v25, %v12085_v48  ;;  %v2582_v62 = vmul.f32 %v9061_v17, %v1517_v51  ;;  %v9696_v20 = vpop.eup %7167  ;;  %1658 = vadd.xlane.f32.xlu1 %v9590_v27  ;;  %v12089_v25 = vld [vmem:[#allocation33_spill] sm:$0xff] }
 0x2ec   : > { %12086 = vst [vmem:[#allocation17_spill] sm:$0xff] %v9696_v20  ;;  %7183 = vrsqrt.f32 %v2159_v22  ;;  %v5432_v3 = vrot.slane %v3132_v8, %v12083_v43  ;;  %v5423_v6 = vsel %vm3680_vm2, %v5422_v31, %v5418_v55  ;;  %v2855_v12 = vmul.f32 %v12087_v47, %v2583_v61  ;;  %v9702_v21 = vpop.eup %7169  ;;  %v1523_v51 = vpop.xlane.xlu1 %1522  ;;  %v12091_v31 = vld [vmem:[#allocation18_spill] sm:$0xff] }
 0x2ed   : > { %12088 = vst [vmem:[#allocation32_spill] sm:$0xff] %v9702_v21  ;;  %7185 = vrsqrt.f32 %v2158_v50  ;;  %v3789_v52 = vsel %vm3687_vm3, %v3788_v33, %v3784_v44  ;;  %v5427_v42 = vrot.slane %v3131_v11, %v12085_v48  ;;  %v2854_v17 = vmul.f32 %v12089_v25, %v2582_v62  ;;  %1656 = vadd.xlane.f32.xlu0 %v9600_v24  ;;  %v9708_v22 = vpop.eup %7171  ;;  %v12092_v11 = vld [vmem:[#allocation19_spill] sm:$0xff]  ;;  %v9730_v21 = vld [vmem:[%s7945_s25 + $0x18] sm:$0xff] }
 0x2ee   : > { %12090 = vst [vmem:[#allocation33_spill] sm:$0xff] %v9708_v22  ;;  %v3134_v29 = vsub.f32 0.0, %v2855_v12  ;;  %v3803_v8 = vrot.slane %v2855_v12, %v12091_v31  ;;  %v3794_v61 = vsel %vm3694_vm4, %v3793_v37, %v3789_v52  ;;  %v2585_v27 = vmul.f32 %v9068_v7, %v1523_v51  ;;  %v1521_v55 = vpop.xlane.xlu0 %1520  ;;  %v12095_v52 = vld [vmem:[#allocation34_spill] sm:$0xff]  ;;  %v12097_v51 = vld [vmem:[#allocation35_spill] sm:$0xff]  ;;  %12098 = vst [vmem:[#allocation273_spill] sm:$0xff] %v9730_v21 }
 0x2ef   : > { %v5428_v50 = vsel %vm3687_vm3, %v5427_v42, %v5423_v6  ;;  %v3133_v44 = vsub.f32 0.0, %v2854_v17  ;;  %v3798_v33 = vrot.slane %v2854_v17, %v12092_v11  ;;  %v2584_v24 = vmul.f32 %v9073_v63, %v1521_v55  ;;  %v9716_v62 = vpop.eup %7173  ;;  %1662 = vadd.xlane.f32.xlu1 %v9607_v38  ;;  %v12102_v20 = vld [vmem:[#allocation22_spill] sm:$0xff] }
 0x2f0   : > { %12093 = vst [vmem:[#allocation18_spill] sm:$0xff] %v9716_v62  ;;  %v5442_v12 = vrot.slane %v3134_v29, %v12091_v31  ;;  %v5433_v37 = vsel %vm3694_vm4, %v5432_v3, %v5428_v50  ;;  %v2857_v7 = vmul.f32 %v12095_v52, %v2585_v27  ;;  %v9723_v6 = vpop.eup %7175  ;;  %v1527_v55 = vpop.xlane.xlu1 %1526  ;;  %v7568_v29 = vld [vmem:[%s7945_s25 + $0x318] sm:$0xff] }
 0x2f1   : > { %12096 = vst [vmem:[#allocation19_spill] sm:$0xff] %v9723_v6  ;;  %v3799_v42 = vsel %vm3701_vm5, %v3798_v33, %v3794_v61  ;;  %v5437_v17 = vrot.slane %v3133_v44, %v12092_v11  ;;  %v2856_v63 = vmul.f32 %v12097_v51, %v2584_v24  ;;  %1660 = vadd.xlane.f32.xlu0 %v9617_v54  ;;  %v9734_v27 = vpop.eup %7177  ;;  %v12100_v50 = vld [vmem:[#allocation21_spill] sm:$0xff] }
 0x2f2   : > { %v1331_v3 = vmul.f32 %v7568_v29, %v9730_v21  ;;  %12099 = vst [vmem:[#allocation274_spill] sm:$0xff] %v9734_v27  ;;  %v3136_v38 = vsub.f32 0.0, %v2857_v7  ;;  %v3813_v6 = vrot.slane %v2857_v7, %v12100_v50  ;;  %v3804_v61 = vsel %vm3708_vm6, %v3803_v8, %v3799_v42  ;;  %v1525_v33 = vpop.xlane.xlu0 %1524  ;;  %v9739_v24 = vpop.eup %7179  ;;  %v12103_v7 = vld [vmem:[#allocation36_spill] sm:$0xff] }
 0x2f3   : > { %v2587_v44 = vmul.f32 %v9076_v32, %v1527_v55  ;;  %12101 = vst [vmem:[#allocation21_spill] sm:$0xff] %v9739_v24  ;;  %v5438_v54 = vsel %vm3701_vm5, %v5437_v17, %v5433_v37  ;;  %v3135_v62 = vsub.f32 0.0, %v2856_v63  ;;  %v3808_v29 = vrot.slane %v2856_v63, %v12102_v20  ;;  %1666 = vadd.xlane.f32.xlu1 %v9628_v15  ;;  %v9749_v32 = vld [vmem:[%s7945_s25 + $0x10] sm:$0xff]  ;;  %v9753_v37 = vpop.eup %7181 }
 0x2f4   : > { %v2586_v39 = vmul.f32 %v9081_v2, %v1525_v33  ;;  %v5452_v27 = vrot.slane %v3136_v38, %v12100_v50  ;;  %v5443_v22 = vsel %vm3708_vm6, %v5442_v12, %v5438_v54  ;;  %12104 = vst [vmem:[#allocation22_spill] sm:$0xff] %v9749_v32  ;;  %v7570_v8 = vld [vmem:[%s7945_s25 + $0x310] sm:$0xff]  ;;  %12105 = vst [vmem:[#allocation275_spill] sm:$0xff] %v9753_v37  ;;  %v1531_v12 = vpop.xlane.xlu1 %1530  ;;  %v7571_v38 = vld [vmem:[%s7945_s25 + $0x328] sm:$0xff] }
 0x2f5   : > { %v2859_v21 = vmul.f32 %v12103_v7, %v2587_v44  ;;  %v1330_v42 = vmul.f32 %v7570_v8, %v9749_v32  ;;  %v3809_v17 = vsel %vm3715_vm7, %v3808_v29, %v3804_v61  ;;  %v5447_v63 = vrot.slane %v3135_v62, %v12102_v20  ;;  %v12106_v2 = vld [vmem:[#allocation37_spill] sm:$0xff]  ;;  %1664 = vadd.xlane.f32.xlu0 %v9639_v57  ;;  %v12107_v33 = vld [vmem:[#allocation24_spill] sm:$0xff]  ;;  %v12109_v7 = vld [vmem:[#allocation38_spill] sm:$0xff] }
 0x2f6   : > { %v2858_v55 = vmul.f32 %v12106_v2, %v2586_v39  ;;  %v1333_v15 = vmul.f32 %v7571_v38, %v9519_v10  ;;  %v3814_v8 = vsel %vm3722_vm8, %v3813_v6, %v3809_v17  ;;  %v2589_v37 = vmul.f32 %v9088_v40, %v1531_v12  ;;  %v1529_v24 = vpop.xlane.xlu0 %1528  ;;  %v12108_v29 = vld [vmem:[#allocation25_spill] sm:$0xff]  ;;  %v12113_v12 = vld [vmem:[#allocation27_spill] sm:$0xff] }
 0x2f7   : > { %v3138_v44 = vsub.f32 0.0, %v2859_v21  ;;  %v3823_v54 = vrot.slane %v2859_v21, %v12107_v33  ;;  %v5448_v61 = vsel %vm3715_vm7, %v5447_v63, %v5443_v22  ;;  %v2588_v57 = vmul.f32 %v9093_v19, %v1529_v24  ;;  %1670 = vadd.xlane.f32.xlu1 %v1331_v3  ;;  %v7572_v21 = vld [vmem:[%s7945_s25 + $0x320] sm:$0xff]  ;;  %v7573_v24 = vld [vmem:[%s7945_s25 + $0x338] sm:$0xff] }
 0x2f8   : > { %v3137_v62 = vsub.f32 0.0, %v2858_v55  ;;  %v3818_v39 = vrot.slane %v2858_v55, %v12108_v29  ;;  %v5453_v38 = vsel %vm3722_vm8, %v5452_v27, %v5448_v61  ;;  %v2861_v10 = vmul.f32 %v12109_v7, %v2589_v37  ;;  %v12111_v63 = vld [vmem:[#allocation39_spill] sm:$0xff]  ;;  %v1535_v19 = vpop.xlane.xlu1 %1534 }
 0x2f9   : > { %v5462_v2 = vrot.slane %v3138_v44, %v12107_v33  ;;  %v1332_v40 = vmul.f32 %v7572_v21, %v9527_v46  ;;  %v9772_v6 = vpop.eup %7183  ;;  %v2860_v55 = vmul.f32 %v12111_v63, %v2588_v57  ;;  %1668 = vadd.xlane.f32.xlu0 %v1330_v42  ;;  %v1335_v27 = vmul.f32 %v7573_v24, %v9537_v28  ;;  %v12114_v42 = vld [vmem:[#allocation29_spill] sm:$0xff]  ;;  %v12115_v28 = vld [vmem:[#allocation40_spill] sm:$0xff] }
 0x2fa   : > { %12110 = vst [vmem:[#allocation24_spill] sm:$0xff] %v9772_v6  ;;  %v3819_v22 = vsel %vm3729_vm9, %v3818_v39, %v3814_v8  ;;  %v5457_v17 = vrot.slane %v3137_v62, %v12108_v29  ;;  %v9779_v37 = vpop.eup %7185  ;;  %v3140_v3 = vsub.f32 0.0, %v2861_v10  ;;  %v3833_v44 = vrot.slane %v2861_v10, %v12113_v12  ;;  %v1533_v8 = vpop.xlane.xlu0 %1532  ;;  %v7574_v10 = vld [vmem:[%s7945_s25 + $0x330] sm:$0xff] }
 0x2fb   : > { %12112 = vst [vmem:[#allocation25_spill] sm:$0xff] %v9779_v37  ;;  %v3824_v61 = vsel %vm3736_vm10, %v3823_v54, %v3819_v22  ;;  %v2591_v21 = vmul.f32 %v9096_v30, %v1535_v19  ;;  %v3139_v39 = vsub.f32 0.0, %v2860_v55  ;;  %v3828_v57 = vrot.slane %v2860_v55, %v12114_v42  ;;  %1674 = vadd.xlane.f32.xlu1 %v1333_v15 }
 0x2fc   : > { %v5458_v62 = vsel %vm3729_vm9, %v5457_v17, %v5453_v38  ;;  %v2590_v6 = vmul.f32 %v9101_v53, %v1533_v8  ;;  %v5472_v24 = vrot.slane %v3140_v3, %v12113_v12  ;;  %v1334_v54 = vmul.f32 %v7574_v10, %v9547_v36  ;;  %v12116_v38 = vld [vmem:[#allocation41_spill] sm:$0xff]  ;;  %v1539_v55 = vpop.xlane.xlu1 %1538  ;;  %v7575_v53 = vld [vmem:[%s7945_s25 + $0x348] sm:$0xff] }
 0x2fd   : > { %v5463_v37 = vsel %vm3736_vm10, %v5462_v2, %v5458_v62  ;;  %v2863_v63 = vmul.f32 %v12115_v28, %v2591_v21  ;;  %v3829_v30 = vsel %vm3743_vm11, %v3828_v57, %v3824_v61  ;;  %v5467_v22 = vrot.slane %v3139_v39, %v12114_v42  ;;  %1672 = vadd.xlane.f32.xlu0 %v1332_v40  ;;  %v12117_v2 = vld [vmem:[#allocation42_spill] sm:$0xff]  ;;  %v12118_v57 = vld [vmem:[#allocation43_spill] sm:$0xff] }
 0x2fe   : > { %v2862_v17 = vmul.f32 %v12116_v38, %v2590_v6  ;;  %v1337_v19 = vmul.f32 %v7575_v53, %v9552_v5  ;;  %v3834_v15 = vsel %vm3750_vm12, %v3833_v44, %v3829_v30  ;;  %v2593_v21 = vmul.f32 %v9108_v14, %v1539_v55  ;;  %v1537_v62 = vpop.xlane.xlu0 %1536 }
 0x2ff   : > { %v3142_v3 = vsub.f32 0.0, %v2863_v63  ;;  %v3843_v8 = vrot.slane %v2863_v63, %v12117_v2  ;;  %v5468_v61 = vsel %vm3743_vm11, %v5467_v22, %v5463_v37  ;;  %v2592_v40 = vmul.f32 %v9113_v26, %v1537_v62  ;;  %1678 = vadd.xlane.f32.xlu1 %v1335_v27  ;;  %v7576_v63 = vld [vmem:[%s7945_s25 + $0x340] sm:$0xff]  ;;  %v12119_v62 = vld [vmem:[#allocation44_spill] sm:$0xff] }
 0x300   : > { %v3141_v39 = vsub.f32 0.0, %v2862_v17  ;;  %v3838_v6 = vrot.slane %v2862_v17, %v12118_v57  ;;  %v5473_v53 = vsel %vm3750_vm12, %v5472_v24, %v5468_v61  ;;  %v2865_v38 = vmul.f32 %v12057_v34, %v2593_v21  ;;  %v1543_v22 = vpop.xlane.xlu1 %1542  ;;  %v7577_v17 = vld [vmem:[%s7945_s25 + $0x358] sm:$0xff] }
 0x301   : > { %v5482_v10 = vrot.slane %v3142_v3, %v12117_v2  ;;  %v1336_v44 = vmul.f32 %v7576_v63, %v9562_v60  ;;  %v2864_v37 = vmul.f32 %v12061_v1, %v2592_v40  ;;  %1676 = vadd.xlane.f32.xlu0 %v1334_v54  ;;  %v1339_v26 = vmul.f32 %v7577_v17, %v9569_v59 }
 0x302   : > { %v3839_v14 = vsel %vm11612_vm13, %v3838_v6, %v3834_v15  ;;  %v5477_v30 = vrot.slane %v3141_v39, %v12118_v57  ;;  %v3144_v24 = vsub.f32 0.0, %v2865_v38  ;;  %v3852_v3 = vrot.slane %v2865_v38, %v12064_v13  ;;  %v1541_v21 = vpop.xlane.xlu0 %1540 }
 0x303   : > { %v3844_v55 = vsel %vm11611_vm14, %v3843_v8, %v3839_v14  ;;  %v2595_v27 = vmul.f32 %v9116_v49, %v1543_v22  ;;  %v3143_v54 = vsub.f32 0.0, %v2864_v37  ;;  %v3848_v39 = vrot.slane %v2864_v37, %v12066_v4  ;;  %1682 = vadd.xlane.f32.xlu1 %v1337_v19  ;;  %v12120_v49 = vld [vmem:[#allocation45_spill] sm:$0xff] }
 0x304   : > { %v9818_v15 = vsel %vm11583_vm15, %v3844_v55, %v12119_v62  ;;  %v5478_v61 = vsel %vm11612_vm13, %v5477_v30, %v5473_v53  ;;  %v5491_v8 = vrot.slane %v3144_v24, %v12064_v13  ;;  %v2594_v38 = vmul.f32 %v9121_v9, %v1541_v21  ;;  %v1547_v30 = vpop.xlane.xlu1 %1546  ;;  %v7578_v37 = vld [vmem:[%s7945_s25 + $0x350] sm:$0xff]  ;;  %v7579_v21 = vld [vmem:[%s7945_s25 + $0x368] sm:$0xff] }
 0x305   : > { %v5483_v6 = vsel %vm11611_vm14, %v5482_v10, %v5478_v61  ;;  %v2867_v40 = vmul.f32 %v12069_v0, %v2595_v27  ;;  %v3853_v14 = vsel %vm3666_vm0, %v3852_v3, %v3848_v39  ;;  %v5487_v53 = vrot.slane %v3143_v54, %v12066_v4  ;;  %1680 = vadd.xlane.f32.xlu0 %v1336_v44 }
 0x306   : > { %v9828_v63 = vsel %vm11583_vm15, %v5483_v6, %v12120_v49  ;;  %v1338_v10 = vmul.f32 %v7578_v37, %v9579_v18  ;;  %v2866_v9 = vmul.f32 %v12071_v41, %v2594_v38  ;;  %v2597_v19 = vmul.f32 %v9128_v56, %v1547_v30  ;;  %v1545_v24 = vpop.xlane.xlu0 %1544  ;;  %v7580_v6 = vld [vmem:[%s7945_s25 + $0x360] sm:$0xff]  ;;  %v7581_v30 = vld [vmem:[%s7945_s25 + $0x378] sm:$0xff] }
 0x307   : > { %v3146_v55 = vsub.f32 0.0, %v2867_v40  ;;  %v5492_v27 = vsel %vm3666_vm0, %v5491_v8, %v5487_v53  ;;  %v3862_v3 = vrot.slane %v2867_v40, %v12073_v16  ;;  %v2596_v44 = vmul.f32 %v9133_v23, %v1545_v24  ;;  %1686 = vadd.xlane.f32.xlu1 %v1339_v26  ;;  %v12122_v56 = vld [vmem:[#allocation267_spill] sm:$0xff]  ;;  %v12124_v23 = vld [vmem:[#allocation268_spill] sm:$0xff] }
 0x308   : > { %v1341_v62 = vmul.f32 %v7579_v21, %v9586_v45  ;;  %v3145_v61 = vsub.f32 0.0, %v2866_v9  ;;  %v3857_v54 = vrot.slane %v2866_v9, %v12075_v58  ;;  %v2869_v39 = vmul.f32 %v12078_v35, %v2597_v19  ;;  %v12123_v8 = vld [vmem:[#allocation31_spill] sm:$0xff]  ;;  %v1551_v40 = vpop.xlane.xlu1 %1550  ;;  %v7582_v24 = vld [vmem:[%s7945_s25 + $0x370] sm:$0xff]  ;;  %v12125_v21 = vld [vmem:[#allocation270_spill] sm:$0xff] }
 0x309   : > { %v1340_v38 = vmul.f32 %v7580_v6, %v12122_v56  ;;  %v5501_v49 = vrot.slane %v3146_v55, %v12073_v16  ;;  %v2868_v53 = vmul.f32 %v12123_v8, %v2596_v44  ;;  %1684 = vadd.xlane.f32.xlu0 %v1338_v10  ;;  %v1343_v37 = vmul.f32 %v7581_v30, %v12124_v23  ;;  %v12126_v8 = vld [vmem:[#allocation223_spill] sm:$0xff] }
 0x30a   : > { %v1342_v17 = vmul.f32 %v7582_v24, %v12125_v21  ;;  %v3858_v9 = vsel %vm3673_vm1, %v3857_v54, %v3853_v14  ;;  %v5496_v26 = vrot.slane %v3145_v61, %v12075_v58  ;;  %v3148_v19 = vsub.f32 0.0, %v2869_v39  ;;  %v1549_v22 = vpop.xlane.xlu0 %1548  ;;  %v12127_v21 = vld [vmem:[#allocation46_spill] sm:$0xff]  ;;  %v7583_v61 = vld [vmem:[%s7945_s25 + $0x388] sm:$0xff] }
 0x30b   : > { %v3872_v6 = vrot.slane %v2869_v39, %v12083_v43  ;;  %v3863_v55 = vsel %vm3680_vm2, %v3862_v3, %v3858_v9  ;;  %v3147_v44 = vsub.f32 0.0, %v2868_v53  ;;  %v3867_v10 = vrot.slane %v2868_v53, %v12085_v48  ;;  %1690 = vadd.xlane.f32.xlu1 %v1341_v62  ;;  %v12128_v54 = vld [vmem:[#allocation271_spill] sm:$0xff] }
 0x30c   : > { %v2599_v56 = vmul.f32 %v12126_v8, %v1551_v40  ;;  %v5497_v30 = vsel %vm3673_vm1, %v5496_v26, %v5492_v27  ;;  %v5511_v24 = vrot.slane %v3148_v19, %v12083_v43  ;;  %v2598_v14 = vmul.f32 %v12127_v21, %v1549_v22  ;;  %v1555_v8 = vpop.xlane.xlu1 %1554  ;;  %v12129_v26 = vld [vmem:[#allocation224_spill] sm:$0xff]  ;;  %v7584_v21 = vld [vmem:[%s7945_s25 + $0x380] sm:$0xff] }
 0x30d   : > { %v1345_v23 = vmul.f32 %v7583_v61, %v12128_v54  ;;  %v5502_v39 = vsel %vm3680_vm2, %v5501_v49, %v5497_v30  ;;  %v3868_v3 = vsel %vm3687_vm3, %v3867_v10, %v3863_v55  ;;  %v5506_v9 = vrot.slane %v3147_v44, %v12085_v48  ;;  %1688 = vadd.xlane.f32.xlu0 %v1340_v38  ;;  %v12130_v19 = vld [vmem:[#allocation28_spill] sm:$0xff] }
 0x30e   : > { %v2871_v53 = vmul.f32 %v12087_v47, %v2599_v56  ;;  %v3873_v27 = vsel %vm3694_vm4, %v3872_v6, %v3868_v3  ;;  %v2870_v40 = vmul.f32 %v12089_v25, %v2598_v14  ;;  %v2601_v22 = vmul.f32 %v12129_v26, %v1555_v8  ;;  %v1553_v62 = vpop.xlane.xlu0 %1552  ;;  %v12131_v56 = vld [vmem:[#allocation225_spill] sm:$0xff] }
 0x30f   : > { %v1344_v61 = vmul.f32 %v7584_v21, %v12130_v19  ;;  %v5507_v49 = vsel %vm3687_vm3, %v5506_v9, %v5502_v39  ;;  %v2600_v38 = vmul.f32 %v12131_v56, %v1553_v62  ;;  %1694 = vadd.xlane.f32.xlu1 %v1343_v37  ;;  %v7585_v39 = vld [vmem:[%s7945_s25 + $0x398] sm:$0xff]  ;;  %vm11586_vm15 = vcmask 1042434  }
 0x310   : > { %v3150_v55 = vsub.f32 0.0, %v2871_v53  ;;  %v3882_v44 = vrot.slane %v2871_v53, %v12091_v31  ;;  %v5512_v10 = vsel %vm3694_vm4, %v5511_v24, %v5507_v49  ;;  %v3149_v6 = vsub.f32 0.0, %v2870_v40  ;;  %v1559_v26 = vpop.xlane.xlu1 %1558  ;;  %v12132_v9 = vld [vmem:[#allocation273_spill] sm:$0xff] }
 0x311   : > { %v3877_v30 = vrot.slane %v2870_v40, %v12092_v11  ;;  %v2873_v14 = vmul.f32 %v12095_v52, %v2601_v22  ;;  %v2872_v8 = vmul.f32 %v12097_v51, %v2600_v38  ;;  %1692 = vadd.xlane.f32.xlu0 %v1342_v17  ;;  %v1347_v21 = vmul.f32 %v7585_v39, %v12132_v9  ;;  %v7586_v53 = vld [vmem:[%s7945_s25 + $0x390] sm:$0xff] }
 0x312   : > { %v5521_v3 = vrot.slane %v3150_v55, %v12091_v31  ;;  %v1346_v62 = vmul.f32 %v7586_v53, %v9749_v32  ;;  %v5516_v40 = vrot.slane %v3149_v6, %v12092_v11  ;;  %v1557_v22 = vpop.xlane.xlu0 %1556  ;;  %v12133_v38 = vld [vmem:[#allocation49_spill] sm:$0xff]  ;;  %v12134_v32 = vld [vmem:[#allocation50_spill] sm:$0xff]  ;;  %v7587_v6 = vld [vmem:[%s7945_s25 + $0x3a8] sm:$0xff] }
 0x313   : > { %v3878_v24 = vsel %vm3701_vm5, %v3877_v30, %v3873_v27  ;;  %v3152_v49 = vsub.f32 0.0, %v2873_v14  ;;  %v3892_v37 = vrot.slane %v2873_v14, %v12100_v50  ;;  %v3151_v56 = vsub.f32 0.0, %v2872_v8  ;;  %1698 = vadd.xlane.f32.xlu1 %v1345_v23  ;;  %v12135_v30 = vld [vmem:[#allocation262_spill] sm:$0xff] }
 0x314   : > { %v3883_v55 = vsel %vm3708_vm6, %v3882_v44, %v3878_v24  ;;  %v3887_v17 = vrot.slane %v2872_v8, %v12102_v20  ;;  %v2603_v51 = vmul.f32 %v12133_v38, %v1559_v26  ;;  %v5517_v39 = vsel %vm3701_vm5, %v5516_v40, %v5512_v10  ;;  %v12136_v8 = vld [vmem:[#allocation36_spill] sm:$0xff]  ;;  %v1563_v26 = vpop.xlane.xlu1 %1562  ;;  %v12137_v40 = vld [vmem:[#allocation37_spill] sm:$0xff]  ;;  %v12138_v38 = vld [vmem:[#allocation226_spill] sm:$0xff] }
 0x315   : > { %v5531_v53 = vrot.slane %v3152_v49, %v12100_v50  ;;  %v2602_v27 = vmul.f32 %v12134_v32, %v1557_v22  ;;  %v1349_v9 = vmul.f32 %v7587_v6, %v12135_v30  ;;  %v5522_v14 = vsel %vm3708_vm6, %v5521_v3, %v5517_v39  ;;  %1696 = vadd.xlane.f32.xlu0 %v1344_v61  ;;  %v7588_v22 = vld [vmem:[%s7945_s25 + $0x3a0] sm:$0xff] }
 0x316   : > { %v3888_v44 = vsel %vm3715_vm7, %v3887_v17, %v3883_v55  ;;  %v5526_v24 = vrot.slane %v3151_v56, %v12102_v20  ;;  %v2875_v52 = vmul.f32 %v12136_v8, %v2603_v51  ;;  %v2605_v32 = vmul.f32 %v12138_v38, %v1563_v26  ;;  %v1561_v23 = vpop.xlane.xlu0 %1560  ;;  %v12139_v51 = vld [vmem:[#allocation227_spill] sm:$0xff] }
 0x317   : > { %v3893_v10 = vsel %vm3722_vm8, %v3892_v37, %v3888_v44  ;;  %v2874_v49 = vmul.f32 %v12137_v40, %v2602_v27  ;;  %v1348_v6 = vmul.f32 %v7588_v22, %v9527_v46  ;;  %v2604_v61 = vmul.f32 %v12139_v51, %v1561_v23  ;;  %1702 = vadd.xlane.f32.xlu1 %v1347_v21  ;;  %v12140_v26 = vld [vmem:[#allocation39_spill] sm:$0xff]  ;;  %v12141_v22 = vld [vmem:[#allocation264_spill] sm:$0xff] }
 0x318   : > { %v5527_v3 = vsel %vm3715_vm7, %v5526_v24, %v5522_v14  ;;  %v3154_v55 = vsub.f32 0.0, %v2875_v52  ;;  %v3902_v56 = vrot.slane %v2875_v52, %v12107_v33  ;;  %v2877_v27 = vmul.f32 %v12109_v7, %v2605_v32  ;;  %v1567_v14 = vpop.xlane.xlu1 %1566  ;;  %v7589_v24 = vld [vmem:[%s7945_s25 + $0x3b8] sm:$0xff]  ;;  %v7590_v23 = vld [vmem:[%s7945_s25 + $0x3b0] sm:$0xff] }
 0x319   : > { %v5532_v17 = vsel %vm3722_vm8, %v5531_v53, %v5527_v3  ;;  %v3153_v37 = vsub.f32 0.0, %v2874_v49  ;;  %v3897_v39 = vrot.slane %v2874_v49, %v12108_v29  ;;  %v2876_v38 = vmul.f32 %v12140_v26, %v2604_v61  ;;  %1700 = vadd.xlane.f32.xlu0 %v1346_v62  ;;  %v12142_v26 = vld [vmem:[#allocation53_spill] sm:$0xff] }
 0x31a   : > { %v5541_v44 = vrot.slane %v3154_v55, %v12107_v33  ;;  %v1351_v52 = vmul.f32 %v7589_v24, %v12141_v22  ;;  %v1350_v53 = vmul.f32 %v7590_v23, %v9547_v36  ;;  %v3156_v32 = vsub.f32 0.0, %v2877_v27  ;;  %v1565_v55 = vpop.xlane.xlu0 %1564  ;;  %v12143_v36 = vld [vmem:[#allocation54_spill] sm:$0xff] }
 0x31b   : > { %v3898_v3 = vsel %vm3729_vm9, %v3897_v39, %v3893_v10  ;;  %v5536_v49 = vrot.slane %v3153_v37, %v12108_v29  ;;  %v3912_v21 = vrot.slane %v2877_v27, %v12113_v12  ;;  %v3155_v62 = vsub.f32 0.0, %v2876_v38  ;;  %1706 = vadd.xlane.f32.xlu1 %v1349_v9  ;;  %v7591_v37 = vld [vmem:[%s7945_s25 + $0x3c8] sm:$0xff] }
 0x31c   : > { %v3903_v51 = vsel %vm3736_vm10, %v3902_v56, %v3898_v3  ;;  %v3907_v61 = vrot.slane %v2876_v38, %v12114_v42  ;;  %v2607_v7 = vmul.f32 %v12142_v26, %v1567_v14  ;;  %v5551_v23 = vrot.slane %v3156_v32, %v12113_v12  ;;  %v1571_v26 = vpop.xlane.xlu1 %1570  ;;  %v12144_v14 = vld [vmem:[#allocation41_spill] sm:$0xff]  ;;  %v12145_v32 = vld [vmem:[#allocation228_spill] sm:$0xff] }
 0x31d   : > { %v5537_v24 = vsel %vm3729_vm9, %v5536_v49, %v5532_v17  ;;  %v2606_v10 = vmul.f32 %v12143_v36, %v1565_v55  ;;  %v1353_v39 = vmul.f32 %v7591_v37, %v9552_v5  ;;  %v5546_v3 = vrot.slane %v3155_v62, %v12114_v42  ;;  %1704 = vadd.xlane.f32.xlu0 %v1348_v6  ;;  %v7592_v55 = vld [vmem:[%s7945_s25 + $0x3c0] sm:$0xff] }
 0x31e   : > { %v5542_v27 = vsel %vm3736_vm10, %v5541_v44, %v5537_v24  ;;  %v3908_v56 = vsel %vm3743_vm11, %v3907_v61, %v3903_v51  ;;  %v2879_v38 = vmul.f32 %v12115_v28, %v2607_v7  ;;  %v2609_v36 = vmul.f32 %v12145_v32, %v1571_v26  ;;  %v1569_v9 = vpop.xlane.xlu0 %1568  ;;  %v12146_v7 = vld [vmem:[#allocation229_spill] sm:$0xff] }
 0x31f   : > { %v3913_v17 = vsel %vm3750_vm12, %v3912_v21, %v3908_v56  ;;  %v2878_v49 = vmul.f32 %v12144_v14, %v2606_v10  ;;  %v1352_v5 = vmul.f32 %v7592_v55, %v9562_v60  ;;  %v5547_v44 = vsel %vm3743_vm11, %v5546_v3, %v5542_v27  ;;  %1710 = vadd.xlane.f32.xlu1 %v1351_v52  ;;  %v7593_v27 = vld [vmem:[%s7945_s25 + $0x3d8] sm:$0xff] }
 0x320   : > { %v3158_v51 = vsub.f32 0.0, %v2879_v38  ;;  %v3922_v62 = vrot.slane %v2879_v38, %v12117_v2  ;;  %v2608_v6 = vmul.f32 %v12146_v7, %v1569_v9  ;;  %v5552_v61 = vsel %vm3750_vm12, %v5551_v23, %v5547_v44  ;;  %v1575_v56 = vpop.xlane.xlu1 %1574  ;;  %v7594_v38 = vld [vmem:[%s7945_s25 + $0x3d0] sm:$0xff]  ;;  %v12148_v7 = vld [vmem:[#allocation58_spill] sm:$0xff] }
 0x321   : > { %v3157_v21 = vsub.f32 0.0, %v2878_v49  ;;  %v3917_v24 = vrot.slane %v2878_v49, %v12118_v57  ;;  %v2881_v10 = vmul.f32 %v12057_v34, %v2609_v36  ;;  %1708 = vadd.xlane.f32.xlu0 %v1350_v53  ;;  %v1355_v3 = vmul.f32 %v7593_v27, %v9569_v59  ;;  %v12147_v44 = vld [vmem:[#allocation57_spill] sm:$0xff] }
 0x322   : > { %v5561_v37 = vrot.slane %v3158_v51, %v12117_v2  ;;  %v2880_v60 = vmul.f32 %v12061_v1, %v2608_v6  ;;  %v1354_v26 = vmul.f32 %v7594_v38, %v9579_v18  ;;  %v1573_v52 = vpop.xlane.xlu0 %1572  ;;  %v2611_v51 = vmul.f32 %v12147_v44, %v1575_v56  ;;  %v12149_v56 = vld [vmem:[#allocation230_spill] sm:$0xff]  ;;  %v7595_v38 = vld [vmem:[%s7945_s25 + $0x3e8] sm:$0xff] }
 0x323   : > { %v3918_v23 = vsel %vm11612_vm13, %v3917_v24, %v3913_v17  ;;  %v5556_v32 = vrot.slane %v3157_v21, %v12118_v57  ;;  %v3160_v49 = vsub.f32 0.0, %v2881_v10  ;;  %v3931_v36 = vrot.slane %v2881_v10, %v12064_v13  ;;  %1714 = vadd.xlane.f32.xlu1 %v1353_v39 }
 0x324   : > { %v3923_v9 = vsel %vm11611_vm14, %v3922_v62, %v3918_v23  ;;  %v3159_v55 = vsub.f32 0.0, %v2880_v60  ;;  %v3927_v53 = vrot.slane %v2880_v60, %v12066_v4  ;;  %v2610_v6 = vmul.f32 %v12148_v7, %v1573_v52  ;;  %v1579_v60 = vpop.xlane.xlu1 %1578  ;;  %v7597_v7 = vld [vmem:[%s7945_s25 + $0x3f8] sm:$0xff] }
 0x325   : > { %v9956_v59 = vsel %vm11586_vm15, %v3923_v9, %v9818_v15  ;;  %v5557_v18 = vsel %vm11612_vm13, %v5556_v32, %v5552_v61  ;;  %v5570_v17 = vrot.slane %v3160_v49, %v12064_v13  ;;  %v2883_v10 = vmul.f32 %v12069_v0, %v2611_v51  ;;  %1712 = vadd.xlane.f32.xlu0 %v1352_v5  ;;  %v12150_v49 = vld [vmem:[#allocation231_spill] sm:$0xff] }
 0x326   : > { %v5562_v21 = vsel %vm11611_vm14, %v5561_v37, %v5557_v18  ;;  %v3932_v62 = vsel %vm3666_vm0, %v3931_v36, %v3927_v53  ;;  %v5566_v24 = vrot.slane %v3159_v55, %v12066_v4  ;;  %v2882_v61 = vmul.f32 %v12071_v41, %v2610_v6  ;;  %v1577_v39 = vpop.xlane.xlu0 %1576  ;;  %v7596_v55 = vld [vmem:[%s7945_s25 + $0x3e0] sm:$0xff]  ;;  %v12153_v6 = vld [vmem:[#allocation268_spill] sm:$0xff] }
 0x327   : > { %v9967_v15 = vsel %vm11586_vm15, %v5562_v21, %v9828_v63  ;;  %v2613_v27 = vmul.f32 %v12149_v56, %v1579_v60  ;;  %v1357_v37 = vmul.f32 %v7595_v38, %v9586_v45  ;;  %v3162_v32 = vsub.f32 0.0, %v2883_v10  ;;  %1718 = vadd.xlane.f32.xlu1 %v1355_v3  ;;  %v12151_v53 = vld [vmem:[#allocation267_spill] sm:$0xff] }
 0x328   : > { %v5571_v23 = vsel %vm3666_vm0, %v5570_v17, %v5566_v24  ;;  %v3941_v5 = vrot.slane %v2883_v10, %v12073_v16  ;;  %v2612_v36 = vmul.f32 %v12150_v49, %v1577_v39  ;;  %v3161_v52 = vsub.f32 0.0, %v2882_v61  ;;  %v12152_v45 = vld [vmem:[#allocation31_spill] sm:$0xff]  ;;  %v1583_v17 = vpop.xlane.xlu1 %1582  ;;  %v7598_v24 = vld [vmem:[%s7945_s25 + $0x3f0] sm:$0xff]  ;;  %v12154_v10 = vld [vmem:[#allocation270_spill] sm:$0xff] }
 0x329   : > { %v3936_v63 = vrot.slane %v2882_v61, %v12075_v58  ;;  %v2885_v9 = vmul.f32 %v12078_v35, %v2613_v27  ;;  %v1356_v44 = vmul.f32 %v7596_v55, %v12151_v53  ;;  %v5580_v51 = vrot.slane %v3162_v32, %v12073_v16  ;;  %1716 = vadd.xlane.f32.xlu0 %v1354_v26  ;;  %v12155_v49 = vld [vmem:[#allocation61_spill] sm:$0xff] }
 0x32a   : > { %v2884_v18 = vmul.f32 %v12152_v45, %v2612_v36  ;;  %v1359_v21 = vmul.f32 %v7597_v7, %v12153_v6  ;;  %v1358_v60 = vmul.f32 %v7598_v24, %v12154_v10  ;;  %v5575_v3 = vrot.slane %v3161_v52, %v12075_v58  ;;  %v1581_v39 = vpop.xlane.xlu0 %1580  ;;  %v12156_v7 = vld [vmem:[#allocation62_spill] sm:$0xff]  ;;  %v7599_v52 = vld [vmem:[%s7945_s25 + $0x408] sm:$0xff] }
 0x32b   : > { %v3937_v61 = vsel %vm3673_vm1, %v3936_v63, %v3932_v62  ;;  %v3164_v56 = vsub.f32 0.0, %v2885_v9  ;;  %v3951_v27 = vrot.slane %v2885_v9, %v12083_v43  ;;  %v2615_v36 = vmul.f32 %v12155_v49, %v1583_v17  ;;  %1722 = vadd.xlane.f32.xlu1 %v1357_v37  ;;  %v12157_v10 = vld [vmem:[#allocation232_spill] sm:$0xff]  ;;  %v12159_v49 = vld [vmem:[#allocation34_spill] sm:$0xff] }
 0x32c   : > { %v3942_v38 = vsel %vm3680_vm2, %v3941_v5, %v3937_v61  ;;  %v3163_v32 = vsub.f32 0.0, %v2884_v18  ;;  %v3946_v26 = vrot.slane %v2884_v18, %v12085_v48  ;;  %v5576_v55 = vsel %vm3673_vm1, %v5575_v3, %v5571_v23  ;;  %v1587_v17 = vpop.xlane.xlu1 %1586  ;;  %v7600_v3 = vld [vmem:[%s7945_s25 + $0x400] sm:$0xff] }
 0x32d   : > { %v5590_v53 = vrot.slane %v3164_v56, %v12083_v43  ;;  %v2614_v62 = vmul.f32 %v12156_v7, %v1581_v39  ;;  %v1361_v63 = vmul.f32 %v7599_v52, %v12128_v54  ;;  %v5581_v9 = vsel %vm3680_vm2, %v5580_v51, %v5576_v55  ;;  %1720 = vadd.xlane.f32.xlu0 %v1356_v44  ;;  %v12160_v7 = vld [vmem:[#allocation35_spill] sm:$0xff]  ;;  %v7601_v52 = vld [vmem:[%s7945_s25 + $0x418] sm:$0xff] }
 0x32e   : > { %v3947_v5 = vsel %vm3687_vm3, %v3946_v26, %v3942_v38  ;;  %v5585_v6 = vrot.slane %v3163_v32, %v12085_v48  ;;  %v2887_v18 = vmul.f32 %v12087_v47, %v2615_v36  ;;  %v2617_v61 = vmul.f32 %v12157_v10, %v1587_v17  ;;  %v1585_v37 = vpop.xlane.xlu0 %1584  ;;  %v12158_v38 = vld [vmem:[#allocation233_spill] sm:$0xff] }
 0x32f   : > { %v3952_v23 = vsel %vm3694_vm4, %v3951_v27, %v3947_v5  ;;  %v2886_v24 = vmul.f32 %v12089_v25, %v2614_v62  ;;  %v1360_v54 = vmul.f32 %v7600_v3, %v12130_v19  ;;  %v2616_v44 = vmul.f32 %v12158_v38, %v1585_v37  ;;  %1726 = vadd.xlane.f32.xlu1 %v1359_v21 }
 0x330   : > { %v5586_v51 = vsel %vm3687_vm3, %v5585_v6, %v5581_v9  ;;  %v3166_v56 = vsub.f32 0.0, %v2887_v18  ;;  %v3961_v39 = vrot.slane %v2887_v18, %v12091_v31  ;;  %v2889_v36 = vmul.f32 %v12159_v49, %v2617_v61  ;;  %v1591_v62 = vpop.xlane.xlu1 %1590  ;;  %v12161_v9 = vld [vmem:[#allocation273_spill] sm:$0xff]  ;;  %v12162_v18 = vld [vmem:[#allocation22_spill] sm:$0xff] }
 0x331   : > { %v5591_v32 = vsel %vm3694_vm4, %v5590_v53, %v5586_v51  ;;  %v3165_v27 = vsub.f32 0.0, %v2886_v24  ;;  %v3956_v26 = vrot.slane %v2886_v24, %v12092_v11  ;;  %v2888_v19 = vmul.f32 %v12160_v7, %v2616_v44  ;;  %1724 = vadd.xlane.f32.xlu0 %v1358_v60  ;;  %v7602_v6 = vld [vmem:[%s7945_s25 + $0x410] sm:$0xff] }
 0x332   : > { %v5600_v55 = vrot.slane %v3166_v56, %v12091_v31  ;;  %v1363_v5 = vmul.f32 %v7601_v52, %v12161_v9  ;;  %v1362_v17 = vmul.f32 %v7602_v6, %v12162_v18  ;;  %v3168_v10 = vsub.f32 0.0, %v2889_v36  ;;  %v1589_v61 = vpop.xlane.xlu0 %1588  ;;  %v12163_v51 = vld [vmem:[#allocation65_spill] sm:$0xff]  ;;  %v12164_v52 = vld [vmem:[#allocation66_spill] sm:$0xff] }
 0x333   : > { %v3957_v53 = vsel %vm3701_vm5, %v3956_v26, %v3952_v23  ;;  %v5595_v24 = vrot.slane %v3165_v27, %v12092_v11  ;;  %v3971_v21 = vrot.slane %v2889_v36, %v12100_v50  ;;  %v3167_v3 = vsub.f32 0.0, %v2888_v19  ;;  %1730 = vadd.xlane.f32.xlu1 %v1361_v63  ;;  %v7603_v27 = vld [vmem:[%s7945_s25 + $0x428] sm:$0xff] }
 0x334   : > { %v3962_v37 = vsel %vm3708_vm6, %v3961_v39, %v3957_v53  ;;  %v3966_v60 = vrot.slane %v2888_v19, %v12102_v20  ;;  %v2619_v56 = vmul.f32 %v12163_v51, %v1591_v62  ;;  %v5610_v44 = vrot.slane %v3168_v10, %v12100_v50  ;;  %v1595_v62 = vpop.xlane.xlu1 %1594 }
 0x335   : > { %v5596_v38 = vsel %vm3701_vm5, %v5595_v24, %v5591_v32  ;;  %v2618_v23 = vmul.f32 %v12164_v52, %v1589_v61  ;;  %v1365_v26 = vmul.f32 %v7603_v27, %v12135_v30  ;;  %v5605_v6 = vrot.slane %v3167_v3, %v12102_v20  ;;  %1728 = vadd.xlane.f32.xlu0 %v1360_v54  ;;  %v12165_v24 = vld [vmem:[#allocation234_spill] sm:$0xff]  ;;  %v12168_v27 = vld [vmem:[#allocation39_spill] sm:$0xff] }
 0x336   : > { %v5601_v36 = vsel %vm3708_vm6, %v5600_v55, %v5596_v38  ;;  %v3967_v39 = vsel %vm3715_vm7, %v3966_v60, %v3962_v37  ;;  %v2891_v19 = vmul.f32 %v12136_v8, %v2619_v56  ;;  %v2621_v10 = vmul.f32 %v12165_v24, %v1595_v62  ;;  %v1593_v63 = vpop.xlane.xlu0 %1592  ;;  %v7604_v61 = vld [vmem:[%s7945_s25 + $0x420] sm:$0xff] }
 0x337   : > { %v3972_v32 = vsel %vm3722_vm8, %v3971_v21, %v3967_v39  ;;  %v2890_v53 = vmul.f32 %v12137_v40, %v2618_v23  ;;  %v1364_v30 = vmul.f32 %v7604_v61, %v9527_v46  ;;  %v5606_v55 = vsel %vm3715_vm7, %v5605_v6, %v5601_v36  ;;  %v12166_v60 = vld [vmem:[#allocation235_spill] sm:$0xff]  ;;  %v12167_v38 = vld [vmem:[#allocation38_spill] sm:$0xff]  ;;  %1734 = vadd.xlane.f32.xlu1 %v1363_v5 }
 0x338   : > { %v3170_v37 = vsub.f32 0.0, %v2891_v19  ;;  %v3981_v3 = vrot.slane %v2891_v19, %v12107_v33  ;;  %v2620_v54 = vmul.f32 %v12166_v60, %v1593_v63  ;;  %v5611_v51 = vsel %vm3722_vm8, %v5610_v44, %v5606_v55  ;;  %v1599_v36 = vpop.xlane.xlu1 %1598  ;;  %v7605_v39 = vld [vmem:[%s7945_s25 + $0x438] sm:$0xff]  ;;  %v7606_v19 = vld [vmem:[%s7945_s25 + $0x430] sm:$0xff] }
 0x339   : > { %v3169_v21 = vsub.f32 0.0, %v2890_v53  ;;  %v3976_v56 = vrot.slane %v2890_v53, %v12108_v29  ;;  %v2893_v52 = vmul.f32 %v12167_v38, %v2621_v10  ;;  %1732 = vadd.xlane.f32.xlu0 %v1362_v17  ;;  %vm11603_vm15 = vcmask 1043459   ;;  %v12169_v62 = vld [vmem:[#allocation266_spill] sm:$0xff] }
 0x33a   : > { %v5620_v23 = vrot.slane %v3170_v37, %v12107_v33  ;;  %v2892_v46 = vmul.f32 %v12168_v27, %v2620_v54  ;;  %v1367_v6 = vmul.f32 %v7605_v39, %v12141_v22  ;;  %v1366_v44 = vmul.f32 %v7606_v19, %v12169_v62  ;;  %v1597_v63 = vpop.xlane.xlu0 %1596  ;;  %v12170_v37 = vld [vmem:[#allocation69_spill] sm:$0xff]  ;;  %v12171_v39 = vld [vmem:[#allocation70_spill] sm:$0xff] }
 0x33b   : > { %v3977_v53 = vsel %vm3729_vm9, %v3976_v56, %v3972_v32  ;;  %v5615_v24 = vrot.slane %v3169_v21, %v12108_v29  ;;  %v3172_v5 = vsub.f32 0.0, %v2893_v52  ;;  %v3991_v10 = vrot.slane %v2893_v52, %v12113_v12  ;;  %1738 = vadd.xlane.f32.xlu1 %v1365_v26  ;;  %v10060_v21 = vld [vmem:[%s7945_s25 + $0x48] sm:$0xff] }
 0x33c   : > { %v3982_v17 = vsel %vm3736_vm10, %v3981_v3, %v3977_v53  ;;  %v3171_v61 = vsub.f32 0.0, %v2892_v46  ;;  %v3986_v55 = vrot.slane %v2892_v46, %v12114_v42  ;;  %v2623_v22 = vmul.f32 %v12170_v37, %v1599_v36  ;;  %v7608_v56 = vld [vmem:[%s7945_s25 + $0x448] sm:$0xff]  ;;  %v1603_v19 = vpop.xlane.xlu1 %1602  ;;  %v7610_v37 = vld [vmem:[%s7945_s25 + $0x440] sm:$0xff] }
 0x33d   : > { %v5616_v60 = vsel %vm3729_vm9, %v5615_v24, %v5611_v51  ;;  %v5630_v54 = vrot.slane %v3172_v5, %v12113_v12  ;;  %v2622_v32 = vmul.f32 %v12171_v39, %v1597_v63  ;;  %v1369_v52 = vmul.f32 %v7608_v56, %v10060_v21  ;;  %1736 = vadd.xlane.f32.xlu0 %v1364_v30  ;;  %v12172_v26 = vld [vmem:[#allocation236_spill] sm:$0xff]  ;;  %v10072_v63 = vld [vmem:[%s7945_s25 + $0x40] sm:$0xff] }
 0x33e   : > { %v5621_v3 = vsel %vm3736_vm10, %v5620_v23, %v5616_v60  ;;  %v3987_v46 = vsel %vm3743_vm11, %v3986_v55, %v3982_v17  ;;  %v5625_v36 = vrot.slane %v3171_v61, %v12114_v42  ;;  %v2895_v51 = vmul.f32 %v12115_v28, %v2623_v22  ;;  %v1601_v5 = vpop.xlane.xlu0 %1600 }
 0x33f   : > { %v3992_v62 = vsel %vm3750_vm12, %v3991_v10, %v3987_v46  ;;  %v2894_v53 = vmul.f32 %v12144_v14, %v2622_v32  ;;  %v2625_v24 = vmul.f32 %v12172_v26, %v1603_v19  ;;  %v1368_v23 = vmul.f32 %v7610_v37, %v10072_v63  ;;  %v12173_v10 = vld [vmem:[#allocation237_spill] sm:$0xff]  ;;  %1742 = vadd.xlane.f32.xlu1 %v1367_v6 }
 0x340   : > { %v5626_v17 = vsel %vm3743_vm11, %v5625_v36, %v5621_v3  ;;  %v3174_v61 = vsub.f32 0.0, %v2895_v51  ;;  %v4001_v30 = vrot.slane %v2895_v51, %v12117_v2  ;;  %v2624_v55 = vmul.f32 %v12173_v10, %v1601_v5  ;;  %v1607_v3 = vpop.xlane.xlu1 %1606  ;;  %v10085_v36 = vld [vmem:[%s7945_s25 + $0x58] sm:$0xff]  ;;  %v10090_v26 = vld [vmem:[%s7945_s25 + $0x50] sm:$0xff] }
 0x341   : > { %v5631_v22 = vsel %vm3750_vm12, %v5630_v54, %v5626_v17  ;;  %v3173_v60 = vsub.f32 0.0, %v2894_v53  ;;  %v3996_v39 = vrot.slane %v2894_v53, %v12118_v57  ;;  %v2897_v32 = vmul.f32 %v12057_v34, %v2625_v24  ;;  %1740 = vadd.xlane.f32.xlu0 %v1366_v44  ;;  %12174 = vst [vmem:[#allocation27_spill] sm:$0xff] %v10085_v36  ;;  %v7612_v19 = vld [vmem:[%s7945_s25 + $0x458] sm:$0xff]  ;;  %v7614_v54 = vld [vmem:[%s7945_s25 + $0x450] sm:$0xff] }
 0x342   : > { %v5640_v56 = vrot.slane %v3174_v61, %v12117_v2  ;;  %v2896_v46 = vmul.f32 %v12061_v1, %v2624_v55  ;;  %v1371_v51 = vmul.f32 %v7612_v19, %v10085_v36  ;;  %v1370_v5 = vmul.f32 %v7614_v54, %v10090_v26  ;;  %v1605_v17 = vpop.xlane.xlu0 %1604  ;;  %v12175_v55 = vld [vmem:[#allocation73_spill] sm:$0xff] }
 0x343   : > { %v3997_v53 = vsel %vm11612_vm13, %v3996_v39, %v3992_v62  ;;  %v5635_v6 = vrot.slane %v3173_v60, %v12118_v57  ;;  %v3176_v24 = vsub.f32 0.0, %v2897_v32  ;;  %v4010_v37 = vrot.slane %v2897_v32, %v12064_v13  ;;  %v12176_v39 = vld [vmem:[#allocation74_spill] sm:$0xff]  ;;  %1746 = vadd.xlane.f32.xlu1 %v1369_v52 }
 0x344   : > { %v4002_v44 = vsel %vm11611_vm14, %v4001_v30, %v3997_v53  ;;  %v3175_v61 = vsub.f32 0.0, %v2896_v46  ;;  %v4006_v10 = vrot.slane %v2896_v46, %v12066_v4  ;;  %v2627_v19 = vmul.f32 %v12175_v55, %v1607_v3  ;;  %v1611_v53 = vpop.xlane.xlu1 %1610 }
 0x345   : > { %v10102_v36 = vsel %vm11603_vm15, %v4002_v44, %v9956_v59  ;;  %v5636_v62 = vsel %vm11612_vm13, %v5635_v6, %v5631_v22  ;;  %v5649_v60 = vrot.slane %v3176_v24, %v12064_v13  ;;  %v2626_v32 = vmul.f32 %v12176_v39, %v1605_v17  ;;  %1744 = vadd.xlane.f32.xlu0 %v1368_v23  ;;  %v12178_v6 = vld [vmem:[#allocation238_spill] sm:$0xff] }
 0x346   : > { %v5641_v30 = vsel %vm11611_vm14, %v5640_v56, %v5636_v62  ;;  %v4011_v54 = vsel %vm3666_vm0, %v4010_v37, %v4006_v10  ;;  %v5645_v46 = vrot.slane %v3175_v61, %v12066_v4  ;;  %v2899_v3 = vmul.f32 %v12069_v0, %v2627_v19  ;;  %v1609_v24 = vpop.xlane.xlu0 %1608  ;;  %v10118_v56 = vld [vmem:[%s7945_s25 + $0x68] sm:$0xff]  ;;  %v10128_v39 = vld [vmem:[%s7945_s25 + $0x60] sm:$0xff] }
 0x347   : > { %v10113_v59 = vsel %vm11603_vm15, %v5641_v30, %v9967_v15  ;;  %v2898_v22 = vmul.f32 %v12071_v41, %v2626_v32  ;;  %v2629_v52 = vmul.f32 %v12178_v6, %v1611_v53  ;;  %12179 = vst [vmem:[#allocation40_spill] sm:$0xff] %v10118_v56  ;;  %v7616_v37 = vld [vmem:[%s7945_s25 + $0x468] sm:$0xff]  ;;  %1750 = vadd.xlane.f32.xlu1 %v1371_v51  ;;  %12181 = vst [vmem:[#allocation42_spill] sm:$0xff] %v10128_v39  ;;  %v7618_v32 = vld [vmem:[%s7945_s25 + $0x460] sm:$0xff]  ;;  %vm11608_vm15 = vcmask 1044484  }
 0x348   : > { %12177 = vst [vmem:[#allocation29_spill] sm:$0xff] %v10113_v59  ;;  %v1373_v17 = vmul.f32 %v7616_v37, %v10118_v56  ;;  %v5650_v23 = vsel %vm3666_vm0, %v5649_v60, %v5645_v46  ;;  %v3178_v44 = vsub.f32 0.0, %v2899_v3  ;;  %v4020_v61 = vrot.slane %v2899_v3, %v12073_v16  ;;  %v12180_v15 = vld [vmem:[#allocation239_spill] sm:$0xff]  ;;  %v1615_v3 = vpop.xlane.xlu1 %1614  ;;  %v10135_v53 = vld [vmem:[%s7945_s25 + $0x78] sm:$0xff]  ;;  %v7622_v51 = vld [vmem:[%s7945_s25 + $0x470] sm:$0xff] }
 0x349   : > { %v2628_v10 = vmul.f32 %v12180_v15, %v1609_v24  ;;  %v3177_v55 = vsub.f32 0.0, %v2898_v22  ;;  %v4015_v19 = vrot.slane %v2898_v22, %v12075_v58  ;;  %v2901_v62 = vmul.f32 %v12078_v35, %v2629_v52  ;;  %1748 = vadd.xlane.f32.xlu0 %v1370_v5  ;;  %12182 = vst [vmem:[#allocation44_spill] sm:$0xff] %v10135_v53  ;;  %v7620_v6 = vld [vmem:[%s7945_s25 + $0x478] sm:$0xff]  ;;  %v10140_v22 = vld [vmem:[%s7945_s25 + $0x70] sm:$0xff] }
 0x34a   : > { %v1372_v30 = vmul.f32 %v7618_v32, %v10128_v39  ;;  %v5659_v60 = vrot.slane %v3178_v44, %v12073_v16  ;;  %v1375_v24 = vmul.f32 %v7620_v6, %v10135_v53  ;;  %v1374_v52 = vmul.f32 %v7622_v51, %v10140_v22  ;;  %v12183_v53 = vld [vmem:[#allocation77_spill] sm:$0xff]  ;;  %v12184_v51 = vld [vmem:[#allocation78_spill] sm:$0xff] }
 0x34b   : > { %v2900_v46 = vmul.f32 %v12152_v45, %v2628_v10  ;;  %v4016_v37 = vsel %vm3673_vm1, %v4015_v19, %v4011_v54  ;;  %v5654_v44 = vrot.slane %v3177_v55, %v12075_v58  ;;  %v3180_v15 = vsub.f32 0.0, %v2901_v62  ;;  %v1613_v10 = vpop.xlane.xlu0 %1612  ;;  %1754 = vadd.xlane.f32.xlu1 %v1373_v17  ;;  %v10154_v55 = vld [vmem:[%s7945_s25 + $0x8] sm:$0xff] }
 0x34c   : > { %v4030_v5 = vrot.slane %v2901_v62, %v12083_v43  ;;  %v4021_v32 = vsel %vm3680_vm2, %v4020_v61, %v4016_v37  ;;  %v2631_v45 = vmul.f32 %v12183_v53, %v1615_v3  ;;  %v2630_v54 = vmul.f32 %v12184_v51, %v1613_v10  ;;  %v7624_v19 = vld [vmem:[%s7945_s25 + $0x488] sm:$0xff]  ;;  %v1619_v53 = vpop.xlane.xlu1 %1618  ;;  %v10166_v51 = vld [vmem:[%s7945_s25] sm:$0xff] }
 0x34d   : > { %v3179_v59 = vsub.f32 0.0, %v2900_v46  ;;  %v4025_v6 = vrot.slane %v2900_v46, %v12085_v48  ;;  %v5655_v39 = vsel %vm3673_vm1, %v5654_v44, %v5650_v23  ;;  %v5669_v35 = vrot.slane %v3180_v15, %v12083_v43  ;;  %1752 = vadd.xlane.f32.xlu0 %v1372_v30  ;;  %v12185_v17 = vld [vmem:[#allocation240_spill] sm:$0xff]  ;;  %12186 = vst [vmem:[#allocation45_spill] sm:$0xff] %v10166_v51  ;;  %v12187_v30 = vld [vmem:[#allocation241_spill] sm:$0xff] }
 0x34e   : > { %v1377_v62 = vmul.f32 %v7624_v19, %v10154_v55  ;;  %v5660_v61 = vsel %vm3680_vm2, %v5659_v60, %v5655_v39  ;;  %v2903_v23 = vmul.f32 %v12087_v47, %v2631_v45  ;;  %v2902_v44 = vmul.f32 %v12089_v25, %v2630_v54  ;;  %v7626_v19 = vld [vmem:[%s7945_s25 + $0x480] sm:$0xff] }
 0x34f   : > { %v4026_v46 = vsel %vm3687_vm3, %v4025_v6, %v4021_v32  ;;  %v5664_v3 = vrot.slane %v3179_v59, %v12085_v48  ;;  %v2633_v15 = vmul.f32 %v12185_v17, %v1619_v53  ;;  %v1617_v10 = vpop.xlane.xlu0 %1616  ;;  %v1376_v39 = vmul.f32 %v7626_v19, %v10166_v51  ;;  %1758 = vadd.xlane.f32.xlu1 %v1375_v24 }
 0x350   : > { %v4031_v37 = vsel %vm3694_vm4, %v4030_v5, %v4026_v46  ;;  %v3182_v60 = vsub.f32 0.0, %v2903_v23  ;;  %v4040_v45 = vrot.slane %v2903_v23, %v12091_v31  ;;  %v2632_v32 = vmul.f32 %v12187_v30, %v1617_v10  ;;  %v1623_v19 = vpop.xlane.xlu1 %1622  ;;  %v7628_v23 = vld [vmem:[%s7945_s25 + $0x490] sm:$0xff] }
 0x351   : > { %v5665_v59 = vsel %vm3687_vm3, %v5664_v3, %v5660_v61  ;;  %v3181_v6 = vsub.f32 0.0, %v2902_v44  ;;  %v4035_v54 = vrot.slane %v2902_v44, %v12092_v11  ;;  %v2905_v46 = vmul.f32 %v12159_v49, %v2633_v15  ;;  %1756 = vadd.xlane.f32.xlu0 %v1374_v52  ;;  %v7627_v61 = vld [vmem:[%s7945_s25 + $0x498] sm:$0xff] }
 0x352   : > { %v5670_v5 = vsel %vm3694_vm4, %v5669_v35, %v5665_v59  ;;  %v5679_v53 = vrot.slane %v3182_v60, %v12091_v31  ;;  %v2904_v17 = vmul.f32 %v12160_v7, %v2632_v32  ;;  %v1379_v3 = vmul.f32 %v7627_v61, %v12161_v9  ;;  %v12188_v32 = vld [vmem:[#allocation81_spill] sm:$0xff] }
 0x353   : > { %v1378_v35 = vmul.f32 %v7628_v23, %v12162_v18  ;;  %v4036_v10 = vsel %vm3701_vm5, %v4035_v54, %v4031_v37  ;;  %v5674_v44 = vrot.slane %v3181_v6, %v12092_v11  ;;  %v3184_v15 = vsub.f32 0.0, %v2905_v46  ;;  %v1621_v59 = vpop.xlane.xlu0 %1620  ;;  %v12189_v18 = vld [vmem:[#allocation82_spill] sm:$0xff]  ;;  %1762 = vadd.xlane.f32.xlu1 %v1377_v62  ;;  %v10192_v6 = vld [vmem:[%s7945_s25 + $0x28] sm:$0xff] }
 0x354   : > { %v4050_v24 = vrot.slane %v2905_v46, %v12100_v50  ;;  %v4041_v60 = vsel %vm3708_vm6, %v4040_v45, %v4036_v10  ;;  %v3183_v52 = vsub.f32 0.0, %v2904_v17  ;;  %v4045_v30 = vrot.slane %v2904_v17, %v12102_v20  ;;  %v7630_v54 = vld [vmem:[%s7945_s25 + $0x4a8] sm:$0xff]  ;;  %v1627_v23 = vpop.xlane.xlu1 %1626  ;;  %v12190_v62 = vld [vmem:[#allocation242_spill] sm:$0xff] }
 0x355   : > { %v2635_v9 = vmul.f32 %v12188_v32, %v1623_v19  ;;  %v5675_v61 = vsel %vm3701_vm5, %v5674_v44, %v5670_v5  ;;  %v5689_v51 = vrot.slane %v3184_v15, %v12100_v50  ;;  %v2634_v37 = vmul.f32 %v12189_v18, %v1621_v59  ;;  %1760 = vadd.xlane.f32.xlu0 %v1376_v39  ;;  %v10204_v32 = vld [vmem:[%s7945_s25 + $0x20] sm:$0xff] }
 0x356   : > { %v1381_v46 = vmul.f32 %v7630_v54, %v10192_v6  ;;  %v5680_v45 = vsel %vm3708_vm6, %v5679_v53, %v5675_v61  ;;  %v4046_v17 = vsel %vm3715_vm7, %v4045_v30, %v4041_v60  ;;  %v5684_v19 = vrot.slane %v3183_v52, %v12102_v20  ;;  %12191 = vst [vmem:[#allocation223_spill] sm:$0xff] %v10204_v32  ;;  %v7632_v18 = vld [vmem:[%s7945_s25 + $0x4a0] sm:$0xff] }
 0x357   : > { %v2907_v5 = vmul.f32 %v12136_v8, %v2635_v9  ;;  %v4051_v10 = vsel %vm3722_vm8, %v4050_v24, %v4046_v17  ;;  %v2906_v44 = vmul.f32 %v12137_v40, %v2634_v37  ;;  %v2637_v15 = vmul.f32 %v12190_v62, %v1627_v23  ;;  %v1625_v59 = vpop.xlane.xlu0 %1624  ;;  %v12192_v24 = vld [vmem:[#allocation243_spill] sm:$0xff]  ;;  %1766 = vadd.xlane.f32.xlu1 %v1379_v3  ;;  %v7634_v62 = vld [vmem:[%s7945_s25 + $0x4b8] sm:$0xff] }
 0x358   : > { %v1380_v53 = vmul.f32 %v7632_v18, %v10204_v32  ;;  %v5685_v60 = vsel %vm3715_vm7, %v5684_v19, %v5680_v45  ;;  %v2636_v30 = vmul.f32 %v12192_v24, %v1625_v59  ;;  %v1631_v45 = vpop.xlane.xlu1 %1630  ;;  %v10217_v19 = vld [vmem:[%s7945_s25 + $0x38] sm:$0xff]  ;;  %v10222_v59 = vld [vmem:[%s7945_s25 + $0x30] sm:$0xff] }
 0x359   : > { %v3186_v52 = vsub.f32 0.0, %v2907_v5  ;;  %v4060_v39 = vrot.slane %v2907_v5, %v12107_v33  ;;  %v5690_v9 = vsel %vm3722_vm8, %v5689_v51, %v5685_v60  ;;  %v3185_v61 = vsub.f32 0.0, %v2906_v44  ;;  %1764 = vadd.xlane.f32.xlu0 %v1378_v35  ;;  %12193 = vst [vmem:[#allocation46_spill] sm:$0xff] %v10217_v19  ;;  %12194 = vst [vmem:[#allocation271_spill] sm:$0xff] %v10222_v59  ;;  %v7636_v51 = vld [vmem:[%s7945_s25 + $0x4b0] sm:$0xff] }
 0x35a   : > { %v4055_v37 = vrot.slane %v2906_v44, %v12108_v29  ;;  %v2909_v54 = vmul.f32 %v12167_v38, %v2637_v15  ;;  %v2908_v23 = vmul.f32 %v12168_v27, %v2636_v30  ;;  %v1383_v5 = vmul.f32 %v7634_v62, %v10217_v19  ;;  %v12195_v62 = vld [vmem:[#allocation85_spill] sm:$0xff] }
 0x35b   : > { %v5699_v17 = vrot.slane %v3186_v52, %v12107_v33  ;;  %v1382_v44 = vmul.f32 %v7636_v51, %v10222_v59  ;;  %v5694_v3 = vrot.slane %v3185_v61, %v12108_v29  ;;  %v1629_v35 = vpop.xlane.xlu0 %1628  ;;  %v2639_v19 = vmul.f32 %v12195_v62, %v1631_v45  ;;  %v12196_v59 = vld [vmem:[#allocation86_spill] sm:$0xff]  ;;  %1770 = vadd.xlane.f32.xlu1 %v1381_v46  ;;  %v7637_v61 = vld [vmem:[%s7945_s25 + $0x4c8] sm:$0xff] }
 0x35c   : > { %v4056_v15 = vsel %vm3729_vm9, %v4055_v37, %v4051_v10  ;;  %v3188_v18 = vsub.f32 0.0, %v2909_v54  ;;  %v4070_v60 = vrot.slane %v2909_v54, %v12113_v12  ;;  %v3187_v24 = vsub.f32 0.0, %v2908_v23  ;;  %v1635_v45 = vpop.xlane.xlu1 %1634 }
 0x35d   : > { %v4061_v52 = vsel %vm3736_vm10, %v4060_v39, %v4056_v15  ;;  %v4065_v30 = vrot.slane %v2908_v23, %v12114_v42  ;;  %v5695_v32 = vsel %vm3729_vm9, %v5694_v3, %v5690_v9  ;;  %v2638_v10 = vmul.f32 %v12196_v59, %v1629_v35  ;;  %1768 = vadd.xlane.f32.xlu0 %v1380_v53  ;;  %v7638_v35 = vld [vmem:[%s7945_s25 + $0x4c0] sm:$0xff] }
 0x35e   : > { %v5709_v51 = vrot.slane %v3188_v18, %v12113_v12  ;;  %v1385_v37 = vmul.f32 %v7637_v61, %v10060_v21  ;;  %v5700_v54 = vsel %vm3736_vm10, %v5699_v17, %v5695_v32  ;;  %v5704_v15 = vrot.slane %v3187_v24, %v12114_v42  ;;  %v12197_v18 = vld [vmem:[#allocation244_spill] sm:$0xff]  ;;  %v12198_v24 = vld [vmem:[#allocation245_spill] sm:$0xff] }
 0x35f   : > { %v4066_v39 = vsel %vm3743_vm11, %v4065_v30, %v4061_v52  ;;  %v2911_v23 = vmul.f32 %v12115_v28, %v2639_v19  ;;  %v2910_v3 = vmul.f32 %v12144_v14, %v2638_v10  ;;  %v2641_v59 = vmul.f32 %v12197_v18, %v1635_v45  ;;  %v1633_v46 = vpop.xlane.xlu0 %1632  ;;  %1774 = vadd.xlane.f32.xlu1 %v1383_v5 }
 0x360   : > { %v4071_v9 = vsel %vm3750_vm12, %v4070_v60, %v4066_v39  ;;  %v1384_v62 = vmul.f32 %v7638_v35, %v10072_v63  ;;  %v5705_v32 = vsel %vm3743_vm11, %v5704_v15, %v5700_v54  ;;  %v2640_v19 = vmul.f32 %v12198_v24, %v1633_v46  ;;  %v1639_v45 = vpop.xlane.xlu1 %1638  ;;  %v7639_v54 = vld [vmem:[%s7945_s25 + $0x4d8] sm:$0xff]  ;;  %v12199_v15 = vld [vmem:[#allocation27_spill] sm:$0xff] }
 0x361   : > { %v3190_v17 = vsub.f32 0.0, %v2911_v23  ;;  %v4080_v52 = vrot.slane %v2911_v23, %v12117_v2  ;;  %v5710_v53 = vsel %vm3750_vm12, %v5709_v51, %v5705_v32  ;;  %v3189_v30 = vsub.f32 0.0, %v2910_v3  ;;  %1772 = vadd.xlane.f32.xlu0 %v1382_v44  ;;  %v12200_v44 = vld [vmem:[#allocation89_spill] sm:$0xff] }
 0x362   : > { %v4075_v60 = vrot.slane %v2910_v3, %v12118_v57  ;;  %v2913_v10 = vmul.f32 %v12057_v34, %v2641_v59  ;;  %v2912_v39 = vmul.f32 %v12061_v1, %v2640_v19  ;;  %v1387_v23 = vmul.f32 %v7639_v54, %v12199_v15  ;;  %v12201_v54 = vld [vmem:[#allocation90_spill] sm:$0xff] }
 0x363   : > { %v5719_v61 = vrot.slane %v3190_v17, %v12117_v2  ;;  %v5714_v51 = vrot.slane %v3189_v30, %v12118_v57  ;;  %v1637_v59 = vpop.xlane.xlu0 %1636  ;;  %v2643_v17 = vmul.f32 %v12200_v44, %v1639_v45  ;;  %1778 = vadd.xlane.f32.xlu1 %v1385_v37  ;;  %v7640_v30 = vld [vmem:[%s7945_s25 + $0x4d0] sm:$0xff]  ;;  %v7641_v37 = vld [vmem:[%s7945_s25 + $0x4e8] sm:$0xff] }
 0x364   : > { %v4076_v18 = vsel %vm11612_vm13, %v4075_v60, %v4071_v9  ;;  %v3192_v46 = vsub.f32 0.0, %v2913_v10  ;;  %v4089_v3 = vrot.slane %v2913_v10, %v12064_v13  ;;  %v3191_v35 = vsub.f32 0.0, %v2912_v39  ;;  %v1643_v45 = vpop.xlane.xlu1 %1642 }
 0x365   : > { %v4081_v5 = vsel %vm11611_vm14, %v4080_v52, %v4076_v18  ;;  %v4085_v32 = vrot.slane %v2912_v39, %v12066_v4  ;;  %v5715_v24 = vsel %vm11612_vm13, %v5714_v51, %v5710_v53  ;;  %v2642_v9 = vmul.f32 %v12201_v54, %v1637_v59  ;;  %1776 = vadd.xlane.f32.xlu0 %v1384_v62  ;;  %v12202_v51 = vld [vmem:[#allocation246_spill] sm:$0xff] }
 0x366   : > { %v5728_v19 = vrot.slane %v3192_v46, %v12064_v13  ;;  %v1386_v60 = vmul.f32 %v7640_v30, %v10090_v26  ;;  %v5720_v10 = vsel %vm11611_vm14, %v5719_v61, %v5715_v24  ;;  %v5724_v18 = vrot.slane %v3191_v35, %v12066_v4 }
 0x367   : > { %v4090_v52 = vsel %vm3666_vm0, %v4089_v3, %v4085_v32  ;;  %v2915_v39 = vmul.f32 %v12069_v0, %v2643_v17  ;;  %v2914_v53 = vmul.f32 %v12071_v41, %v2642_v9  ;;  %v2645_v46 = vmul.f32 %v12202_v51, %v1643_v45  ;;  %v1641_v59 = vpop.xlane.xlu0 %1640  ;;  %v12204_v32 = vld [vmem:[#allocation247_spill] sm:$0xff]  ;;  %v12205_v9 = vld [vmem:[#allocation30_spill] sm:$0xff]  ;;  %1782 = vadd.xlane.f32.xlu1 %v1387_v23 }
 0x368   : > { %v1389_v44 = vmul.f32 %v7641_v37, %v10118_v56  ;;  %v10277_v61 = vsel %vm11608_vm15, %v4081_v5, %v10102_v36  ;;  %v5729_v3 = vsel %vm3666_vm0, %v5728_v19, %v5724_v18  ;;  %v2644_v17 = vmul.f32 %v12204_v32, %v1641_v59  ;;  %v7642_v45 = vld [vmem:[%s7945_s25 + $0x4e0] sm:$0xff]  ;;  %v1647_v19 = vpop.xlane.xlu1 %1646  ;;  %v7643_v18 = vld [vmem:[%s7945_s25 + $0x4f8] sm:$0xff] }
 0x369   : > { %12203 = vst [vmem:[#allocation224_spill] sm:$0xff] %v10277_v61  ;;  %v3194_v35 = vsub.f32 0.0, %v2915_v39  ;;  %v4099_v62 = vrot.slane %v2915_v39, %v12073_v16  ;;  %v3193_v24 = vsub.f32 0.0, %v2914_v53  ;;  %v4094_v54 = vrot.slane %v2914_v53, %v12075_v58  ;;  %v12206_v51 = vld [vmem:[#allocation42_spill] sm:$0xff]  ;;  %v12207_v36 = vld [vmem:[#allocation31_spill] sm:$0xff]  ;;  %1780 = vadd.xlane.f32.xlu0 %v1386_v60  ;;  %v12208_v61 = vld [vmem:[#allocation44_spill] sm:$0xff] }
 0x36a   : > { %v2917_v30 = vmul.f32 %v12205_v9, %v2645_v46  ;;  %v1388_v37 = vmul.f32 %v7642_v45, %v12206_v51  ;;  %v2916_v5 = vmul.f32 %v12207_v36, %v2644_v17  ;;  %v1391_v39 = vmul.f32 %v7643_v18, %v12208_v61  ;;  %v12209_v59 = vld [vmem:[#allocation29_spill] sm:$0xff] }
 0x36b   : > { %v5738_v56 = vrot.slane %v3194_v35, %v12073_v16  ;;  %v10292_v32 = vsel %vm11608_vm15, %v5720_v10, %v12209_v59  ;;  %v4095_v53 = vsel %vm3673_vm1, %v4094_v54, %v4090_v52  ;;  %v5733_v23 = vrot.slane %v3193_v24, %v12075_v58  ;;  %v1645_v35 = vpop.xlane.xlu0 %1644  ;;  %v12211_v51 = vld [vmem:[#allocation93_spill] sm:$0xff]  ;;  %v12212_v59 = vld [vmem:[#allocation94_spill] sm:$0xff]  ;;  %1786 = vadd.xlane.f32.xlu1 %v1389_v44 }
 0x36c   : > { %12210 = vst [vmem:[#allocation28_spill] sm:$0xff] %v10292_v32  ;;  %v3196_v46 = vsub.f32 0.0, %v2917_v30  ;;  %v4109_v45 = vrot.slane %v2917_v30, %v12083_v43  ;;  %v4100_v17 = vsel %vm3680_vm2, %v4099_v62, %v4095_v53  ;;  %v3195_v60 = vsub.f32 0.0, %v2916_v5  ;;  %v7644_v24 = vld [vmem:[%s7945_s25 + $0x4f0] sm:$0xff] }
 0x36d   : > { %v4104_v36 = vrot.slane %v2916_v5, %v12085_v48  ;;  %v2647_v9 = vmul.f32 %v12211_v51, %v1647_v19  ;;  %v5734_v18 = vsel %vm3673_vm1, %v5733_v23, %v5729_v3  ;;  %v2646_v52 = vmul.f32 %v12212_v59, %v1645_v35  ;;  %1784 = vadd.xlane.f32.xlu0 %v1388_v37  ;;  %v1651_v51 = vpop.xlane.xlu1 %1650  ;;  %v12213_v23 = vld [vmem:[#allocation248_spill] sm:$0xff]  ;;  %v12214_v37 = vld [vmem:[#allocation249_spill] sm:$0xff] }
 0x36e   : > { %v5748_v10 = vrot.slane %v3196_v46, %v12083_v43  ;;  %v1390_v54 = vmul.f32 %v7644_v24, %v10140_v22  ;;  %v5739_v30 = vsel %vm3680_vm2, %v5738_v56, %v5734_v18  ;;  %v5743_v53 = vrot.slane %v3195_v60, %v12085_v48  ;;  %v7645_v35 = vld [vmem:[%s7945_s25 + $0x508] sm:$0xff] }
 0x36f   : > { %v4105_v62 = vsel %vm3687_vm3, %v4104_v36, %v4100_v17  ;;  %v2919_v5 = vmul.f32 %v12087_v47, %v2647_v9  ;;  %v2918_v19 = vmul.f32 %v12089_v25, %v2646_v52  ;;  %v2649_v46 = vmul.f32 %v12213_v23, %v1651_v51  ;;  %v1649_v44 = vpop.xlane.xlu0 %1648  ;;  %1790 = vadd.xlane.f32.xlu1 %v1391_v39  ;;  %v12215_v51 = vld [vmem:[#allocation45_spill] sm:$0xff] }
 0x370   : > { %v4110_v3 = vsel %vm3694_vm4, %v4109_v45, %v4105_v62  ;;  %v1393_v59 = vmul.f32 %v7645_v35, %v10154_v55  ;;  %v5744_v56 = vsel %vm3687_vm3, %v5743_v53, %v5739_v30  ;;  %v2648_v17 = vmul.f32 %v12214_v37, %v1649_v44  ;;  %v7646_v53 = vld [vmem:[%s7945_s25 + $0x500] sm:$0xff]  ;;  %v7648_v44 = vld [vmem:[%s7945_s25 + $0x518] sm:$0xff] }
 0x371   : > { %v3198_v36 = vsub.f32 0.0, %v2919_v5  ;;  %v4119_v9 = vrot.slane %v2919_v5, %v12091_v31  ;;  %v5749_v45 = vsel %vm3694_vm4, %v5748_v10, %v5744_v56  ;;  %v3197_v60 = vsub.f32 0.0, %v2918_v19  ;;  %1788 = vadd.xlane.f32.xlu0 %v1390_v54  ;;  %v1655_v30 = vpop.xlane.xlu1 %1654  ;;  %v10325_v5 = vld [vmem:[%s7945_s25 + $0x18] sm:$0xff] }
 0x372   : > { %v4114_v18 = vrot.slane %v2918_v19, %v12092_v11  ;;  %v2921_v52 = vmul.f32 %v12159_v49, %v2649_v46  ;;  %v2920_v62 = vmul.f32 %v12160_v7, %v2648_v17  ;;  %v1392_v23 = vmul.f32 %v7646_v53, %v12215_v51  ;;  %v12216_v17 = vld [vmem:[#allocation97_spill] sm:$0xff] }
 0x373   : > { %v5758_v24 = vrot.slane %v3198_v36, %v12091_v31  ;;  %v1395_v10 = vmul.f32 %v7648_v44, %v10325_v5  ;;  %v5753_v39 = vrot.slane %v3197_v60, %v12092_v11  ;;  %v1653_v56 = vpop.xlane.xlu0 %1652  ;;  %v2651_v53 = vmul.f32 %v12216_v17, %v1655_v30  ;;  %v12217_v44 = vld [vmem:[#allocation98_spill] sm:$0xff]  ;;  %1794 = vadd.xlane.f32.xlu1 %v1393_v59  ;;  %v10339_v60 = vld [vmem:[%s7945_s25 + $0x10] sm:$0xff] }
 0x374   : > { %v4115_v19 = vsel %vm3701_vm5, %v4114_v18, %v4110_v3  ;;  %v3200_v46 = vsub.f32 0.0, %v2921_v52  ;;  %v4129_v35 = vrot.slane %v2921_v52, %v12100_v50  ;;  %v3199_v36 = vsub.f32 0.0, %v2920_v62  ;;  %v7650_v18 = vld [vmem:[%s7945_s25 + $0x510] sm:$0xff]  ;;  %v12218_v59 = vld [vmem:[#allocation250_spill] sm:$0xff] }
 0x375   : > { %v4120_v54 = vsel %vm3708_vm6, %v4119_v9, %v4115_v19  ;;  %v4124_v37 = vrot.slane %v2920_v62, %v12102_v20  ;;  %v5754_v32 = vsel %vm3701_vm5, %v5753_v39, %v5749_v45  ;;  %v2650_v3 = vmul.f32 %v12217_v44, %v1653_v56  ;;  %1792 = vadd.xlane.f32.xlu0 %v1392_v23  ;;  %v1659_v45 = vpop.xlane.xlu1 %1658  ;;  %v7651_v44 = vld [vmem:[%s7945_s25 + $0x528] sm:$0xff] }
 0x376   : > { %v5768_v51 = vrot.slane %v3200_v46, %v12100_v50  ;;  %v1394_v52 = vmul.f32 %v7650_v18, %v10339_v60  ;;  %v5759_v9 = vsel %vm3708_vm6, %v5758_v24, %v5754_v32  ;;  %v5763_v62 = vrot.slane %v3199_v36, %v12102_v20  ;;  %v12219_v36 = vld [vmem:[#allocation251_spill] sm:$0xff] }
 0x377   : > { %v4125_v19 = vsel %vm3715_vm7, %v4124_v37, %v4120_v54  ;;  %v2923_v30 = vmul.f32 %v12136_v8, %v2651_v53  ;;  %v2922_v46 = vmul.f32 %v12137_v40, %v2650_v3  ;;  %v2653_v56 = vmul.f32 %v12218_v59, %v1659_v45  ;;  %v1657_v17 = vpop.xlane.xlu0 %1656  ;;  %1798 = vadd.xlane.f32.xlu1 %v1395_v10 }
 0x378   : > { %v4130_v39 = vsel %vm3722_vm8, %v4129_v35, %v4125_v19  ;;  %v1397_v18 = vmul.f32 %v7651_v44, %v10192_v6  ;;  %v5764_v32 = vsel %vm3715_vm7, %v5763_v62, %v5759_v9  ;;  %v2652_v23 = vmul.f32 %v12219_v36, %v1657_v17  ;;  %v7652_v9 = vld [vmem:[%s7945_s25 + $0x520] sm:$0xff] }
 0x379   : > { %v3202_v24 = vsub.f32 0.0, %v2923_v30  ;;  %v4139_v54 = vrot.slane %v2923_v30, %v12107_v33  ;;  %v5769_v37 = vsel %vm3722_vm8, %v5768_v51, %v5764_v32  ;;  %v3201_v35 = vsub.f32 0.0, %v2922_v46  ;;  %1796 = vadd.xlane.f32.xlu0 %v1394_v52  ;;  %v1663_v59 = vpop.xlane.xlu1 %1662  ;;  %v12220_v62 = vld [vmem:[#allocation223_spill] sm:$0xff]  ;;  %v7653_v30 = vld [vmem:[%s7945_s25 + $0x538] sm:$0xff] }
 0x37a   : > { %v4134_v53 = vrot.slane %v2922_v46, %v12108_v29  ;;  %v2925_v3 = vmul.f32 %v12167_v38, %v2653_v56  ;;  %v2924_v45 = vmul.f32 %v12168_v27, %v2652_v23  ;;  %v1396_v44 = vmul.f32 %v7652_v9, %v12220_v62  ;;  %v12221_v17 = vld [vmem:[#allocation46_spill] sm:$0xff]  ;;  %v12222_v27 = vld [vmem:[#allocation101_spill] sm:$0xff] }
 0x37b   : > { %v5778_v19 = vrot.slane %v3202_v24, %v12107_v33  ;;  %v1399_v36 = vmul.f32 %v7653_v30, %v12221_v17  ;;  %v5773_v46 = vrot.slane %v3201_v35, %v12108_v29  ;;  %v1661_v56 = vpop.xlane.xlu0 %1660  ;;  %v2655_v38 = vmul.f32 %v12222_v27, %v1663_v59  ;;  %v12223_v17 = vld [vmem:[#allocation102_spill] sm:$0xff]  ;;  %1802 = vadd.xlane.f32.xlu1 %v1397_v18  ;;  %v7654_v35 = vld [vmem:[%s7945_s25 + $0x530] sm:$0xff] }
 0x37c   : > { %v4135_v51 = vsel %vm3729_vm9, %v4134_v53, %v4130_v39  ;;  %v3204_v32 = vsub.f32 0.0, %v2925_v3  ;;  %v4149_v10 = vrot.slane %v2925_v3, %v12113_v12  ;;  %v3203_v23 = vsub.f32 0.0, %v2924_v45  ;;  %v12224_v53 = vld [vmem:[#allocation271_spill] sm:$0xff] }
 0x37d   : > { %v4140_v24 = vsel %vm3736_vm10, %v4139_v54, %v4135_v51  ;;  %v4144_v52 = vrot.slane %v2924_v45, %v12114_v42  ;;  %v5774_v9 = vsel %vm3729_vm9, %v5773_v46, %v5769_v37  ;;  %v2654_v39 = vmul.f32 %v12223_v17, %v1661_v56  ;;  %1800 = vadd.xlane.f32.xlu0 %v1396_v44  ;;  %v1667_v27 = vpop.xlane.xlu1 %1666  ;;  %v12225_v46 = vld [vmem:[#allocation252_spill] sm:$0xff] }
 0x37e   : > { %v5788_v30 = vrot.slane %v3204_v32, %v12113_v12  ;;  %v1398_v62 = vmul.f32 %v7654_v35, %v12224_v53  ;;  %v5779_v3 = vsel %vm3736_vm10, %v5778_v19, %v5774_v9  ;;  %v5783_v51 = vrot.slane %v3203_v23, %v12114_v42  ;;  %v7655_v32 = vld [vmem:[%s7945_s25 + $0x548] sm:$0xff] }
 0x37f   : > { %v4145_v54 = vsel %vm3743_vm11, %v4144_v52, %v4140_v24  ;;  %v2927_v45 = vmul.f32 %v12115_v28, %v2655_v38  ;;  %v2926_v59 = vmul.f32 %v12144_v14, %v2654_v39  ;;  %v2657_v17 = vmul.f32 %v12225_v46, %v1667_v27  ;;  %v1665_v18 = vpop.xlane.xlu0 %1664  ;;  %v12226_v38 = vld [vmem:[#allocation253_spill] sm:$0xff]  ;;  %1806 = vadd.xlane.f32.xlu1 %v1399_v36 }
 0x380   : > { %v4150_v37 = vsel %vm3750_vm12, %v4149_v10, %v4145_v54  ;;  %v1401_v56 = vmul.f32 %v7655_v32, %v10060_v21  ;;  %v5784_v19 = vsel %vm3743_vm11, %v5783_v51, %v5779_v3  ;;  %v2656_v44 = vmul.f32 %v12226_v38, %v1665_v18  ;;  %v7656_v3 = vld [vmem:[%s7945_s25 + $0x540] sm:$0xff] }
 0x381   : > { %v3206_v24 = vsub.f32 0.0, %v2927_v45  ;;  %v4159_v23 = vrot.slane %v2927_v45, %v12117_v2  ;;  %v5789_v52 = vsel %vm3750_vm12, %v5788_v30, %v5784_v19  ;;  %v3205_v10 = vsub.f32 0.0, %v2926_v59  ;;  %1804 = vadd.xlane.f32.xlu0 %v1398_v62  ;;  %v1671_v27 = vpop.xlane.xlu1 %1670  ;;  %v7657_v45 = vld [vmem:[%s7945_s25 + $0x558] sm:$0xff] }
 0x382   : > { %v4154_v9 = vrot.slane %v2926_v59, %v12118_v57  ;;  %v2929_v39 = vmul.f32 %v12057_v34, %v2657_v17  ;;  %v2928_v54 = vmul.f32 %v12061_v1, %v2656_v44  ;;  %v1400_v51 = vmul.f32 %v7656_v3, %v10072_v63 }
 0x383   : > { %v5798_v35 = vrot.slane %v3206_v24, %v12117_v2  ;;  %v1403_v46 = vmul.f32 %v7657_v45, %v12199_v15  ;;  %v5793_v59 = vrot.slane %v3205_v10, %v12118_v57  ;;  %v1669_v17 = vpop.xlane.xlu0 %1668  ;;  %v12227_v24 = vld [vmem:[#allocation105_spill] sm:$0xff]  ;;  %v12228_v45 = vld [vmem:[#allocation106_spill] sm:$0xff]  ;;  %1810 = vadd.xlane.f32.xlu1 %v1401_v56  ;;  %vm11610_vm15 = vcmask 1045509  }
 0x384   : > { %v4155_v30 = vsel %vm11612_vm13, %v4154_v9, %v4150_v37  ;;  %v3208_v18 = vsub.f32 0.0, %v2929_v39  ;;  %v4168_v36 = vrot.slane %v2929_v39, %v12064_v13  ;;  %v3207_v19 = vsub.f32 0.0, %v2928_v54  ;;  %v7658_v10 = vld [vmem:[%s7945_s25 + $0x550] sm:$0xff] }
 0x385   : > { %v4160_v32 = vsel %vm11611_vm14, %v4159_v23, %v4155_v30  ;;  %v4164_v62 = vrot.slane %v2928_v54, %v12066_v4  ;;  %v2659_v38 = vmul.f32 %v12227_v24, %v1671_v27  ;;  %v5794_v44 = vsel %vm11612_vm13, %v5793_v59, %v5789_v52  ;;  %1808 = vadd.xlane.f32.xlu0 %v1400_v51  ;;  %v1675_v52 = vpop.xlane.xlu1 %1674  ;;  %v12230_v59 = vld [vmem:[#allocation254_spill] sm:$0xff]  ;;  %v12231_v24 = vld [vmem:[#allocation40_spill] sm:$0xff] }
 0x386   : > { %v5807_v3 = vrot.slane %v3208_v18, %v12064_v13  ;;  %v2658_v37 = vmul.f32 %v12228_v45, %v1669_v17  ;;  %v1402_v9 = vmul.f32 %v7658_v10, %v10090_v26  ;;  %v10408_v39 = vsel %vm11611_vm14, %v5798_v35, %v5794_v44  ;;  %v7659_v17 = vld [vmem:[%s7945_s25 + $0x568] sm:$0xff]  ;;  %v12233_v10 = vld [vmem:[#allocation30_spill] sm:$0xff] }
 0x387   : > { %12229 = vst [vmem:[#allocation225_spill] sm:$0xff] %v10408_v39  ;;  %v4169_v23 = vsel %vm3666_vm0, %v4168_v36, %v4164_v62  ;;  %v5803_v54 = vrot.slane %v3207_v19, %v12066_v4  ;;  %v2931_v27 = vmul.f32 %v12069_v0, %v2659_v38  ;;  %v2661_v18 = vmul.f32 %v12230_v59, %v1675_v52  ;;  %v1673_v56 = vpop.xlane.xlu0 %1672  ;;  %v12232_v62 = vld [vmem:[#allocation255_spill] sm:$0xff]  ;;  %v12234_v59 = vld [vmem:[#allocation42_spill] sm:$0xff] }
 0x388   : > { %v2930_v30 = vmul.f32 %v12071_v41, %v2658_v37  ;;  %v1405_v45 = vmul.f32 %v7659_v17, %v12231_v24  ;;  %v2660_v38 = vmul.f32 %v12232_v62, %v1673_v56  ;;  %1814 = vadd.xlane.f32.xlu1 %v1403_v46  ;;  %v7660_v52 = vld [vmem:[%s7945_s25 + $0x560] sm:$0xff]  ;;  %v12236_v56 = vld [vmem:[#allocation224_spill] sm:$0xff] }
 0x389   : > { %v5808_v35 = vsel %vm3666_vm0, %v5807_v3, %v5803_v54  ;;  %v3210_v36 = vsub.f32 0.0, %v2931_v27  ;;  %v4178_v19 = vrot.slane %v2931_v27, %v12073_v16  ;;  %v2933_v37 = vmul.f32 %v12233_v10, %v2661_v18  ;;  %v12235_v24 = vld [vmem:[#allocation31_spill] sm:$0xff]  ;;  %1812 = vadd.xlane.f32.xlu0 %v1402_v9  ;;  %v1679_v3 = vpop.xlane.xlu1 %1678  ;;  %v7661_v54 = vld [vmem:[%s7945_s25 + $0x578] sm:$0xff] }
 0x38a   : > { %v3209_v51 = vsub.f32 0.0, %v2930_v30  ;;  %v4173_v44 = vrot.slane %v2930_v30, %v12075_v58  ;;  %v1404_v39 = vmul.f32 %v7660_v52, %v12234_v59  ;;  %v2932_v41 = vmul.f32 %v12235_v24, %v2660_v38  ;;  %v12238_v59 = vld [vmem:[#allocation109_spill] sm:$0xff] }
 0x38b   : > { %v5817_v17 = vrot.slane %v3210_v36, %v12073_v16  ;;  %v1407_v27 = vmul.f32 %v7661_v54, %v12208_v61  ;;  %v10430_v62 = vsel %vm11610_vm15, %v4160_v32, %v12236_v56  ;;  %v3212_v18 = vsub.f32 0.0, %v2933_v37  ;;  %v1677_v36 = vpop.xlane.xlu0 %1676  ;;  %v12239_v56 = vld [vmem:[#allocation110_spill] sm:$0xff] }
 0x38c   : > { %12237 = vst [vmem:[#allocation49_spill] sm:$0xff] %v10430_v62  ;;  %v4174_v30 = vsel %vm3673_vm1, %v4173_v44, %v4169_v23  ;;  %v5812_v46 = vrot.slane %v3209_v51, %v12075_v58  ;;  %v4188_v52 = vrot.slane %v2933_v37, %v12083_v43  ;;  %v3211_v9 = vsub.f32 0.0, %v2932_v41  ;;  %1818 = vadd.xlane.f32.xlu1 %v1405_v45  ;;  %v7662_v51 = vld [vmem:[%s7945_s25 + $0x570] sm:$0xff]  ;;  %v12244_v62 = vld [vmem:[#allocation114_spill] sm:$0xff] }
 0x38d   : > { %v4179_v38 = vsel %vm3680_vm2, %v4178_v19, %v4174_v30  ;;  %v4183_v24 = vrot.slane %v2932_v41, %v12085_v48  ;;  %v2663_v10 = vmul.f32 %v12238_v59, %v1679_v3  ;;  %v5827_v32 = vrot.slane %v3212_v18, %v12083_v43  ;;  %1816 = vadd.xlane.f32.xlu0 %v1404_v39  ;;  %v1683_v59 = vpop.xlane.xlu1 %1682 }
 0x38e   : > { %v5813_v54 = vsel %vm3673_vm1, %v5812_v46, %v5808_v35  ;;  %v2662_v23 = vmul.f32 %v12239_v56, %v1677_v36  ;;  %v1406_v44 = vmul.f32 %v7662_v51, %v10140_v22  ;;  %v5822_v30 = vrot.slane %v3211_v9, %v12085_v48  ;;  %v12240_v46 = vld [vmem:[#allocation256_spill] sm:$0xff] }
 0x38f   : > { %v5818_v37 = vsel %vm3680_vm2, %v5817_v17, %v5813_v54  ;;  %v4184_v19 = vsel %vm3687_vm3, %v4183_v24, %v4179_v38  ;;  %v2935_v41 = vmul.f32 %v12087_v47, %v2663_v10  ;;  %v2665_v18 = vmul.f32 %v12240_v46, %v1683_v59  ;;  %v1681_v45 = vpop.xlane.xlu0 %1680  ;;  %v7663_v36 = vld [vmem:[%s7945_s25 + $0x588] sm:$0xff]  ;;  %v12241_v10 = vld [vmem:[#allocation257_spill] sm:$0xff] }
 0x390   : > { %v4189_v35 = vsel %vm3694_vm4, %v4188_v52, %v4184_v19  ;;  %v2934_v3 = vmul.f32 %v12089_v25, %v2662_v23  ;;  %v1409_v56 = vmul.f32 %v7663_v36, %v10154_v55  ;;  %v5823_v24 = vsel %vm3687_vm3, %v5822_v30, %v5818_v37  ;;  %1822 = vadd.xlane.f32.xlu1 %v1407_v27  ;;  %v7664_v37 = vld [vmem:[%s7945_s25 + $0x580] sm:$0xff]  ;;  %v12242_v30 = vld [vmem:[#allocation45_spill] sm:$0xff] }
 0x391   : > { %v3214_v17 = vsub.f32 0.0, %v2935_v41  ;;  %v4198_v38 = vrot.slane %v2935_v41, %v12091_v31  ;;  %v2664_v39 = vmul.f32 %v12241_v10, %v1681_v45  ;;  %v5828_v9 = vsel %vm3694_vm4, %v5827_v32, %v5823_v24  ;;  %1820 = vadd.xlane.f32.xlu0 %v1406_v44  ;;  %v1687_v59 = vpop.xlane.xlu1 %1686  ;;  %v7665_v41 = vld [vmem:[%s7945_s25 + $0x598] sm:$0xff] }
 0x392   : > { %v3213_v52 = vsub.f32 0.0, %v2934_v3  ;;  %v4193_v54 = vrot.slane %v2934_v3, %v12092_v11  ;;  %v2937_v23 = vmul.f32 %v12159_v49, %v2665_v18  ;;  %v1408_v46 = vmul.f32 %v7664_v37, %v12242_v30  ;;  %v12243_v10 = vld [vmem:[#allocation113_spill] sm:$0xff] }
 0x393   : > { %v5837_v51 = vrot.slane %v3214_v17, %v12091_v31  ;;  %v2936_v19 = vmul.f32 %v12160_v7, %v2664_v39  ;;  %v1411_v45 = vmul.f32 %v7665_v41, %v10325_v5  ;;  %v1685_v18 = vpop.xlane.xlu0 %1684  ;;  %v2667_v39 = vmul.f32 %v12243_v10, %v1687_v59 }
 0x394   : > { %v4194_v32 = vsel %vm3701_vm5, %v4193_v54, %v4189_v35  ;;  %v5832_v3 = vrot.slane %v3213_v52, %v12092_v11  ;;  %v3216_v36 = vsub.f32 0.0, %v2937_v23  ;;  %v4208_v27 = vrot.slane %v2937_v23, %v12100_v50  ;;  %1826 = vadd.xlane.f32.xlu1 %v1409_v56  ;;  %v7666_v52 = vld [vmem:[%s7945_s25 + $0x590] sm:$0xff] }
 0x395   : > { %v4199_v24 = vsel %vm3708_vm6, %v4198_v38, %v4194_v32  ;;  %v3215_v17 = vsub.f32 0.0, %v2936_v19  ;;  %v4203_v44 = vrot.slane %v2936_v19, %v12102_v20  ;;  %v2666_v35 = vmul.f32 %v12244_v62, %v1685_v18  ;;  %1824 = vadd.xlane.f32.xlu0 %v1408_v46  ;;  %v1691_v59 = vpop.xlane.xlu1 %1690  ;;  %v7667_v18 = vld [vmem:[%s7945_s25 + $0x5a8] sm:$0xff] }
 0x396   : > { %v5833_v37 = vsel %vm3701_vm5, %v5832_v3, %v5828_v9  ;;  %v5847_v41 = vrot.slane %v3216_v36, %v12100_v50  ;;  %v1410_v54 = vmul.f32 %v7666_v52, %v10339_v60  ;;  %v2939_v19 = vmul.f32 %v12136_v8, %v2667_v39  ;;  %v12245_v36 = vld [vmem:[#allocation258_spill] sm:$0xff] }
 0x397   : > { %v5838_v23 = vsel %vm3708_vm6, %v5837_v51, %v5833_v37  ;;  %v4204_v38 = vsel %vm3715_vm7, %v4203_v44, %v4199_v24  ;;  %v5842_v32 = vrot.slane %v3215_v17, %v12102_v20  ;;  %v2938_v3 = vmul.f32 %v12137_v40, %v2666_v35  ;;  %v1689_v56 = vpop.xlane.xlu0 %1688  ;;  %v12246_v44 = vld [vmem:[#allocation259_spill] sm:$0xff]  ;;  %v12247_v35 = vld [vmem:[#allocation38_spill] sm:$0xff] }
 0x398   : > { %v4209_v9 = vsel %vm3722_vm8, %v4208_v27, %v4204_v38  ;;  %v2669_v62 = vmul.f32 %v12245_v36, %v1691_v59  ;;  %v1413_v10 = vmul.f32 %v7667_v18, %v10192_v6  ;;  %v3218_v24 = vsub.f32 0.0, %v2939_v19  ;;  %1830 = vadd.xlane.f32.xlu1 %v1411_v45  ;;  %v12248_v59 = vld [vmem:[#allocation39_spill] sm:$0xff] }
 0x399   : > { %v5843_v51 = vsel %vm3715_vm7, %v5842_v32, %v5838_v23  ;;  %v4218_v17 = vrot.slane %v2939_v19, %v12107_v33  ;;  %v2668_v46 = vmul.f32 %v12246_v44, %v1689_v56  ;;  %v3217_v27 = vsub.f32 0.0, %v2938_v3  ;;  %1828 = vadd.xlane.f32.xlu0 %v1410_v54  ;;  %v1695_v36 = vpop.xlane.xlu1 %1694  ;;  %v7668_v23 = vld [vmem:[%s7945_s25 + $0x5a0] sm:$0xff]  ;;  %v7669_v19 = vld [vmem:[%s7945_s25 + $0x5b8] sm:$0xff] }
 0x39a   : > { %v5848_v39 = vsel %vm3722_vm8, %v5847_v41, %v5843_v51  ;;  %v4213_v37 = vrot.slane %v2938_v3, %v12108_v29  ;;  %v2941_v52 = vmul.f32 %v12247_v35, %v2669_v62  ;;  %v5857_v38 = vrot.slane %v3218_v24, %v12107_v33  ;;  %v12249_v32 = vld [vmem:[#allocation223_spill] sm:$0xff]  ;;  %v12250_v56 = vld [vmem:[#allocation46_spill] sm:$0xff] }
 0x39b   : > { %v2940_v6 = vmul.f32 %v12248_v59, %v2668_v46  ;;  %v1412_v18 = vmul.f32 %v7668_v23, %v12249_v32  ;;  %v1415_v44 = vmul.f32 %v7669_v19, %v12250_v56  ;;  %v5852_v3 = vrot.slane %v3217_v27, %v12108_v29  ;;  %v1693_v62 = vpop.xlane.xlu0 %1692  ;;  %v12251_v59 = vld [vmem:[#allocation117_spill] sm:$0xff]  ;;  %v12252_v56 = vld [vmem:[#allocation118_spill] sm:$0xff] }
 0x39c   : > { %v4214_v41 = vsel %vm3729_vm9, %v4213_v37, %v4209_v9  ;;  %v3220_v51 = vsub.f32 0.0, %v2941_v52  ;;  %v4228_v45 = vrot.slane %v2941_v52, %v12113_v12  ;;  %v2671_v35 = vmul.f32 %v12251_v59, %v1695_v36  ;;  %1834 = vadd.xlane.f32.xlu1 %v1413_v10  ;;  %v7670_v27 = vld [vmem:[%s7945_s25 + $0x5b0] sm:$0xff] }
 0x39d   : > { %v4219_v24 = vsel %vm3736_vm10, %v4218_v17, %v4214_v41  ;;  %v3219_v46 = vsub.f32 0.0, %v2940_v6  ;;  %v4223_v54 = vrot.slane %v2940_v6, %v12114_v42  ;;  %v5853_v23 = vsel %vm3729_vm9, %v5852_v3, %v5848_v39  ;;  %1832 = vadd.xlane.f32.xlu0 %v1412_v18  ;;  %v1699_v59 = vpop.xlane.xlu1 %1698  ;;  %v12253_v3 = vld [vmem:[#allocation260_spill] sm:$0xff] }
 0x39e   : > { %v5867_v19 = vrot.slane %v3220_v51, %v12113_v12  ;;  %v2670_v9 = vmul.f32 %v12252_v56, %v1693_v62  ;;  %v1414_v37 = vmul.f32 %v7670_v27, %v12224_v53  ;;  %v5858_v52 = vsel %vm3736_vm10, %v5857_v38, %v5853_v23  ;;  %v7671_v62 = vld [vmem:[%s7945_s25 + $0x5c8] sm:$0xff] }
 0x39f   : > { %v4224_v17 = vsel %vm3743_vm11, %v4223_v54, %v4219_v24  ;;  %v5862_v41 = vrot.slane %v3219_v46, %v12114_v42  ;;  %v2943_v6 = vmul.f32 %v12115_v28, %v2671_v35  ;;  %v2673_v51 = vmul.f32 %v12253_v3, %v1699_v59  ;;  %v1697_v10 = vpop.xlane.xlu0 %1696  ;;  %v12254_v35 = vld [vmem:[#allocation261_spill] sm:$0xff] }
 0x3a0   : > { %v4229_v39 = vsel %vm3750_vm12, %v4228_v45, %v4224_v17  ;;  %v2942_v36 = vmul.f32 %v12144_v14, %v2670_v9  ;;  %v1417_v53 = vmul.f32 %v7671_v62, %v10060_v21  ;;  %v2672_v18 = vmul.f32 %v12254_v35, %v1697_v10  ;;  %1838 = vadd.xlane.f32.xlu1 %v1415_v44  ;;  %v12255_v62 = vld [vmem:[#allocation121_spill] sm:$0xff] }
 0x3a1   : > { %v5863_v38 = vsel %vm3743_vm11, %v5862_v41, %v5858_v52  ;;  %v3222_v24 = vsub.f32 0.0, %v2943_v6  ;;  %v4238_v46 = vrot.slane %v2943_v6, %v12117_v2  ;;  %v2945_v56 = vmul.f32 %v12057_v34, %v2673_v51  ;;  %1836 = vadd.xlane.f32.xlu0 %v1414_v37  ;;  %v1703_v27 = vpop.xlane.xlu1 %1702  ;;  %v7672_v52 = vld [vmem:[%s7945_s25 + $0x5c0] sm:$0xff]  ;;  %v7673_v41 = vld [vmem:[%s7945_s25 + $0x5d8] sm:$0xff]  ;;  %v7674_v35 = vld [vmem:[%s7945_s25 + $0x5d0] sm:$0xff] }
 0x3a2   : > { %v5868_v54 = vsel %vm3750_vm12, %v5867_v19, %v5863_v38  ;;  %v3221_v45 = vsub.f32 0.0, %v2942_v36  ;;  %v4233_v23 = vrot.slane %v2942_v36, %v12118_v57  ;;  %v2944_v21 = vmul.f32 %v12061_v1, %v2672_v18 }
 0x3a3   : > { %v5877_v9 = vrot.slane %v3222_v24, %v12117_v2  ;;  %v1416_v17 = vmul.f32 %v7672_v52, %v10072_v63  ;;  %v1419_v6 = vmul.f32 %v7673_v41, %v12199_v15  ;;  %v3224_v36 = vsub.f32 0.0, %v2945_v56  ;;  %v1701_v3 = vpop.xlane.xlu0 %1700  ;;  %v12258_v52 = vld [vmem:[#allocation263_spill] sm:$0xff] }
 0x3a4   : > { %v4234_v19 = vsel %vm11612_vm13, %v4233_v23, %v4229_v39  ;;  %v5872_v59 = vrot.slane %v3221_v45, %v12118_v57  ;;  %v4247_v44 = vrot.slane %v2945_v56, %v12064_v13  ;;  %v3223_v37 = vsub.f32 0.0, %v2944_v21  ;;  %v12256_v39 = vld [vmem:[#allocation122_spill] sm:$0xff]  ;;  %1842 = vadd.xlane.f32.xlu1 %v1417_v53 }
 0x3a5   : > { %v10532_v51 = vsel %vm11611_vm14, %v4238_v46, %v4234_v19  ;;  %v4243_v10 = vrot.slane %v2944_v21, %v12066_v4  ;;  %v2675_v63 = vmul.f32 %v12255_v62, %v1703_v27  ;;  %v5886_v15 = vrot.slane %v3224_v36, %v12064_v13  ;;  %1840 = vadd.xlane.f32.xlu0 %v1416_v17  ;;  %v12257_v21 = vld [vmem:[#allocation20_spill] sm:$0xff] }
 0x3a6   : > { %v5873_v38 = vsel %vm11612_vm13, %v5872_v59, %v5868_v54  ;;  %v2674_v24 = vmul.f32 %v12256_v39, %v1701_v3  ;;  %v1418_v18 = vmul.f32 %v7674_v35, %v10090_v26  ;;  %v5882_v23 = vrot.slane %v3223_v37, %v12066_v4  ;;  %v1707_v54 = vpop.xlane.xlu1 %1706  ;;  %v7675_v19 = vld [vmem:[%s7945_s25 + $0x5e8] sm:$0xff]  ;;  %v12263_v39 = vld [vmem:[#allocation30_spill] sm:$0xff] }
 0x3a7   : > { %v10542_v45 = vsel %vm11611_vm14, %v5877_v9, %v5873_v38  ;;  %v4248_v46 = vsel %vm3666_vm0, %v4247_v44, %v4243_v10  ;;  %v2947_v56 = vmul.f32 %v12069_v0, %v2675_v63  ;;  %v2677_v41 = vmul.f32 %v12258_v52, %v1707_v54  ;;  %v1705_v53 = vpop.xlane.xlu0 %1704  ;;  %v12259_v59 = vld [vmem:[#allocation40_spill] sm:$0xff]  ;;  %v12261_v9 = vld [vmem:[#allocation225_spill] sm:$0xff]  ;;  %v7676_v35 = vld [vmem:[%s7945_s25 + $0x5e0] sm:$0xff] }
 0x3a8   : > { %v2946_v27 = vmul.f32 %v12257_v21, %v2674_v24  ;;  %v1421_v26 = vmul.f32 %v7675_v19, %v12259_v59  ;;  %v12260_v36 = vld [vmem:[#allocation28_spill] sm:$0xff]  ;;  %v5887_v3 = vsel %vm3666_vm0, %v5886_v15, %v5882_v23  ;;  %v12262_v10 = vld [vmem:[#allocation265_spill] sm:$0xff]  ;;  %1846 = vadd.xlane.f32.xlu1 %v1419_v6  ;;  %v12264_v54 = vld [vmem:[#allocation42_spill] sm:$0xff] }
 0x3a9   : > { %v10554_v44 = vsel %vm11610_vm15, %v12261_v9, %v12260_v36  ;;  %v3226_v17 = vsub.f32 0.0, %v2947_v56  ;;  %v4257_v37 = vrot.slane %v2947_v56, %v12073_v16  ;;  %v2676_v62 = vmul.f32 %v12262_v10, %v1705_v53  ;;  %v12265_v59 = vld [vmem:[#allocation31_spill] sm:$0xff]  ;;  %1844 = vadd.xlane.f32.xlu0 %v1418_v18  ;;  %v7677_v23 = vld [vmem:[%s7945_s25 + $0x5f8] sm:$0xff]  ;;  %v7678_v53 = vld [vmem:[%s7945_s25 + $0x5f0] sm:$0xff] }
 0x3aa   : > { %v3225_v63 = vsub.f32 0.0, %v2946_v27  ;;  %v4252_v38 = vrot.slane %v2946_v27, %v12075_v58  ;;  %v2949_v24 = vmul.f32 %v12263_v39, %v2677_v41  ;;  %v1420_v52 = vmul.f32 %v7676_v35, %v12264_v54  ;;  %v1711_v15 = vpop.xlane.xlu1 %1710  ;;  %v12266_v54 = vld [vmem:[#allocation125_spill] sm:$0xff] }
 0x3ab   : > { %v5896_v19 = vrot.slane %v3226_v17, %v12073_v16  ;;  %v2948_v36 = vmul.f32 %v12265_v59, %v2676_v62  ;;  %v1423_v56 = vmul.f32 %v7677_v23, %v12208_v61  ;;  %v1422_v9 = vmul.f32 %v7678_v53, %v10140_v22  ;;  %v1709_v35 = vpop.xlane.xlu0 %1708  ;;  %v12267_v23 = vld [vmem:[#allocation126_spill] sm:$0xff] }
 0x3ac   : > { %v4253_v27 = vsel %vm3673_vm1, %v4252_v38, %v4248_v46  ;;  %v5891_v6 = vrot.slane %v3225_v63, %v12075_v58  ;;  %v3228_v41 = vsub.f32 0.0, %v2949_v24  ;;  %v4267_v10 = vrot.slane %v2949_v24, %v12083_v43  ;;  %1850 = vadd.xlane.f32.xlu1 %v1421_v26  ;;  %v7679_v63 = vld [vmem:[%s7945_s25 + $0x608] sm:$0xff] }
 0x3ad   : > { %v4258_v17 = vsel %vm3680_vm2, %v4257_v37, %v4253_v27  ;;  %v3227_v62 = vsub.f32 0.0, %v2948_v36  ;;  %v4262_v18 = vrot.slane %v2948_v36, %v12085_v48  ;;  %v2679_v59 = vmul.f32 %v12266_v54, %v1711_v15  ;;  %1848 = vadd.xlane.f32.xlu0 %v1420_v52 }
 0x3ae   : > { %v5892_v61 = vsel %vm3673_vm1, %v5891_v6, %v5887_v3  ;;  %v5906_v22 = vrot.slane %v3228_v41, %v12083_v43  ;;  %v2678_v46 = vmul.f32 %v12267_v23, %v1709_v35  ;;  %v1425_v38 = vmul.f32 %v7679_v63, %v10154_v55  ;;  %v1715_v15 = vpop.xlane.xlu1 %1714  ;;  %v12268_v6 = vld [vmem:[#allocation127_spill] sm:$0xff] }
 0x3af   : > { %v5897_v24 = vsel %vm3680_vm2, %v5896_v19, %v5892_v61  ;;  %v4263_v37 = vsel %vm3687_vm3, %v4262_v18, %v4258_v17  ;;  %v5901_v53 = vrot.slane %v3227_v62, %v12085_v48  ;;  %v2951_v36 = vmul.f32 %v12087_v47, %v2679_v59  ;;  %v1713_v26 = vpop.xlane.xlu0 %1712  ;;  %v7680_v35 = vld [vmem:[%s7945_s25 + $0x600] sm:$0xff]  ;;  %v12269_v59 = vld [vmem:[#allocation269_spill] sm:$0xff] }
 0x3b0   : > { %v4268_v3 = vsel %vm3694_vm4, %v4267_v10, %v4263_v37  ;;  %v2950_v27 = vmul.f32 %v12089_v25, %v2678_v46  ;;  %v2681_v41 = vmul.f32 %v12268_v6, %v1715_v15  ;;  %v1424_v55 = vmul.f32 %v7680_v35, %v12242_v30  ;;  %1854 = vadd.xlane.f32.xlu1 %v1423_v56  ;;  %v12270_v35 = vld [vmem:[#allocation128_spill] sm:$0xff] }
 0x3b1   : > { %v5902_v19 = vsel %vm3687_vm3, %v5901_v53, %v5897_v24  ;;  %v3230_v17 = vsub.f32 0.0, %v2951_v36  ;;  %v4277_v62 = vrot.slane %v2951_v36, %v12091_v31  ;;  %v2680_v52 = vmul.f32 %v12269_v59, %v1713_v26  ;;  %1852 = vadd.xlane.f32.xlu0 %v1422_v9  ;;  %v7681_v24 = vld [vmem:[%s7945_s25 + $0x680] sm:$0xff]  ;;  %v7682_v53 = vld [vmem:[%s7945_s25 + $0x610] sm:$0xff] }
 0x3b2   : > { %v5907_v18 = vsel %vm3694_vm4, %v5906_v22, %v5902_v19  ;;  %v3229_v10 = vsub.f32 0.0, %v2950_v27  ;;  %v4272_v54 = vrot.slane %v2950_v27, %v12092_v11  ;;  %v2953_v61 = vmul.f32 %v12159_v49, %v2681_v41  ;;  %v1719_v63 = vpop.xlane.xlu1 %1718  ;;  %v12271_v59 = vld [vmem:[#allocation129_spill] sm:$0xff] }
 0x3b3   : > { %v5916_v23 = vrot.slane %v3230_v17, %v12091_v31  ;;  %v2952_v46 = vmul.f32 %v12160_v7, %v2680_v52  ;;  %v1440_v37 = vmul.f32 %v7681_v24, %v12242_v30  ;;  %v1426_v36 = vmul.f32 %v7682_v53, %v10339_v60  ;;  %v1717_v6 = vpop.xlane.xlu0 %1716  ;;  %v7683_v52 = vld [vmem:[%s7945_s25 + $0x618] sm:$0xff] }
 0x3b4   : > { %v4273_v22 = vsel %vm3701_vm5, %v4272_v54, %v4268_v3  ;;  %v5911_v15 = vrot.slane %v3229_v10, %v12092_v11  ;;  %v3232_v27 = vsub.f32 0.0, %v2953_v61  ;;  %v4287_v56 = vrot.slane %v2953_v61, %v12100_v50  ;;  %1858 = vadd.xlane.f32.xlu1 %v1425_v38  ;;  %v12272_v53 = vld [vmem:[#allocation130_spill] sm:$0xff] }
 0x3b5   : > { %v4278_v41 = vsel %vm3708_vm6, %v4277_v62, %v4273_v22  ;;  %v3231_v26 = vsub.f32 0.0, %v2952_v46  ;;  %v4282_v9 = vrot.slane %v2952_v46, %v12102_v20  ;;  %v2683_v19 = vmul.f32 %v12270_v35, %v1719_v63  ;;  %1856 = vadd.xlane.f32.xlu0 %v1424_v55 }
 0x3b6   : > { %v5912_v30 = vsel %vm3701_vm5, %v5911_v15, %v5907_v18  ;;  %v5926_v17 = vrot.slane %v3232_v27, %v12100_v50  ;;  %v2682_v3 = vmul.f32 %v12271_v59, %v1717_v6  ;;  %v1427_v10 = vmul.f32 %v7683_v52, %v10325_v5  ;;  %v1723_v18 = vpop.xlane.xlu1 %1722  ;;  %v10620_v15 = vld [vmem:[%s7945_s25 + $0x8] sm:$0xff] }
 0x3b7   : > { %v5917_v54 = vsel %vm3708_vm6, %v5916_v23, %v5912_v30  ;;  %v4283_v62 = vsel %vm3715_vm7, %v4282_v9, %v4278_v41  ;;  %v5921_v61 = vrot.slane %v3231_v26, %v12102_v20  ;;  %v2955_v46 = vmul.f32 %v12136_v8, %v2683_v19  ;;  %v1721_v38 = vpop.xlane.xlu0 %1720  ;;  %v7685_v27 = vld [vmem:[%s7945_s25 + $0x688] sm:$0xff]  ;;  %v12274_v30 = vld [vmem:[#allocation38_spill] sm:$0xff] }
 0x3b8   : > { %v4288_v63 = vsel %vm3722_vm8, %v4287_v56, %v4283_v62  ;;  %v2954_v24 = vmul.f32 %v12137_v40, %v2682_v3  ;;  %v2685_v22 = vmul.f32 %v12272_v53, %v1723_v18  ;;  %v1441_v23 = vmul.f32 %v7685_v27, %v10620_v15  ;;  %v12273_v26 = vld [vmem:[#allocation131_spill] sm:$0xff]  ;;  %1888 = vadd.xlane.f32.xlu1 %v1440_v37  ;;  %v7688_v53 = vld [vmem:[%s7945_s25 + $0x690] sm:$0xff] }
 0x3b9   : > { %v5922_v6 = vsel %vm3715_vm7, %v5921_v61, %v5917_v54  ;;  %v3234_v41 = vsub.f32 0.0, %v2955_v46  ;;  %v4297_v55 = vrot.slane %v2955_v46, %v12107_v33  ;;  %v2684_v56 = vmul.f32 %v12273_v26, %v1721_v38  ;;  %v12275_v52 = vld [vmem:[#allocation39_spill] sm:$0xff]  ;;  %1860 = vadd.xlane.f32.xlu0 %v1426_v36 }
 0x3ba   : > { %v5927_v9 = vsel %vm3722_vm8, %v5926_v17, %v5922_v6  ;;  %v3233_v35 = vsub.f32 0.0, %v2954_v24  ;;  %v4292_v19 = vrot.slane %v2954_v24, %v12108_v29  ;;  %v2957_v59 = vmul.f32 %v12274_v30, %v2685_v22  ;;  %v1727_v54 = vpop.xlane.xlu1 %1726  ;;  %v10633_v61 = vld [vmem:[%s7945_s25] sm:$0xff] }
 0x3bb   : > { %v5936_v3 = vrot.slane %v3234_v41, %v12107_v33  ;;  %v2956_v62 = vmul.f32 %v12275_v52, %v2684_v56  ;;  %v7687_v18 = vld [vmem:[%s7945_s25 + $0x700] sm:$0xff]  ;;  %v1442_v17 = vmul.f32 %v7688_v53, %v10339_v60  ;;  %v1725_v27 = vpop.xlane.xlu0 %1724  ;;  %v12277_v53 = vld [vmem:[#allocation13_spill] sm:$0xff]  ;;  %vm11620_vm15 = vcmask 1046534  }
 0x3bc   : > { %v1456_v46 = vmul.f32 %v7687_v18, %v10633_v61  ;;  %v4293_v24 = vsel %vm3729_vm9, %v4292_v19, %v4288_v63  ;;  %v5931_v22 = vrot.slane %v3233_v35, %v12108_v29  ;;  %v3236_v37 = vsub.f32 0.0, %v2957_v59  ;;  %v12276_v26 = vld [vmem:[#allocation15_spill] sm:$0xff]  ;;  %1862 = vadd.xlane.f32.xlu1 %v1427_v10 }
 0x3bd   : > { %v4307_v38 = vrot.slane %v2957_v59, %v12113_v12  ;;  %v4298_v36 = vsel %vm3736_vm10, %v4297_v55, %v4293_v24  ;;  %v3235_v6 = vsub.f32 0.0, %v2956_v62  ;;  %v4302_v41 = vrot.slane %v2956_v62, %v12114_v42  ;;  %v7689_v63 = vld [vmem:[%s7945_s25 + $0x620] sm:$0xff]  ;;  %1890 = vadd.xlane.f32.xlu0 %v1441_v23 }
 0x3be   : > { %v2687_v56 = vmul.f32 %v12276_v26, %v1727_v54  ;;  %v5932_v18 = vsel %vm3729_vm9, %v5931_v22, %v5927_v9  ;;  %v5946_v52 = vrot.slane %v3236_v37, %v12113_v12  ;;  %v2686_v30 = vmul.f32 %v12277_v53, %v1725_v27  ;;  %v1731_v54 = vpop.xlane.xlu1 %1730  ;;  %v12278_v22 = vld [vmem:[#allocation132_spill] sm:$0xff] }
 0x3bf   : > { %v1428_v35 = vmul.f32 %v7689_v63, %v12249_v32  ;;  %v5937_v19 = vsel %vm3736_vm10, %v5936_v3, %v5932_v18  ;;  %v4303_v59 = vsel %vm3743_vm11, %v4302_v41, %v4298_v36  ;;  %v5941_v55 = vrot.slane %v3235_v6, %v12114_v42  ;;  %v1729_v10 = vpop.xlane.xlu0 %1728  ;;  %v12279_v36 = vld [vmem:[#allocation14_spill] sm:$0xff] }
 0x3c0   : > { %v2959_v62 = vmul.f32 %v12115_v28, %v2687_v56  ;;  %v4308_v9 = vsel %vm3750_vm12, %v4307_v38, %v4303_v59  ;;  %v2958_v24 = vmul.f32 %v12144_v14, %v2686_v30  ;;  %v2689_v37 = vmul.f32 %v12278_v22, %v1731_v54  ;;  %1920 = vadd.xlane.f32.xlu1 %v1456_v46  ;;  %v12280_v30 = vld [vmem:[#allocation135_spill] sm:$0xff]  ;;  %v12282_v54 = vld [vmem:[#allocation272_spill] sm:$0xff] }
 0x3c1   : > { %v5942_v32 = vsel %vm3743_vm11, %v5941_v55, %v5937_v19  ;;  %v2688_v6 = vmul.f32 %v12279_v36, %v1729_v10  ;;  %v12281_v56 = vmax.f32 %v12280_v30, 1e-16  ;;  %1892 = vadd.xlane.f32.xlu0 %v1442_v17  ;;  %v7690_v19 = vld [vmem:[%s7945_s25 + $0x708] sm:$0xff]  ;;  %v12283_v10 = vld [vmem:[#allocation133_spill] sm:$0xff] }
 0x3c2   : > { %v3238_v3 = vsub.f32 0.0, %v2959_v62  ;;  %v4317_v27 = vrot.slane %v2959_v62, %v12117_v2  ;;  %v5947_v41 = vsel %vm3750_vm12, %v5946_v52, %v5942_v32  ;;  %v3237_v23 = vsub.f32 0.0, %v2958_v24  ;;  %v1735_v63 = vpop.xlane.xlu1 %1734  ;;  %v12284_v17 = vld [vmem:[#allocation49_spill] sm:$0xff] }
 0x3c3   : > { %v4312_v26 = vrot.slane %v2958_v24, %v12118_v57  ;;  %v2961_v38 = vmul.f32 %v12057_v34, %v2689_v37  ;;  %7187 = vrsqrt.f32 %v12281_v56  ;;  %v2960_v53 = vmul.f32 %v12061_v1, %v2688_v6  ;;  %v1733_v24 = vpop.xlane.xlu0 %1732 }
 0x3c4   : > { %v5956_v18 = vrot.slane %v3238_v3, %v12117_v2  ;;  %v1457_v59 = vmul.f32 %v7690_v19, %v10620_v15  ;;  %v5951_v55 = vrot.slane %v3237_v23, %v12118_v57  ;;  %v2691_v46 = vmul.f32 %v12282_v54, %v1735_v63  ;;  %1864 = vadd.xlane.f32.xlu1 %v1428_v35  ;;  %v7691_v23 = vld [vmem:[%s7945_s25 + $0x710] sm:$0xff]  ;;  %v12285_v63 = vld [vmem:[#allocation134_spill] sm:$0xff]  ;;  %v7693_v35 = vld [vmem:[%s7945_s25 + $0x788] sm:$0xff] }
 0x3c5   : > { %v4313_v52 = vsel %vm11612_vm13, %v4312_v26, %v4308_v9  ;;  %v3240_v62 = vsub.f32 0.0, %v2961_v38  ;;  %v3239_v37 = vsub.f32 0.0, %v2960_v53  ;;  %v2690_v32 = vmul.f32 %v12283_v10, %v1733_v24  ;;  %v12287_v24 = vld [vmem:[#allocation11_spill] sm:$0xff] }
 0x3c6   : > { %v4318_v22 = vsel %vm11611_vm14, %v4317_v27, %v4313_v52  ;;  %v5041_v3 = vsel %vm11620_vm15, %v10532_v51, %v12284_v17  ;;  %v5952_v36 = vsel %vm11612_vm13, %v5951_v55, %v5947_v41  ;;  %v2963_v6 = vmul.f32 %v12069_v0, %v2691_v46  ;;  %1922 = vadd.xlane.f32.xlu0 %v1457_v59  ;;  %v1739_v56 = vpop.xlane.xlu1 %1738  ;;  %v7692_v51 = vld [vmem:[%s7945_s25 + $0x698] sm:$0xff]  ;;  %v12286_v59 = vld [vmem:[#allocation16_spill] sm:$0xff] }
 0x3c7   : > { %v5965_v9 = vrot.slane %v3240_v62, %v12064_v13  ;;  %v1458_v26 = vmul.f32 %v7691_v23, %v10339_v60  ;;  %v5957_v27 = vsel %vm11611_vm14, %v5956_v18, %v5952_v36  ;;  %v5961_v38 = vrot.slane %v3239_v37, %v12066_v4  ;;  %v1737_v52 = vpop.xlane.xlu0 %1736 }
 0x3c8   : > { %v2962_v30 = vmul.f32 %v12257_v21, %v2690_v32  ;;  %v1443_v41 = vmul.f32 %v7692_v51, %v10325_v5  ;;  %v3242_v53 = vsub.f32 0.0, %v2963_v6  ;;  %v2693_v19 = vmul.f32 %v12285_v63, %v1739_v56  ;;  %v7694_v32 = vld [vmem:[%s7945_s25 + $0x780] sm:$0xff] }
 0x3c9   : > { %v1473_v55 = vmul.f32 %v7693_v35, %v10620_v15  ;;  %v6674_v18 = vsel %vm11620_vm15, %v10542_v45, %v10554_v44  ;;  %v5966_v62 = vsel %vm3666_vm0, %v5965_v9, %v5961_v38  ;;  %v2692_v46 = vmul.f32 %v12286_v59, %v1737_v52  ;;  %1924 = vadd.xlane.f32.xlu1 %v1458_v26  ;;  %v12288_v6 = vld [vmem:[#allocation31_spill] sm:$0xff]  ;;  %v12289_v38 = vld [vmem:[#allocation137_spill] sm:$0xff] }
 0x3ca   : > { %v3241_v54 = vsub.f32 0.0, %v2962_v30  ;;  %vm3108_vm14 = vcmp.lt.s32.totalorder %v12287_v24, 5  ;;  %v5975_v37 = vrot.slane %v3242_v53, %v12073_v16  ;;  %v2965_v10 = vmul.f32 %v12263_v39, %v2693_v19  ;;  %1894 = vadd.xlane.f32.xlu0 %v1443_v41  ;;  %v1743_v44 = vpop.xlane.xlu1 %1742  ;;  %v12290_v26 = vld [vmem:[#allocation17_spill] sm:$0xff]  ;;  %v12292_v19 = vld [vmem:[#allocation138_spill] sm:$0xff] }
 0x3cb   : > { %v1472_v17 = vmul.f32 %v7694_v32, %v10633_v61  ;;  %vm11615_vm13 = vcmask 1047559   ;;  %v2964_v45 = vmul.f32 %v12288_v6, %v2692_v46  ;;  %v2163_v30 = vmax.f32 %v12289_v38, 1e-16  ;;  %v1741_v53 = vpop.xlane.xlu0 %1740  ;;  %v10717_v59 = vld [vmem:[%s7945_s25 + $0x20] sm:$0xff]  ;;  %v12294_v32 = vld [vmem:[#allocation136_spill] sm:$0xff] }
 0x3cc   : > { %v5970_v36 = vrot.slane %v3241_v54, %v12075_v58  ;;  %v5043_v9 = vsel %vm11615_vm13, %v4318_v22, %v5041_v3  ;;  %v6675_v23 = vsel %vm11615_vm13, %v5957_v27, %v6674_v18  ;;  %v3244_v56 = vsub.f32 0.0, %v2965_v10  ;;  %v12293_v3 = vld [vmem:[#allocation32_spill] sm:$0xff]  ;;  %v7696_v46 = vld [vmem:[%s7945_s25 + $0x6a0] sm:$0xff] }
 0x3cd   : > { %v2695_v51 = vmul.f32 %v12290_v26, %v1743_v44  ;;  %v10708_v63 = vsel %vm3108_vm14, %v5043_v9, %v6675_v23  ;;  %v2162_v52 = vmax.f32 %v12292_v19, 1e-16  ;;  %v3243_v22 = vsub.f32 0.0, %v2964_v45  ;;  %1954 = vadd.xlane.f32.xlu1 %v1473_v55  ;;  %v10726_v9 = vld [vmem:[%s7945_s25 + $0x28] sm:$0xff] }
 0x3ce   : > { %12291 = vst [vmem:[#allocation50_spill] sm:$0xff] %v10708_v63  ;;  %v5971_v41 = vsel %vm3673_vm1, %v5970_v36, %v5966_v62  ;;  %v2694_v35 = vmul.f32 %v12293_v3, %v1741_v53  ;;  %v5985_v27 = vrot.slane %v3244_v56, %v12083_v43  ;;  %v1444_v10 = vmul.f32 %v7696_v46, %v10717_v59  ;;  %v1747_v45 = vpop.xlane.xlu1 %1746  ;;  %v12296_v38 = vld [vmem:[#allocation139_spill] sm:$0xff] }
 0x3cf   : > { %v5976_v18 = vsel %vm3680_vm2, %v5975_v37, %v5971_v41  ;;  %v2967_v54 = vmul.f32 %v12087_v47, %v2695_v51  ;;  %v12295_v44 = vmax.f32 %v12294_v32, 1e-16  ;;  %v5980_v62 = vrot.slane %v3243_v22, %v12085_v48  ;;  %1952 = vadd.xlane.f32.xlu0 %v1472_v17  ;;  %v7698_v37 = vld [vmem:[%s7945_s25 + $0x628] sm:$0xff]  ;;  %v12297_v51 = vld [vmem:[#allocation33_spill] sm:$0xff]  ;;  %v1745_v19 = vpop.xlane.xlu0 %1744  ;;  %v12298_v22 = vld [vmem:[#allocation18_spill] sm:$0xff] }
 0x3d0   : > { %v2966_v36 = vmul.f32 %v12089_v25, %v2694_v35  ;;  %v1429_v55 = vmul.f32 %v7698_v37, %v10726_v9  ;;  %v10730_v23 = vpop.eup %7187  ;;  %v2165_v56 = vmax.f32 %v12296_v38, 1e-16  ;;  %v2697_v53 = vmul.f32 %v12297_v51, %v1747_v45 }
 0x3d1   : > { %7189 = vrsqrt.f32 %v12295_v44  ;;  %v3246_v26 = vsub.f32 0.0, %v2967_v54  ;;  %v5981_v17 = vsel %vm3687_vm3, %v5980_v62, %v5976_v18  ;;  %v2696_v3 = vmul.f32 %v12298_v22, %v1745_v19  ;;  %1896 = vadd.xlane.f32.xlu1 %v1444_v10  ;;  %v12299_v44 = vld [vmem:[#allocation140_spill] sm:$0xff]  ;;  %v7700_v62 = vld [vmem:[%s7945_s25 + $0x718] sm:$0xff]  ;;  %v12301_v10 = vld [vmem:[#allocation19_spill] sm:$0xff] }
 0x3d2   : > { %7191 = vrsqrt.f32 %v2163_v30  ;;  %v3245_v41 = vsub.f32 0.0, %v2966_v36  ;;  %v5986_v46 = vsel %vm3694_vm4, %v5985_v27, %v5981_v17  ;;  %v2969_v32 = vmul.f32 %v12159_v49, %v2697_v53  ;;  %v7699_v30 = vld [vmem:[%s7945_s25 + $0x790] sm:$0xff]  ;;  %v1751_v18 = vpop.xlane.xlu1 %1750 }
 0x3d3   : > { %7193 = vrsqrt.f32 %v2162_v52  ;;  %v5995_v35 = vrot.slane %v3246_v26, %v12091_v31  ;;  %v1474_v54 = vmul.f32 %v7699_v30, %v10339_v60  ;;  %v2164_v45 = vmax.f32 %v12299_v44, 1e-16  ;;  %1866 = vadd.xlane.f32.xlu0 %v1429_v55  ;;  %v12300_v27 = vld [vmem:[#allocation141_spill] sm:$0xff]  ;;  %v1749_v53 = vpop.xlane.xlu0 %1748  ;;  %v12302_v60 = vld [vmem:[#allocation142_spill] sm:$0xff] }
 0x3d4   : > { %v5990_v37 = vrot.slane %v3245_v41, %v12092_v11  ;;  %v2968_v52 = vmul.f32 %v12160_v7, %v2696_v3  ;;  %v1459_v36 = vmul.f32 %v7700_v62, %v10325_v5  ;;  %7195 = vrsqrt.f32 %v2165_v56  ;;  %v12303_v55 = vld [vmem:[#allocation274_spill] sm:$0xff]  ;;  %v12304_v62 = vld [vmem:[#allocation143_spill] sm:$0xff] }
 0x3d5   : > { %v2167_v38 = vmax.f32 %v12300_v27, 1e-16  ;;  %v3248_v26 = vsub.f32 0.0, %v2969_v32  ;;  %v2699_v51 = vmul.f32 %v12301_v10, %v1751_v18  ;;  %v2166_v19 = vmax.f32 %v12302_v60, 1e-16  ;;  %1956 = vadd.xlane.f32.xlu1 %v1474_v54  ;;  %v7701_v32 = vld [vmem:[%s7945_s25 + $0x6a8] sm:$0xff] }
 0x3d6   : > { %v5991_v17 = vsel %vm3701_vm5, %v5990_v37, %v5986_v46  ;;  %v3247_v41 = vsub.f32 0.0, %v2968_v52  ;;  %v2698_v22 = vmul.f32 %v12303_v55, %v1749_v53  ;;  %v1445_v30 = vmul.f32 %v7701_v32, %v10726_v9  ;;  %v1755_v46 = vpop.xlane.xlu1 %1754  ;;  %v10759_v37 = vld [vmem:[%s7945_s25 + $0x30] sm:$0xff]  ;;  %v12306_v53 = vld [vmem:[#allocation275_spill] sm:$0xff]  ;;  %v12307_v55 = vld [vmem:[#allocation38_spill] sm:$0xff] }
 0x3d7   : > { %v6005_v3 = vrot.slane %v3248_v26, %v12100_v50  ;;  %v5996_v5 = vsel %vm3708_vm6, %v5995_v35, %v5991_v17  ;;  %v2971_v56 = vmul.f32 %v12136_v8, %v2699_v51  ;;  %7197 = vrsqrt.f32 %v2164_v45  ;;  %1926 = vadd.xlane.f32.xlu0 %v1459_v36  ;;  %v7703_v52 = vld [vmem:[%s7945_s25 + $0x630] sm:$0xff]  ;;  %v1753_v45 = vpop.xlane.xlu0 %1752 }
 0x3d8   : > { %v6000_v44 = vrot.slane %v3247_v41, %v12102_v20  ;;  %v2970_v18 = vmul.f32 %v12137_v40, %v2698_v22  ;;  %v1430_v35 = vmul.f32 %v7703_v52, %v10759_v37  ;;  %7199 = vrsqrt.f32 %v2167_v38  ;;  %v12305_v26 = vld [vmem:[#allocation21_spill] sm:$0xff] }
 0x3d9   : > { %v2169_v54 = vmax.f32 %v12304_v62, 1e-16  ;;  %v3250_v27 = vsub.f32 0.0, %v2971_v56  ;;  %v2701_v10 = vmul.f32 %v12305_v26, %v1755_v46  ;;  %7201 = vrsqrt.f32 %v2166_v19  ;;  %1898 = vadd.xlane.f32.xlu1 %v1445_v30  ;;  %v10771_v38 = vld [vmem:[%s7945_s25 + $0x18] sm:$0xff]  ;;  %v12308_v46 = vld [vmem:[#allocation144_spill] sm:$0xff]  ;;  %v7706_v62 = vld [vmem:[%s7945_s25 + $0x720] sm:$0xff] }
 0x3da   : > { %v6001_v51 = vsel %vm3715_vm7, %v6000_v44, %v5996_v5  ;;  %v3249_v36 = vsub.f32 0.0, %v2970_v18  ;;  %v2700_v60 = vmul.f32 %v12306_v53, %v1753_v45  ;;  %v7705_v56 = vld [vmem:[%s7945_s25 + $0x798] sm:$0xff]  ;;  %v2168_v19 = vmax.f32 %v12308_v46, 1e-16  ;;  %v12309_v5 = vld [vmem:[#allocation39_spill] sm:$0xff]  ;;  %v1759_v18 = vpop.xlane.xlu1 %1758  ;;  %v12311_v45 = vld [vmem:[#allocation24_spill] sm:$0xff] }
 0x3db   : > { %v6015_v17 = vrot.slane %v3250_v27, %v12107_v33  ;;  %v6006_v41 = vsel %vm3722_vm8, %v6005_v3, %v6001_v51  ;;  %v2973_v22 = vmul.f32 %v12307_v55, %v2701_v10  ;;  %v1475_v32 = vmul.f32 %v7705_v56, %v10771_v38  ;;  %1868 = vadd.xlane.f32.xlu0 %v1430_v35  ;;  %v12310_v30 = vld [vmem:[#allocation145_spill] sm:$0xff]  ;;  %v1757_v53 = vpop.xlane.xlu0 %1756  ;;  %v12312_v46 = vld [vmem:[#allocation146_spill] sm:$0xff] }
 0x3dc   : > { %v6010_v52 = vrot.slane %v3249_v36, %v12108_v29  ;;  %v2972_v44 = vmul.f32 %v12309_v5, %v2700_v60  ;;  %v1460_v27 = vmul.f32 %v7706_v62, %v10717_v59  ;;  %7203 = vrsqrt.f32 %v2169_v54  ;;  %v12313_v60 = vld [vmem:[#allocation25_spill] sm:$0xff] }
 0x3dd   : > { %v2171_v26 = vmax.f32 %v12310_v30, 1e-16  ;;  %v3252_v10 = vsub.f32 0.0, %v2973_v22  ;;  %v2703_v51 = vmul.f32 %v12311_v45, %v1759_v18  ;;  %v2170_v24 = vmax.f32 %v12312_v46, 1e-16  ;;  %1958 = vadd.xlane.f32.xlu1 %v1475_v32  ;;  %v7707_v22 = vld [vmem:[%s7945_s25 + $0x808] sm:$0xff] }
 0x3de   : > { %v7190_v3 = vpop.eup %7189  ;;  %v6011_v36 = vsel %vm3729_vm9, %v6010_v52, %v6006_v41  ;;  %v3251_v35 = vsub.f32 0.0, %v2972_v44  ;;  %v2702_v63 = vmul.f32 %v12313_v60, %v1757_v53  ;;  %v1489_v18 = vmul.f32 %v7707_v22, %v10620_v15  ;;  %v1763_v41 = vpop.xlane.xlu1 %1762  ;;  %v7708_v52 = vld [vmem:[%s7945_s25 + $0x800] sm:$0xff] }
 0x3df   : > { %v7192_v56 = vpop.eup %7191  ;;  %v6025_v62 = vrot.slane %v3252_v10, %v12113_v12  ;;  %v6016_v54 = vsel %vm3736_vm10, %v6015_v17, %v6011_v36  ;;  %v2975_v30 = vmul.f32 %v12115_v28, %v2703_v51  ;;  %7205 = vrsqrt.f32 %v2168_v19  ;;  %1928 = vadd.xlane.f32.xlu0 %v1460_v27  ;;  %v1761_v51 = vpop.xlane.xlu0 %1760 }
 0x3e0   : > { %v7194_v5 = vpop.eup %7193  ;;  %v6020_v45 = vrot.slane %v3251_v35, %v12114_v42  ;;  %v2974_v46 = vmul.f32 %v12144_v14, %v2702_v63  ;;  %v1488_v44 = vmul.f32 %v7708_v52, %v10633_v61  ;;  %7207 = vrsqrt.f32 %v2171_v26  ;;  %v7709_v61 = vld [vmem:[%s7945_s25 + $0x6b0] sm:$0xff] }
 0x3e1   : > { %v3254_v10 = vsub.f32 0.0, %v2975_v30  ;;  %v2705_v17 = vmul.f32 %v10730_v23, %v1763_v41  ;;  %v7196_v32 = vpop.eup %7195  ;;  %7209 = vrsqrt.f32 %v2170_v24  ;;  %v2704_v53 = vmul.f32 %v7190_v3, %v1761_v51  ;;  %1986 = vadd.xlane.f32.xlu1 %v1489_v18  ;;  %v12314_v23 = vld [vmem:[#allocation147_spill] sm:$0xff]  ;;  %v10805_v30 = vld [vmem:[%s7945_s25 + $0x38] sm:$0xff] }
 0x3e2   : > { %v6021_v15 = vsel %vm3743_vm11, %v6020_v45, %v6016_v54  ;;  %v3253_v19 = vsub.f32 0.0, %v2974_v46  ;;  %v1446_v26 = vmul.f32 %v7709_v61, %v10759_v37  ;;  %v2173_v35 = vmax.f32 %v12314_v23, 1e-16  ;;  %v1767_v54 = vpop.xlane.xlu1 %1766  ;;  %v7711_v3 = vld [vmem:[%s7945_s25 + $0x638] sm:$0xff]  ;;  %v12315_v45 = vld [vmem:[#allocation148_spill] sm:$0xff] }
 0x3e3   : > { %v6035_v63 = vrot.slane %v3254_v10, %v12117_v2  ;;  %v6026_v27 = vsel %vm3750_vm12, %v6025_v62, %v6021_v15  ;;  %v2977_v36 = vmul.f32 %v12057_v34, %v2705_v17  ;;  %v2976_v24 = vmul.f32 %v12061_v1, %v2704_v53  ;;  %1984 = vadd.xlane.f32.xlu0 %v1488_v44  ;;  %v12316_v46 = vld [vmem:[#allocation149_spill] sm:$0xff]  ;;  %v1765_v17 = vpop.xlane.xlu0 %1764  ;;  %v12317_v15 = vld [vmem:[#allocation150_spill] sm:$0xff] }
 0x3e4   : > { %v6030_v60 = vrot.slane %v3253_v19, %v12118_v57  ;;  %v1431_v22 = vmul.f32 %v7711_v3, %v10805_v30  ;;  %v7198_v62 = vpop.eup %7197  ;;  %v2172_v18 = vmax.f32 %v12315_v45, 1e-16  ;;  %v2175_v41 = vmax.f32 %v12316_v46, 1e-16 }
 0x3e5   : > { %v3256_v52 = vsub.f32 0.0, %v2977_v36  ;;  %v2707_v10 = vmul.f32 %v7192_v56, %v1767_v54  ;;  %v7200_v51 = vpop.eup %7199  ;;  %v2174_v19 = vmax.f32 %v12317_v15, 1e-16  ;;  %vm12318_vm14 = vcmask 982912   ;;  %1900 = vadd.xlane.f32.xlu1 %v1446_v26  ;;  %v7712_v36 = vld [vmem:[%s7945_s25 + $0x7a0] sm:$0xff] }
 0x3e6   : > { %v6031_v44 = vsel %vm12318_vm14, %v6030_v60, %v6026_v27  ;;  %v3255_v53 = vsub.f32 0.0, %v2976_v24  ;;  %v2706_v61 = vmul.f32 %v7194_v5, %v1765_v17  ;;  %v7202_v23 = vpop.eup %7201  ;;  %vm12319_vm13 = vcmask 1048512   ;;  %v1771_v27 = vpop.xlane.xlu1 %1770  ;;  %v7713_v5 = vld [vmem:[%s7945_s25 + $0x728] sm:$0xff] }
 0x3e7   : > { %v10814_v3 = vsel %vm12319_vm13, %v6035_v63, %v6031_v44  ;;  %v6044_v1 = vrot.slane %v3256_v52, %v12064_v13  ;;  %v2979_v45 = vmul.f32 %v12069_v0, %v2707_v10  ;;  %v1476_v56 = vmul.f32 %v7712_v36, %v10717_v59  ;;  %1870 = vadd.xlane.f32.xlu0 %v1431_v22  ;;  %v12320_v60 = vld [vmem:[#allocation151_spill] sm:$0xff]  ;;  %v1769_v10 = vpop.xlane.xlu0 %1768  ;;  %vm12338_vm13 = vmmov %vm12318_vm14 }
 0x3e8   : > { %7211 = vrsqrt.f32 %v2173_v35  ;;  %v6040_v54 = vrot.slane %v3255_v53, %v12066_v4  ;;  %v2978_v46 = vmul.f32 %v12257_v21, %v2706_v61  ;;  %v1461_v63 = vmul.f32 %v7713_v5, %v10726_v9  ;;  %v7715_v61 = vld [vmem:[%s7945_s25 + $0x640] sm:$0xff] }
 0x3e9   : > { %7213 = vrsqrt.f32 %v2172_v18  ;;  %v2177_v24 = vmax.f32 %v12320_v60, 1e-16  ;;  %v3258_v52 = vsub.f32 0.0, %v2979_v45  ;;  %v2709_v26 = vmul.f32 %v7196_v32, %v1771_v27  ;;  %v7204_v17 = vpop.eup %7203  ;;  %1960 = vadd.xlane.f32.xlu1 %v1476_v56  ;;  %v10829_v18 = vld [vmem:[%s7945_s25 + $0x40] sm:$0xff]  ;;  %v12321_v45 = vld [vmem:[#allocation152_spill] sm:$0xff]  ;;  %v12322_v56 = vld [vmem:[#allocation153_spill] sm:$0xff] }
 0x3ea   : > { %7215 = vrsqrt.f32 %v2175_v41  ;;  %v6045_v35 = vsel %vm3666_vm0, %v6044_v1, %v6040_v54  ;;  %v3257_v15 = vsub.f32 0.0, %v2978_v46  ;;  %v2708_v22 = vmul.f32 %v7198_v62, %v1769_v10  ;;  %v1775_v54 = vpop.xlane.xlu1 %1774  ;;  %v7716_v62 = vld [vmem:[%s7945_s25 + $0x10] sm:$0xff] }
 0x3eb   : > { %7217 = vrsqrt.f32 %v2174_v19  ;;  %v6054_v44 = vrot.slane %v3258_v52, %v12073_v16  ;;  %v2981_v53 = vmul.f32 %v12263_v39, %v2709_v26  ;;  %v1432_v32 = vmul.f32 %v7715_v61, %v10829_v18  ;;  %1930 = vadd.xlane.f32.xlu0 %v1461_v63  ;;  %v7717_v19 = vld [vmem:[%s7945_s25 + $0x810] sm:$0xff]  ;;  %v1773_v26 = vpop.xlane.xlu0 %1772  ;;  %v12323_v61 = vld [vmem:[#allocation154_spill] sm:$0xff] }
 0x3ec   : > { %v2176_v36 = vmax.f32 %v12321_v45, 1e-16  ;;  %v6049_v41 = vrot.slane %v3257_v15, %v12075_v58  ;;  %v2980_v1 = vmul.f32 %v12288_v6, %v2708_v22  ;;  %v1490_v46 = vmul.f32 %v7717_v19, %v7716_v62  ;;  %v7206_v27 = vpop.eup %7205  ;;  %v7718_v19 = vld [vmem:[%s7945_s25 + $0x730] sm:$0xff] }
 0x3ed   : > { %7219 = vrsqrt.f32 %v2177_v24  ;;  %v2179_v5 = vmax.f32 %v12322_v56, 1e-16  ;;  %v3260_v60 = vsub.f32 0.0, %v2981_v53  ;;  %v2711_v52 = vmul.f32 %v7200_v51, %v1775_v54  ;;  %v7208_v10 = vpop.eup %7207  ;;  %1872 = vadd.xlane.f32.xlu1 %v1432_v32 }
 0x3ee   : > { %v2178_v45 = vmax.f32 %v12323_v61, 1e-16  ;;  %v6050_v15 = vsel %vm3673_vm1, %v6049_v41, %v6045_v35  ;;  %v3259_v22 = vsub.f32 0.0, %v2980_v1  ;;  %v2710_v63 = vmul.f32 %v7202_v23, %v1773_v26  ;;  %v7210_v6 = vpop.eup %7209  ;;  %v1779_v35 = vpop.xlane.xlu1 %1778  ;;  %v7719_v23 = vld [vmem:[%s7945_s25 + $0x6b8] sm:$0xff]  ;;  %v12324_v1 = vld [vmem:[#allocation155_spill] sm:$0xff] }
 0x3ef   : > { %v6064_v58 = vrot.slane %v3260_v60, %v12083_v43  ;;  %v6055_v62 = vsel %vm3680_vm2, %v6054_v44, %v6050_v15  ;;  %v2983_v24 = vmul.f32 %v12087_v47, %v2711_v52  ;;  %v1462_v51 = vmul.f32 %v7718_v19, %v10759_v37  ;;  %1988 = vadd.xlane.f32.xlu0 %v1490_v46  ;;  %v1777_v32 = vpop.xlane.xlu0 %1776  ;;  %v7721_v19 = vld [vmem:[%s7945_s25 + $0x7a8] sm:$0xff] }
 0x3f0   : > { %7221 = vrsqrt.f32 %v2176_v36  ;;  %v6059_v53 = vrot.slane %v3259_v22, %v12085_v48  ;;  %v2982_v54 = vmul.f32 %v12089_v25, %v2710_v63  ;;  %v1447_v41 = vmul.f32 %v7719_v23, %v10805_v30  ;;  %v7720_v22 = vld [vmem:[%s7945_s25 + $0x818] sm:$0xff]  ;;  %v12325_v63 = vld [vmem:[#allocation156_spill] sm:$0xff] }
 0x3f1   : > { %7223 = vrsqrt.f32 %v2179_v5  ;;  %v2181_v44 = vmax.f32 %v12324_v1, 1e-16  ;;  %v3262_v56 = vsub.f32 0.0, %v2983_v24  ;;  %v2713_v60 = vmul.f32 %v7204_v17, %v1779_v35  ;;  %1932 = vadd.xlane.f32.xlu1 %v1462_v51  ;;  %v12327_v1 = vld [vmem:[#allocation158_spill] sm:$0xff] }
 0x3f2   : > { %7225 = vrsqrt.f32 %v2178_v45  ;;  %v6060_v36 = vsel %vm3687_vm3, %v6059_v53, %v6055_v62  ;;  %v3261_v52 = vsub.f32 0.0, %v2982_v54  ;;  %v2712_v26 = vmul.f32 %v7206_v27, %v1777_v32  ;;  %v1783_v62 = vpop.xlane.xlu1 %1782 }
 0x3f3   : > { %v6074_v61 = vrot.slane %v3262_v56, %v12091_v31  ;;  %v6065_v46 = vsel %vm3694_vm4, %v6064_v58, %v6060_v36  ;;  %v2985_v15 = vmul.f32 %v12159_v49, %v2713_v60  ;;  %v1491_v5 = vmul.f32 %v7720_v22, %v10771_v38  ;;  %1902 = vadd.xlane.f32.xlu0 %v1447_v41  ;;  %v12326_v58 = vld [vmem:[#allocation157_spill] sm:$0xff]  ;;  %v1781_v23 = vpop.xlane.xlu0 %1780 }
 0x3f4   : > { %v2180_v24 = vmax.f32 %v12325_v63, 1e-16  ;;  %v6069_v17 = vrot.slane %v3261_v52, %v12092_v11  ;;  %v2984_v45 = vmul.f32 %v12160_v7, %v2712_v26  ;;  %v1477_v27 = vmul.f32 %v7721_v19, %v10726_v9 }
 0x3f5   : > { %v7212_v53 = vpop.eup %7211  ;;  %7227 = vrsqrt.f32 %v2181_v44  ;;  %v2183_v54 = vmax.f32 %v12326_v58, 1e-16  ;;  %v3264_v51 = vsub.f32 0.0, %v2985_v15  ;;  %v2715_v35 = vmul.f32 %v7208_v10, %v1783_v62  ;;  %1990 = vadd.xlane.f32.xlu1 %v1491_v5  ;;  %v7722_v15 = vld [vmem:[%s7945_s25 + $0x6c0] sm:$0xff] }
 0x3f6   : > { %v7214_v38 = vpop.eup %7213  ;;  %v2182_v56 = vmax.f32 %v12327_v1, 1e-16  ;;  %v6070_v60 = vsel %vm3701_vm5, %v6069_v17, %v6065_v46  ;;  %v3263_v32 = vsub.f32 0.0, %v2984_v45  ;;  %v2714_v41 = vmul.f32 %v7210_v6, %v1781_v23  ;;  %v1787_v17 = vpop.xlane.xlu1 %1786  ;;  %v10873_v6 = vld [vmem:[%s7945_s25 + $0x48] sm:$0xff] }
 0x3f7   : > { %v7216_v36 = vpop.eup %7215  ;;  %v6084_v52 = vrot.slane %v3264_v51, %v12100_v50  ;;  %v6075_v26 = vsel %vm3708_vm6, %v6074_v61, %v6070_v60  ;;  %v2987_v44 = vmul.f32 %v12136_v8, %v2715_v35  ;;  %v1448_v10 = vmul.f32 %v7722_v15, %v10829_v18  ;;  %1962 = vadd.xlane.f32.xlu0 %v1477_v27  ;;  %v7724_v45 = vld [vmem:[%s7945_s25 + $0x648] sm:$0xff]  ;;  %v1785_v51 = vpop.xlane.xlu0 %1784 }
 0x3f8   : > { %v7218_v22 = vpop.eup %7217  ;;  %7229 = vrsqrt.f32 %v2180_v24  ;;  %v6079_v63 = vrot.slane %v3263_v32, %v12102_v20  ;;  %v2986_v46 = vmul.f32 %v12137_v40, %v2714_v41  ;;  %v1433_v61 = vmul.f32 %v7724_v45, %v10873_v6  ;;  %v12328_v62 = vld [vmem:[#allocation159_spill] sm:$0xff] }
 0x3f9   : > { %7231 = vrsqrt.f32 %v2183_v54  ;;  %v2185_v5 = vmax.f32 %v12328_v62, 1e-16  ;;  %v3266_v19 = vsub.f32 0.0, %v2987_v44  ;;  %v2717_v58 = vmul.f32 %v7212_v53, %v1787_v17  ;;  %1904 = vadd.xlane.f32.xlu1 %v1448_v10  ;;  %v7725_v54 = vld [vmem:[%s7945_s25 + $0x7b0] sm:$0xff]  ;;  %v12330_v17 = vld [vmem:[#allocation39_spill] sm:$0xff] }
 0x3fa   : > { %v7220_v35 = vpop.eup %7219  ;;  %7233 = vrsqrt.f32 %v2182_v56  ;;  %v6080_v24 = vsel %vm3715_vm7, %v6079_v63, %v6075_v26  ;;  %v3265_v23 = vsub.f32 0.0, %v2986_v46  ;;  %v2716_v27 = vmul.f32 %v7214_v38, %v1785_v51  ;;  %v12329_v44 = vld [vmem:[#allocation160_spill] sm:$0xff]  ;;  %v1791_v26 = vpop.xlane.xlu1 %1790  ;;  %v7726_v63 = vld [vmem:[%s7945_s25 + $0x738] sm:$0xff] }
 0x3fb   : > { %v6094_v1 = vrot.slane %v3266_v19, %v12107_v33  ;;  %v6085_v60 = vsel %vm3722_vm8, %v6084_v52, %v6080_v24  ;;  %v2989_v32 = vmul.f32 %v12307_v55, %v2717_v58  ;;  %v1478_v41 = vmul.f32 %v7725_v54, %v10759_v37  ;;  %1874 = vadd.xlane.f32.xlu0 %v1433_v61  ;;  %v12331_v52 = vld [vmem:[#allocation161_spill] sm:$0xff]  ;;  %v1789_v19 = vpop.xlane.xlu0 %1788  ;;  %v12332_v51 = vld [vmem:[#allocation162_spill] sm:$0xff] }
 0x3fc   : > { %v2184_v53 = vmax.f32 %v12329_v44, 1e-16  ;;  %v6089_v15 = vrot.slane %v3265_v23, %v12108_v29  ;;  %v2988_v56 = vmul.f32 %v12330_v17, %v2716_v27  ;;  %v1463_v38 = vmul.f32 %v7726_v63, %v10805_v30 }
 0x3fd   : > { %v7222_v46 = vpop.eup %7221  ;;  %7235 = vrsqrt.f32 %v2185_v5  ;;  %v2187_v10 = vmax.f32 %v12331_v52, 1e-16  ;;  %v3268_v45 = vsub.f32 0.0, %v2989_v32  ;;  %v2719_v62 = vmul.f32 %v7216_v36, %v1791_v26  ;;  %1964 = vadd.xlane.f32.xlu1 %v1478_v41  ;;  %v10896_v52 = vld [vmem:[%s7945_s25 + $0x50] sm:$0xff] }
 0x3fe   : > { %v7224_v58 = vpop.eup %7223  ;;  %v2186_v24 = vmax.f32 %v12332_v51, 1e-16  ;;  %v6090_v23 = vsel %vm3729_vm9, %v6089_v15, %v6085_v60  ;;  %v3267_v61 = vsub.f32 0.0, %v2988_v56  ;;  %v2718_v27 = vmul.f32 %v7218_v22, %v1789_v19  ;;  %v7728_v36 = vld [vmem:[%s7945_s25 + $0x650] sm:$0xff]  ;;  %v1795_v22 = vpop.xlane.xlu1 %1794  ;;  %v7729_v15 = vld [vmem:[%s7945_s25 + $0x820] sm:$0xff] }
 0x3ff   : > { %v7226_v54 = vpop.eup %7225  ;;  %v6104_v44 = vrot.slane %v3268_v45, %v12113_v12  ;;  %v6095_v63 = vsel %vm3736_vm10, %v6094_v1, %v6090_v23  ;;  %v2991_v5 = vmul.f32 %v12115_v28, %v2719_v62  ;;  %v1434_v32 = vmul.f32 %v7728_v36, %v10896_v52  ;;  %1934 = vadd.xlane.f32.xlu0 %v1463_v38  ;;  %v1793_v41 = vpop.xlane.xlu0 %1792  ;;  %v12334_v36 = vld [vmem:[#allocation23_spill] sm:$0xff] }
 0x400   : > { %7237 = vrsqrt.f32 %v2184_v53  ;;  %v6099_v26 = vrot.slane %v3267_v61, %v12114_v42  ;;  %v2990_v60 = vmul.f32 %v12144_v14, %v2718_v27  ;;  %v1492_v56 = vmul.f32 %v7729_v15, %v10717_v59  ;;  %v7730_v27 = vld [vmem:[%s7945_s25 + $0x740] sm:$0xff]  ;;  %v12336_v15 = vld [vmem:[#allocation165_spill] sm:$0xff] }
 0x401   : > { %7239 = vrsqrt.f32 %v2187_v10  ;;  %v3270_v1 = vsub.f32 0.0, %v2991_v5  ;;  %v2721_v45 = vmul.f32 %v7220_v35, %v1795_v22  ;;  %v2720_v51 = vmul.f32 %v7222_v46, %v1793_v41  ;;  %1876 = vadd.xlane.f32.xlu1 %v1434_v32  ;;  %v12333_v10 = vld [vmem:[#allocation163_spill] sm:$0xff]  ;;  %v12335_v22 = vld [vmem:[#allocation164_spill] sm:$0xff] }
 0x402   : > { %v7228_v62 = vpop.eup %7227  ;;  %7241 = vrsqrt.f32 %v2186_v24  ;;  %v6100_v19 = vsel %vm3743_vm11, %v6099_v26, %v6095_v63  ;;  %v3269_v53 = vsub.f32 0.0, %v2990_v60  ;;  %v1464_v59 = vmul.f32 %v7730_v27, %v10829_v18  ;;  %v1799_v63 = vpop.xlane.xlu1 %1798  ;;  %v7731_v26 = vld [vmem:[%s7945_s25 + $0x6c8] sm:$0xff]  ;;  %v12337_v27 = vld [vmem:[#allocation166_spill] sm:$0xff] }
 0x403   : > { %v6114_v23 = vrot.slane %v3270_v1, %v12117_v2  ;;  %v6105_v38 = vsel %vm3750_vm12, %v6104_v44, %v6100_v19  ;;  %v2993_v61 = vmul.f32 %v12057_v34, %v2721_v45  ;;  %v2189_v35 = vmax.f32 %v12333_v10, 1e-16  ;;  %1992 = vadd.xlane.f32.xlu0 %v1492_v56  ;;  %v1797_v41 = vpop.xlane.xlu0 %1796 }
 0x404   : > { %v6109_v5 = vrot.slane %v3269_v53, %v12118_v57  ;;  %v2992_v24 = vmul.f32 %v12334_v36, %v2720_v51  ;;  %v1449_v46 = vmul.f32 %v7731_v26, %v10873_v6  ;;  %v2188_v44 = vmax.f32 %v12335_v22, 1e-16 }
 0x405   : > { %v7230_v60 = vpop.eup %7229  ;;  %v2191_v32 = vmax.f32 %v12336_v15, 1e-16  ;;  %v3272_v1 = vsub.f32 0.0, %v2993_v61  ;;  %v2723_v45 = vmul.f32 %v7224_v58, %v1799_v63  ;;  %v2190_v10 = vmax.f32 %v12337_v27, 1e-16  ;;  %1936 = vadd.xlane.f32.xlu1 %v1464_v59  ;;  %v7732_v15 = vld [vmem:[%s7945_s25 + $0x828] sm:$0xff] }
 0x406   : > { %v7232_v19 = vpop.eup %7231  ;;  %v6110_v53 = vsel %vm12338_vm13, %v6109_v5, %v6105_v38  ;;  %v3271_v56 = vsub.f32 0.0, %v2992_v24  ;;  %v2722_v51 = vmul.f32 %v7226_v54, %v1797_v41  ;;  %vm12339_vm14 = vcmask 1048512   ;;  %v1803_v54 = vpop.xlane.xlu1 %1802  ;;  %v7733_v5 = vld [vmem:[%s7945_s25 + $0x7b8] sm:$0xff]  ;;  %v12341_v24 = vld [vmem:[#allocation167_spill] sm:$0xff] }
 0x407   : > { %v7234_v36 = vpop.eup %7233  ;;  %v6115_v26 = vsel %vm12339_vm14, %v6114_v23, %v6110_v53  ;;  %v6123_v57 = vrot.slane %v3272_v1, %v12064_v13  ;;  %v2995_v22 = vmul.f32 %v12069_v0, %v2723_v45  ;;  %v1493_v58 = vmul.f32 %v7732_v15, %v10726_v9  ;;  %1906 = vadd.xlane.f32.xlu0 %v1449_v46  ;;  %v1801_v9 = vpop.xlane.xlu0 %1800 }
 0x408   : > { %vm12340_vm15 = vcmask 1041409   ;;  %v6119_v63 = vrot.slane %v3271_v56, %v12066_v4  ;;  %v2994_v38 = vmul.f32 %v12257_v21, %v2722_v51  ;;  %v1479_v23 = vmul.f32 %v7733_v5, %v10805_v30 }
 0x409   : > { %v10926_v61 = vsel %vm12340_vm15, %v6115_v26, %v10814_v3  ;;  %7243 = vrsqrt.f32 %v2189_v35  ;;  %v2193_v59 = vmax.f32 %v12341_v24, 1e-16  ;;  %v3274_v1 = vsub.f32 0.0, %v2995_v22  ;;  %1994 = vadd.xlane.f32.xlu1 %v1493_v58  ;;  %v7734_v35 = vld [vmem:[%s7945_s25 + $0x6d0] sm:$0xff]  ;;  %v12343_v22 = vld [vmem:[#allocation31_spill] sm:$0xff]  ;;  %vm12360_vm15 = vmmov %vm12338_vm13 }
 0x40a   : > { %v2725_v45 = vmul.f32 %v7228_v62, %v1803_v54  ;;  %v7236_v41 = vpop.eup %7235  ;;  %7245 = vrsqrt.f32 %v2188_v44  ;;  %v6124_v3 = vsel %vm3666_vm0, %v6123_v57, %v6119_v63  ;;  %v3273_v27 = vsub.f32 0.0, %v2994_v38  ;;  %v12342_v62 = vld [vmem:[#allocation12_spill] sm:$0xff]  ;;  %v1807_v44 = vpop.xlane.xlu1 %1806  ;;  %v10941_v54 = vld [vmem:[%s7945_s25 + $0x58] sm:$0xff]  ;;  %vm12361_vm13 = vmmov %vm12339_vm14 }
 0x40b   : > { %v2724_v53 = vmul.f32 %v7230_v60, %v1801_v9  ;;  %7247 = vrsqrt.f32 %v2191_v32  ;;  %v6133_v46 = vrot.slane %v3274_v1, %v12073_v16  ;;  %v1450_v51 = vmul.f32 %v7734_v35, %v10896_v52  ;;  %1966 = vadd.xlane.f32.xlu0 %v1479_v23  ;;  %v7736_v57 = vld [vmem:[%s7945_s25 + $0x658] sm:$0xff]  ;;  %v12344_v63 = vld [vmem:[#allocation168_spill] sm:$0xff]  ;;  %v1805_v24 = vpop.xlane.xlu0 %1804 }
 0x40c   : > { %v2997_v56 = vmul.f32 %v12263_v39, %v2725_v45  ;;  %7249 = vrsqrt.f32 %v2190_v10  ;;  %v6128_v26 = vrot.slane %v3273_v27, %v12342_v62  ;;  %v1435_v60 = vmul.f32 %v7736_v57, %v10941_v54  ;;  %v12345_v1 = vld [vmem:[#allocation169_spill] sm:$0xff] }
 0x40d   : > { %v2996_v15 = vmul.f32 %v12343_v22, %v2724_v53  ;;  %v7238_v32 = vpop.eup %7237  ;;  %7251 = vrsqrt.f32 %v2193_v59  ;;  %v2192_v58 = vmax.f32 %v12344_v63, 1e-16  ;;  %v2727_v5 = vmul.f32 %v7232_v19, %v1807_v44  ;;  %1908 = vadd.xlane.f32.xlu1 %v1450_v51  ;;  %v7737_v63 = vld [vmem:[%s7945_s25 + $0x7c0] sm:$0xff] }
 0x40e   : > { %v3276_v38 = vsub.f32 0.0, %v2997_v56  ;;  %v7240_v10 = vpop.eup %7239  ;;  %v2195_v45 = vmax.f32 %v12345_v1, 1e-16  ;;  %v6129_v23 = vsel %vm3673_vm1, %v6128_v26, %v6124_v3  ;;  %v2726_v27 = vmul.f32 %v7234_v36, %v1805_v24  ;;  %v12346_v56 = vld [vmem:[#allocation170_spill] sm:$0xff]  ;;  %v1811_v3 = vpop.xlane.xlu1 %1810  ;;  %v7738_v36 = vld [vmem:[%s7945_s25 + $0x748] sm:$0xff] }
 0x40f   : > { %v3275_v9 = vsub.f32 0.0, %v2996_v15  ;;  %v7242_v53 = vpop.eup %7241  ;;  %v6134_v57 = vsel %vm3680_vm2, %v6133_v46, %v6129_v23  ;;  %v2999_v59 = vmul.f32 %v12087_v47, %v2727_v5  ;;  %v1480_v19 = vmul.f32 %v7737_v63, %v10829_v18  ;;  %1878 = vadd.xlane.f32.xlu0 %v1435_v60  ;;  %v12347_v46 = vld [vmem:[#allocation171_spill] sm:$0xff]  ;;  %v1809_v5 = vpop.xlane.xlu0 %1808 }
 0x410   : > { %v6143_v35 = vrot.slane %v3276_v38, %v12083_v43  ;;  %v2194_v44 = vmax.f32 %v12346_v56, 1e-16  ;;  %v2998_v22 = vmul.f32 %v12089_v25, %v2726_v27  ;;  %v1465_v26 = vmul.f32 %v7738_v36, %v10873_v6  ;;  %v10964_v56 = vld [vmem:[%s7945_s25 + $0x60] sm:$0xff] }
 0x411   : > { %v6138_v1 = vrot.slane %v3275_v9, %v12085_v48  ;;  %7253 = vrsqrt.f32 %v2192_v58  ;;  %v2197_v15 = vmax.f32 %v12347_v46, 1e-16  ;;  %v3278_v51 = vsub.f32 0.0, %v2999_v59  ;;  %1968 = vadd.xlane.f32.xlu1 %v1480_v19  ;;  %v7740_v58 = vld [vmem:[%s7945_s25 + $0x660] sm:$0xff] }
 0x412   : > { %v2729_v38 = vmul.f32 %v7236_v41, %v1811_v3  ;;  %7255 = vrsqrt.f32 %v2195_v45  ;;  %v3277_v23 = vsub.f32 0.0, %v2998_v22  ;;  %v2728_v9 = vmul.f32 %v7238_v32, %v1809_v5  ;;  %v1815_v22 = vpop.xlane.xlu1 %1814  ;;  %v7741_v32 = vld [vmem:[%s7945_s25 + $0x830] sm:$0xff] }
 0x413   : > { %v6139_v24 = vsel %vm3687_vm3, %v6138_v1, %v6134_v57  ;;  %v6153_v60 = vrot.slane %v3278_v51, %v12091_v31  ;;  %v1436_v59 = vmul.f32 %v7740_v58, %v10964_v56  ;;  %7257 = vrsqrt.f32 %v2194_v44  ;;  %1938 = vadd.xlane.f32.xlu0 %v1465_v26  ;;  %v1813_v36 = vpop.xlane.xlu0 %1812  ;;  %v12349_v51 = vld [vmem:[#allocation173_spill] sm:$0xff]  ;;  %v12350_v58 = vld [vmem:[#allocation174_spill] sm:$0xff] }
 0x414   : > { %v6144_v27 = vsel %vm3694_vm4, %v6143_v35, %v6139_v24  ;;  %v3001_v63 = vmul.f32 %v12159_v49, %v2729_v38  ;;  %v6148_v41 = vrot.slane %v3277_v23, %v12092_v11  ;;  %v3000_v45 = vmul.f32 %v12160_v7, %v2728_v9  ;;  %v12348_v35 = vld [vmem:[#allocation172_spill] sm:$0xff] }
 0x415   : > { %v1494_v57 = vmul.f32 %v7741_v32, %v10759_v37  ;;  %7259 = vrsqrt.f32 %v2197_v15  ;;  %v2196_v1 = vmax.f32 %v12348_v35, 1e-16  ;;  %v2731_v3 = vmul.f32 %v7240_v10, %v1815_v22  ;;  %1880 = vadd.xlane.f32.xlu1 %v1436_v59  ;;  %v7742_v9 = vld [vmem:[%s7945_s25 + $0x750] sm:$0xff]  ;;  %v12351_v35 = vld [vmem:[#allocation175_spill] sm:$0xff] }
 0x416   : > { %v3280_v19 = vsub.f32 0.0, %v3001_v63  ;;  %v7244_v46 = vpop.eup %7243  ;;  %v2199_v38 = vmax.f32 %v12349_v51, 1e-16  ;;  %v6149_v44 = vsel %vm3701_vm5, %v6148_v41, %v6144_v27  ;;  %v3279_v5 = vsub.f32 0.0, %v3000_v45  ;;  %v7743_v41 = vld [vmem:[%s7945_s25 + $0x6d8] sm:$0xff] }
 0x417   : > { %v2730_v24 = vmul.f32 %v7242_v53, %v1813_v36  ;;  %v7246_v26 = vpop.eup %7245  ;;  %v6154_v37 = vsel %vm3708_vm6, %v6153_v60, %v6149_v44  ;;  %v3003_v15 = vmul.f32 %v12136_v8, %v2731_v3  ;;  %v1466_v10 = vmul.f32 %v7742_v9, %v10896_v52  ;;  %1996 = vadd.xlane.f32.xlu0 %v1494_v57  ;;  %v1819_v53 = vpop.xlane.xlu1 %1818 }
 0x418   : > { %v6163_v23 = vrot.slane %v3280_v19, %v12100_v50  ;;  %v7248_v63 = vpop.eup %7247  ;;  %v2198_v22 = vmax.f32 %v12350_v58, 1e-16  ;;  %v6158_v32 = vrot.slane %v3279_v5, %v12102_v20  ;;  %v1451_v45 = vmul.f32 %v7743_v41, %v10941_v54  ;;  %v1817_v36 = vpop.xlane.xlu0 %1816 }
 0x419   : > { %v3002_v27 = vmul.f32 %v12137_v40, %v2730_v24  ;;  %v7250_v60 = vpop.eup %7249  ;;  %7261 = vrsqrt.f32 %v2196_v1  ;;  %v2201_v59 = vmax.f32 %v12351_v35, 1e-16  ;;  %v3282_v19 = vsub.f32 0.0, %v3003_v15  ;;  %1940 = vadd.xlane.f32.xlu1 %v1466_v10  ;;  %v7744_v1 = vld [vmem:[%s7945_s25 + $0x838] sm:$0xff] }
 0x41a   : > { %v2733_v3 = vmul.f32 %v7244_v46, %v1819_v53  ;;  %v7252_v51 = vpop.eup %7251  ;;  %7263 = vrsqrt.f32 %v2199_v38  ;;  %v6159_v44 = vsel %vm3715_vm7, %v6158_v32, %v6154_v37  ;;  %v2732_v24 = vmul.f32 %v7246_v26, %v1817_v36  ;;  %v7745_v37 = vld [vmem:[%s7945_s25 + $0x7c8] sm:$0xff] }
 0x41b   : > { %v3281_v5 = vsub.f32 0.0, %v3002_v27  ;;  %v6173_v57 = vrot.slane %v3282_v19, %v12107_v33  ;;  %v6164_v9 = vsel %vm3722_vm8, %v6163_v23, %v6159_v44  ;;  %v1495_v41 = vmul.f32 %v7744_v1, %v10805_v30  ;;  %1910 = vadd.xlane.f32.xlu0 %v1451_v45  ;;  %v1823_v38 = vpop.xlane.xlu1 %1822  ;;  %v12352_v32 = vld [vmem:[#allocation176_spill] sm:$0xff]  ;;  %v12353_v19 = vld [vmem:[#allocation177_spill] sm:$0xff] }
 0x41c   : > { %v3005_v58 = vmul.f32 %v12307_v55, %v2733_v3  ;;  %7265 = vrsqrt.f32 %v2198_v22  ;;  %v3004_v15 = vmul.f32 %v12330_v17, %v2732_v24  ;;  %v1481_v26 = vmul.f32 %v7745_v37, %v10873_v6  ;;  %v1821_v10 = vpop.xlane.xlu0 %1820  ;;  %v7746_v24 = vld [vmem:[%s7945_s25 + $0x6e0] sm:$0xff] }
 0x41d   : > { %v6168_v46 = vrot.slane %v3281_v5, %v12108_v29  ;;  %7267 = vrsqrt.f32 %v2201_v59  ;;  %v2200_v23 = vmax.f32 %v12352_v32, 1e-16  ;;  %v2735_v53 = vmul.f32 %v7248_v63, %v1823_v38  ;;  %1998 = vadd.xlane.f32.xlu1 %v1495_v41 }
 0x41e   : > { %v3284_v27 = vsub.f32 0.0, %v3005_v58  ;;  %v7254_v35 = vpop.eup %7253  ;;  %v2203_v30 = vmax.f32 %v12353_v19, 1e-16  ;;  %v3283_v3 = vsub.f32 0.0, %v3004_v15  ;;  %v2734_v45 = vmul.f32 %v7250_v60, %v1821_v10  ;;  %v12354_v58 = vld [vmem:[#allocation178_spill] sm:$0xff]  ;;  %v11008_v60 = vld [vmem:[%s7945_s25 + $0x68] sm:$0xff] }
 0x41f   : > { %v6169_v22 = vsel %vm3729_vm9, %v6168_v46, %v6164_v9  ;;  %v7256_v36 = vpop.eup %7255  ;;  %v3007_v59 = vmul.f32 %v12115_v28, %v2735_v53  ;;  %v1452_v63 = vmul.f32 %v7746_v24, %v10964_v56  ;;  %v2202_v1 = vmax.f32 %v12354_v58, 1e-16  ;;  %1970 = vadd.xlane.f32.xlu0 %v1481_v26  ;;  %v1827_v46 = vpop.xlane.xlu1 %1826  ;;  %v7748_v15 = vld [vmem:[%s7945_s25 + $0x668] sm:$0xff]  ;;  %v7749_v24 = vld [vmem:[%s7945_s25 + $0x7d0] sm:$0xff] }
 0x420   : > { %v6183_v44 = vrot.slane %v3284_v27, %v12113_v12  ;;  %v6174_v5 = vsel %vm3736_vm10, %v6173_v57, %v6169_v22  ;;  %v6178_v38 = vrot.slane %v3283_v3, %v12114_v42  ;;  %v3006_v9 = vmul.f32 %v12144_v14, %v2734_v45  ;;  %v7258_v37 = vpop.eup %7257  ;;  %v1825_v27 = vpop.xlane.xlu0 %1824  ;;  %v12356_v58 = vld [vmem:[#allocation23_spill] sm:$0xff] }
 0x421   : > { %v1437_v57 = vmul.f32 %v7748_v15, %v11008_v60  ;;  %7269 = vrsqrt.f32 %v2200_v23  ;;  %v3286_v41 = vsub.f32 0.0, %v3007_v59  ;;  %v2737_v32 = vmul.f32 %v7252_v51, %v1827_v46  ;;  %1912 = vadd.xlane.f32.xlu1 %v1452_v63  ;;  %v12355_v51 = vld [vmem:[#allocation43_spill] sm:$0xff] }
 0x422   : > { %v7260_v53 = vpop.eup %7259  ;;  %7271 = vrsqrt.f32 %v2203_v30  ;;  %v6179_v10 = vsel %vm3743_vm11, %v6178_v38, %v6174_v5  ;;  %v3285_v19 = vsub.f32 0.0, %v3006_v9  ;;  %v2736_v22 = vmul.f32 %v7254_v35, %v1825_v27  ;;  %v7750_v5 = vld [vmem:[%s7945_s25 + $0x758] sm:$0xff]  ;;  %v12357_v38 = vld [vmem:[#allocation179_spill] sm:$0xff] }
 0x423   : > { %v6193_v26 = vrot.slane %v3286_v41, %v12117_v2  ;;  %v6184_v3 = vsel %vm3750_vm12, %v6183_v44, %v6179_v10  ;;  %v3009_v45 = vmul.f32 %v12057_v34, %v2737_v32  ;;  %v1482_v23 = vmul.f32 %v7749_v24, %v10896_v52  ;;  %1882 = vadd.xlane.f32.xlu0 %v1437_v57  ;;  %v1831_v30 = vpop.xlane.xlu1 %1830  ;;  %v12358_v44 = vld [vmem:[#allocation180_spill] sm:$0xff] }
 0x424   : > { %7273 = vrsqrt.f32 %v2202_v1  ;;  %v6188_v59 = vrot.slane %v3285_v19, %v12355_v51  ;;  %v3008_v46 = vmul.f32 %v12356_v58, %v2736_v22  ;;  %v1467_v35 = vmul.f32 %v7750_v5, %v10941_v54  ;;  %v1829_v32 = vpop.xlane.xlu0 %1828  ;;  %v12359_v1 = vld [vmem:[#allocation181_spill] sm:$0xff] }
 0x425   : > { %v2205_v9 = vmax.f32 %v12357_v38, 1e-16  ;;  %v2204_v15 = vmax.f32 %v12358_v44, 1e-16  ;;  %v3288_v63 = vsub.f32 0.0, %v3009_v45  ;;  %v2739_v41 = vmul.f32 %v7256_v36, %v1831_v30  ;;  %1972 = vadd.xlane.f32.xlu1 %v1482_v23  ;;  %v11030_v44 = vld [vmem:[%s7945_s25 + $0x70] sm:$0xff] }
 0x426   : > { %v7262_v27 = vpop.eup %7261  ;;  %v2207_v10 = vmax.f32 %v12359_v1, 1e-16  ;;  %v6189_v19 = vsel %vm12360_vm15, %v6188_v59, %v6184_v3  ;;  %v3287_v57 = vsub.f32 0.0, %v3008_v46  ;;  %v2738_v22 = vmul.f32 %v7258_v37, %v1829_v32  ;;  %v7752_v36 = vld [vmem:[%s7945_s25 + $0x670] sm:$0xff]  ;;  %v7753_v59 = vld [vmem:[%s7945_s25 + $0x840] sm:$0xff] }
 0x427   : > { %v7264_v24 = vpop.eup %7263  ;;  %v6194_v5 = vsel %vm12361_vm13, %v6193_v26, %v6189_v19  ;;  %v6202_v58 = vrot.slane %v3288_v63, %v12064_v13  ;;  %v3011_v38 = vmul.f32 %v12069_v0, %v2739_v41  ;;  %v1438_v45 = vmul.f32 %v7752_v36, %v11030_v44  ;;  %1942 = vadd.xlane.f32.xlu0 %v1467_v35  ;;  %v1835_v26 = vpop.xlane.xlu1 %1834  ;;  %v12363_v63 = vld [vmem:[#allocation182_spill] sm:$0xff] }
 0x428   : > { %vm12362_vm14 = vcmask 1042434   ;;  %v6198_v3 = vrot.slane %v3287_v57, %v12066_v4  ;;  %v3010_v37 = vmul.f32 %v12257_v21, %v2738_v22  ;;  %v1496_v46 = vmul.f32 %v7753_v59, %v10829_v18  ;;  %v1833_v19 = vpop.xlane.xlu0 %1832 }
 0x429   : > { %v11036_v30 = vsel %vm12362_vm14, %v6194_v5, %v10926_v61  ;;  %v7266_v23 = vpop.eup %7265  ;;  %7275 = vrsqrt.f32 %v2205_v9  ;;  %v2206_v41 = vmax.f32 %v12363_v63, 1e-16  ;;  %v3290_v32 = vsub.f32 0.0, %v3011_v38  ;;  %v12364_v61 = vld [vmem:[#allocation183_spill] sm:$0xff]  ;;  %1884 = vadd.xlane.f32.xlu1 %v1438_v45 }
 0x42a   : > { %v2741_v1 = vmul.f32 %v7260_v53, %v1835_v26  ;;  %v7268_v36 = vpop.eup %7267  ;;  %v2209_v5 = vmax.f32 %v12364_v61, 1e-16  ;;  %v6203_v57 = vsel %vm3666_vm0, %v6202_v58, %v6198_v3  ;;  %v3289_v22 = vsub.f32 0.0, %v3010_v37  ;;  %v7754_v9 = vld [vmem:[%s7945_s25 + $0x760] sm:$0xff]  ;;  %v7755_v61 = vld [vmem:[%s7945_s25 + $0x6e8] sm:$0xff] }
 0x42b   : > { %v2740_v35 = vmul.f32 %v7262_v27, %v1833_v19  ;;  %7277 = vrsqrt.f32 %v2204_v15  ;;  %v6212_v0 = vrot.slane %v3290_v32, %v12073_v16  ;;  %v1468_v59 = vmul.f32 %v7754_v9, %v10964_v56  ;;  %v12365_v38 = vld [vmem:[#allocation31_spill] sm:$0xff]  ;;  %2000 = vadd.xlane.f32.xlu0 %v1496_v46  ;;  %v1839_v63 = vpop.xlane.xlu1 %1838  ;;  %v12366_v15 = vld [vmem:[#allocation184_spill] sm:$0xff] }
 0x42c   : > { %v3013_v18 = vmul.f32 %v12263_v39, %v2741_v1  ;;  %7279 = vrsqrt.f32 %v2207_v10  ;;  %v6207_v53 = vrot.slane %v3289_v22, %v12342_v62  ;;  %v1453_v58 = vmul.f32 %v7755_v61, %v11008_v60  ;;  %v1837_v45 = vpop.xlane.xlu0 %1836 }
 0x42d   : > { %v3012_v26 = vmul.f32 %v12365_v38, %v2740_v35  ;;  %7281 = vrsqrt.f32 %v2206_v41  ;;  %v2208_v27 = vmax.f32 %v12366_v15, 1e-16  ;;  %v2743_v37 = vmul.f32 %v7264_v24, %v1839_v63  ;;  %1944 = vadd.xlane.f32.xlu1 %v1468_v59  ;;  %v7756_v41 = vld [vmem:[%s7945_s25 + $0x848] sm:$0xff]  ;;  %v12367_v24 = vld [vmem:[#allocation185_spill] sm:$0xff] }
 0x42e   : > { %v3292_v3 = vsub.f32 0.0, %v3013_v18  ;;  %v7270_v32 = vpop.eup %7269  ;;  %7283 = vrsqrt.f32 %v2209_v5  ;;  %v6208_v10 = vsel %vm3673_vm1, %v6207_v53, %v6203_v57  ;;  %v2742_v19 = vmul.f32 %v7266_v23, %v1837_v45  ;;  %v7757_v23 = vld [vmem:[%s7945_s25 + $0x7d8] sm:$0xff] }
 0x42f   : > { %v3291_v1 = vsub.f32 0.0, %v3012_v26  ;;  %v7272_v22 = vpop.eup %7271  ;;  %v6213_v35 = vsel %vm3680_vm2, %v6212_v0, %v6208_v10  ;;  %v3015_v9 = vmul.f32 %v12087_v47, %v2743_v37  ;;  %v1497_v18 = vmul.f32 %v7756_v41, %v10873_v6  ;;  %1914 = vadd.xlane.f32.xlu0 %v1453_v58  ;;  %v1843_v57 = vpop.xlane.xlu1 %1842  ;;  %v12368_v0 = vld [vmem:[#allocation186_spill] sm:$0xff]  ;;  %v12369_v6 = vld [vmem:[#allocation200_spill] sm:$0xff] }
 0x430   : > { %v6222_v46 = vrot.slane %v3292_v3, %v12083_v43  ;;  %v2211_v63 = vmax.f32 %v12367_v24, 1e-16  ;;  %v3014_v61 = vmul.f32 %v12089_v25, %v2742_v19  ;;  %v1483_v53 = vmul.f32 %v7757_v23, %v10941_v54  ;;  %v1841_v37 = vpop.xlane.xlu0 %1840 }
 0x431   : > { %v6217_v5 = vrot.slane %v3291_v1, %v12085_v48  ;;  %v7274_v26 = vpop.eup %7273  ;;  %7285 = vrsqrt.f32 %v2208_v27  ;;  %v2210_v15 = vmax.f32 %v12368_v0, 1e-16  ;;  %v3294_v59 = vsub.f32 0.0, %v3015_v9  ;;  %2002 = vadd.xlane.f32.xlu1 %v1497_v18  ;;  %v7758_v27 = vld [vmem:[%s7945_s25 + $0x6f0] sm:$0xff] }
 0x432   : > { %v2745_v3 = vmul.f32 %v7268_v36, %v1843_v57  ;;  %v2224_v45 = vmax.f32 %v12369_v6, 1e-16  ;;  %v3293_v1 = vsub.f32 0.0, %v3014_v61  ;;  %v2744_v58 = vmul.f32 %v7270_v32, %v1841_v37  ;;  %v7760_v32 = vld [vmem:[%s7945_s25 + $0x678] sm:$0xff] }
 0x433   : > { %v6218_v10 = vsel %vm3687_vm3, %v6217_v5, %v6213_v35  ;;  %v6232_v19 = vrot.slane %v3294_v59, %v12091_v31  ;;  %v1454_v9 = vmul.f32 %v7758_v27, %v11030_v44  ;;  %7287 = vrsqrt.f32 %v2211_v63  ;;  %1974 = vadd.xlane.f32.xlu0 %v1483_v53  ;;  %v1847_v23 = vpop.xlane.xlu1 %1846  ;;  %v11076_v35 = vld [vmem:[%s7945_s25 + $0x78] sm:$0xff] }
 0x434   : > { %v6223_v41 = vsel %vm3694_vm4, %v6222_v46, %v6218_v10  ;;  %v3017_v24 = vmul.f32 %v12159_v49, %v2745_v3  ;;  %v6227_v36 = vrot.slane %v3293_v1, %v12092_v11  ;;  %v3016_v57 = vmul.f32 %v12160_v7, %v2744_v58  ;;  %v12370_v46 = vld [vmem:[#allocation187_spill] sm:$0xff]  ;;  %v1845_v59 = vpop.xlane.xlu0 %1844 }
 0x435   : > { %v1439_v5 = vmul.f32 %v7760_v32, %v11076_v35  ;;  %7289 = vrsqrt.f32 %v2210_v15  ;;  %v2747_v0 = vmul.f32 %v7272_v22, %v1847_v23  ;;  %v2746_v53 = vmul.f32 %v7274_v26, %v1845_v59  ;;  %1916 = vadd.xlane.f32.xlu1 %v1454_v9  ;;  %v7761_v15 = vld [vmem:[%s7945_s25 + $0x7e0] sm:$0xff]  ;;  %v7762_v26 = vld [vmem:[%s7945_s25 + $0x768] sm:$0xff] }
 0x436   : > { %v3296_v18 = vsub.f32 0.0, %v3017_v24  ;;  %v7276_v3 = vpop.eup %7275  ;;  %7291 = vrsqrt.f32 %v2224_v45  ;;  %v6228_v63 = vsel %vm3701_vm5, %v6227_v36, %v6223_v41  ;;  %v3295_v37 = vsub.f32 0.0, %v3016_v57  ;;  %v12371_v22 = vld [vmem:[#allocation199_spill] sm:$0xff]  ;;  %v12373_v9 = vld [vmem:[#allocation202_spill] sm:$0xff] }
 0x437   : > { %v6233_v10 = vsel %vm3708_vm6, %v6232_v19, %v6228_v63  ;;  %v3019_v1 = vmul.f32 %v12136_v8, %v2747_v0  ;;  %v1484_v58 = vmul.f32 %v7761_v15, %v10964_v56  ;;  %v2225_v27 = vmax.f32 %v12371_v22, 1e-16  ;;  %1886 = vadd.xlane.f32.xlu0 %v1439_v5  ;;  %v1851_v41 = vpop.xlane.xlu1 %1850  ;;  %v12372_v19 = vld [vmem:[#allocation188_spill] sm:$0xff] }
 0x438   : > { %v6242_v6 = vrot.slane %v3296_v18, %v12100_v50  ;;  %v7278_v24 = vpop.eup %7277  ;;  %v6237_v45 = vrot.slane %v3295_v37, %v12102_v20  ;;  %v3018_v23 = vmul.f32 %v12137_v40, %v2746_v53  ;;  %v1469_v36 = vmul.f32 %v7762_v26, %v11008_v60  ;;  %v1849_v63 = vpop.xlane.xlu0 %1848  ;;  %v12374_v22 = vld [vmem:[#allocation216_spill] sm:$0xff] }
 0x439   : > { %v7280_v57 = vpop.eup %7279  ;;  %v2212_v32 = vmax.f32 %v12372_v19, 1e-16  ;;  %v2226_v18 = vmax.f32 %v12373_v9, 1e-16  ;;  %v3298_v0 = vsub.f32 0.0, %v3019_v1  ;;  %v2749_v59 = vmul.f32 %v7276_v3, %v1851_v41  ;;  %1976 = vadd.xlane.f32.xlu1 %v1484_v58  ;;  %v7763_v9 = vld [vmem:[%s7945_s25 + $0x6f8] sm:$0xff] }
 0x43a   : > { %v7282_v15 = vpop.eup %7281  ;;  %v2240_v61 = vmax.f32 %v12374_v22, 1e-16  ;;  %v6238_v37 = vsel %vm3715_vm7, %v6237_v45, %v6233_v10  ;;  %v3297_v5 = vsub.f32 0.0, %v3018_v23  ;;  %v2748_v53 = vmul.f32 %v7278_v24, %v1849_v63  ;;  %v7764_v45 = vld [vmem:[%s7945_s25 + $0x850] sm:$0xff] }
 0x43b   : > { %v7284_v8 = vpop.eup %7283  ;;  %v6252_v26 = vrot.slane %v3298_v0, %v12107_v33  ;;  %v6243_v40 = vsel %vm3722_vm8, %v6242_v6, %v6238_v37  ;;  %v3021_v19 = vmul.f32 %v12307_v55, %v2749_v59  ;;  %v1455_v3 = vmul.f32 %v7763_v9, %v11076_v35  ;;  %1946 = vadd.xlane.f32.xlu0 %v1469_v36  ;;  %v1855_v10 = vpop.xlane.xlu1 %1854  ;;  %v12375_v23 = vld [vmem:[#allocation201_spill] sm:$0xff] }
 0x43c   : > { %7293 = vrsqrt.f32 %v2225_v27  ;;  %v6247_v1 = vrot.slane %v3297_v5, %v12108_v29  ;;  %v3020_v41 = vmul.f32 %v12330_v17, %v2748_v53  ;;  %v1498_v24 = vmul.f32 %v7764_v45, %v10896_v52  ;;  %v1853_v58 = vpop.xlane.xlu0 %1852  ;;  %v7765_v52 = vld [vmem:[%s7945_s25 + $0x7e8] sm:$0xff] }
 0x43d   : > { %v2227_v0 = vmax.f32 %v12375_v23, 1e-16  ;;  %7295 = vrsqrt.f32 %v2226_v18  ;;  %v3300_v6 = vsub.f32 0.0, %v3021_v19  ;;  %v2751_v59 = vmul.f32 %v7280_v57, %v1855_v10  ;;  %1918 = vadd.xlane.f32.xlu1 %v1455_v3  ;;  %v12376_v19 = vld [vmem:[#allocation215_spill] sm:$0xff] }
 0x43e   : > { %v7286_v63 = vpop.eup %7285  ;;  %7297 = vrsqrt.f32 %v2240_v61  ;;  %v6248_v27 = vsel %vm3729_vm9, %v6247_v1, %v6243_v40  ;;  %v3299_v22 = vsub.f32 0.0, %v3020_v41  ;;  %v2750_v37 = vmul.f32 %v7282_v15, %v1853_v58  ;;  %v7766_v1 = vld [vmem:[%s7945_s25 + $0x770] sm:$0xff] }
 0x43f   : > { %v6262_v36 = vrot.slane %v3300_v6, %v12113_v12  ;;  %v6253_v5 = vsel %vm3736_vm10, %v6252_v26, %v6248_v27  ;;  %v3023_v53 = vmul.f32 %v12115_v28, %v2751_v59  ;;  %v1485_v18 = vmul.f32 %v7765_v52, %v11008_v60  ;;  %2004 = vadd.xlane.f32.xlu0 %v1498_v24  ;;  %v1859_v40 = vpop.xlane.xlu1 %1858  ;;  %v12377_v26 = vld [vmem:[#allocation218_spill] sm:$0xff] }
 0x440   : > { %v2241_v57 = vmax.f32 %v12376_v19, 1e-16  ;;  %v6257_v9 = vrot.slane %v3299_v22, %v12114_v42  ;;  %v3022_v61 = vmul.f32 %v12144_v14, %v2750_v37  ;;  %v1470_v15 = vmul.f32 %v7766_v1, %v11030_v44  ;;  %v7288_v41 = vpop.eup %7287  ;;  %v1857_v23 = vpop.xlane.xlu0 %1856 }
 0x441   : > { %7299 = vrsqrt.f32 %v2212_v32  ;;  %v2242_v10 = vmax.f32 %v12377_v26, 1e-16  ;;  %v3302_v3 = vsub.f32 0.0, %v3023_v53  ;;  %v2753_v45 = vmul.f32 %v7284_v8, %v1859_v40  ;;  %1978 = vadd.xlane.f32.xlu1 %v1485_v18  ;;  %v7767_v32 = vld [vmem:[%s7945_s25 + $0x778] sm:$0xff]  ;;  %v12380_v26 = vld [vmem:[#allocation64_spill] sm:$0xff] }
 0x442   : > { %v7290_v6 = vpop.eup %7289  ;;  %7301 = vrsqrt.f32 %v2227_v0  ;;  %v6258_v59 = vsel %vm3743_vm11, %v6257_v9, %v6253_v5  ;;  %v3301_v58 = vsub.f32 0.0, %v3022_v61  ;;  %v2752_v27 = vmul.f32 %v7286_v63, %v1857_v23  ;;  %v12378_v0 = vld [vmem:[#allocation23_spill] sm:$0xff]  ;;  %v7768_v63 = vld [vmem:[%s7945_s25 + $0x858] sm:$0xff] }
 0x443   : > { %v7292_v24 = vpop.eup %7291  ;;  %v6272_v22 = vrot.slane %v3302_v3, %v12117_v2  ;;  %v6263_v37 = vsel %vm3750_vm12, %v6262_v36, %v6258_v59  ;;  %v3025_v52 = vmul.f32 %v12057_v34, %v2753_v45  ;;  %v1471_v53 = vmul.f32 %v7767_v32, %v11076_v35  ;;  %1948 = vadd.xlane.f32.xlu0 %v1470_v15  ;;  %v1889_v5 = vpop.xlane.xlu1 %1888  ;;  %v12379_v61 = vld [vmem:[#allocation63_spill] sm:$0xff]  ;;  %v7770_v32 = vld [vmem:[%s7945_s25 + $0x7f0] sm:$0xff] }
 0x444   : > { %7303 = vrsqrt.f32 %v2241_v57  ;;  %v6267_v8 = vrot.slane %v3301_v58, %v12355_v51  ;;  %v3024_v19 = vmul.f32 %v12378_v0, %v2752_v27  ;;  %v1499_v9 = vmul.f32 %v7768_v63, %v10941_v54  ;;  %v1861_v18 = vpop.xlane.xlu0 %1860  ;;  %v7769_v54 = vld [vmem:[%s7945_s25 + $0x860] sm:$0xff] }
 0x445   : > { %7305 = vrsqrt.f32 %v2242_v10  ;;  %v2257_v36 = vmax.f32 %v12379_v61, 1e-16  ;;  %v3304_v40 = vsub.f32 0.0, %v3025_v52  ;;  %v2768_v1 = vmul.f32 %v7292_v24, %v1889_v5  ;;  %1950 = vadd.xlane.f32.xlu1 %v1471_v53 }
 0x446   : > { %v2256_v3 = vmax.f32 %v12380_v26, 1e-16  ;;  %v6268_v57 = vsel %vm12360_vm15, %v6267_v8, %v6263_v37  ;;  %v3303_v45 = vsub.f32 0.0, %v3024_v19  ;;  %v2754_v23 = vmul.f32 %v7290_v6, %v1861_v18  ;;  %v12383_v8 = vld [vmem:[#allocation204_spill] sm:$0xff]  ;;  %v12384_v18 = vld [vmem:[#allocation26_spill] sm:$0xff] }
 0x447   : > { %v6273_v15 = vsel %vm12361_vm13, %v6272_v22, %v6268_v57  ;;  %v6281_v59 = vrot.slane %v3304_v40, %v12064_v13  ;;  %v3040_v58 = vmul.f32 %v12378_v0, %v2768_v1  ;;  %v1500_v10 = vmul.f32 %v7769_v54, %v10964_v56  ;;  %2006 = vadd.xlane.f32.xlu0 %v1499_v9  ;;  %v1863_v52 = vpop.xlane.xlu1 %1862  ;;  %v7771_v26 = vld [vmem:[%s7945_s25 + $0x868] sm:$0xff] }
 0x448   : > { %v6277_v27 = vrot.slane %v3303_v45, %v12066_v4  ;;  %v3026_v24 = vmul.f32 %v12257_v21, %v2754_v23  ;;  %v1486_v37 = vmul.f32 %v7770_v32, %v11030_v44  ;;  %vm12381_vm14 = vcmask 1043459   ;;  %v1891_v5 = vpop.xlane.xlu0 %1890 }
 0x449   : > { %v11142_v6 = vsel %vm12381_vm14, %v6273_v15, %v11036_v30  ;;  %v7294_v22 = vpop.eup %7293  ;;  %v12382_v53 = vmax.f32 %v12370_v46, 1e-16  ;;  %v2228_v56 = vmax.f32 %v12383_v8, 1e-16  ;;  %v2755_v19 = vmul.f32 %v7288_v41, %v1863_v52  ;;  %2008 = vadd.xlane.f32.xlu1 %v1500_v10  ;;  %v12385_v10 = vld [vmem:[#allocation217_spill] sm:$0xff] }
 0x44a   : > { %v7296_v63 = vpop.eup %7295  ;;  %v6282_v9 = vsel %vm3666_vm0, %v6281_v59, %v6277_v27  ;;  %v3305_v61 = vsub.f32 0.0, %v3026_v24  ;;  %v2769_v40 = vmul.f32 %v7294_v22, %v1891_v5  ;;  %v1501_v46 = vmul.f32 %v7771_v26, %v11008_v60  ;;  %v12386_v22 = vld [vmem:[#allocation68_spill] sm:$0xff] }
 0x44b   : > { %7307 = vrsqrt.f32 %v12382_v53  ;;  %v7298_v1 = vpop.eup %7297  ;;  %v3027_v30 = vmul.f32 %v12384_v18, %v2755_v19  ;;  %v3319_v57 = vsub.f32 0.0, %v3040_v58  ;;  %1980 = vadd.xlane.f32.xlu0 %v1486_v37  ;;  %v1921_v23 = vpop.xlane.xlu1 %1920  ;;  %v2243_v24 = vmax.f32 %v12385_v10, 1e-16 }
 0x44c   : > { %7309 = vrsqrt.f32 %v2257_v36  ;;  %v6286_v45 = vrot.slane %v3305_v61, %v12342_v62  ;;  %v3041_v41 = vmul.f32 %v12057_v34, %v2769_v40  ;;  %v7772_v36 = vld [vmem:[%s7945_s25 + $0x7f8] sm:$0xff]  ;;  %v1893_v54 = vpop.xlane.xlu0 %1892  ;;  %v2258_v37 = vmax.f32 %v12386_v22, 1e-16 }
 0x44d   : > { %7311 = vrsqrt.f32 %v2256_v3  ;;  %v1487_v15 = vmul.f32 %v7772_v36, %v11076_v35  ;;  %v3306_v59 = vsub.f32 0.0, %v3027_v30  ;;  %v2784_v3 = vmul.f32 %v7298_v1, %v1921_v23  ;;  %2010 = vadd.xlane.f32.xlu1 %v1501_v46  ;;  %v12387_v23 = vld [vmem:[#allocation190_spill] sm:$0xff] }
 0x44e   : > { %7313 = vrsqrt.f32 %v2228_v56  ;;  %v7300_v27 = vpop.eup %7299  ;;  %v6287_v60 = vsel %vm3673_vm1, %v6286_v45, %v6282_v9  ;;  %v3320_v58 = vsub.f32 0.0, %v3041_v41  ;;  %v2770_v52 = vmul.f32 %v7296_v63, %v1893_v54  ;;  %v7773_v56 = vld [vmem:[%s7945_s25 + $0x878] sm:$0xff]  ;;  %v7774_v63 = vld [vmem:[%s7945_s25 + $0x870] sm:$0xff] }
 0x44f   : > { %v7302_v32 = vpop.eup %7301  ;;  %v6291_v53 = vrot.slane %v3306_v59, %v12073_v16  ;;  %v3056_v8 = vmul.f32 %v12378_v0, %v2784_v3  ;;  %v1503_v19 = vmul.f32 %v7773_v56, %v11076_v35  ;;  %v6356_v5 = vrot.slane %v3319_v57, %v12066_v4  ;;  %1982 = vadd.xlane.f32.xlu0 %v1487_v15  ;;  %v1865_v9 = vpop.xlane.xlu1 %1864  ;;  %v12388_v3 = vld [vmem:[#allocation203_spill] sm:$0xff] }
 0x450   : > { %v6360_v61 = vrot.slane %v3320_v58, %v12064_v13  ;;  %v3042_v40 = vmul.f32 %v12257_v21, %v2770_v52  ;;  %v1502_v1 = vmul.f32 %v7774_v63, %v11030_v44  ;;  %v2756_v45 = vmul.f32 %v7300_v27, %v1865_v9  ;;  %v1923_v41 = vpop.xlane.xlu0 %1922  ;;  %v12390_v63 = vld [vmem:[#allocation220_spill] sm:$0xff] }
 0x451   : > { %v7304_v30 = vpop.eup %7303  ;;  %v6292_v26 = vsel %vm3680_vm2, %v6291_v53, %v6287_v60  ;;  %v2214_v36 = vmax.f32 %v12387_v23, 1e-16  ;;  %v2229_v54 = vmax.f32 %v12388_v3, 1e-16  ;;  %7315 = vrsqrt.f32 %v2258_v37  ;;  %2014 = vadd.xlane.f32.xlu1 %v1503_v19  ;;  %v12389_v19 = vld [vmem:[#allocation67_spill] sm:$0xff] }
 0x452   : > { %v7306_v46 = vpop.eup %7305  ;;  %v6361_v35 = vsel %vm3666_vm0, %v6360_v61, %v6356_v5  ;;  %v3321_v57 = vsub.f32 0.0, %v3042_v40  ;;  %v2785_v59 = vmul.f32 %v7304_v30, %v1923_v41  ;;  %v3028_v15 = vmul.f32 %v12365_v38, %v2756_v45 }
 0x453   : > { %7317 = vrsqrt.f32 %v2243_v24  ;;  %v3335_v44 = vsub.f32 0.0, %v3056_v8  ;;  %2012 = vadd.xlane.f32.xlu0 %v1502_v1  ;;  %v1925_v60 = vpop.xlane.xlu1 %1924  ;;  %v2259_v24 = vmax.f32 %v12389_v19, 1e-16  ;;  %v2244_v1 = vmax.f32 %v12390_v63, 1e-16 }
 0x454   : > { %v6365_v10 = vrot.slane %v3321_v57, %v12342_v62  ;;  %v3057_v27 = vmul.f32 %v12057_v34, %v2785_v59  ;;  %v3307_v58 = vsub.f32 0.0, %v3028_v15  ;;  %v2786_v52 = vmul.f32 %v7306_v46, %v1925_v60  ;;  %v1895_v22 = vpop.xlane.xlu0 %1894  ;;  %v12391_v15 = vld [vmem:[#allocation95_spill] sm:$0xff]  ;;  %v12392_v60 = vld [vmem:[#allocation96_spill] sm:$0xff] }
 0x455   : > { %7319 = vrsqrt.f32 %v2214_v36  ;;  %v2771_v37 = vmul.f32 %v7302_v32, %v1895_v22  ;;  %v6435_v30 = vrot.slane %v3335_v44, %v12066_v4 }
 0x456   : > { %v6366_v56 = vsel %vm3673_vm1, %v6365_v10, %v6361_v35  ;;  %v3336_v5 = vsub.f32 0.0, %v3057_v27  ;;  %7321 = vrsqrt.f32 %v2229_v54  ;;  %v6296_v8 = vrot.slane %v3307_v58, %v12085_v48 }
 0x457   : > { %v3058_v40 = vmul.f32 %v12257_v21, %v2786_v52  ;;  %v3043_v41 = vmul.f32 %v12384_v18, %v2771_v37  ;;  %v1955_v46 = vpop.xlane.xlu1 %1954  ;;  %7323 = vrsqrt.f32 %v2259_v24  ;;  %v2273_v10 = vmax.f32 %v12391_v15, 1e-16 }
 0x458   : > { %v7308_v53 = vpop.eup %7307  ;;  %v6439_v45 = vrot.slane %v3336_v5, %v12064_v13  ;;  %v6297_v32 = vsel %vm3687_vm3, %v6296_v8, %v6292_v26  ;;  %v1953_v35 = vpop.xlane.xlu0 %1952  ;;  %7325 = vrsqrt.f32 %v2244_v1  ;;  %v2272_v58 = vmax.f32 %v12392_v60, 1e-16 }
 0x459   : > { %v7310_v61 = vpop.eup %7309  ;;  %v3337_v23 = vsub.f32 0.0, %v3058_v40  ;;  %v3322_v3 = vsub.f32 0.0, %v3043_v41  ;;  %7327 = vrsqrt.f32 %v2273_v10  ;;  %v12394_v41 = vld [vmem:[#allocation189_spill] sm:$0xff] }
 0x45a   : > { %v7312_v9 = vpop.eup %7311  ;;  %v2801_v36 = vmul.f32 %v7310_v61, %v1955_v46  ;;  %v6440_v59 = vsel %vm3666_vm0, %v6439_v45, %v6435_v30  ;;  %v2215_v46 = vmax.f32 %v12394_v41, 1e-16  ;;  %7329 = vrsqrt.f32 %v2272_v58  ;;  %v12397_v41 = vld [vmem:[#allocation192_spill] sm:$0xff] }
 0x45b   : > { %v7314_v57 = vpop.eup %7313  ;;  %v2800_v54 = vmul.f32 %v7312_v9, %v1953_v35  ;;  %v6444_v44 = vrot.slane %v3337_v23, %v12342_v62  ;;  %v6370_v26 = vrot.slane %v3322_v3, %v12073_v16  ;;  %v1897_v22 = vpop.xlane.xlu1 %1896  ;;  %v12393_v9 = vld [vmem:[#allocation206_spill] sm:$0xff] }
 0x45c   : > { %v3073_v27 = vmul.f32 %v12057_v34, %v2801_v36  ;;  %v2772_v61 = vmul.f32 %v7314_v57, %v1897_v22  ;;  %v1867_v19 = vpop.xlane.xlu0 %1866  ;;  %v2230_v63 = vmax.f32 %v12393_v9, 1e-16 }
 0x45d   : > { %v3072_v52 = vmul.f32 %v12378_v0, %v2800_v54  ;;  %v6445_v5 = vsel %vm3673_vm1, %v6444_v44, %v6440_v59  ;;  %v6371_v24 = vsel %vm3680_vm2, %v6370_v26, %v6366_v56  ;;  %v2757_v40 = vmul.f32 %v7308_v53, %v1867_v19  ;;  %v12395_v44 = vld [vmem:[#allocation72_spill] sm:$0xff] }
 0x45e   : > { %v3352_v37 = vsub.f32 0.0, %v3073_v27  ;;  %v3044_v30 = vmul.f32 %v12365_v38, %v2772_v61  ;;  %v7316_v45 = vpop.eup %7315  ;;  %7331 = vrsqrt.f32 %v2230_v63  ;;  %v2260_v27 = vmax.f32 %v12395_v44, 1e-16 }
 0x45f   : > { %v3351_v8 = vsub.f32 0.0, %v3072_v52  ;;  %v3029_v36 = vmul.f32 %v12263_v39, %v2757_v40  ;;  %v1957_v35 = vpop.xlane.xlu1 %1956  ;;  %7333 = vrsqrt.f32 %v2215_v46  ;;  %v12396_v52 = vld [vmem:[#allocation219_spill] sm:$0xff] }
 0x460   : > { %v6518_v1 = vrot.slane %v3352_v37, %v12064_v13  ;;  %v7318_v57 = vpop.eup %7317  ;;  %v3323_v56 = vsub.f32 0.0, %v3044_v30  ;;  %v2802_v59 = vmul.f32 %v7316_v45, %v1957_v35  ;;  %v1927_v53 = vpop.xlane.xlu0 %1926  ;;  %v2245_v22 = vmax.f32 %v12396_v52, 1e-16 }
 0x461   : > { %v6514_v23 = vrot.slane %v3351_v8, %v12066_v4  ;;  %v3308_v54 = vsub.f32 0.0, %v3029_v36  ;;  %v2787_v15 = vmul.f32 %v7318_v57, %v1927_v53  ;;  %7335 = vrsqrt.f32 %v2260_v27  ;;  %v12398_v57 = vld [vmem:[#allocation100_spill] sm:$0xff] }
 0x462   : > { %v7320_v10 = vpop.eup %7319  ;;  %v6375_v60 = vrot.slane %v3323_v56, %v12085_v48  ;;  %v3074_v58 = vmul.f32 %v12257_v21, %v2802_v59  ;;  %7337 = vrsqrt.f32 %v2245_v22  ;;  %v2274_v56 = vmax.f32 %v12398_v57, 1e-16  ;;  %v12401_v57 = vld [vmem:[#allocation99_spill] sm:$0xff] }
 0x463   : > { %v6519_v3 = vsel %vm3666_vm0, %v6518_v1, %v6514_v23  ;;  %v7322_v26 = vpop.eup %7321  ;;  %v6301_v37 = vrot.slane %v3308_v54, %v12083_v43  ;;  %v3059_v61 = vmul.f32 %v12384_v18, %v2787_v15  ;;  %v1899_v19 = vpop.xlane.xlu1 %1898  ;;  %v2216_v23 = vmax.f32 %v12397_v41, 1e-16 }
 0x464   : > { %v6376_v8 = vsel %vm3687_vm3, %v6375_v60, %v6371_v24  ;;  %v3353_v40 = vsub.f32 0.0, %v3074_v58  ;;  %v2773_v9 = vmul.f32 %v7322_v26, %v1899_v19  ;;  %v1869_v63 = vpop.xlane.xlu0 %1868  ;;  %v7324_v35 = vpop.eup %7323  ;;  %v12399_v26 = vld [vmem:[#allocation222_spill] sm:$0xff]  ;;  %v12400_v19 = vld [vmem:[#allocation205_spill] sm:$0xff] }
 0x465   : > { %v6302_v1 = vsel %vm3694_vm4, %v6301_v37, %v6297_v32  ;;  %v3338_v30 = vsub.f32 0.0, %v3059_v61  ;;  %v2758_v45 = vmul.f32 %v7320_v10, %v1869_v63  ;;  %v7326_v54 = vpop.eup %7325  ;;  %7339 = vrsqrt.f32 %v2216_v23 }
 0x466   : > { %v6523_v46 = vrot.slane %v3353_v40, %v12342_v62  ;;  %v3045_v36 = vmul.f32 %v12263_v39, %v2773_v9  ;;  %v2246_v52 = vmax.f32 %v12399_v26, 1e-16  ;;  %v7328_v61 = vpop.eup %7327  ;;  %v2231_v40 = vmax.f32 %v12400_v19, 1e-16 }
 0x467   : > { %v6449_v24 = vrot.slane %v3338_v30, %v12073_v16  ;;  %v3030_v59 = vmul.f32 %v12089_v25, %v2758_v45  ;;  %v1959_v53 = vpop.xlane.xlu1 %1958  ;;  %7341 = vrsqrt.f32 %v2274_v56  ;;  %v7330_v30 = vpop.eup %7329 }
 0x468   : > { %v6524_v32 = vsel %vm3673_vm1, %v6523_v46, %v6519_v3  ;;  %v3324_v15 = vsub.f32 0.0, %v3045_v36  ;;  %v2803_v10 = vmul.f32 %v7324_v35, %v1959_v53  ;;  %v1929_v44 = vpop.xlane.xlu0 %1928  ;;  %7343 = vrsqrt.f32 %v2246_v52 }
 0x469   : > { %v6450_v27 = vsel %vm3680_vm2, %v6449_v24, %v6445_v5  ;;  %v3309_v60 = vsub.f32 0.0, %v3030_v59  ;;  %v2788_v58 = vmul.f32 %v7326_v54, %v1929_v44  ;;  %v2275_v24 = vmax.f32 %v12401_v57, 1e-16  ;;  %v12402_v54 = vld [vmem:[#allocation71_spill] sm:$0xff] }
 0x46a   : > { %v6380_v22 = vrot.slane %v3324_v15, %v12083_v43  ;;  %v3075_v37 = vmul.f32 %v12384_v18, %v2803_v10  ;;  %7345 = vrsqrt.f32 %v2231_v40  ;;  %v2261_v15 = vmax.f32 %v12402_v54, 1e-16 }
 0x46b   : > { %v6306_v3 = vrot.slane %v3309_v60, %v12092_v11  ;;  %v3060_v9 = vmul.f32 %v12365_v38, %v2788_v58  ;;  %v1987_v63 = vpop.xlane.xlu1 %1986  ;;  %v7332_v53 = vpop.eup %7331  ;;  %7347 = vrsqrt.f32 %v2275_v24 }
 0x46c   : > { %v6381_v5 = vsel %vm3694_vm4, %v6380_v22, %v6376_v8  ;;  %v3354_v45 = vsub.f32 0.0, %v3075_v37  ;;  %v2817_v41 = vmul.f32 %v7328_v61, %v1987_v63  ;;  %v1985_v23 = vpop.xlane.xlu0 %1984  ;;  %v7334_v60 = vpop.eup %7333  ;;  %7349 = vrsqrt.f32 %v2261_v15 }
 0x46d   : > { %v6307_v46 = vsel %vm3701_vm5, %v6306_v3, %v6302_v1  ;;  %v3339_v36 = vsub.f32 0.0, %v3060_v9  ;;  %v2816_v35 = vmul.f32 %v7330_v30, %v1985_v23 }
 0x46e   : > { %v6528_v56 = vrot.slane %v3354_v45, %v12073_v16  ;;  %v3089_v59 = vmul.f32 %v12057_v34, %v2817_v41  ;;  %v12403_v34 = vld [vmem:[#allocation208_spill] sm:$0xff]  ;;  %v7336_v9 = vpop.eup %7335 }
 0x46f   : > { %v6454_v8 = vrot.slane %v3339_v36, %v12085_v48  ;;  %v3088_v10 = vmul.f32 %v12378_v0, %v2816_v35  ;;  %v1901_v44 = vpop.xlane.xlu1 %1900  ;;  %v2232_v19 = vmax.f32 %v12403_v34, 1e-16  ;;  %v12404_v0 = vld [vmem:[#allocation191_spill] sm:$0xff]  ;;  %v7338_v41 = vpop.eup %7337 }
 0x470   : > { %v6529_v1 = vsel %vm3680_vm2, %v6528_v56, %v6524_v32  ;;  %v3368_v58 = vsub.f32 0.0, %v3089_v59  ;;  %v2774_v26 = vmul.f32 %v7332_v53, %v1901_v44  ;;  %v1871_v52 = vpop.xlane.xlu0 %1870  ;;  %v2217_v63 = vmax.f32 %v12404_v0, 1e-16 }
 0x471   : > { %v6455_v22 = vsel %vm3687_vm3, %v6454_v8, %v6450_v27  ;;  %v3367_v37 = vsub.f32 0.0, %v3088_v10  ;;  %v2759_v61 = vmul.f32 %v7334_v60, %v1871_v52  ;;  %7351 = vrsqrt.f32 %v2232_v19 }
 0x472   : > { %v6597_v40 = vrot.slane %v3368_v58, %v12064_v13  ;;  %v3046_v3 = vmul.f32 %v12089_v25, %v2774_v26  ;;  %v12405_v13 = vld [vmem:[#allocation76_spill] sm:$0xff]  ;;  %v7340_v54 = vpop.eup %7339  ;;  %7353 = vrsqrt.f32 %v2217_v63 }
 0x473   : > { %v6593_v32 = vrot.slane %v3367_v37, %v12066_v4  ;;  %v3031_v30 = vmul.f32 %v12087_v47, %v2759_v61  ;;  %v1961_v45 = vpop.xlane.xlu1 %1960  ;;  %v2262_v56 = vmax.f32 %v12405_v13, 1e-16  ;;  %v12406_v4 = vld [vmem:[#allocation221_spill] sm:$0xff] }
 0x474   : > { %v3325_v27 = vsub.f32 0.0, %v3046_v3  ;;  %v2804_v23 = vmul.f32 %v7336_v9, %v1961_v45  ;;  %v1931_v36 = vpop.xlane.xlu0 %1930  ;;  %v2247_v15 = vmax.f32 %v12406_v4, 1e-16  ;;  %v7342_v60 = vpop.eup %7341 }
 0x475   : > { %v6598_v35 = vsel %vm3666_vm0, %v6597_v40, %v6593_v32  ;;  %v3310_v57 = vsub.f32 0.0, %v3031_v30  ;;  %v2789_v24 = vmul.f32 %v7338_v41, %v1931_v36  ;;  %v12407_v40 = vld [vmem:[#allocation194_spill] sm:$0xff]  ;;  %7355 = vrsqrt.f32 %v2262_v56  ;;  %v7344_v63 = vpop.eup %7343  ;;  %v12408_v32 = vld [vmem:[#allocation104_spill] sm:$0xff]  ;;  %vm12443_vm0 = vmmov %vm12360_vm15 }
 0x476   : > { %v6385_v59 = vrot.slane %v3325_v27, %v12092_v11  ;;  %v3076_v53 = vmul.f32 %v12365_v38, %v2804_v23  ;;  %v2218_v3 = vmax.f32 %v12407_v40, 1e-16  ;;  %7357 = vrsqrt.f32 %v2247_v15  ;;  %vm12464_vm15 = vmmov %vm12443_vm0 }
 0x477   : > { %v6311_v8 = vrot.slane %v3310_v57, %v12091_v31  ;;  %v3061_v10 = vmul.f32 %v12263_v39, %v2789_v24  ;;  %v1873_v44 = vpop.xlane.xlu1 %1872  ;;  %v2276_v30 = vmax.f32 %v12408_v32, 1e-16  ;;  %v7346_v27 = vpop.eup %7345  ;;  %v12412_v32 = vld [vmem:[#allocation75_spill] sm:$0xff] }
 0x478   : > { %v6386_v58 = vsel %vm3701_vm5, %v6385_v59, %v6381_v5  ;;  %v3355_v26 = vsub.f32 0.0, %v3076_v53  ;;  %v2760_v52 = vmul.f32 %v7340_v54, %v1873_v44  ;;  %v1989_v37 = vpop.xlane.xlu0 %1988  ;;  %7359 = vrsqrt.f32 %v2218_v3  ;;  %v12409_v59 = vld [vmem:[#allocation48_spill] sm:$0xff]  ;;  %v7348_v15 = vpop.eup %7347  ;;  %v12411_v3 = vld [vmem:[#allocation103_spill] sm:$0xff] }
 0x479   : > { %v6312_v61 = vsel %vm3708_vm6, %v6311_v8, %v6307_v46  ;;  %v3340_v34 = vsub.f32 0.0, %v3061_v10  ;;  %v2818_v19 = vmul.f32 %v7342_v60, %v1989_v37  ;;  %v2248_v53 = vmax.f32 %v12409_v59, 1e-16  ;;  %v7350_v60 = vpop.eup %7349 }
 0x47a   : > { %v6533_v9 = vrot.slane %v3355_v26, %v12085_v48  ;;  %v3032_v0 = vmul.f32 %v12160_v7, %v2760_v52  ;;  %7361 = vrsqrt.f32 %v2276_v30  ;;  %v2263_v30 = vmax.f32 %v12412_v32, 1e-16 }
 0x47b   : > { %v6459_v5 = vrot.slane %v3340_v34, %v12083_v43  ;;  %v3090_v45 = vmul.f32 %v12257_v21, %v2818_v19  ;;  %v1933_v41 = vpop.xlane.xlu1 %1932  ;;  %v12410_v21 = vld [vmem:[#allocation207_spill] sm:$0xff]  ;;  %7363 = vrsqrt.f32 %v2248_v53 }
 0x47c   : > { %v6534_v46 = vsel %vm3687_vm3, %v6533_v9, %v6529_v1  ;;  %v3311_v23 = vsub.f32 0.0, %v3032_v0  ;;  %v2790_v36 = vmul.f32 %v7344_v63, %v1933_v41  ;;  %v1903_v57 = vpop.xlane.xlu0 %1902  ;;  %v2233_v8 = vmax.f32 %v12410_v21, 1e-16 }
 0x47d   : > { %v6460_v24 = vsel %vm3694_vm4, %v6459_v5, %v6455_v22  ;;  %v3369_v13 = vsub.f32 0.0, %v3090_v45  ;;  %v2775_v56 = vmul.f32 %v7346_v27, %v1903_v57  ;;  %v2277_v9 = vmax.f32 %v12411_v3, 1e-16 }
 0x47e   : > { %v6316_v54 = vrot.slane %v3311_v23, %v12102_v20  ;;  %v3062_v4 = vmul.f32 %v12089_v25, %v2790_v36  ;;  %v7352_v63 = vpop.eup %7351  ;;  %7365 = vrsqrt.f32 %v2233_v8 }
 0x47f   : > { %v6602_v1 = vrot.slane %v3369_v13, %v12342_v62  ;;  %v3047_v10 = vmul.f32 %v12087_v47, %v2775_v56  ;;  %v1991_v44 = vpop.xlane.xlu1 %1990  ;;  %v7354_v41 = vpop.eup %7353  ;;  %7367 = vrsqrt.f32 %v2277_v9 }
 0x480   : > { %v6317_v22 = vsel %vm3715_vm7, %v6316_v54, %v6312_v61  ;;  %v3341_v26 = vsub.f32 0.0, %v3062_v4  ;;  %v2819_v52 = vmul.f32 %v7348_v15, %v1991_v44  ;;  %v1963_v37 = vpop.xlane.xlu0 %1962  ;;  %v12414_v15 = vld [vmem:[#allocation193_spill] sm:$0xff]  ;;  %7369 = vrsqrt.f32 %v2263_v30 }
 0x481   : > { %v6603_v34 = vsel %vm3673_vm1, %v6602_v1, %v6598_v35  ;;  %v3326_v19 = vsub.f32 0.0, %v3047_v10  ;;  %v2805_v40 = vmul.f32 %v7350_v60, %v1963_v37  ;;  %v2219_v21 = vmax.f32 %v12414_v15, 1e-16  ;;  %vm12450_vm1 = vmmov %vm12443_vm0 }
 0x482   : > { %v6464_v0 = vrot.slane %v3341_v26, %v12092_v11  ;;  %v3091_v62 = vmul.f32 %v12384_v18, %v2819_v52  ;;  %v12413_v18 = vld [vmem:[#allocation210_spill] sm:$0xff]  ;;  %v7356_v4 = vpop.eup %7355 }
 0x483   : > { %v6390_v61 = vrot.slane %v3326_v19, %v12091_v31  ;;  %v3077_v5 = vmul.f32 %v12263_v39, %v2805_v40  ;;  %v1905_v45 = vpop.xlane.xlu1 %1904  ;;  %v2234_v59 = vmax.f32 %v12413_v18, 1e-16  ;;  %v7358_v10 = vpop.eup %7357  ;;  %v12415_v19 = vld [vmem:[#allocation80_spill] sm:$0xff] }
 0x484   : > { %v6465_v35 = vsel %vm3701_vm5, %v6464_v0, %v6460_v24  ;;  %v3370_v27 = vsub.f32 0.0, %v3091_v62  ;;  %v2776_v23 = vmul.f32 %v7352_v63, %v1905_v45  ;;  %v1875_v36 = vpop.xlane.xlu0 %1874  ;;  %v2264_v40 = vmax.f32 %v12415_v19, 1e-16  ;;  %v12416_v62 = vld [vmem:[#allocation47_spill] sm:$0xff] }
 0x485   : > { %v6391_v57 = vsel %vm3708_vm6, %v6390_v61, %v6386_v58  ;;  %v3356_v13 = vsub.f32 0.0, %v3077_v5  ;;  %v2761_v56 = vmul.f32 %v7354_v41, %v1875_v36  ;;  %7371 = vrsqrt.f32 %v2234_v59  ;;  %v7360_v0 = vpop.eup %7359  ;;  %v12418_v59 = vld [vmem:[#allocation37_spill] sm:$0xff] }
 0x486   : > { %v6607_v53 = vrot.slane %v3370_v27, %v12073_v16  ;;  %v3048_v54 = vmul.f32 %v12160_v7, %v2776_v23  ;;  %7373 = vrsqrt.f32 %v2219_v21  ;;  %v2249_v63 = vmax.f32 %v12416_v62, 1e-16 }
 0x487   : > { %v6538_v24 = vrot.slane %v3356_v13, %v12083_v43  ;;  %v3033_v8 = vmul.f32 %v12159_v49, %v2761_v56  ;;  %v1965_v1 = vpop.xlane.xlu1 %1964  ;;  %v7362_v61 = vpop.eup %7361  ;;  %v12417_v13 = vld [vmem:[#allocation196_spill] sm:$0xff]  ;;  %7375 = vrsqrt.f32 %v2264_v40 }
 0x488   : > { %v6608_v58 = vsel %vm3680_vm2, %v6607_v53, %v6603_v34  ;;  %v3327_v44 = vsub.f32 0.0, %v3048_v54  ;;  %v2806_v60 = vmul.f32 %v7356_v4, %v1965_v1  ;;  %v1935_v26 = vpop.xlane.xlu0 %1934  ;;  %v2220_v56 = vmax.f32 %v12417_v13, 1e-16  ;;  %v7364_v54 = vpop.eup %7363  ;;  %v12419_v4 = vld [vmem:[#allocation108_spill] sm:$0xff]  ;;  %vm12451_vm2 = vmmov %vm12361_vm13 }
 0x489   : > { %v6539_v52 = vsel %vm3694_vm4, %v6538_v24, %v6534_v46  ;;  %v3312_v16 = vsub.f32 0.0, %v3033_v8  ;;  %v2791_v37 = vmul.f32 %v7358_v10, %v1935_v26  ;;  %7377 = vrsqrt.f32 %v2249_v63  ;;  %vm12465_vm13 = vmmov %vm12451_vm2 }
 0x48a   : > { %v6395_v3 = vrot.slane %v3327_v44, %v12102_v20  ;;  %v3078_v9 = vmul.f32 %v12089_v25, %v2806_v60  ;;  %v2278_v15 = vmax.f32 %v12419_v4, 1e-16  ;;  %7379 = vrsqrt.f32 %v2220_v56 }
 0x48b   : > { %v6321_v34 = vrot.slane %v3312_v16, %v12100_v50  ;;  %v3063_v32 = vmul.f32 %v12087_v47, %v2791_v37  ;;  %v1877_v30 = vpop.xlane.xlu1 %1876  ;;  %v7366_v8 = vpop.eup %7365  ;;  %v12420_v37 = vld [vmem:[#allocation52_spill] sm:$0xff] }
 0x48c   : > { %v6396_v46 = vsel %vm3715_vm7, %v6395_v3, %v6391_v57  ;;  %v3357_v5 = vsub.f32 0.0, %v3078_v9  ;;  %v2762_v45 = vmul.f32 %v7360_v0, %v1877_v30  ;;  %v1993_v41 = vpop.xlane.xlu0 %1992  ;;  %v2250_v19 = vmax.f32 %v12420_v37, 1e-16  ;;  %v7368_v9 = vpop.eup %7367 }
 0x48d   : > { %v6322_v27 = vsel %vm3722_vm8, %v6321_v34, %v6317_v22  ;;  %v3342_v23 = vsub.f32 0.0, %v3063_v32  ;;  %v2820_v36 = vmul.f32 %v7362_v61, %v1993_v41  ;;  %7381 = vrsqrt.f32 %v2278_v15  ;;  %v7370_v34 = vpop.eup %7369 }
 0x48e   : > { %v6543_v18 = vrot.slane %v3357_v5, %v12092_v11  ;;  %v3034_v53 = vmul.f32 %v12418_v59, %v2762_v45  ;;  %7383 = vrsqrt.f32 %v2250_v19  ;;  %v12425_v19 = vld [vmem:[#allocation195_spill] sm:$0xff] }
 0x48f   : > { %v6469_v57 = vrot.slane %v3342_v23, %v12091_v31  ;;  %v3092_v21 = vmul.f32 %v12365_v38, %v2820_v36  ;;  %v1937_v24 = vpop.xlane.xlu1 %1936  ;;  %v12421_v38 = vld [vmem:[#allocation209_spill] sm:$0xff]  ;;  %v12422_v23 = vld [vmem:[#allocation107_spill] sm:$0xff] }
 0x490   : > { %v6544_v22 = vsel %vm3701_vm5, %v6543_v18, %v6539_v52  ;;  %v3313_v1 = vsub.f32 0.0, %v3034_v53  ;;  %v2792_v10 = vmul.f32 %v7364_v54, %v1937_v24  ;;  %v1907_v44 = vpop.xlane.xlu0 %1906  ;;  %v2235_v0 = vmax.f32 %v12421_v38, 1e-16  ;;  %v12423_v18 = vld [vmem:[#allocation79_spill] sm:$0xff] }
 0x491   : > { %v6470_v60 = vsel %vm3708_vm6, %v6469_v57, %v6465_v35  ;;  %v3371_v26 = vsub.f32 0.0, %v3092_v21  ;;  %v2777_v16 = vmul.f32 %v7366_v8, %v1907_v44  ;;  %v2279_v36 = vmax.f32 %v12422_v23, 1e-16 }
 0x492   : > { %v6326_v40 = vrot.slane %v3313_v1, %v12108_v29  ;;  %v3064_v3 = vmul.f32 %v12160_v7, %v2792_v10  ;;  %v7372_v56 = vpop.eup %7371  ;;  %7385 = vrsqrt.f32 %v2235_v0  ;;  %v2265_v53 = vmax.f32 %v12423_v18, 1e-16 }
 0x493   : > { %v6612_v52 = vrot.slane %v3371_v26, %v12085_v48  ;;  %v3049_v62 = vmul.f32 %v12159_v49, %v2777_v16  ;;  %v1995_v63 = vpop.xlane.xlu1 %1994  ;;  %v7374_v15 = vpop.eup %7373  ;;  %7387 = vrsqrt.f32 %v2279_v36  ;;  %v12428_v36 = vld [vmem:[#allocation51_spill] sm:$0xff] }
 0x494   : > { %v6327_v35 = vsel %vm3729_vm9, %v6326_v40, %v6322_v27  ;;  %v3343_v32 = vsub.f32 0.0, %v3064_v3  ;;  %v2821_v30 = vmul.f32 %v7368_v9, %v1995_v63  ;;  %v1967_v61 = vpop.xlane.xlu0 %1966  ;;  %v7376_v37 = vpop.eup %7375  ;;  %v2221_v40 = vmax.f32 %v12425_v19, 1e-16  ;;  %v12426_v3 = vld [vmem:[#allocation36_spill] sm:$0xff] }
 0x495   : > { %v6613_v5 = vsel %vm3687_vm3, %v6612_v52, %v6608_v58  ;;  %v3328_v45 = vsub.f32 0.0, %v3049_v62  ;;  %v2807_v41 = vmul.f32 %v7370_v34, %v1967_v61  ;;  %7389 = vrsqrt.f32 %v2265_v53 }
 0x496   : > { %v6474_v13 = vrot.slane %v3343_v32, %v12102_v20  ;;  %v3093_v48 = vmul.f32 %v12263_v39, %v2821_v30  ;;  %v12424_v39 = vld [vmem:[#allocation212_spill] sm:$0xff]  ;;  %v7378_v0 = vpop.eup %7377  ;;  %vm12453_vm3 = vcmask 1044484  }
 0x497   : > { %v6400_v27 = vrot.slane %v3328_v45, %v12100_v50  ;;  %v3079_v54 = vmul.f32 %v12087_v47, %v2807_v41  ;;  %v1909_v4 = vpop.xlane.xlu1 %1908  ;;  %v2236_v44 = vmax.f32 %v12424_v39, 1e-16  ;;  %v12427_v30 = vld [vmem:[#allocation84_spill] sm:$0xff]  ;;  %v7380_v23 = vpop.eup %7379 }
 0x498   : > { %v6475_v58 = vsel %vm3715_vm7, %v6474_v13, %v6470_v60  ;;  %v3372_v57 = vsub.f32 0.0, %v3093_v48  ;;  %v2778_v21 = vmul.f32 %v7372_v56, %v1909_v4  ;;  %v1879_v24 = vpop.xlane.xlu0 %1878  ;;  %v2266_v61 = vmax.f32 %v12427_v30, 1e-16 }
 0x499   : > { %v6401_v8 = vsel %vm3722_vm8, %v6400_v27, %v6396_v46  ;;  %v3358_v1 = vsub.f32 0.0, %v3079_v54  ;;  %v2763_v10 = vmul.f32 %v7374_v15, %v1879_v24  ;;  %7391 = vrsqrt.f32 %v2236_v44  ;;  %v12430_v44 = vld [vmem:[#allocation112_spill] sm:$0xff] }
 0x49a   : > { %v6617_v26 = vrot.slane %v3372_v57, %v12083_v43  ;;  %v3050_v16 = vmul.f32 %v12418_v59, %v2778_v21  ;;  %7393 = vrsqrt.f32 %v2221_v40  ;;  %v2251_v13 = vmax.f32 %v12428_v36, 1e-16  ;;  %v7382_v18 = vpop.eup %7381  ;;  %v12429_v21 = vld [vmem:[#allocation198_spill] sm:$0xff] }
 0x49b   : > { %v6548_v60 = vrot.slane %v3358_v1, %v12091_v31  ;;  %v3035_v9 = vmul.f32 %v12426_v3, %v2763_v10  ;;  %v1969_v38 = vpop.xlane.xlu1 %1968  ;;  %v2222_v24 = vmax.f32 %v12429_v21, 1e-16  ;;  %7395 = vrsqrt.f32 %v2266_v61  ;;  %v7384_v39 = vpop.eup %7383 }
 0x49c   : > { %v6618_v46 = vsel %vm3694_vm4, %v6617_v26, %v6613_v5  ;;  %v3329_v52 = vsub.f32 0.0, %v3050_v16  ;;  %v2808_v62 = vmul.f32 %v7376_v37, %v1969_v38  ;;  %v1939_v63 = vpop.xlane.xlu0 %1938  ;;  %7397 = vrsqrt.f32 %v2251_v13  ;;  %vm12455_vm4 = vmmov %vm12451_vm2 }
 0x49d   : > { %v6549_v34 = vsel %vm3708_vm6, %v6548_v60, %v6544_v22  ;;  %v3314_v43 = vsub.f32 0.0, %v3035_v9  ;;  %v2793_v32 = vmul.f32 %v7378_v0, %v1939_v63  ;;  %v2280_v26 = vmax.f32 %v12430_v44, 1e-16 }
 0x49e   : > { %v6405_v45 = vrot.slane %v3329_v52, %v12108_v29  ;;  %v3080_v41 = vmul.f32 %v12160_v7, %v2808_v62  ;;  %7399 = vrsqrt.f32 %v2222_v24  ;;  %v12431_v62 = vld [vmem:[#allocation56_spill] sm:$0xff] }
 0x49f   : > { %v6331_v5 = vrot.slane %v3314_v43, %v12107_v33  ;;  %v3065_v48 = vmul.f32 %v12159_v49, %v2793_v32  ;;  %v1881_v56 = vpop.xlane.xlu1 %1880  ;;  %v7386_v19 = vpop.eup %7385  ;;  %v2252_v63 = vmax.f32 %v12431_v62, 1e-16  ;;  %7401 = vrsqrt.f32 %v2280_v26 }
 0x4a0   : > { %v6406_v22 = vsel %vm3729_vm9, %v6405_v45, %v6401_v8  ;;  %v3359_v53 = vsub.f32 0.0, %v3080_v41  ;;  %v2764_v27 = vmul.f32 %v7380_v23, %v1881_v56  ;;  %v1997_v54 = vpop.xlane.xlu0 %1996  ;;  %v7388_v30 = vpop.eup %7387 }
 0x4a1   : > { %v6332_v4 = vsel %vm3736_vm10, %v6331_v5, %v6327_v35  ;;  %v3344_v15 = vsub.f32 0.0, %v3065_v48  ;;  %v2822_v57 = vmul.f32 %v7382_v18, %v1997_v54  ;;  %7403 = vrsqrt.f32 %v2252_v63 }
 0x4a2   : > { %v6553_v1 = vrot.slane %v3359_v53, %v12102_v20  ;;  %v3036_v10 = vmul.f32 %v12330_v17, %v2764_v27  ;;  %v7390_v23 = vpop.eup %7389  ;;  %v12433_v53 = vld [vmem:[#allocation111_spill] sm:$0xff] }
 0x4a3   : > { %v6479_v8 = vrot.slane %v3344_v15, %v12100_v50  ;;  %v3094_v16 = vmul.f32 %v12089_v25, %v2822_v57  ;;  %v1941_v37 = vpop.xlane.xlu1 %1940  ;;  %v12432_v25 = vld [vmem:[#allocation211_spill] sm:$0xff]  ;;  %v2281_v27 = vmax.f32 %v12433_v53, 1e-16 }
 0x4a4   : > { %v6554_v35 = vsel %vm3715_vm7, %v6553_v1, %v6549_v34  ;;  %v3315_v40 = vsub.f32 0.0, %v3036_v10  ;;  %v2794_v60 = vmul.f32 %v7384_v39, %v1941_v37  ;;  %v1911_v9 = vpop.xlane.xlu0 %1910  ;;  %v2237_v61 = vmax.f32 %v12432_v25, 1e-16  ;;  %v12434_v57 = vld [vmem:[#allocation83_spill] sm:$0xff] }
 0x4a5   : > { %v6480_v38 = vsel %vm3722_vm8, %v6479_v8, %v6475_v58  ;;  %v3373_v0 = vsub.f32 0.0, %v3094_v16  ;;  %v2779_v52 = vmul.f32 %v7386_v19, %v1911_v9  ;;  %v2267_v21 = vmax.f32 %v12434_v57, 1e-16 }
 0x4a6   : > { %v6336_v43 = vrot.slane %v3315_v40, %v12114_v42  ;;  %v3066_v32 = vmul.f32 %v12418_v59, %v2794_v60  ;;  %v7392_v15 = vpop.eup %7391  ;;  %7405 = vrsqrt.f32 %v2237_v61 }
 0x4a7   : > { %v6622_v34 = vrot.slane %v3373_v0, %v12092_v11  ;;  %v3051_v45 = vmul.f32 %v12426_v3, %v2779_v52  ;;  %v1999_v41 = vpop.xlane.xlu1 %1998  ;;  %v7394_v10 = vpop.eup %7393  ;;  %7407 = vrsqrt.f32 %v2281_v27  ;;  %v12436_v0 = vld [vmem:[#allocation197_spill] sm:$0xff] }
 0x4a8   : > { %v6337_v58 = vsel %vm3743_vm11, %v6336_v43, %v6332_v4  ;;  %v3345_v36 = vsub.f32 0.0, %v3066_v32  ;;  %v2823_v13 = vmul.f32 %v7388_v30, %v1999_v41  ;;  %v1971_v5 = vpop.xlane.xlu0 %1970  ;;  %v7396_v9 = vpop.eup %7395  ;;  %v2223_v52 = vmax.f32 %v12436_v0, 1e-16 }
 0x4a9   : > { %v6623_v48 = vsel %vm3701_vm5, %v6622_v34, %v6618_v46  ;;  %v3330_v56 = vsub.f32 0.0, %v3051_v45  ;;  %v2809_v18 = vmul.f32 %v7390_v23, %v1971_v5  ;;  %7409 = vrsqrt.f32 %v2267_v21  ;;  %v7398_v43 = vpop.eup %7397  ;;  %v12437_v45 = vld [vmem:[#allocation88_spill] sm:$0xff]  ;;  %v12438_v5 = vld [vmem:[#allocation55_spill] sm:$0xff] }
 0x4aa   : > { %v6484_v54 = vrot.slane %v3345_v36, %v12108_v29  ;;  %v3095_v11 = vmul.f32 %v12087_v47, %v2823_v13  ;;  %v12435_v47 = vld [vmem:[#allocation214_spill] sm:$0xff]  ;;  %v2268_v41 = vmax.f32 %v12437_v45, 1e-16  ;;  %vm12457_vm5 = vcmask 1045509  }
 0x4ab   : > { %v6410_v4 = vrot.slane %v3330_v56, %v12107_v33  ;;  %v3081_v24 = vmul.f32 %v12159_v49, %v2809_v18  ;;  %v1913_v1 = vpop.xlane.xlu1 %1912  ;;  %v2238_v19 = vmax.f32 %v12435_v47, 1e-16  ;;  %v7400_v13 = vpop.eup %7399  ;;  %v2253_v56 = vmax.f32 %v12438_v5, 1e-16 }
 0x4ac   : > { %v6485_v46 = vsel %vm3729_vm9, %v6484_v54, %v6480_v38  ;;  %v3374_v39 = vsub.f32 0.0, %v3095_v11  ;;  %v2780_v44 = vmul.f32 %v7392_v15, %v1913_v1  ;;  %v1883_v26 = vpop.xlane.xlu0 %1882  ;;  %v7402_v27 = vpop.eup %7401 }
 0x4ad   : > { %v6411_v8 = vsel %vm3736_vm10, %v6410_v4, %v6406_v22  ;;  %v3360_v16 = vsub.f32 0.0, %v3081_v24  ;;  %v2765_v37 = vmul.f32 %v7394_v10, %v1883_v26  ;;  %7411 = vrsqrt.f32 %v2238_v19  ;;  %v12439_v24 = vld [vmem:[#allocation213_spill] sm:$0xff]  ;;  %v12440_v26 = vld [vmem:[#allocation116_spill] sm:$0xff] }
 0x4ae   : > { %v6627_v40 = vrot.slane %v3374_v39, %v12091_v31  ;;  %v3052_v60 = vmul.f32 %v12330_v17, %v2780_v44  ;;  %7413 = vrsqrt.f32 %v2223_v52  ;;  %v2239_v1 = vmax.f32 %v12439_v24, 1e-16  ;;  %v7404_v44 = vpop.eup %7403 }
 0x4af   : > { %v6558_v38 = vrot.slane %v3360_v16, %v12100_v50  ;;  %v3037_v62 = vmul.f32 %v12307_v55, %v2765_v37  ;;  %v1973_v63 = vpop.xlane.xlu1 %1972  ;;  %7415 = vrsqrt.f32 %v2268_v41  ;;  %v2282_v16 = vmax.f32 %v12440_v26, 1e-16 }
 0x4b0   : > { %v6628_v22 = vsel %vm3708_vm6, %v6627_v40, %v6623_v48  ;;  %v3331_v32 = vsub.f32 0.0, %v3052_v60  ;;  %v2810_v30 = vmul.f32 %v7396_v9, %v1973_v63  ;;  %v1943_v25 = vpop.xlane.xlu0 %1942  ;;  %7417 = vrsqrt.f32 %v2253_v56  ;;  %vm12458_vm6 = vmmov %vm12443_vm0 }
 0x4b1   : > { %v6559_v61 = vsel %vm3722_vm8, %v6558_v38, %v6554_v35  ;;  %v3316_v31 = vsub.f32 0.0, %v3037_v62  ;;  %v2795_v34 = vmul.f32 %v7398_v43, %v1943_v25  ;;  %7419 = vrsqrt.f32 %v2239_v1  ;;  %v12441_v62 = vld [vmem:[#allocation87_spill] sm:$0xff] }
 0x4b2   : > { %v6415_v23 = vrot.slane %v3331_v32, %v12114_v42  ;;  %v3082_v36 = vmul.f32 %v12418_v59, %v2810_v30  ;;  %v2269_v63 = vmax.f32 %v12441_v62, 1e-16  ;;  %7421 = vrsqrt.f32 %v2282_v16 }
 0x4b3   : > { %v6341_v48 = vrot.slane %v3316_v31, %v12113_v12  ;;  %v3067_v18 = vmul.f32 %v12426_v3, %v2795_v34  ;;  %v1885_v53 = vpop.xlane.xlu1 %1884  ;;  %v7406_v19 = vpop.eup %7405 }
 0x4b4   : > { %v6416_v35 = vsel %vm3743_vm11, %v6415_v23, %v6411_v8  ;;  %v3361_v54 = vsub.f32 0.0, %v3082_v36  ;;  %v2766_v11 = vmul.f32 %v7400_v13, %v1885_v53  ;;  %v2001_v15 = vpop.xlane.xlu0 %2000  ;;  %v7408_v30 = vpop.eup %7407  ;;  %7423 = vrsqrt.f32 %v2269_v63 }
 0x4b5   : > { %v6342_v57 = vsel %vm3750_vm12, %v6341_v48, %v6337_v58  ;;  %v3346_v21 = vsub.f32 0.0, %v3067_v18  ;;  %v2824_v4 = vmul.f32 %v7402_v27, %v2001_v15  ;;  %v12444_v48 = vld [vmem:[#allocation59_spill] sm:$0xff] }
 0x4b6   : > { %v6563_v10 = vrot.slane %v3361_v54, %v12108_v29  ;;  %v3038_v39 = vmul.f32 %v12144_v14, %v2766_v11  ;;  %v7410_v45 = vpop.eup %7409  ;;  %v2255_v18 = vmax.f32 %v12444_v48, 1e-16  ;;  %v12445_v54 = vld [vmem:[#allocation115_spill] sm:$0xff] }
 0x4b7   : > { %v6489_v8 = vrot.slane %v3346_v21, %v12107_v33  ;;  %v3096_v37 = vmul.f32 %v12160_v7, %v2824_v4  ;;  %v1945_v47 = vpop.xlane.xlu1 %1944  ;;  %v12442_v7 = vld [vmem:[#allocation60_spill] sm:$0xff]  ;;  %v2283_v11 = vmax.f32 %v12445_v54, 1e-16 }
 0x4b8   : > { %v6564_v58 = vsel %vm3729_vm9, %v6563_v10, %v6559_v61  ;;  %v3317_v40 = vsub.f32 0.0, %v3038_v39  ;;  %v2796_v60 = vmul.f32 %v7404_v44, %v1945_v47  ;;  %v1915_v9 = vpop.xlane.xlu0 %1914  ;;  %v2254_v25 = vmax.f32 %v12442_v7, 1e-16 }
 0x4b9   : > { %v6490_v0 = vsel %vm3736_vm10, %v6489_v8, %v6485_v46  ;;  %v3375_v52 = vsub.f32 0.0, %v3096_v37  ;;  %v2781_v38 = vmul.f32 %v7406_v19, %v1915_v9  ;;  %v12447_v19 = vld [vmem:[#allocation92_spill] sm:$0xff] }
 0x4ba   : > { %v6346_v43 = vrot.slane %v3317_v40, %v12355_v51  ;;  %v3068_v32 = vmul.f32 %v12330_v17, %v2796_v60  ;;  %v7412_v27 = vpop.eup %7411  ;;  %7425 = vrsqrt.f32 %v2254_v25  ;;  %v2270_v40 = vmax.f32 %v12447_v19, 1e-16 }
 0x4bb   : > { %v6632_v61 = vrot.slane %v3375_v52, %v12102_v20  ;;  %v3053_v31 = vmul.f32 %v12307_v55, %v2781_v38  ;;  %v2003_v34 = vpop.xlane.xlu1 %2002  ;;  %v7414_v4 = vpop.eup %7413  ;;  %7427 = vrsqrt.f32 %v2255_v18 }
 0x4bc   : > { %v6347_v46 = vsel %vm12443_vm0, %v6346_v43, %v6342_v57  ;;  %v3347_v41 = vsub.f32 0.0, %v3068_v32  ;;  %v2825_v23 = vmul.f32 %v7408_v30, %v2003_v34  ;;  %v1975_v36 = vpop.xlane.xlu0 %1974  ;;  %v7416_v47 = vpop.eup %7415  ;;  %7429 = vrsqrt.f32 %v2283_v11  ;;  %v12448_v43 = vld [vmem:[#allocation119_spill] sm:$0xff] }
 0x4bd   : > { %v6633_v13 = vsel %vm3715_vm7, %v6632_v61, %v6628_v22  ;;  %v3332_v5 = vsub.f32 0.0, %v3053_v31  ;;  %v2811_v56 = vmul.f32 %v7410_v45, %v1975_v36  ;;  %v7418_v52 = vpop.eup %7417  ;;  %v2285_v32 = vmax.f32 %v12448_v43, 1e-16  ;;  %v12449_v34 = vld [vmem:[#allocation91_spill] sm:$0xff]  ;;  %vm12459_vm7 = vmmov %vm12451_vm2 }
 0x4be   : > { %v6494_v53 = vrot.slane %v3347_v41, %v12114_v42  ;;  %v3097_v20 = vmul.f32 %v12159_v49, %v2825_v23  ;;  %v12446_v49 = vld [vmem:[#allocation120_spill] sm:$0xff]  ;;  %v7420_v31 = vpop.eup %7419  ;;  %v2271_v45 = vmax.f32 %v12449_v34, 1e-16 }
 0x4bf   : > { %v6420_v15 = vrot.slane %v3332_v5, %v12113_v12  ;;  %v3083_v57 = vmul.f32 %v12426_v3, %v2811_v56  ;;  %v1917_v21 = vpop.xlane.xlu1 %1916  ;;  %v2284_v16 = vmax.f32 %v12446_v49, 1e-16 }
 0x4c0   : > { %v6495_v22 = vsel %vm3743_vm11, %v6494_v53, %v6490_v0  ;;  %v3376_v24 = vsub.f32 0.0, %v3097_v20  ;;  %v2782_v1 = vmul.f32 %v7412_v27, %v1917_v21  ;;  %v1887_v10 = vpop.xlane.xlu0 %1886  ;;  %v12452_v27 = vld [vmem:[#allocation123_spill] sm:$0xff] }
 0x4c1   : > { %v6421_v39 = vsel %vm3750_vm12, %v6420_v15, %v6416_v35  ;;  %v3362_v44 = vsub.f32 0.0, %v3083_v57  ;;  %v2767_v26 = vmul.f32 %v7414_v4, %v1887_v10  ;;  %7431 = vrsqrt.f32 %v2284_v16  ;;  %v12454_v4 = vld [vmem:[#allocation124_spill] sm:$0xff] }
 0x4c2   : > { %v6637_v8 = vrot.slane %v3376_v24, %v12100_v50  ;;  %v3054_v37 = vmul.f32 %v12144_v14, %v2782_v1  ;;  %7433 = vrsqrt.f32 %v2270_v40  ;;  %v2287_v54 = vmax.f32 %v12452_v27, 1e-16 }
 0x4c3   : > { %v6568_v60 = vrot.slane %v3362_v44, %v12107_v33  ;;  %v3039_v9 = vmul.f32 %v12115_v28, %v2767_v26  ;;  %v1977_v0 = vpop.xlane.xlu1 %1976  ;;  %7435 = vrsqrt.f32 %v2285_v32  ;;  %v2286_v24 = vmax.f32 %v12454_v4, 1e-16 }
 0x4c4   : > { %v6638_v35 = vsel %vm3722_vm8, %v6637_v8, %v6633_v13  ;;  %v3333_v38 = vsub.f32 0.0, %v3054_v37  ;;  %v2812_v62 = vmul.f32 %v7416_v47, %v1977_v0  ;;  %v1947_v63 = vpop.xlane.xlu0 %1946  ;;  %v7422_v13 = vpop.eup %7421  ;;  %7437 = vrsqrt.f32 %v2271_v45 }
 0x4c5   : > { %v6569_v50 = vsel %vm3736_vm10, %v6568_v60, %v6564_v58  ;;  %v3318_v30 = vsub.f32 0.0, %v3039_v9  ;;  %v2797_v7 = vmul.f32 %v7418_v52, %v1947_v63  ;;  %v7424_v21 = vpop.eup %7423  ;;  %7439 = vrsqrt.f32 %v2287_v54  ;;  %v12456_v63 = vld [vmem:[#allocation50_spill] sm:$0xff] }
 0x4c6   : > { %v6425_v25 = vrot.slane %v3333_v38, %v12355_v51  ;;  %v3084_v61 = vmul.f32 %v12330_v17, %v2812_v62  ;;  %7441 = vrsqrt.f32 %v2286_v24  ;;  %v6692_v43 = vand.u32 2147483647, %v12456_v63 }
 0x4c7   : > { %v6351_v41 = vrot.slane %v3318_v30, %v12117_v2  ;;  %v3069_v23 = vmul.f32 %v12307_v55, %v2797_v7  ;;  %v1919_v36 = vpop.xlane.xlu1 %1918  ;;  %vm12460_vm8 = vcmask 1046534  }
 0x4c8   : > { %v6426_v5 = vsel %vm12450_vm1, %v6425_v25, %v6421_v39  ;;  %v3363_v58 = vsub.f32 0.0, %v3084_v61  ;;  %v2783_v56 = vmul.f32 %v7420_v31, %v1919_v36  ;;  %v2005_v48 = vpop.xlane.xlu0 %2004  ;;  %v7426_v39 = vpop.eup %7425 }
 0x4c9   : > { %v6352_v18 = vsel %vm12451_vm2, %v6351_v41, %v6347_v46  ;;  %v3348_v53 = vsub.f32 0.0, %v3069_v23  ;;  %v2826_v20 = vmul.f32 %v7422_v13, %v2005_v48  ;;  %v7428_v40 = vpop.eup %7427 }
 0x4ca   : > { %v6679_v11 = vsel %vm12453_vm3, %v6352_v18, %v11142_v6  ;;  %v6573_v15 = vrot.slane %v3363_v58, %v12114_v42  ;;  %v3055_v57 = vmul.f32 %v12115_v28, %v2783_v56  ;;  %v7430_v0 = vpop.eup %7429  ;;  %v6695_v58 = vsub.f32 0.0, %v6692_v43 }
 0x4cb   : > { %v6499_v1 = vrot.slane %v3348_v53, %v12113_v12  ;;  %v3098_v10 = vmul.f32 %v12418_v59, %v2826_v20  ;;  %v1979_v46 = vpop.xlane.xlu1 %1978 }
 0x4cc   : > { %v6574_v44 = vsel %vm3743_vm11, %v6573_v15, %v6569_v50  ;;  %v3334_v26 = vsub.f32 0.0, %v3055_v57  ;;  %v2813_v49 = vmul.f32 %v7424_v21, %v1979_v46  ;;  %v1949_v16 = vpop.xlane.xlu0 %1948  ;;  %v6698_v4 = vmul.f32 1.442695, %v6695_v58 }
 0x4cd   : > { %v6500_v6 = vsel %vm3750_vm12, %v6499_v1, %v6495_v22  ;;  %v3377_v8 = vsub.f32 0.0, %v3098_v10  ;;  %v2798_v37 = vmul.f32 %v7426_v39, %v1949_v16 }
 0x4ce   : > { %v6430_v47 = vrot.slane %v3334_v26, %v12117_v2  ;;  %v3085_v19 = vmul.f32 %v12307_v55, %v2813_v49  ;;  %v7432_v61 = vpop.eup %7431  ;;  %7443 = vpow2.f32 %v6698_v4 }
 0x4cf   : > { %v6642_v59 = vrot.slane %v3377_v8, %v12108_v29  ;;  %v3070_v60 = vmul.f32 %v12144_v14, %v2798_v37  ;;  %v1951_v9 = vpop.xlane.xlu1 %1950  ;;  %v7434_v41 = vpop.eup %7433 }
 0x4d0   : > { %v6431_v52 = vsel %vm12455_vm4, %v6430_v47, %v6426_v5  ;;  %v3364_v38 = vsub.f32 0.0, %v3085_v19  ;;  %v2799_v62 = vmul.f32 %v7428_v40, %v1951_v9  ;;  %v2007_v22 = vpop.xlane.xlu0 %2006  ;;  %v7436_v18 = vpop.eup %7435 }
 0x4d1   : > { %v6680_v32 = vsel %vm12457_vm5, %v6431_v52, %v6679_v11  ;;  %v6643_v50 = vsel %vm3729_vm9, %v6642_v59, %v6638_v35  ;;  %v3349_v30 = vsub.f32 0.0, %v3070_v60  ;;  %v2827_v7 = vmul.f32 %v7430_v0, %v2007_v22  ;;  %v7438_v11 = vpop.eup %7437  ;;  %vm12461_vm9 = vmmov %vm12443_vm0 }
 0x4d2   : > { %v6578_v25 = vrot.slane %v3364_v38, %v12113_v12  ;;  %v3071_v29 = vmul.f32 %v12115_v28, %v2799_v62 }
 0x4d3   : > { %v6504_v31 = vrot.slane %v3349_v30, %v12355_v51  ;;  %v3099_v34 = vmul.f32 %v12426_v3, %v2827_v7  ;;  %v2009_v45 = vpop.xlane.xlu1 %2008 }
 0x4d4   : > { %v6579_v23 = vsel %vm3750_vm12, %v6578_v25, %v6574_v44  ;;  %v3350_v36 = vsub.f32 0.0, %v3071_v29  ;;  %v2828_v13 = vmul.f32 %v7432_v61, %v2009_v45  ;;  %v1981_v5 = vpop.xlane.xlu0 %1980  ;;  %v7440_v44 = vpop.eup %7439 }
 0x4d5   : > { %v6505_v35 = vsel %vm12458_vm6, %v6504_v31, %v6500_v6  ;;  %v3378_v56 = vsub.f32 0.0, %v3099_v34  ;;  %v2814_v48 = vmul.f32 %v7434_v41, %v1981_v5  ;;  %v7442_v6 = vpop.eup %7441 }
 0x4d6   : > { %v6509_v53 = vrot.slane %v3350_v36, %v12117_v2  ;;  %v3100_v20 = vmul.f32 %v12330_v17, %v2828_v13 }
 0x4d7   : > { %v6647_v27 = vrot.slane %v3378_v56, %v12107_v33  ;;  %v3086_v3 = vmul.f32 %v12144_v14, %v2814_v48  ;;  %v2011_v54 = vpop.xlane.xlu1 %2010 }
 0x4d8   : > { %v6510_v15 = vsel %vm12459_vm7, %v6509_v53, %v6505_v35  ;;  %v3379_v57 = vsub.f32 0.0, %v3100_v20  ;;  %v2829_v21 = vmul.f32 %v7436_v18, %v2011_v54  ;;  %v1983_v24 = vpop.xlane.xlu0 %1982 }
 0x4d9   : > { %v6681_v1 = vsel %vm12460_vm8, %v6510_v15, %v6680_v32  ;;  %v6648_v10 = vsel %vm3736_vm10, %v6647_v27, %v6643_v50  ;;  %v3365_v46 = vsub.f32 0.0, %v3086_v3  ;;  %v2815_v39 = vmul.f32 %v7438_v11, %v1983_v24  ;;  %vm12462_vm10 = vmmov %vm12451_vm2 }
 0x4da   : > { %v6652_v17 = vrot.slane %v3379_v57, %v12114_v42  ;;  %v3101_v33 = vmul.f32 %v12307_v55, %v2829_v21  ;;  %v6689_v27 = vmin.f32 %v12456_v63, 0.0  ;;  %v12466_v21 = vld [vmem:[#allocation11_spill] sm:$0xff]  ;;  %vm6741_vm2 = vcmask 1040384  }
 0x4db   : > { %v6583_v26 = vrot.slane %v3365_v46, %v12355_v51  ;;  %v3087_v49 = vmul.f32 %v12115_v28, %v2815_v39  ;;  %v2015_v16 = vpop.xlane.xlu1 %2014  ;;  %v7444_v29 = vpop.eup %7443  ;;  %vm6734_vm14 = vcmp.ge.s32.totalorder %v12466_v21, 1 }
 0x4dc   : > { %v6653_v8 = vsel %vm3743_vm11, %v6652_v17, %v6648_v10  ;;  %v3380_v37 = vsub.f32 0.0, %v3101_v33  ;;  %v2831_v47 = vmul.f32 %v7440_v44, %v2015_v16  ;;  %v2013_v19 = vpop.xlane.xlu0 %2012  ;;  %vm12463_vm11 = vcmask 1047559  }
 0x4dd   : > { %v6584_v40 = vsel %vm12461_vm9, %v6583_v26, %v6579_v23  ;;  %v3366_v59 = vsub.f32 0.0, %v3087_v49  ;;  %v2830_v60 = vmul.f32 %v7442_v6, %v2013_v19  ;;  %v6704_v34 = vadd.f32 1.0, %v7444_v29 }
 0x4de   : > { %v6657_v42 = vrot.slane %v3380_v37, %v12113_v12  ;;  %v3103_v55 = vmul.f32 %v12115_v28, %v2831_v47  ;;  %v6707_v23 = vmul.f32 -0.5, %v7444_v29  ;;  %v6710_v5 = vand.u32 2147483647, %v7444_v29 }
 0x4df   : > { %v6588_v9 = vrot.slane %v3366_v59, %v12117_v2  ;;  %v3102_v0 = vmul.f32 %v12144_v14, %v2830_v60 }
 0x4e0   : > { %v6658_v52 = vsel %vm3750_vm12, %v6657_v42, %v6653_v8  ;;  %v3382_v38 = vsub.f32 0.0, %v3103_v55  ;;  %v6708_v13 = vadd.f32 1.0, %v6707_v23  ;;  %vm6711_vm12 = vcmp.lt.f32.partialorder %v6710_v5, 0.0004427343 }
 0x4e1   : > { %v6589_v62 = vsel %vm12462_vm10, %v6588_v9, %v6584_v40  ;;  %v3381_v22 = vsub.f32 0.0, %v3102_v0 }
 0x4e2   : > { %v6682_v43 = vsel %vm12463_vm11, %v6589_v62, %v6681_v1  ;;  %v6667_v32 = vrot.slane %v3382_v38, %v12117_v2  ;;  %v6709_v56 = vmul.f32 %v7444_v29, %v6708_v13 }
 0x4e3   : > { %v6693_v50 = vand.u32 2147483647, %v6682_v43  ;;  %v6662_v30 = vrot.slane %v3381_v22, %v12355_v51  ;;  %v6690_v4 = vmin.f32 %v6682_v43, 0.0 }
 0x4e5   : > { %v6696_v12 = vsub.f32 0.0, %v6693_v50  ;;  %v6663_v28 = vsel %vm12464_vm15, %v6662_v30, %v6658_v52 }
 0x4e6   : > { %v6668_v7 = vsel %vm12465_vm13, %v6667_v32, %v6663_v28 }
 0x4e7   : > { %v6700_v25 = vmul.f32 1.442695, %v6696_v12  ;;  %v6694_v14 = vand.u32 2147483647, %v6668_v7  ;;  %v6691_v63 = vmin.f32 %v6668_v7, 0.0 }
 0x4e9   : > { %7445 = vpow2.f32 %v6700_v25  ;;  %v6697_v61 = vsub.f32 0.0, %v6694_v14 }
 0x4eb   : > { %v6702_v31 = vmul.f32 1.442695, %v6697_v61 }
 0x4ed   : > { %7447 = vpow2.f32 %v6702_v31 }
 0x4ee   : > { %7449 = vlog2.f32 %v6704_v34 }
 0x4f6   : > { %v7446_v45 = vpop.eup %7445 }
 0x4f7   : > { %v6713_v41 = vadd.f32 1.0, %v7446_v45  ;;  %v6716_v58 = vmul.f32 -0.5, %v7446_v45  ;;  %v6719_v20 = vand.u32 2147483647, %v7446_v45 }
 0x4f9   : > { %7451 = vlog2.f32 %v6713_v41  ;;  %v6717_v48 = vadd.f32 1.0, %v6716_v58  ;;  %vm6720_vm0 = vcmp.lt.f32.partialorder %v6719_v20, 0.0004427343 }
 0x4fa   : > { %v7448_v2 = vpop.eup %7447 }
 0x4fb   : > { %v6722_v51 = vadd.f32 1.0, %v7448_v2  ;;  %v7450_v36 = vpop.eup %7449  ;;  %v6725_v18 = vmul.f32 -0.5, %v7448_v2  ;;  %v6718_v15 = vmul.f32 %v7446_v45, %v6717_v48  ;;  %v6728_v24 = vand.u32 2147483647, %v7448_v2 }
 0x4fc   : > { %v6706_v35 = vmul.f32 0.6931472, %v7450_v36 }
 0x4fd   : > { %7453 = vlog2.f32 %v6722_v51  ;;  %v6726_v57 = vadd.f32 1.0, %v6725_v18  ;;  %vm6729_vm1 = vcmp.lt.f32.partialorder %v6728_v24, 0.0004427343 }
 0x4fe   : > { %v6712_v53 = vsel %vm6711_vm12, %v6709_v56, %v6706_v35 }
 0x4ff   : > { %v6731_v54 = vsub.f32 %v6689_v27, %v6712_v53  ;;  %v6727_v33 = vmul.f32 %v7448_v2, %v6726_v57 }
 0x501   : > { %v6737_v39 = vsel %vm6734_vm14, %v6731_v54, 0.0 }
 0x506   : > { %v7452_v3 = vpop.eup %7451 }
 0x507   : > { %v6715_v11 = vmul.f32 0.6931472, %v7452_v3 }
 0x509   : > { %v6721_v1 = vsel %vm6720_vm0, %v6718_v15, %v6715_v11 }
 0x50a   : > { %v7454_v10 = vpop.eup %7453  ;;  %v6732_v46 = vsub.f32 %v6690_v4, %v6721_v1 }
 0x50b   : > { %v6724_v17 = vmul.f32 0.6931472, %v7454_v10 }
 0x50c   : > { %v6740_v44 = vadd.f32 %v6737_v39, %v6732_v46 }
 0x50d   : > { %v6730_v26 = vsel %vm6729_vm1, %v6727_v33, %v6724_v17 }
 0x50e   : > { %v6733_v49 = vsub.f32 %v6691_v63, %v6730_v26 }
 0x510   : > { %v6742_v16 = vsel %vm6741_vm2, %v6733_v49, 0.0 }
 0x511   : > { %v6743_v6 = vadd.f32 %v6742_v16, %v6740_v44 }
 0x513   : > { %v6744_v8 = vrot.slane %v6743_v6, 4 }
 0x515   : > { %v6745_v37 = vadd.f32 %v6744_v8, %v6743_v6 }
 0x517   : > { %v6746_v47 = vrot.slane %v6745_v37, 2 }
 0x519   : > { %v6747_v19 = vadd.f32 %v6746_v47, %v6745_v37 }
 0x51b   : > { %v6748_v40 = vrot.slane %v6747_v19, 1 }
 0x51d   : > { %v6749_v59 = vadd.f32 %v6748_v40, %v6747_v19 }
 0x51f   : > { %v6750_v60 = vsub.f32 0.0, %v6749_v59 }
 0x521   : > { %6751 = vst [vmem:[%s158_s17] sm:$0x1] %v6750_v60 }
 0x522   : > { %7788 = shalt.err (!%p7785_p7)
}
 0x523   : > { %s7789_s4 = scalar_lea.hbm %s6763_s28, 16  ;;  %s7793_s13 = scalar_lea.hbm %s11493_s1, 32 }
 0x524   : > { %p7790_p8 = scmp.ne.s32.totalorder %s6763_s28, %s7789_s4  ;;  %p7794_p0 = scmp.lt.s32.totalorder %s6763_s28, %s11493_s1 }
 0x525   : > { %p7795_p1 = scmp.lt.s32.totalorder %s7793_s13, %s7789_s4 }
 0x526   : > { %p7791_p12 = pnand %p7790_p8, %p7906_p9 }
 0x527   : > { %p7796_p2 = por %p7795_p1, %p7794_p0 }
 0x528   : > { %p7792_p13 = pneg %p7791_p12 }
 0x52a   : > { %p7797_p11 = pnand %p7796_p2, %p7792_p13 }
 0x52c   : > { %7800 = shalt.err (!%p7797_p11)
}
 0x52d   : > { %6854 = dma.vmem_to_hbm [thread:$0]  (%p7906_p9), %s6766_s20, 16, %s6763_s28, %s6753_s29  }
 0x52e PF: > { %s6777_s22 = sand.u32 1, %s7827_s6   ;;  %p12467_p3 = scmp.ge.s32.totalorder %s7839_s9, 2 }
 0x52f   : > { %s6778_s23 = scalar_lea.sflag [#allocation4], %s6777_s22 }
 0x530   : > { %p6857_p4 = pnand %p12467_p3, %p7910_p10 }
 0x532   : > { %p6858_p5 = pneg %p6857_p4 }
 0x534   : > { %7822 = dma.done.wait (%p6858_p5), %s6778_s23, 16  }
 0x535   : > { %7824 = vsyncadd (%p6858_p5), %s6778_s23, 4294967280  ;;  %p14_p11 = scmp.ge.s32.totalorder %s7883_s12, 4   ;;  %s12468_s6 = smov %s7831_s7 }
 0x536   : > { %s12469_s7 = smov %s7835_s8  ;;  %s12470_s8 = smov %s7895_s15 }
 0x537   : > { %s12471_s9 = smov %s7883_s12  ;;  %16 = sbr.rel (!%p14_p11) target bundleno = 5 (0x5), region = 74 }
 0x53c   :  { %6782 = vsyncpa [#allocation3], 1 }
 0x53d   :  { %6784 = vsyncpa [#allocation3 + $0x1], 1 }
 0x53e   :  { %6785 = vsyncpa [#allocation4], 1 }
 0x53f   :  { %6787 = vsyncpa [#allocation4 + $0x1], 1 }

</bundles_post_ra>
